<compile_context>
chip_gen: v7x
topology: tpu7x:2x2x1
jax: 0.10.0
libtpu: 0.0.40
codegen_flags: <defaults>
</compile_context>

<pallas_src>
import functools

import jax
import jax.numpy as jnp
from jax.experimental import pallas as pl
from jax.experimental.pallas import tpu as pltpu


_VMEM_LIMIT = 48 * 1024 * 1024   # > v5e's 16 MiB scoped default, < v7x's 64 MiB


# ----------------------------- Pallas kernels ------------------------------ #

def _mm_bias_relu_kernel(a_ref, w_ref, b_ref, o_ref, acc_ref):
    """out = relu(A @ W + b).  A resident as (Kb, tm, tk); W streamed (tk, tn)."""
    k = pl.program_id(2)

    @pl.when(k == 0)
    def _():
        acc_ref[...] = jnp.zeros_like(acc_ref)

    # bf16 x bf16 -> f32 accumulate on the MXU; A's K-block picked off the
    # leading (untiled) axis of the resident activation buffer.
    acc_ref[...] += jnp.dot(a_ref[k], w_ref[...],
                            preferred_element_type=jnp.float32)

    @pl.when(k == pl.num_programs(2) - 1)
    def _():
        o_ref[...] = jnp.maximum(acc_ref[...] + b_ref[...], 0.0).astype(o_ref.dtype)


def _head_kernel(a_ref, w1_ref, b1_ref, w2_ref, b2_ref, o_ref, *, n_valid):
    """log_softmax(relu(A @ W1 + b1) @ W2 + b2, axis=-1) with lane masking."""
    h = jnp.dot(a_ref[...], w1_ref[...], preferred_element_type=jnp.float32)
    h = jnp.maximum(h + b1_ref[...], 0.0)                       # conv11 + ReLU
    z = jnp.dot(h.astype(jnp.bfloat16), w2_ref[...],
                preferred_element_type=jnp.float32)
    z = z + b2_ref[...]                                         # conv12
    col = jax.lax.broadcasted_iota(jnp.int32, z.shape, 1)
    mask = col < n_valid
    zm = jnp.where(mask, z, -jnp.inf)
    m = jnp.max(zm, axis=-1, keepdims=True)
    ex = jnp.where(mask, jnp.exp(zm - m), 0.0)
    lse = m + jnp.log(jnp.sum(ex, axis=-1, keepdims=True))
    o_ref[...] = jnp.where(mask, zm - lse, 0.0).astype(o_ref.dtype)


# ------------------------------ host wrappers ------------------------------ #

def _round_up(x, m):
    return (x + m - 1) // m * m


def _pad2d(x, rows, cols, dtype):
    out = jnp.zeros((rows, cols), dtype)
    return out.at[:x.shape[0], :x.shape[1]].set(x.astype(dtype))


def matmul_bias_relu(a, w, b, *, out_dtype=jnp.bfloat16):
    """relu(a @ w + b).  a:(M,K) w:(K,N) b:(N,).  bf16 operands, f32 accum."""
    M, K = a.shape
    N = w.shape[1]

    # --- tile selection ---
    # N: 512 tiles for the wide (2000-ch) layers, 128 for 250-ch layers so the
    # parallel j axis always has extent >= 2 (v7x has 2 TensorCores).
    tn = 512 if N >= 1024 else 128
    Np = _round_up(N, tn)
    # K: whole K in one tile when it fits, else 2048-wide reduction tiles.
    Kp = _round_up(K, 128)
    tk = Kp if Kp <= 2048 else 2048
    Kp = _round_up(K, tk)
    kb = Kp // tk
    # M: pad to 16 (bf16 sublane packing); cap tm so resident-A + accumulator
    # stay bounded on v7x (64 MiB VMEM) for large batch * L_out.
    Mp = _round_up(M, 16)
    if Mp <= 256:
        tm = Mp
    else:
        tm = 256
        Mp = _round_up(M, tm)

    a_p = _pad2d(a, Mp, Kp, jnp.bfloat16)
    a_r = a_p.reshape(Mp, kb, tk).transpose(1, 0, 2)        # (kb, Mp, tk)
    w_p = _pad2d(w, Kp, Np, jnp.bfloat16)
    b_p = _pad2d(b.reshape(1, -1), 1, Np, jnp.float32)

    out = pl.pallas_call(
        _mm_bias_relu_kernel,
        out_shape=jax.ShapeDtypeStruct((Mp, Np), out_dtype),
        grid_spec=pltpu.PrefetchScalarGridSpec(
            num_scalar_prefetch=0,
            grid=(Mp // tm, Np // tn, kb),
            in_specs=[
                pl.BlockSpec((kb, tm, tk), lambda i, j, k: (0, i, 0)),  # resident A
                pl.BlockSpec((tk, tn), lambda i, j, k: (k, j)),         # streamed W
                pl.BlockSpec((1, tn), lambda i, j, k: (0, j)),          # bias (f32)
            ],
            out_specs=pl.BlockSpec((tm, tn), lambda i, j, k: (i, j)),
            scratch_shapes=[pltpu.VMEM((tm, tn), jnp.float32)],
        ),
        compiler_params=pltpu.CompilerParams(
            dimension_semantics=("parallel", "parallel", "arbitrary"),
            vmem_limit_bytes=_VMEM_LIMIT),
    )(a_r, w_p, b_p)
    return out[:M, :N]


def head_fused(a, w1, b1, w2, b2):
    """Fused conv11(+ReLU) -> conv12 -> log_softmax over channels."""
    M, K = a.shape
    H = w1.shape[1]
    C = w2.shape[1]
    Kp = _round_up(K, 128)
    Hp = _round_up(H, 128)
    Cp = _round_up(C, 128)
    tm = 32                                   # >= 2 row blocks => 2 TCs on v7x
    Mp = _round_up(M, tm)

    a_p = _pad2d(a, Mp, Kp, jnp.bfloat16)
    w1_p = _pad2d(w1, Kp, Hp, jnp.bfloat16)
    b1_p = _pad2d(b1.reshape(1, -1), 1, Hp, jnp.float32)
    w2_p = _pad2d(w2, Hp, Cp, jnp.bfloat16)
    b2_p = _pad2d(b2.reshape(1, -1), 1, Cp, jnp.float32)

    kernel = functools.partial(_head_kernel, n_valid=C)
    out = pl.pallas_call(
        kernel,
        out_shape=jax.ShapeDtypeStruct((Mp, Cp), jnp.float32),
        grid_spec=pltpu.PrefetchScalarGridSpec(
            num_scalar_prefetch=0,
            grid=(Mp // tm,),
            in_specs=[
                pl.BlockSpec((tm, Kp), lambda i: (i, 0)),
                pl.BlockSpec((Kp, Hp), lambda i: (0, 0)),   # constant block idx:
                pl.BlockSpec((1, Hp), lambda i: (0, 0)),    # fetched once
                pl.BlockSpec((Hp, Cp), lambda i: (0, 0)),
                pl.BlockSpec((1, Cp), lambda i: (0, 0)),
            ],
            out_specs=pl.BlockSpec((tm, Cp), lambda i: (i, 0)),
        ),
        compiler_params=pltpu.CompilerParams(
            dimension_semantics=("parallel",),
            vmem_limit_bytes=_VMEM_LIMIT),
    )(a_p, w1_p, b1_p, w2_p, b2_p)
    return out[:M, :C]


def _im2col(x_nlc, ksize, stride, padding):
    """(N, L, Cin) -> (N*L_out, Cin*ksize) with (Cin major, tap minor) order."""
    # TODO(synk): tap expansion is still materialized host-side; for long
    # sequences move it into the kernel (per-tap K-blocks reading strided VMEM
    # windows) to avoid re-reading activations ksize times from HBM.
    Nb, L, Cin = x_nlc.shape
    L_out = (L + 2 * padding - ksize) // stride + 1
    x_pad = jnp.pad(x_nlc, ((0, 0), (padding, padding), (0, 0)))
    taps = [x_pad[:, t:t + stride * L_out:stride, :] for t in range(ksize)]
    patches = jnp.stack(taps, axis=-1)                    # (N, L_out, Cin, ks)
    return patches.reshape(Nb * L_out, Cin * ksize), L_out


def conv1d_relu(x_nlc, w, b, *, stride=1, padding=0):
    """x:(N,L,Cin), w:(Cout,Cin,ks) PyTorch layout, b:(Cout,) -> bf16 (N,L_out,Cout)."""
    Nb, L, Cin = x_nlc.shape
    Cout, _, ks = w.shape
    a, L_out = _im2col(x_nlc, ks, stride, padding)
    wm = w.reshape(Cout, Cin * ks).T              # (Cin*ks, Cout), matches im2col
    out = matmul_bias_relu(a, wm, b)
    return out.reshape(Nb, L_out, Cout)


# --------------------------- wav2phoneme forward ---------------------------- #

def init_params(key, base_channels):
    defs = [
        ("1", (250, base_channels, 3, 48)),
        ("2", (250, 250, 7)), ("3", (250, 250, 7)), ("4", (250, 250, 7)),
        ("5", (250, 250, 7)), ("6", (250, 250, 7)), ("7", (250, 250, 7)),
        ("8", (250, 250, 7)),
        ("9", (2000, 250, 32)),
        ("10", (2000, 2000, 1)),
        ("11", (40, 2000, 1)),
        ("12", (41, 40, 1)),
    ]
    params = {}
    for name, shp in defs:
        fan_in = 1
        for d in shp[1:]:
            fan_in *= d
        bound = 1.0 / float(fan_in) ** 0.5
        key, kw, kb = jax.random.split(key, 3)
        params[f"w{name}"] = jax.random.uniform(kw, shp, jnp.float32, -bound, bound)
        params[f"b{name}"] = jax.random.uniform(kb, (shp[0],), jnp.float32, -bound, bound)
    return params


def wav2phoneme_forward(x_nchw, params):
    """x: (N, C, 3, W) -> (N, 41, L_final) log-probabilities."""
    Nb, C, H, W = x_nchw.shape
    # conv1: Conv2d k=(3,48), stride 2, pad (0,23).  With H == 3 the output
    # height is 1 (PyTorch forward squeezes it), so (c, kh) collapse into C*3
    # flattened input channels of a stride-2 1-D conv over width.
    x = jnp.transpose(x_nchw.reshape(Nb, C * H, W), (0, 2, 1))     # (N, W, C*3)
    w1 = params["w1"].reshape(params["w1"].shape[0], C * H, 48)
    x = conv1d_relu(x, w1, params["b1"], stride=2, padding=23)
    # conv2 .. conv8: k=7, pad=3
    for i in range(2, 9):
        x = conv1d_relu(x, params[f"w{i}"], params[f"b{i}"], stride=1, padding=3)
    # conv9: 250 -> 2000, k=32, pad=15
    x = conv1d_relu(x, params["w9"], params["b9"], stride=1, padding=15)
    # conv10: 1x1 conv == channel matmul; keep output in bf16.
    Nb2, L, Cc = x.shape
    a = matmul_bias_relu(x.reshape(Nb2 * L, Cc),
                         params["w10"].reshape(params["w10"].shape[0], -1).T,
                         params["b10"])
    # conv11 + ReLU + conv12 + log_softmax fused in one Pallas kernel.
    out = head_fused(a,
                     params["w11"].reshape(params["w11"].shape[0], -1).T,
                     params["b11"],
                     params["w12"].reshape(params["w12"].shape[0], -1).T,
                     params["b12"])
    out = out.reshape(Nb2, L, out.shape[-1])
    return jnp.transpose(out, (0, 2, 1))                    # (N, 41, L_final)


# ------------------------------ pure-JAX ref -------------------------------- #

def ref_forward(x, params):
    def conv1d(x, w, b, stride, pad):
        y = jax.lax.conv_general_dilated(
            x, w, window_strides=(stride,), padding=[(pad, pad)],
            dimension_numbers=("NCH", "OIH", "NCH"))
        return y + b[None, :, None]

    y = jax.lax.conv_general_dilated(
        x, params["w1"], window_strides=(2, 2), padding=[(0, 0), (23, 23)],
        dimension_numbers=("NCHW", "OIHW", "NCHW"))
    y = jax.nn.relu(y + params["b1"][None, :, None, None])
    y = jnp.squeeze(y, axis=2)
    for i in range(2, 9):
        y = jax.nn.relu(conv1d(y, params[f"w{i}"], params[f"b{i}"], 1, 3))
    y = jax.nn.relu(conv1d(y, params["w9"], params["b9"], 1, 15))
    y = jax.nn.relu(conv1d(y, params["w10"], params["b10"], 1, 0))
    y = jax.nn.relu(conv1d(y, params["w11"], params["b11"], 1, 0))
    y = conv1d(y, params["w12"], params["b12"], 1, 0)
    return jax.nn.log_softmax(y, axis=1)


# ---------------------------------- main ------------------------------------ #

if __name__ == "__main__":
    base_channels = 4                # stand-in for project_vars.base_channels
    batch, height, width = 2, 3, 64  # height must be 3 so the squeeze(2) is valid

    key = jax.random.PRNGKey(0)
    kx, kp = jax.random.split(key)
    x = jax.random.normal(kx, (batch, base_channels, height, width), jnp.float32)
    params = init_params(kp, base_channels)

    fwd = jax.jit(wav2phoneme_forward)
    out = jax.block_until_ready(fwd(x, params))

    ref = jax.block_until_ready(ref_forward(x, params))
    assert out.shape == ref.shape, (out.shape, ref.shape)
    max_err = float(jnp.max(jnp.abs(out - ref)))
    assert max_err < 5e-2, f"max abs error vs reference too large: {max_err}"

    print("KERNEL_OK")
</pallas_src>

<mosaic_0001>
module attributes {stable_mosaic.version = 11 : i64} {
  func.func @_mm_bias_relu_kernel(%arg0: i32, %arg1: i32, %arg2: i32, %arg3: memref<1x64x640xbf16, #tpu.memory_space<vmem>>, %arg4: memref<640x128xbf16, #tpu.memory_space<vmem>>, %arg5: memref<1x128xf32, #tpu.memory_space<vmem>>, %arg6: memref<64x128xbf16, #tpu.memory_space<vmem>>, %arg7: memref<64x128xf32, #tpu.memory_space<vmem>>) attributes {dimension_semantics = [#tpu.dimension_semantics<parallel>, #tpu.dimension_semantics<parallel>, #tpu.dimension_semantics<arbitrary>], iteration_bounds = array<i64: 1, 2, 1>, scalar_prefetch = 0 : i64, scratch_operands = 1 : i64, tpu.core_type = #tpu.core_type<tc>, window_params = [{transform_indices = @transform_0, window_bounds = array<i64: 1, 64, 640>}, {transform_indices = @transform_1, window_bounds = array<i64: 640, 128>}, {transform_indices = @transform_2, window_bounds = array<i64: 1, 128>}, {transform_indices = @transform_3, window_bounds = array<i64: 64, 128>}]} {
    %c0_i32 = arith.constant 0 : i32
    %0 = arith.cmpi eq, %arg2, %c0_i32 : i32
    %1 = arith.extui %0 : i1 to i32
    %c0_i32_0 = arith.constant 0 : i32
    %2 = arith.cmpi ne, %1, %c0_i32_0 : i32
    scf.if %2 {
      %cst_10 = arith.constant 0.000000e+00 : f32
      %14 = vector.broadcast %cst_10 : f32 to vector<64x128xf32>
      %c0_11 = arith.constant 0 : index
      %c0_12 = arith.constant 0 : index
      %15 = vector.load %arg7[%c0_11, %c0_12] : memref<64x128xf32, #tpu.memory_space<vmem>>, vector<64x128xf32>
      tpu.vector_store %arg7[%c0_11, %c0_12], %14 {strides = array<i32>} : memref<64x128xf32, #tpu.memory_space<vmem>>, vector<64x128xf32>,
    } else {
    }
    %c0 = arith.constant 0 : index
    %c0_1 = arith.constant 0 : index
    %3 = vector.load %arg7[%c0, %c0_1] : memref<64x128xf32, #tpu.memory_space<vmem>>, vector<64x128xf32>
    %4 = arith.index_cast %arg2 : i32 to index
    %c0_2 = arith.constant 0 : index
    %c0_3 = arith.constant 0 : index
    %5 = vector.load %arg3[%4, %c0_2, %c0_3] : memref<1x64x640xbf16, #tpu.memory_space<vmem>>, vector<1x64x640xbf16>
    %6 = vector.shape_cast %5 : vector<1x64x640xbf16> to vector<64x640xbf16>
    %c0_4 = arith.constant 0 : index
    %c0_5 = arith.constant 0 : index
    %7 = vector.load %arg4[%c0_4, %c0_5] : memref<640x128xbf16, #tpu.memory_space<vmem>>, vector<640x128xbf16>
    %cst = arith.constant dense<0.000000e+00> : vector<64x128xf32>
    %8 = tpu.matmul %6, %7, %cst {dimension_numbers = #tpu.dot_dimension_numbers<[1], [0], [0], [1], [0, 0, 1, 1], [], []>} : vector<64x640xbf16>, vector<640x128xbf16>, vector<64x128xf32> -> vector<64x128xf32>
    %9 = arith.addf %3, %8 : vector<64x128xf32>
    %c0_6 = arith.constant 0 : index
    %c0_7 = arith.constant 0 : index
    %10 = vector.load %arg7[%c0_6, %c0_7] : memref<64x128xf32, #tpu.memory_space<vmem>>, vector<64x128xf32>
    tpu.vector_store %arg7[%c0_6, %c0_7], %9 {strides = array<i32>} : memref<64x128xf32, #tpu.memory_space<vmem>>, vector<64x128xf32>,
    %c0_i32_8 = arith.constant 0 : i32
    %11 = arith.cmpi eq, %arg2, %c0_i32_8 : i32
    %12 = arith.extui %11 : i1 to i32
    %c0_i32_9 = arith.constant 0 : i32
    %13 = arith.cmpi ne, %12, %c0_i32_9 : i32
    scf.if %13 {
      %c0_10 = arith.constant 0 : index
      %c0_11 = arith.constant 0 : index
      %14 = vector.load %arg7[%c0_10, %c0_11] : memref<64x128xf32, #tpu.memory_space<vmem>>, vector<64x128xf32>
      %c0_12 = arith.constant 0 : index
      %c0_13 = arith.constant 0 : index
      %15 = vector.load %arg5[%c0_12, %c0_13] : memref<1x128xf32, #tpu.memory_space<vmem>>, vector<1x128xf32>
      %16 = vector.broadcast %15 : vector<1x128xf32> to vector<64x128xf32>
      %17 = arith.addf %14, %16 : vector<64x128xf32>
      %cst_14 = arith.constant 0.000000e+00 : f32
      %18 = vector.broadcast %cst_14 : f32 to vector<64x128xf32>
      %19 = arith.maximumf %17, %18 : vector<64x128xf32>
      %20 = arith.truncf %19 : vector<64x128xf32> to vector<64x128xbf16>
      %c0_15 = arith.constant 0 : index
      %c0_16 = arith.constant 0 : index
      %21 = vector.load %arg6[%c0_15, %c0_16] : memref<64x128xbf16, #tpu.memory_space<vmem>>, vector<64x128xbf16>
      tpu.vector_store %arg6[%c0_15, %c0_16], %20 {strides = array<i32>} : memref<64x128xbf16, #tpu.memory_space<vmem>>, vector<64x128xbf16>,
    } else {
    }
    return
  }
  func.func @transform_0(%arg0: i32, %arg1: i32, %arg2: i32) -> (i32, i32, i32) {
    %c0_i32 = arith.constant 0 : i32
    %c0_i32_0 = arith.constant 0 : i32
    %c0_i32_1 = arith.constant 0 : i32
    return %c0_i32, %arg0, %c0_i32_0 : i32, i32, i32
  }
  func.func @transform_1(%arg0: i32, %arg1: i32, %arg2: i32) -> (i32, i32) {
    %c0_i32 = arith.constant 0 : i32
    return %arg2, %arg1 : i32, i32
  }
  func.func @transform_2(%arg0: i32, %arg1: i32, %arg2: i32) -> (i32, i32) {
    %c0_i32 = arith.constant 0 : i32
    %c0_i32_0 = arith.constant 0 : i32
    return %c0_i32, %arg1 : i32, i32
  }
  func.func @transform_3(%arg0: i32, %arg1: i32, %arg2: i32) -> (i32, i32) {
    %c0_i32 = arith.constant 0 : i32
    return %arg0, %arg1 : i32, i32
  }
}

module attributes {stable_mosaic.version = 11 : i64} {
  func.func @_mm_bias_relu_kernel(%arg0: i32, %arg1: i32, %arg2: i32, %arg3: memref<1x64x1792xbf16, #tpu.memory_space<vmem>>, %arg4: memref<1792x128xbf16, #tpu.memory_space<vmem>>, %arg5: memref<1x128xf32, #tpu.memory_space<vmem>>, %arg6: memref<64x128xbf16, #tpu.memory_space<vmem>>, %arg7: memref<64x128xf32, #tpu.memory_space<vmem>>) attributes {dimension_semantics = [#tpu.dimension_semantics<parallel>, #tpu.dimension_semantics<parallel>, #tpu.dimension_semantics<arbitrary>], iteration_bounds = array<i64: 1, 2, 1>, scalar_prefetch = 0 : i64, scratch_operands = 1 : i64, tpu.core_type = #tpu.core_type<tc>, window_params = [{transform_indices = @transform_0, window_bounds = array<i64: 1, 64, 1792>}, {transform_indices = @transform_1, window_bounds = array<i64: 1792, 128>}, {transform_indices = @transform_2, window_bounds = array<i64: 1, 128>}, {transform_indices = @transform_3, window_bounds = array<i64: 64, 128>}]} {
    %c0_i32 = arith.constant 0 : i32
    %0 = arith.cmpi eq, %arg2, %c0_i32 : i32
    %1 = arith.extui %0 : i1 to i32
    %c0_i32_0 = arith.constant 0 : i32
    %2 = arith.cmpi ne, %1, %c0_i32_0 : i32
    scf.if %2 {
      %cst_10 = arith.constant 0.000000e+00 : f32
      %14 = vector.broadcast %cst_10 : f32 to vector<64x128xf32>
      %c0_11 = arith.constant 0 : index
      %c0_12 = arith.constant 0 : index
      %15 = vector.load %arg7[%c0_11, %c0_12] : memref<64x128xf32, #tpu.memory_space<vmem>>, vector<64x128xf32>
      tpu.vector_store %arg7[%c0_11, %c0_12], %14 {strides = array<i32>} : memref<64x128xf32, #tpu.memory_space<vmem>>, vector<64x128xf32>,
    } else {
    }
    %c0 = arith.constant 0 : index
    %c0_1 = arith.constant 0 : index
    %3 = vector.load %arg7[%c0, %c0_1] : memref<64x128xf32, #tpu.memory_space<vmem>>, vector<64x128xf32>
    %4 = arith.index_cast %arg2 : i32 to index
    %c0_2 = arith.constant 0 : index
    %c0_3 = arith.constant 0 : index
    %5 = vector.load %arg3[%4, %c0_2, %c0_3] : memref<1x64x1792xbf16, #tpu.memory_space<vmem>>, vector<1x64x1792xbf16>
    %6 = vector.shape_cast %5 : vector<1x64x1792xbf16> to vector<64x1792xbf16>
    %c0_4 = arith.constant 0 : index
    %c0_5 = arith.constant 0 : index
    %7 = vector.load %arg4[%c0_4, %c0_5] : memref<1792x128xbf16, #tpu.memory_space<vmem>>, vector<1792x128xbf16>
    %cst = arith.constant dense<0.000000e+00> : vector<64x128xf32>
    %8 = tpu.matmul %6, %7, %cst {dimension_numbers = #tpu.dot_dimension_numbers<[1], [0], [0], [1], [0, 0, 1, 1], [], []>} : vector<64x1792xbf16>, vector<1792x128xbf16>, vector<64x128xf32> -> vector<64x128xf32>
    %9 = arith.addf %3, %8 : vector<64x128xf32>
    %c0_6 = arith.constant 0 : index
    %c0_7 = arith.constant 0 : index
    %10 = vector.load %arg7[%c0_6, %c0_7] : memref<64x128xf32, #tpu.memory_space<vmem>>, vector<64x128xf32>
    tpu.vector_store %arg7[%c0_6, %c0_7], %9 {strides = array<i32>} : memref<64x128xf32, #tpu.memory_space<vmem>>, vector<64x128xf32>,
    %c0_i32_8 = arith.constant 0 : i32
    %11 = arith.cmpi eq, %arg2, %c0_i32_8 : i32
    %12 = arith.extui %11 : i1 to i32
    %c0_i32_9 = arith.constant 0 : i32
    %13 = arith.cmpi ne, %12, %c0_i32_9 : i32
    scf.if %13 {
      %c0_10 = arith.constant 0 : index
      %c0_11 = arith.constant 0 : index
      %14 = vector.load %arg7[%c0_10, %c0_11] : memref<64x128xf32, #tpu.memory_space<vmem>>, vector<64x128xf32>
      %c0_12 = arith.constant 0 : index
      %c0_13 = arith.constant 0 : index
      %15 = vector.load %arg5[%c0_12, %c0_13] : memref<1x128xf32, #tpu.memory_space<vmem>>, vector<1x128xf32>
      %16 = vector.broadcast %15 : vector<1x128xf32> to vector<64x128xf32>
      %17 = arith.addf %14, %16 : vector<64x128xf32>
      %cst_14 = arith.constant 0.000000e+00 : f32
      %18 = vector.broadcast %cst_14 : f32 to vector<64x128xf32>
      %19 = arith.maximumf %17, %18 : vector<64x128xf32>
      %20 = arith.truncf %19 : vector<64x128xf32> to vector<64x128xbf16>
      %c0_15 = arith.constant 0 : index
      %c0_16 = arith.constant 0 : index
      %21 = vector.load %arg6[%c0_15, %c0_16] : memref<64x128xbf16, #tpu.memory_space<vmem>>, vector<64x128xbf16>
      tpu.vector_store %arg6[%c0_15, %c0_16], %20 {strides = array<i32>} : memref<64x128xbf16, #tpu.memory_space<vmem>>, vector<64x128xbf16>,
    } else {
    }
    return
  }
  func.func @transform_0(%arg0: i32, %arg1: i32, %arg2: i32) -> (i32, i32, i32) {
    %c0_i32 = arith.constant 0 : i32
    %c0_i32_0 = arith.constant 0 : i32
    %c0_i32_1 = arith.constant 0 : i32
    return %c0_i32, %arg0, %c0_i32_0 : i32, i32, i32
  }
  func.func @transform_1(%arg0: i32, %arg1: i32, %arg2: i32) -> (i32, i32) {
    %c0_i32 = arith.constant 0 : i32
    return %arg2, %arg1 : i32, i32
  }
  func.func @transform_2(%arg0: i32, %arg1: i32, %arg2: i32) -> (i32, i32) {
    %c0_i32 = arith.constant 0 : i32
    %c0_i32_0 = arith.constant 0 : i32
    return %c0_i32, %arg1 : i32, i32
  }
  func.func @transform_3(%arg0: i32, %arg1: i32, %arg2: i32) -> (i32, i32) {
    %c0_i32 = arith.constant 0 : i32
    return %arg0, %arg1 : i32, i32
  }
}

module attributes {stable_mosaic.version = 11 : i64} {
  func.func @_mm_bias_relu_kernel(%arg0: i32, %arg1: i32, %arg2: i32, %arg3: memref<4x64x2048xbf16, #tpu.memory_space<vmem>>, %arg4: memref<2048x512xbf16, #tpu.memory_space<vmem>>, %arg5: memref<1x512xf32, #tpu.memory_space<vmem>>, %arg6: memref<64x512xbf16, #tpu.memory_space<vmem>>, %arg7: memref<64x512xf32, #tpu.memory_space<vmem>>) attributes {dimension_semantics = [#tpu.dimension_semantics<parallel>, #tpu.dimension_semantics<parallel>, #tpu.dimension_semantics<arbitrary>], iteration_bounds = array<i64: 1, 4, 4>, scalar_prefetch = 0 : i64, scratch_operands = 1 : i64, tpu.core_type = #tpu.core_type<tc>, window_params = [{transform_indices = @transform_0, window_bounds = array<i64: 4, 64, 2048>}, {transform_indices = @transform_1, window_bounds = array<i64: 2048, 512>}, {transform_indices = @transform_2, window_bounds = array<i64: 1, 512>}, {transform_indices = @transform_3, window_bounds = array<i64: 64, 512>}]} {
    %c0_i32 = arith.constant 0 : i32
    %0 = arith.cmpi eq, %arg2, %c0_i32 : i32
    %1 = arith.extui %0 : i1 to i32
    %c0_i32_0 = arith.constant 0 : i32
    %2 = arith.cmpi ne, %1, %c0_i32_0 : i32
    scf.if %2 {
      %cst_9 = arith.constant 0.000000e+00 : f32
      %14 = vector.broadcast %cst_9 : f32 to vector<64x512xf32>
      %c0_10 = arith.constant 0 : index
      %c0_11 = arith.constant 0 : index
      %15 = vector.load %arg7[%c0_10, %c0_11] : memref<64x512xf32, #tpu.memory_space<vmem>>, vector<64x512xf32>
      tpu.vector_store %arg7[%c0_10, %c0_11], %14 {strides = array<i32>} : memref<64x512xf32, #tpu.memory_space<vmem>>, vector<64x512xf32>,
    } else {
    }
    %c0 = arith.constant 0 : index
    %c0_1 = arith.constant 0 : index
    %3 = vector.load %arg7[%c0, %c0_1] : memref<64x512xf32, #tpu.memory_space<vmem>>, vector<64x512xf32>
    %4 = arith.index_cast %arg2 : i32 to index
    %c0_2 = arith.constant 0 : index
    %c0_3 = arith.constant 0 : index
    %5 = vector.load %arg3[%4, %c0_2, %c0_3] : memref<4x64x2048xbf16, #tpu.memory_space<vmem>>, vector<1x64x2048xbf16>
    %6 = vector.shape_cast %5 : vector<1x64x2048xbf16> to vector<64x2048xbf16>
    %c0_4 = arith.constant 0 : index
    %c0_5 = arith.constant 0 : index
    %7 = vector.load %arg4[%c0_4, %c0_5] : memref<2048x512xbf16, #tpu.memory_space<vmem>>, vector<2048x512xbf16>
    %cst = arith.constant dense<0.000000e+00> : vector<64x512xf32>
    %8 = tpu.matmul %6, %7, %cst {dimension_numbers = #tpu.dot_dimension_numbers<[1], [0], [0], [1], [0, 0, 1, 1], [], []>} : vector<64x2048xbf16>, vector<2048x512xbf16>, vector<64x512xf32> -> vector<64x512xf32>
    %9 = arith.addf %3, %8 : vector<64x512xf32>
    %c0_6 = arith.constant 0 : index
    %c0_7 = arith.constant 0 : index
    %10 = vector.load %arg7[%c0_6, %c0_7] : memref<64x512xf32, #tpu.memory_space<vmem>>, vector<64x512xf32>
    tpu.vector_store %arg7[%c0_6, %c0_7], %9 {strides = array<i32>} : memref<64x512xf32, #tpu.memory_space<vmem>>, vector<64x512xf32>,
    %c3_i32 = arith.constant 3 : i32
    %11 = arith.cmpi eq, %arg2, %c3_i32 : i32
    %12 = arith.extui %11 : i1 to i32
    %c0_i32_8 = arith.constant 0 : i32
    %13 = arith.cmpi ne, %12, %c0_i32_8 : i32
    scf.if %13 {
      %c0_9 = arith.constant 0 : index
      %c0_10 = arith.constant 0 : index
      %14 = vector.load %arg7[%c0_9, %c0_10] : memref<64x512xf32, #tpu.memory_space<vmem>>, vector<64x512xf32>
      %c0_11 = arith.constant 0 : index
      %c0_12 = arith.constant 0 : index
      %15 = vector.load %arg5[%c0_11, %c0_12] : memref<1x512xf32, #tpu.memory_space<vmem>>, vector<1x512xf32>
      %16 = vector.broadcast %15 : vector<1x512xf32> to vector<64x512xf32>
      %17 = arith.addf %14, %16 : vector<64x512xf32>
      %cst_13 = arith.constant 0.000000e+00 : f32
      %18 = vector.broadcast %cst_13 : f32 to vector<64x512xf32>
      %19 = arith.maximumf %17, %18 : vector<64x512xf32>
      %20 = arith.truncf %19 : vector<64x512xf32> to vector<64x512xbf16>
      %c0_14 = arith.constant 0 : index
      %c0_15 = arith.constant 0 : index
      %21 = vector.load %arg6[%c0_14, %c0_15] : memref<64x512xbf16, #tpu.memory_space<vmem>>, vector<64x512xbf16>
      tpu.vector_store %arg6[%c0_14, %c0_15], %20 {strides = array<i32>} : memref<64x512xbf16, #tpu.memory_space<vmem>>, vector<64x512xbf16>,
    } else {
    }
    return
  }
  func.func @transform_0(%arg0: i32, %arg1: i32, %arg2: i32) -> (i32, i32, i32) {
    %c0_i32 = arith.constant 0 : i32
    %c0_i32_0 = arith.constant 0 : i32
    %c0_i32_1 = arith.constant 0 : i32
    return %c0_i32, %arg0, %c0_i32_0 : i32, i32, i32
  }
  func.func @transform_1(%arg0: i32, %arg1: i32, %arg2: i32) -> (i32, i32) {
    %c0_i32 = arith.constant 0 : i32
    return %arg2, %arg1 : i32, i32
  }
  func.func @transform_2(%arg0: i32, %arg1: i32, %arg2: i32) -> (i32, i32) {
    %c0_i32 = arith.constant 0 : i32
    %c0_i32_0 = arith.constant 0 : i32
    return %c0_i32, %arg1 : i32, i32
  }
  func.func @transform_3(%arg0: i32, %arg1: i32, %arg2: i32) -> (i32, i32) {
    %c0_i32 = arith.constant 0 : i32
    return %arg0, %arg1 : i32, i32
  }
}

module attributes {stable_mosaic.version = 11 : i64} {
  func.func @_mm_bias_relu_kernel(%arg0: i32, %arg1: i32, %arg2: i32, %arg3: memref<1x64x2048xbf16, #tpu.memory_space<vmem>>, %arg4: memref<2048x512xbf16, #tpu.memory_space<vmem>>, %arg5: memref<1x512xf32, #tpu.memory_space<vmem>>, %arg6: memref<64x512xbf16, #tpu.memory_space<vmem>>, %arg7: memref<64x512xf32, #tpu.memory_space<vmem>>) attributes {dimension_semantics = [#tpu.dimension_semantics<parallel>, #tpu.dimension_semantics<parallel>, #tpu.dimension_semantics<arbitrary>], iteration_bounds = array<i64: 1, 4, 1>, scalar_prefetch = 0 : i64, scratch_operands = 1 : i64, tpu.core_type = #tpu.core_type<tc>, window_params = [{transform_indices = @transform_0, window_bounds = array<i64: 1, 64, 2048>}, {transform_indices = @transform_1, window_bounds = array<i64: 2048, 512>}, {transform_indices = @transform_2, window_bounds = array<i64: 1, 512>}, {transform_indices = @transform_3, window_bounds = array<i64: 64, 512>}]} {
    %c0_i32 = arith.constant 0 : i32
    %0 = arith.cmpi eq, %arg2, %c0_i32 : i32
    %1 = arith.extui %0 : i1 to i32
    %c0_i32_0 = arith.constant 0 : i32
    %2 = arith.cmpi ne, %1, %c0_i32_0 : i32
    scf.if %2 {
      %cst_10 = arith.constant 0.000000e+00 : f32
      %14 = vector.broadcast %cst_10 : f32 to vector<64x512xf32>
      %c0_11 = arith.constant 0 : index
      %c0_12 = arith.constant 0 : index
      %15 = vector.load %arg7[%c0_11, %c0_12] : memref<64x512xf32, #tpu.memory_space<vmem>>, vector<64x512xf32>
      tpu.vector_store %arg7[%c0_11, %c0_12], %14 {strides = array<i32>} : memref<64x512xf32, #tpu.memory_space<vmem>>, vector<64x512xf32>,
    } else {
    }
    %c0 = arith.constant 0 : index
    %c0_1 = arith.constant 0 : index
    %3 = vector.load %arg7[%c0, %c0_1] : memref<64x512xf32, #tpu.memory_space<vmem>>, vector<64x512xf32>
    %4 = arith.index_cast %arg2 : i32 to index
    %c0_2 = arith.constant 0 : index
    %c0_3 = arith.constant 0 : index
    %5 = vector.load %arg3[%4, %c0_2, %c0_3] : memref<1x64x2048xbf16, #tpu.memory_space<vmem>>, vector<1x64x2048xbf16>
    %6 = vector.shape_cast %5 : vector<1x64x2048xbf16> to vector<64x2048xbf16>
    %c0_4 = arith.constant 0 : index
    %c0_5 = arith.constant 0 : index
    %7 = vector.load %arg4[%c0_4, %c0_5] : memref<2048x512xbf16, #tpu.memory_space<vmem>>, vector<2048x512xbf16>
    %cst = arith.constant dense<0.000000e+00> : vector<64x512xf32>
    %8 = tpu.matmul %6, %7, %cst {dimension_numbers = #tpu.dot_dimension_numbers<[1], [0], [0], [1], [0, 0, 1, 1], [], []>} : vector<64x2048xbf16>, vector<2048x512xbf16>, vector<64x512xf32> -> vector<64x512xf32>
    %9 = arith.addf %3, %8 : vector<64x512xf32>
    %c0_6 = arith.constant 0 : index
    %c0_7 = arith.constant 0 : index
    %10 = vector.load %arg7[%c0_6, %c0_7] : memref<64x512xf32, #tpu.memory_space<vmem>>, vector<64x512xf32>
    tpu.vector_store %arg7[%c0_6, %c0_7], %9 {strides = array<i32>} : memref<64x512xf32, #tpu.memory_space<vmem>>, vector<64x512xf32>,
    %c0_i32_8 = arith.constant 0 : i32
    %11 = arith.cmpi eq, %arg2, %c0_i32_8 : i32
    %12 = arith.extui %11 : i1 to i32
    %c0_i32_9 = arith.constant 0 : i32
    %13 = arith.cmpi ne, %12, %c0_i32_9 : i32
    scf.if %13 {
      %c0_10 = arith.constant 0 : index
      %c0_11 = arith.constant 0 : index
      %14 = vector.load %arg7[%c0_10, %c0_11] : memref<64x512xf32, #tpu.memory_space<vmem>>, vector<64x512xf32>
      %c0_12 = arith.constant 0 : index
      %c0_13 = arith.constant 0 : index
      %15 = vector.load %arg5[%c0_12, %c0_13] : memref<1x512xf32, #tpu.memory_space<vmem>>, vector<1x512xf32>
      %16 = vector.broadcast %15 : vector<1x512xf32> to vector<64x512xf32>
      %17 = arith.addf %14, %16 : vector<64x512xf32>
      %cst_14 = arith.constant 0.000000e+00 : f32
      %18 = vector.broadcast %cst_14 : f32 to vector<64x512xf32>
      %19 = arith.maximumf %17, %18 : vector<64x512xf32>
      %20 = arith.truncf %19 : vector<64x512xf32> to vector<64x512xbf16>
      %c0_15 = arith.constant 0 : index
      %c0_16 = arith.constant 0 : index
      %21 = vector.load %arg6[%c0_15, %c0_16] : memref<64x512xbf16, #tpu.memory_space<vmem>>, vector<64x512xbf16>
      tpu.vector_store %arg6[%c0_15, %c0_16], %20 {strides = array<i32>} : memref<64x512xbf16, #tpu.memory_space<vmem>>, vector<64x512xbf16>,
    } else {
    }
    return
  }
  func.func @transform_0(%arg0: i32, %arg1: i32, %arg2: i32) -> (i32, i32, i32) {
    %c0_i32 = arith.constant 0 : i32
    %c0_i32_0 = arith.constant 0 : i32
    %c0_i32_1 = arith.constant 0 : i32
    return %c0_i32, %arg0, %c0_i32_0 : i32, i32, i32
  }
  func.func @transform_1(%arg0: i32, %arg1: i32, %arg2: i32) -> (i32, i32) {
    %c0_i32 = arith.constant 0 : i32
    return %arg2, %arg1 : i32, i32
  }
  func.func @transform_2(%arg0: i32, %arg1: i32, %arg2: i32) -> (i32, i32) {
    %c0_i32 = arith.constant 0 : i32
    %c0_i32_0 = arith.constant 0 : i32
    return %c0_i32, %arg1 : i32, i32
  }
  func.func @transform_3(%arg0: i32, %arg1: i32, %arg2: i32) -> (i32, i32) {
    %c0_i32 = arith.constant 0 : i32
    return %arg0, %arg1 : i32, i32
  }
}

module attributes {stable_mosaic.version = 11 : i64} {
  func.func @_head_kernel(%arg0: i32, %arg1: memref<32x2048xbf16, #tpu.memory_space<vmem>>, %arg2: memref<2048x128xbf16, #tpu.memory_space<vmem>>, %arg3: memref<1x128xf32, #tpu.memory_space<vmem>>, %arg4: memref<128x128xbf16, #tpu.memory_space<vmem>>, %arg5: memref<1x128xf32, #tpu.memory_space<vmem>>, %arg6: memref<32x128xf32, #tpu.memory_space<vmem>>) attributes {dimension_semantics = [#tpu.dimension_semantics<parallel>], iteration_bounds = array<i64: 2>, scalar_prefetch = 0 : i64, scratch_operands = 0 : i64, tpu.core_type = #tpu.core_type<tc>, window_params = [{transform_indices = @transform_0, window_bounds = array<i64: 32, 2048>}, {pipeline_mode = #tpu.pipeline_mode<synchronous>, transform_indices = @transform_1, window_bounds = array<i64: 2048, 128>}, {pipeline_mode = #tpu.pipeline_mode<synchronous>, transform_indices = @transform_2, window_bounds = array<i64: 1, 128>}, {pipeline_mode = #tpu.pipeline_mode<synchronous>, transform_indices = @transform_3, window_bounds = array<i64: 128, 128>}, {pipeline_mode = #tpu.pipeline_mode<synchronous>, transform_indices = @transform_4, window_bounds = array<i64: 1, 128>}, {transform_indices = @transform_5, window_bounds = array<i64: 32, 128>}]} {
    %c0 = arith.constant 0 : index
    %c0_0 = arith.constant 0 : index
    %0 = vector.load %arg1[%c0, %c0_0] : memref<32x2048xbf16, #tpu.memory_space<vmem>>, vector<32x2048xbf16>
    %c0_1 = arith.constant 0 : index
    %c0_2 = arith.constant 0 : index
    %1 = vector.load %arg2[%c0_1, %c0_2] : memref<2048x128xbf16, #tpu.memory_space<vmem>>, vector<2048x128xbf16>
    %cst = arith.constant dense<0.000000e+00> : vector<32x128xf32>
    %2 = tpu.matmul %0, %1, %cst {dimension_numbers = #tpu.dot_dimension_numbers<[1], [0], [0], [1], [0, 0, 1, 1], [], []>} : vector<32x2048xbf16>, vector<2048x128xbf16>, vector<32x128xf32> -> vector<32x128xf32>
    %c0_3 = arith.constant 0 : index
    %c0_4 = arith.constant 0 : index
    %3 = vector.load %arg3[%c0_3, %c0_4] : memref<1x128xf32, #tpu.memory_space<vmem>>, vector<1x128xf32>
    %4 = vector.broadcast %3 : vector<1x128xf32> to vector<32x128xf32>
    %5 = arith.addf %2, %4 : vector<32x128xf32>
    %cst_5 = arith.constant 0.000000e+00 : f32
    %6 = vector.broadcast %cst_5 : f32 to vector<32x128xf32>
    %7 = arith.maximumf %5, %6 : vector<32x128xf32>
    %8 = arith.truncf %7 : vector<32x128xf32> to vector<32x128xbf16>
    %c0_6 = arith.constant 0 : index
    %c0_7 = arith.constant 0 : index
    %9 = vector.load %arg4[%c0_6, %c0_7] : memref<128x128xbf16, #tpu.memory_space<vmem>>, vector<128x128xbf16>
    %cst_8 = arith.constant dense<0.000000e+00> : vector<32x128xf32>
    %10 = tpu.matmul %8, %9, %cst_8 {dimension_numbers = #tpu.dot_dimension_numbers<[1], [0], [0], [1], [0, 0, 1, 1], [], []>} : vector<32x128xbf16>, vector<128x128xbf16>, vector<32x128xf32> -> vector<32x128xf32>
    %c0_9 = arith.constant 0 : index
    %c0_10 = arith.constant 0 : index
    %11 = vector.load %arg5[%c0_9, %c0_10] : memref<1x128xf32, #tpu.memory_space<vmem>>, vector<1x128xf32>
    %12 = vector.broadcast %11 : vector<1x128xf32> to vector<32x128xf32>
    %13 = arith.addf %10, %12 : vector<32x128xf32>
    %14 = tpu.iota {dimensions = array<i32: 1>} : vector<32x128xi32>
    %c41_i32 = arith.constant 41 : i32
    %15 = vector.broadcast %c41_i32 : i32 to vector<32x128xi32>
    %16 = arith.cmpi slt, %14, %15 : vector<32x128xi32>
    %cst_11 = arith.constant 0xFF800000 : f32
    %17 = vector.broadcast %cst_11 : f32 to vector<32x128xf32>
    %18 = arith.select %16, %13, %17 : vector<32x128xi1>, vector<32x128xf32>
    %cst_12 = arith.constant dense<0xFF800000> : vector<32xf32>
    %19 = vector.multi_reduction <maximumf>, %18, %cst_12 [1] : vector<32x128xf32> to vector<32xf32>
    %20 = vector.shape_cast %19 : vector<32xf32> to vector<32x1xf32>
    %21 = vector.broadcast %20 : vector<32x1xf32> to vector<32x128xf32>
    %22 = arith.subf %18, %21 : vector<32x128xf32>
    %23 = math.exp %22 : vector<32x128xf32>
    %cst_13 = arith.constant 0.000000e+00 : f32
    %24 = vector.broadcast %cst_13 : f32 to vector<32x128xf32>
    %25 = arith.select %16, %23, %24 : vector<32x128xi1>, vector<32x128xf32>
    %cst_14 = arith.constant dense<0.000000e+00> : vector<32xf32>
    %26 = vector.multi_reduction <add>, %25, %cst_14 [1] : vector<32x128xf32> to vector<32xf32>
    %27 = vector.shape_cast %26 : vector<32xf32> to vector<32x1xf32>
    %28 = math.log %27 : vector<32x1xf32>
    %29 = arith.addf %20, %28 : vector<32x1xf32>
    %30 = vector.broadcast %29 : vector<32x1xf32> to vector<32x128xf32>
    %31 = arith.subf %18, %30 : vector<32x128xf32>
    %cst_15 = arith.constant 0.000000e+00 : f32
    %32 = vector.broadcast %cst_15 : f32 to vector<32x128xf32>
    %33 = arith.select %16, %31, %32 : vector<32x128xi1>, vector<32x128xf32>
    %c0_16 = arith.constant 0 : index
    %c0_17 = arith.constant 0 : index
    %34 = vector.load %arg6[%c0_16, %c0_17] : memref<32x128xf32, #tpu.memory_space<vmem>>, vector<32x128xf32>
    tpu.vector_store %arg6[%c0_16, %c0_17], %33 {strides = array<i32>} : memref<32x128xf32, #tpu.memory_space<vmem>>, vector<32x128xf32>,
    return
  }
  func.func @transform_0(%arg0: i32) -> (i32, i32) {
    %c0_i32 = arith.constant 0 : i32
    %c0_i32_0 = arith.constant 0 : i32
    return %arg0, %c0_i32 : i32, i32
  }
  func.func @transform_1(%arg0: i32) -> (i32, i32) {
    %c0_i32 = arith.constant 0 : i32
    %c0_i32_0 = arith.constant 0 : i32
    %c0_i32_1 = arith.constant 0 : i32
    return %c0_i32, %c0_i32_0 : i32, i32
  }
  func.func @transform_2(%arg0: i32) -> (i32, i32) {
    %c0_i32 = arith.constant 0 : i32
    %c0_i32_0 = arith.constant 0 : i32
    %c0_i32_1 = arith.constant 0 : i32
    return %c0_i32, %c0_i32_0 : i32, i32
  }
  func.func @transform_3(%arg0: i32) -> (i32, i32) {
    %c0_i32 = arith.constant 0 : i32
    %c0_i32_0 = arith.constant 0 : i32
    %c0_i32_1 = arith.constant 0 : i32
    return %c0_i32, %c0_i32_0 : i32, i32
  }
  func.func @transform_4(%arg0: i32) -> (i32, i32) {
    %c0_i32 = arith.constant 0 : i32
    %c0_i32_0 = arith.constant 0 : i32
    %c0_i32_1 = arith.constant 0 : i32
    return %c0_i32, %c0_i32_0 : i32, i32
  }
  func.func @transform_5(%arg0: i32) -> (i32, i32) {
    %c0_i32 = arith.constant 0 : i32
    %c0_i32_0 = arith.constant 0 : i32
    return %arg0, %c0_i32 : i32, i32
  }
}

</mosaic_0001>

<bundles_post_ra>
// kernel: wav2phoneme_forward.11
= control target key start
LH: loop header
LB: loop body
LE: loop exit
PB: predicated region body
PF: predicated region fallthrough
CT: control target
= control target key end

     0   :  { %s1937_s12 = smov 0   ;;  %s1939_s13 = smov 0   ;;  %s2287_s0 = inlined_call_operand.vmem [shape: bf16[1,64,640], index: 0, kind: input, shape index: {}]   ;;  %s2288_s1 = inlined_call_operand.vmem [shape: bf16[640,256], index: 1, kind: input, shape index: {}]   ;;  %s2289_s2 = inlined_call_operand.vmem [shape: f32[1,256], index: 2, kind: input, shape index: {}]   ;;  %s2290_s3 = inlined_call_operand.vmem [shape: bf16[64,256], index: 3, kind: output, shape index: {}]  }
   0x1   :  { %s1941_s14 = smov 0   ;;  %s1943_s15 = smov 0  }
   0x2   :  { %s1945_s16 = smov 0  }
   0x3 LB: > { %s28_s17 = sadd.s32 1, %s1911_s15  ;;  %s1523_s18 = sadd.s32 4294967295, %s1915_s16   ;;  %s1915_s16 = sphi %s1945_s16, %s13_s16   ;;  %s1911_s15 = sphi %s1943_s15, %s2295_s15   ;;  %s1907_s14 = sphi %s1941_s14, %s2294_s14   ;;  %s1903_s13 = sphi %s1939_s13, %s2293_s13   ;;  %s1899_s12 = sphi %s1937_s12, %s2292_s12  }
   0x4   : > { %p30_p0 = scmp.ge.s32.totalorder %s28_s17, 2  ;;  %p74_p1 = scmp.ne.s32.totalorder %s1903_s13, %s1899_s12 }
   0x5   : > { %p75_p2 = scmp.eq.s32.totalorder %s1915_s16, 0  ;;  %p132_p4 = scmp.eq.s32.totalorder %s1523_s18, 1 }
   0x6   : > { %s2297_s17 = smov (%p30_p0, %s28_s17), 0  ;;  %s67_s20 = sadd.s32 1, %s1903_s13 }
   0x7   : > { %p76_p3 = por %p75_p2, %p74_p1  ;;  %s63_s19 = ssub.s32 %s1911_s15, %s2297_s17 }
   0x8   : > { %p65_p5 = scmp.eq.s32.totalorder %s63_s19, 0  ;;  %p1972_p6 = por %p132_p4, %p74_p1 }
   0x9   : > { %p1527_p7 = scmp.ge.s32.totalorder %s1915_s16, 2 }
   0xa   : > { %s1977_s22 = scalar_select %p65_p5, %s1903_s13, %s67_s20  }
   0xb   : > { %164 = sbr.rel (%p1527_p7) target bundleno = 75 (0x4b), region = 20 }
  0x12   : > { %167 = sbr.rel (!%p76_p3) target bundleno = 75 (0x4b), region = 24  ;;  %s169_s23 = sand.u32 (%p76_p3), 1, %s1903_s13  }
  0x13   : > { %s1528_s24 = sshll.u32 (%p76_p3), %s1911_s15, 2  ;;  %s1767_s25 = smul.u32 (%p76_p3), 320, %s169_s23 }
  0x14   : > { %s1985_s28 = scalar_lea.vmem (%p76_p3), %s2288_s1, %s1528_s24 }
  0x15   : > { %v192_v0 = vld [vmem:[%s1985_s28] sm:$0xf] (%p76_p3)  ;;  %v194_v1 = vld [vmem:[%s1985_s28 + $0x8] sm:$0xf] (%p76_p3)  ;;  %v196_v2 = vld [vmem:[%s1985_s28 + $0x10] sm:$0xf] (%p76_p3) }
  0x16   : > { %v198_v3 = vld [vmem:[%s1985_s28 + $0x18] sm:$0xf] (%p76_p3)  ;;  %v200_v4 = vld [vmem:[%s1985_s28 + $0x20] sm:$0xf] (%p76_p3)  ;;  %s1992_s29 = scalar_lea.vmem (%p76_p3), [#allocation3], %s1767_s25 }
  0x17   : > { %193 = vst [vmem:[%s1992_s29] sm:$0xf] (%p76_p3), %v192_v0  ;;  %195 = vst [vmem:[%s1992_s29 + $0x4] sm:$0xf] (%p76_p3), %v194_v1  ;;  %v202_v5 = vld [vmem:[%s1985_s28 + $0x28] sm:$0xf] (%p76_p3) }
  0x18   : > { %197 = vst [vmem:[%s1992_s29 + $0x8] sm:$0xf] (%p76_p3), %v196_v2  ;;  %199 = vst [vmem:[%s1992_s29 + $0xc] sm:$0xf] (%p76_p3), %v198_v3  ;;  %v204_v6 = vld [vmem:[%s1985_s28 + $0x30] sm:$0xf] (%p76_p3) }
  0x19   : > { %201 = vst [vmem:[%s1992_s29 + $0x10] sm:$0xf] %v200_v4  ;;  %v206_v7 = vld [vmem:[%s1985_s28 + $0x38] sm:$0xf]  ;;  %203 = vst [vmem:[%s1992_s29 + $0x14] sm:$0xf] %v202_v5 }
  0x1a   : > { %205 = vst [vmem:[%s1992_s29 + $0x18] sm:$0xf] %v204_v6  ;;  %207 = vst [vmem:[%s1992_s29 + $0x1c] sm:$0xf] %v206_v7  ;;  %v208_v8 = vld [vmem:[%s1985_s28 + $0x40] sm:$0xf] }
  0x1b   : > { %v210_v9 = vld [vmem:[%s1985_s28 + $0x48] sm:$0xf]  ;;  %v212_v10 = vld [vmem:[%s1985_s28 + $0x50] sm:$0xf]  ;;  %209 = vst [vmem:[%s1992_s29 + $0x20] sm:$0xf] %v208_v8 }
  0x1c   : > { %211 = vst [vmem:[%s1992_s29 + $0x24] sm:$0xf] %v210_v9  ;;  %213 = vst [vmem:[%s1992_s29 + $0x28] sm:$0xf] %v212_v10  ;;  %v214_v11 = vld [vmem:[%s1985_s28 + $0x58] sm:$0xf] }
  0x1d   : > { %v216_v12 = vld [vmem:[%s1985_s28 + $0x60] sm:$0xf]  ;;  %v218_v13 = vld [vmem:[%s1985_s28 + $0x68] sm:$0xf]  ;;  %215 = vst [vmem:[%s1992_s29 + $0x2c] sm:$0xf] %v214_v11 }
  0x1e   : > { %217 = vst [vmem:[%s1992_s29 + $0x30] sm:$0xf] %v216_v12  ;;  %219 = vst [vmem:[%s1992_s29 + $0x34] sm:$0xf] %v218_v13  ;;  %v220_v14 = vld [vmem:[%s1985_s28 + $0x70] sm:$0xf] }
  0x1f   : > { %v222_v15 = vld [vmem:[%s1985_s28 + $0x78] sm:$0xf]  ;;  %v224_v16 = vld [vmem:[%s1985_s28 + $0x80] sm:$0xf]  ;;  %221 = vst [vmem:[%s1992_s29 + $0x38] sm:$0xf] %v220_v14 }
  0x20   : > { %223 = vst [vmem:[%s1992_s29 + $0x3c] sm:$0xf] %v222_v15  ;;  %225 = vst [vmem:[%s1992_s29 + $0x40] sm:$0xf] %v224_v16  ;;  %v226_v17 = vld [vmem:[%s1985_s28 + $0x88] sm:$0xf] }
  0x21   : > { %v228_v18 = vld [vmem:[%s1985_s28 + $0x90] sm:$0xf]  ;;  %v230_v19 = vld [vmem:[%s1985_s28 + $0x98] sm:$0xf]  ;;  %227 = vst [vmem:[%s1992_s29 + $0x44] sm:$0xf] %v226_v17 }
  0x22   : > { %229 = vst [vmem:[%s1992_s29 + $0x48] sm:$0xf] %v228_v18  ;;  %231 = vst [vmem:[%s1992_s29 + $0x4c] sm:$0xf] %v230_v19  ;;  %v232_v20 = vld [vmem:[%s1985_s28 + $0xa0] sm:$0xf] }
  0x23   : > { %v234_v21 = vld [vmem:[%s1985_s28 + $0xa8] sm:$0xf]  ;;  %v236_v22 = vld [vmem:[%s1985_s28 + $0xb0] sm:$0xf]  ;;  %233 = vst [vmem:[%s1992_s29 + $0x50] sm:$0xf] %v232_v20 }
  0x24   : > { %235 = vst [vmem:[%s1992_s29 + $0x54] sm:$0xf] %v234_v21  ;;  %237 = vst [vmem:[%s1992_s29 + $0x58] sm:$0xf] %v236_v22  ;;  %v238_v23 = vld [vmem:[%s1985_s28 + $0xb8] sm:$0xf] }
  0x25   : > { %v240_v24 = vld [vmem:[%s1985_s28 + $0xc0] sm:$0xf]  ;;  %v242_v25 = vld [vmem:[%s1985_s28 + $0xc8] sm:$0xf]  ;;  %239 = vst [vmem:[%s1992_s29 + $0x5c] sm:$0xf] %v238_v23 }
  0x26   : > { %241 = vst [vmem:[%s1992_s29 + $0x60] sm:$0xf] %v240_v24  ;;  %243 = vst [vmem:[%s1992_s29 + $0x64] sm:$0xf] %v242_v25  ;;  %v244_v26 = vld [vmem:[%s1985_s28 + $0xd0] sm:$0xf] }
  0x27   : > { %v246_v27 = vld [vmem:[%s1985_s28 + $0xd8] sm:$0xf]  ;;  %v248_v28 = vld [vmem:[%s1985_s28 + $0xe0] sm:$0xf]  ;;  %245 = vst [vmem:[%s1992_s29 + $0x68] sm:$0xf] %v244_v26 }
  0x28   : > { %247 = vst [vmem:[%s1992_s29 + $0x6c] sm:$0xf] %v246_v27  ;;  %249 = vst [vmem:[%s1992_s29 + $0x70] sm:$0xf] %v248_v28  ;;  %v250_v29 = vld [vmem:[%s1985_s28 + $0xe8] sm:$0xf] }
  0x29   : > { %v252_v30 = vld [vmem:[%s1985_s28 + $0xf0] sm:$0xf]  ;;  %v254_v31 = vld [vmem:[%s1985_s28 + $0xf8] sm:$0xf]  ;;  %251 = vst [vmem:[%s1992_s29 + $0x74] sm:$0xf] %v250_v29 }
  0x2a   : > { %253 = vst [vmem:[%s1992_s29 + $0x78] sm:$0xf] %v252_v30  ;;  %255 = vst [vmem:[%s1992_s29 + $0x7c] sm:$0xf] %v254_v31  ;;  %v256_v32 = vld [vmem:[%s1985_s28 + $0x100] sm:$0xf] }
  0x2b   : > { %v258_v33 = vld [vmem:[%s1985_s28 + $0x108] sm:$0xf]  ;;  %v260_v34 = vld [vmem:[%s1985_s28 + $0x110] sm:$0xf]  ;;  %257 = vst [vmem:[%s1992_s29 + $0x80] sm:$0xf] %v256_v32 }
  0x2c   : > { %259 = vst [vmem:[%s1992_s29 + $0x84] sm:$0xf] %v258_v33  ;;  %261 = vst [vmem:[%s1992_s29 + $0x88] sm:$0xf] %v260_v34  ;;  %v262_v35 = vld [vmem:[%s1985_s28 + $0x118] sm:$0xf] }
  0x2d   : > { %v264_v36 = vld [vmem:[%s1985_s28 + $0x120] sm:$0xf]  ;;  %v266_v37 = vld [vmem:[%s1985_s28 + $0x128] sm:$0xf]  ;;  %263 = vst [vmem:[%s1992_s29 + $0x8c] sm:$0xf] %v262_v35 }
  0x2e   : > { %265 = vst [vmem:[%s1992_s29 + $0x90] sm:$0xf] %v264_v36  ;;  %267 = vst [vmem:[%s1992_s29 + $0x94] sm:$0xf] %v266_v37  ;;  %v268_v38 = vld [vmem:[%s1985_s28 + $0x130] sm:$0xf] }
  0x2f   : > { %v270_v39 = vld [vmem:[%s1985_s28 + $0x138] sm:$0xf]  ;;  %v272_v40 = vld [vmem:[%s1985_s28 + $0x140] sm:$0xf]  ;;  %269 = vst [vmem:[%s1992_s29 + $0x98] sm:$0xf] %v268_v38 }
  0x30   : > { %271 = vst [vmem:[%s1992_s29 + $0x9c] sm:$0xf] %v270_v39  ;;  %273 = vst [vmem:[%s1992_s29 + $0xa0] sm:$0xf] %v272_v40  ;;  %v274_v41 = vld [vmem:[%s1985_s28 + $0x148] sm:$0xf] }
  0x31   : > { %v276_v42 = vld [vmem:[%s1985_s28 + $0x150] sm:$0xf]  ;;  %v278_v43 = vld [vmem:[%s1985_s28 + $0x158] sm:$0xf]  ;;  %275 = vst [vmem:[%s1992_s29 + $0xa4] sm:$0xf] %v274_v41 }
  0x32   : > { %277 = vst [vmem:[%s1992_s29 + $0xa8] sm:$0xf] %v276_v42  ;;  %279 = vst [vmem:[%s1992_s29 + $0xac] sm:$0xf] %v278_v43  ;;  %v280_v44 = vld [vmem:[%s1985_s28 + $0x160] sm:$0xf] }
  0x33   : > { %v282_v45 = vld [vmem:[%s1985_s28 + $0x168] sm:$0xf]  ;;  %v284_v46 = vld [vmem:[%s1985_s28 + $0x170] sm:$0xf]  ;;  %281 = vst [vmem:[%s1992_s29 + $0xb0] sm:$0xf] %v280_v44 }
  0x34   : > { %283 = vst [vmem:[%s1992_s29 + $0xb4] sm:$0xf] %v282_v45  ;;  %285 = vst [vmem:[%s1992_s29 + $0xb8] sm:$0xf] %v284_v46  ;;  %v286_v47 = vld [vmem:[%s1985_s28 + $0x178] sm:$0xf] }
  0x35   : > { %v288_v48 = vld [vmem:[%s1985_s28 + $0x180] sm:$0xf]  ;;  %v290_v49 = vld [vmem:[%s1985_s28 + $0x188] sm:$0xf]  ;;  %287 = vst [vmem:[%s1992_s29 + $0xbc] sm:$0xf] %v286_v47 }
  0x36   : > { %289 = vst [vmem:[%s1992_s29 + $0xc0] sm:$0xf] %v288_v48  ;;  %291 = vst [vmem:[%s1992_s29 + $0xc4] sm:$0xf] %v290_v49  ;;  %v292_v50 = vld [vmem:[%s1985_s28 + $0x190] sm:$0xf] }
  0x37   : > { %v294_v51 = vld [vmem:[%s1985_s28 + $0x198] sm:$0xf]  ;;  %v296_v52 = vld [vmem:[%s1985_s28 + $0x1a0] sm:$0xf]  ;;  %293 = vst [vmem:[%s1992_s29 + $0xc8] sm:$0xf] %v292_v50 }
  0x38   : > { %295 = vst [vmem:[%s1992_s29 + $0xcc] sm:$0xf] %v294_v51  ;;  %297 = vst [vmem:[%s1992_s29 + $0xd0] sm:$0xf] %v296_v52  ;;  %v298_v53 = vld [vmem:[%s1985_s28 + $0x1a8] sm:$0xf] }
  0x39   : > { %v300_v54 = vld [vmem:[%s1985_s28 + $0x1b0] sm:$0xf]  ;;  %v302_v55 = vld [vmem:[%s1985_s28 + $0x1b8] sm:$0xf]  ;;  %299 = vst [vmem:[%s1992_s29 + $0xd4] sm:$0xf] %v298_v53 }
  0x3a   : > { %301 = vst [vmem:[%s1992_s29 + $0xd8] sm:$0xf] %v300_v54  ;;  %303 = vst [vmem:[%s1992_s29 + $0xdc] sm:$0xf] %v302_v55  ;;  %v304_v56 = vld [vmem:[%s1985_s28 + $0x1c0] sm:$0xf] }
  0x3b   : > { %v306_v57 = vld [vmem:[%s1985_s28 + $0x1c8] sm:$0xf]  ;;  %v308_v58 = vld [vmem:[%s1985_s28 + $0x1d0] sm:$0xf]  ;;  %305 = vst [vmem:[%s1992_s29 + $0xe0] sm:$0xf] %v304_v56 }
  0x3c   : > { %307 = vst [vmem:[%s1992_s29 + $0xe4] sm:$0xf] %v306_v57  ;;  %309 = vst [vmem:[%s1992_s29 + $0xe8] sm:$0xf] %v308_v58  ;;  %v310_v59 = vld [vmem:[%s1985_s28 + $0x1d8] sm:$0xf] }
  0x3d   : > { %v312_v60 = vld [vmem:[%s1985_s28 + $0x1e0] sm:$0xf]  ;;  %v314_v61 = vld [vmem:[%s1985_s28 + $0x1e8] sm:$0xf]  ;;  %311 = vst [vmem:[%s1992_s29 + $0xec] sm:$0xf] %v310_v59 }
  0x3e   : > { %313 = vst [vmem:[%s1992_s29 + $0xf0] sm:$0xf] %v312_v60  ;;  %315 = vst [vmem:[%s1992_s29 + $0xf4] sm:$0xf] %v314_v61  ;;  %v316_v62 = vld [vmem:[%s1985_s28 + $0x1f0] sm:$0xf] }
  0x3f   : > { %v318_v63 = vld [vmem:[%s1985_s28 + $0x1f8] sm:$0xf]  ;;  %v320_v0 = vld [vmem:[%s1985_s28 + $0x200] sm:$0xf]  ;;  %317 = vst [vmem:[%s1992_s29 + $0xf8] sm:$0xf] %v316_v62 }
  0x40   : > { %319 = vst [vmem:[%s1992_s29 + $0xfc] sm:$0xf] %v318_v63  ;;  %321 = vst [vmem:[%s1992_s29 + $0x100] sm:$0xf] %v320_v0  ;;  %v322_v1 = vld [vmem:[%s1985_s28 + $0x208] sm:$0xf] }
  0x41   : > { %v324_v2 = vld [vmem:[%s1985_s28 + $0x210] sm:$0xf]  ;;  %v326_v3 = vld [vmem:[%s1985_s28 + $0x218] sm:$0xf]  ;;  %323 = vst [vmem:[%s1992_s29 + $0x104] sm:$0xf] %v322_v1 }
  0x42   : > { %325 = vst [vmem:[%s1992_s29 + $0x108] sm:$0xf] %v324_v2  ;;  %327 = vst [vmem:[%s1992_s29 + $0x10c] sm:$0xf] %v326_v3  ;;  %v328_v4 = vld [vmem:[%s1985_s28 + $0x220] sm:$0xf] }
  0x43   : > { %v330_v5 = vld [vmem:[%s1985_s28 + $0x228] sm:$0xf]  ;;  %v332_v6 = vld [vmem:[%s1985_s28 + $0x230] sm:$0xf]  ;;  %329 = vst [vmem:[%s1992_s29 + $0x110] sm:$0xf] %v328_v4 }
  0x44   : > { %331 = vst [vmem:[%s1992_s29 + $0x114] sm:$0xf] %v330_v5  ;;  %333 = vst [vmem:[%s1992_s29 + $0x118] sm:$0xf] %v332_v6  ;;  %v334_v7 = vld [vmem:[%s1985_s28 + $0x238] sm:$0xf] }
  0x45   : > { %v336_v8 = vld [vmem:[%s1985_s28 + $0x240] sm:$0xf]  ;;  %v338_v9 = vld [vmem:[%s1985_s28 + $0x248] sm:$0xf]  ;;  %335 = vst [vmem:[%s1992_s29 + $0x11c] sm:$0xf] %v334_v7 }
  0x46   : > { %337 = vst [vmem:[%s1992_s29 + $0x120] sm:$0xf] %v336_v8  ;;  %339 = vst [vmem:[%s1992_s29 + $0x124] sm:$0xf] %v338_v9  ;;  %v340_v10 = vld [vmem:[%s1985_s28 + $0x250] sm:$0xf] }
  0x47   : > { %v342_v11 = vld [vmem:[%s1985_s28 + $0x258] sm:$0xf]  ;;  %v344_v12 = vld [vmem:[%s1985_s28 + $0x260] sm:$0xf]  ;;  %341 = vst [vmem:[%s1992_s29 + $0x128] sm:$0xf] %v340_v10 }
  0x48   : > { %343 = vst [vmem:[%s1992_s29 + $0x12c] sm:$0xf] %v342_v11  ;;  %345 = vst [vmem:[%s1992_s29 + $0x130] sm:$0xf] %v344_v12  ;;  %v346_v13 = vld [vmem:[%s1985_s28 + $0x268] sm:$0xf] }
  0x49   : > { %v348_v14 = vld [vmem:[%s1985_s28 + $0x270] sm:$0xf]  ;;  %v350_v15 = vld [vmem:[%s1985_s28 + $0x278] sm:$0xf]  ;;  %347 = vst [vmem:[%s1992_s29 + $0x134] sm:$0xf] %v346_v13 }
  0x4a   : > { %349 = vst [vmem:[%s1992_s29 + $0x138] sm:$0xf] %v348_v14  ;;  %351 = vst [vmem:[%s1992_s29 + $0x13c] sm:$0xf] %v350_v15 }
  0x4b PF: > { %p1529_p8 = scmp.ge.s32.totalorder %s1915_s16, 1  ;;  %p539_p9 = scmp.lt.s32.totalorder %s1915_s16, 3 }
  0x4d   : > { %p540_p10 = pnand %p1529_p8, %p539_p9 }
  0x4e   : > { %s546_s30 = sand.u32 (!%p540_p10), 1, %s1899_s12   ;;  %v1843_v16 = vld [vmem:[%s2287_s0 + $0x4] ss:$20 sps:$4 sm:$0xff] (!%p540_p10)   ;;  %v1846_v17 = vld [vmem:[%s2287_s0 + $0xc] ss:$20 sps:$4 sm:$0xff] (!%p540_p10)   ;;  %p585_p11 = scmp.lt.s32.totalorder (!%p540_p10), %s1907_s14, 1 }
  0x4f   : > { %543 = sbr.rel (%p540_p10) target bundleno = 384 (0x180), region = 69  ;;  %1093 = vmatprep.mubr.bf16.mxu0 (!%p540_p10), %v1843_v16  ;;  %1158 = vmatprep.mubr.bf16.mxu1 (!%p540_p10), %v1846_v17  ;;  %v1841_v48 = vld [vmem:[%s2287_s0] ss:$20 sps:$4 sm:$0xff] (!%p540_p10)   ;;  %v1844_v50 = vld [vmem:[%s2287_s0 + $0x8] ss:$20 sps:$4 sm:$0xff] (!%p540_p10)   ;;  %s1530_s23 = sshll.u32 (!%p540_p10), %s546_s30, 5 }
  0x50   : > { %s1768_s4 = smul.u32 (!%p540_p10), 320, %s546_s30  ;;  %v1849_v54 = vld [vmem:[%s2287_s0 + $0x2c] ss:$20 sps:$4 sm:$0xff] (!%p540_p10)   ;;  %v1851_v55 = vld [vmem:[%s2287_s0 + $0x34] ss:$20 sps:$4 sm:$0xff] (!%p540_p10)   ;;  %s576_s24 = scalar_lea.vmem (!%p540_p10), [#allocation4], %s1530_s23 }
  0x51   : > { %v1853_v57 = vld [vmem:[%s2287_s0 + $0x28] ss:$20 sps:$4 sm:$0xff] (!%p540_p10)   ;;  %v1854_v58 = vld [vmem:[%s2287_s0 + $0x30] ss:$20 sps:$4 sm:$0xff] (!%p540_p10)   ;;  %v1862_v0 = vld [vmem:[%s2287_s0 + $0x58] ss:$20 sps:$4 sm:$0xff] (!%p540_p10)  }
  0x52   : > { %s2160_s9 = scalar_lea.vmem (!%p540_p10), [#allocation3], %s1768_s4  ;;  %v1857_v60 = vld [vmem:[%s2287_s0 + $0x54] ss:$20 sps:$4 sm:$0xff] (!%p540_p10)   ;;  %v1859_v61 = vld [vmem:[%s2287_s0 + $0x5c] ss:$20 sps:$4 sm:$0xff] (!%p540_p10)  }
  0x53   : > { %v1809_v18 = vld [vmem:[%s2160_s9 + $0x40] sm:$0xff] (!%p540_p10)   ;;  %v1813_v22 = vld [vmem:[%s2160_s9 + $0x48] sm:$0xff] (!%p540_p10)   ;;  %v1817_v26 = vld [vmem:[%s2160_s9 + $0x50] sm:$0xff] (!%p540_p10)  }
  0x54   : > { %v1810_v19 = vld [vmem:[%s2160_s9 + $0xc0] sm:$0xff] (!%p540_p10)   ;;  %1635 = vmatprep.subr.bf16.mxu0 (!%p540_p10), %v1809_v18  ;;  %v1814_v23 = vld [vmem:[%s2160_s9 + $0xc8] sm:$0xff] (!%p540_p10)   ;;  %v1818_v27 = vld [vmem:[%s2160_s9 + $0xd0] sm:$0xff] (!%p540_p10)  }
  0x55   : > { %v1811_v20 = vld [vmem:[%s2160_s9] sm:$0xff] (!%p540_p10)   ;;  %1675 = vmatprep.subr.bf16.mxu1 (!%p540_p10), %v1810_v19  ;;  %v1815_v24 = vld [vmem:[%s2160_s9 + $0x8] sm:$0xff] (!%p540_p10)   ;;  %v1819_v28 = vld [vmem:[%s2160_s9 + $0x10] sm:$0xff] (!%p540_p10)  }
  0x56   : > { %v1812_v21 = vld [vmem:[%s2160_s9 + $0x80] sm:$0xff]   ;;  %1636 = vmatpush3.bf16.msra.mxu0 %v1811_v20  ;;  %v1816_v25 = vld [vmem:[%s2160_s9 + $0x88] sm:$0xff]   ;;  %v1820_v29 = vld [vmem:[%s2160_s9 + $0x90] sm:$0xff]   ;;  %s586_s11 = scalar_select %p585_p11, %s1907_s14, 1 }
  0x57   : > { %1676 = vmatpush3.bf16.msra.mxu1 %v1812_v21  ;;  %1637 = vmatprep.subr.bf16.mxu0 %v1813_v22  ;;  %v1821_v30 = vld [vmem:[%s2160_s9 + $0x58] sm:$0xff]   ;;  %v1825_v34 = vld [vmem:[%s2160_s9 + $0x60] sm:$0xff]   ;;  %v1829_v38 = vld [vmem:[%s2160_s9 + $0x68] sm:$0xff]   ;;  %s1601_s12 = sshll.u32 (%p1972_p6), %s1907_s14, 2 }
  0x58   : > { %1677 = vmatprep.subr.bf16.mxu1 %v1814_v23  ;;  %v1822_v31 = vld [vmem:[%s2160_s9 + $0xd8] sm:$0xff]   ;;  %v1826_v35 = vld [vmem:[%s2160_s9 + $0xe0] sm:$0xff]   ;;  %v1830_v39 = vld [vmem:[%s2160_s9 + $0xe8] sm:$0xff]   ;;  %s587_s20 = scalar_lea.vmem %s2289_s2, %s586_s11  ;;  %s1357_s26 = scalar_lea.vmem (%p1972_p6), %s2290_s3, %s1601_s12 }
  0x59   : > { %v1823_v32 = vld [vmem:[%s2160_s9 + $0x18] sm:$0xff]   ;;  %v1827_v36 = vld [vmem:[%s2160_s9 + $0x20] sm:$0xff]   ;;  %v1831_v40 = vld [vmem:[%s2160_s9 + $0x28] sm:$0xff]  }
  0x5a   : > { %1638 = vmatpush3.bf16.msra.mxu0 %v1815_v24  ;;  %v1824_v33 = vld [vmem:[%s2160_s9 + $0x98] sm:$0xff]   ;;  %v1828_v37 = vld [vmem:[%s2160_s9 + $0xa0] sm:$0xff]   ;;  %v1832_v41 = vld [vmem:[%s2160_s9 + $0xa8] sm:$0xff]  }
  0x5b   : > { %1678 = vmatpush3.bf16.msra.mxu1 %v1816_v25  ;;  %1639 = vmatprep.subr.bf16.mxu0 %v1817_v26  ;;  %v1833_v42 = vld [vmem:[%s2160_s9 + $0x70] sm:$0xff]   ;;  %v1837_v46 = vld [vmem:[%s2160_s9 + $0x78] sm:$0xff]   ;;  %v1847_v52 = vld [vmem:[%s2160_s9 + $0x100] sm:$0xff]  }
  0x5c   : > { %1679 = vmatprep.subr.bf16.mxu1 %v1818_v27  ;;  %v1834_v43 = vld [vmem:[%s2160_s9 + $0xf0] sm:$0xff]   ;;  %v1838_v47 = vld [vmem:[%s2160_s9 + $0xf8] sm:$0xff]   ;;  %v1848_v53 = vld [vmem:[%s2160_s9 + $0x108] sm:$0xff]  }
  0x5d   : > { %v1835_v44 = vld [vmem:[%s2160_s9 + $0x30] sm:$0xff]   ;;  %v1839_v49 = vld [vmem:[%s2160_s9 + $0x38] sm:$0xff]   ;;  %v1863_v62 = vld [vmem:[%s2160_s9 + $0x120] sm:$0xff]  }
  0x5e   : > { %1640 = vmatpush3.bf16.msra.mxu0 %v1819_v28  ;;  %v1836_v45 = vld [vmem:[%s2160_s9 + $0xb0] sm:$0xff]   ;;  %v1840_v51 = vld [vmem:[%s2160_s9 + $0xb8] sm:$0xff]   ;;  %v1864_v1 = vld [vmem:[%s2160_s9 + $0x128] sm:$0xff]  }
  0x5f   : > { %1680 = vmatpush3.bf16.msra.mxu1 %v1820_v29  ;;  %1641 = vmatprep.subr.bf16.mxu0 %v1821_v30  ;;  %v1855_v56 = vld [vmem:[%s2160_s9 + $0x110] sm:$0xff]   ;;  %v1856_v59 = vld [vmem:[%s2160_s9 + $0x118] sm:$0xff]  }
  0x60   : > { %1681 = vmatprep.subr.bf16.mxu1 %v1822_v31  ;;  %v1861_v63 = vld [vmem:[%s2287_s0 + $0x50] ss:$20 sps:$4 sm:$0xff]   ;;  %v1869_v5 = vld [vmem:[%s2287_s0 + $0x78] ss:$20 sps:$4 sm:$0xff]   ;;  %v1870_v6 = vld [vmem:[%s2287_s0 + $0x80] ss:$20 sps:$4 sm:$0xff]  }
  0x61   : > { %v1865_v2 = vld [vmem:[%s2287_s0 + $0x7c] ss:$20 sps:$4 sm:$0xff]   ;;  %v1867_v3 = vld [vmem:[%s2287_s0 + $0x84] ss:$20 sps:$4 sm:$0xff]   ;;  %v1874_v9 = vld [vmem:[%s2287_s0 + $0x60] ss:$20 sps:$4 sm:$0xff]  }
  0x62   : > { %1642 = vmatpush3.bf16.msra.mxu0 %v1823_v32  ;;  %v1871_v4 = vld [vmem:[%s2160_s9 + $0x130] sm:$0xff]   ;;  %v1872_v7 = vld [vmem:[%s2160_s9 + $0x138] sm:$0xff]  }
  0x63   : > { %1682 = vmatpush3.bf16.msra.mxu1 %v1824_v33  ;;  %1643 = vmatprep.subr.bf16.mxu0 %v1825_v34  ;;  %v1873_v8 = vld [vmem:[%s2287_s0 + $0x10] ss:$20 sps:$4 sm:$0xff]   ;;  %v1875_v10 = vld [vmem:[%s2287_s0 + $0x38] ss:$20 sps:$4 sm:$0xff]   ;;  %v1876_v11 = vld [vmem:[%s2287_s0 + $0x88] ss:$20 sps:$4 sm:$0xff]  }
  0x64   : > { %1683 = vmatprep.subr.bf16.mxu1 %v1826_v35 }
  0x66   : > { %1644 = vmatpush3.bf16.msra.mxu0 %v1827_v36 }
  0x67   : > { %1684 = vmatpush3.bf16.msra.mxu1 %v1828_v37  ;;  %1645 = vmatprep.subr.bf16.mxu0 %v1829_v38 }
  0x68   : > { %1685 = vmatprep.subr.bf16.mxu1 %v1830_v39 }
  0x6a   : > { %1646 = vmatpush3.bf16.msra.mxu0 %v1831_v40 }
  0x6b   : > { %1686 = vmatpush3.bf16.msra.mxu1 %v1832_v41  ;;  %1647 = vmatprep.subr.bf16.mxu0 %v1833_v42 }
  0x6c   : > { %1687 = vmatprep.subr.bf16.mxu1 %v1834_v43 }
  0x6e   : > { %1648 = vmatpush3.bf16.msra.mxu0 %v1835_v44 }
  0x6f   : > { %1688 = vmatpush3.bf16.msra.mxu1 %v1836_v45  ;;  %1649 = vmatprep.subr.bf16.mxu0 %v1837_v46 }
  0x70   : > { %1689 = vmatprep.subr.bf16.mxu1 %v1838_v47 }
  0x72   : > { %1650 = vmatpush3.bf16.msra.mxu0 %v1839_v49 }
  0x73   : > { %1690 = vmatpush3.bf16.msra.mxu1 %v1840_v51  ;;  %1727 = vmatprep.subr.bf16.mxu0 %v1847_v52 }
  0x74   : > { %1751 = vmatprep.subr.bf16.mxu1 %v1847_v52 }
  0x75   : > { %1094 = vmatmul.mubr.bf16.vlgmr.msra.gmra.mrb[0].mxu0 %v1841_v48 }
  0x76   : > { %1159 = vmatmul.mubr.bf16.vlgmr.msra.gmra.mrb[0].mxu1 %v1844_v50  ;;  %1728 = vmatpush3.bf16.msra.mxu0 %v1847_v52 }
  0x77   : > { %1759 = vmatpush3.bf16.msra.mxu1 %v1847_v52  ;;  %1729 = vmatprep.subr.bf16.mxu0 %v1848_v53 }
  0x78   : > { %1752 = vmatprep.subr.bf16.mxu1 %v1848_v53  ;;  %1101 = vmatprep.mubr.bf16.mxu0 %v1849_v54 }
  0x79   : > { %1166 = vmatprep.mubr.bf16.mxu1 %v1851_v55 }
  0x7a   : > { %1730 = vmatpush3.bf16.msra.mxu0 %v1848_v53 }
  0x7b   : > { %1760 = vmatpush3.bf16.msra.mxu1 %v1848_v53  ;;  %1731 = vmatprep.subr.bf16.mxu0 %v1855_v56 }
  0x7c   : > { %1753 = vmatprep.subr.bf16.mxu1 %v1855_v56 }
  0x7d   : > { %1102 = vmatmul.mubr.bf16.gmra.mrb[4].mxu0 %v1853_v57 }
  0x7e   : > { %1167 = vmatmul.mubr.bf16.gmra.mrb[4].mxu1 %v1854_v58  ;;  %1732 = vmatpush3.bf16.msra.mxu0 %v1855_v56 }
  0x7f   : > { %1761 = vmatpush3.bf16.msra.mxu1 %v1855_v56  ;;  %1733 = vmatprep.subr.bf16.mxu0 %v1856_v59 }
  0x80   : > { %1754 = vmatprep.subr.bf16.mxu1 %v1856_v59  ;;  %1109 = vmatprep.mubr.bf16.mxu0 %v1857_v60 }
  0x81   : > { %1174 = vmatprep.mubr.bf16.mxu1 %v1859_v61 }
  0x82   : > { %1734 = vmatpush3.bf16.msra.mxu0 %v1856_v59 }
  0x83   : > { %1762 = vmatpush3.bf16.msra.mxu1 %v1856_v59  ;;  %1735 = vmatprep.subr.bf16.mxu0 %v1863_v62 }
  0x84   : > { %1755 = vmatprep.subr.bf16.mxu1 %v1863_v62 }
  0x85   : > { %1110 = vmatmul.mubr.bf16.gmra.mrb[8].mxu0 %v1861_v63 }
  0x86   : > { %1175 = vmatmul.mubr.bf16.gmra.mrb[8].mxu1 %v1862_v0  ;;  %1736 = vmatpush3.bf16.msra.mxu0 %v1863_v62 }
  0x87   : > { %1763 = vmatpush3.bf16.msra.mxu1 %v1863_v62  ;;  %1737 = vmatprep.subr.bf16.mxu0 %v1864_v1 }
  0x88   : > { %1756 = vmatprep.subr.bf16.mxu1 %v1864_v1  ;;  %1117 = vmatprep.mubr.bf16.mxu0 %v1865_v2 }
  0x89   : > { %1182 = vmatprep.mubr.bf16.mxu1 %v1867_v3 }
  0x8a   : > { %1738 = vmatpush3.bf16.msra.mxu0 %v1864_v1 }
  0x8b   : > { %1764 = vmatpush3.bf16.msra.mxu1 %v1864_v1  ;;  %1739 = vmatprep.subr.bf16.mxu0 %v1871_v4 }
  0x8c   : > { %1757 = vmatprep.subr.bf16.mxu1 %v1871_v4 }
  0x8d   : > { %1118 = vmatmul.mubr.bf16.gmra.mrb[12].mxu0 %v1869_v5  ;;  %v1591_v5 = vld [vmem:[%s587_s20] ss:$0 sm:$0xff] }
  0x8e   : > { %1183 = vmatmul.mubr.bf16.gmra.mrb[12].mxu1 %v1870_v6  ;;  %1740 = vmatpush3.bf16.msra.mxu0 %v1871_v4 }
  0x8f   : > { %1765 = vmatpush3.bf16.msra.mxu1 %v1871_v4  ;;  %1741 = vmatprep.subr.bf16.mxu0 %v1872_v7 }
  0x90   : > { %1758 = vmatprep.subr.bf16.mxu1 %v1872_v7  ;;  %1743 = vmatprep.mubr.bf16.mxu0 %v1873_v8 }
  0x91   : > { %1747 = vmatprep.mubr.bf16.mxu1 %v1874_v9 }
  0x92   : > { %1742 = vmatpush3.bf16.msra.mxu0 %v1872_v7 }
  0x93   : > { %1766 = vmatpush3.bf16.msra.mxu1 %v1872_v7 }
  0x95   : > { %1744 = vmatmul.mubr.bf16.vlgmr.msra.gmra.mrb[16].mxu0 %v1875_v10 }
  0x96   : > { %1748 = vmatmul.mubr.bf16.vlgmr.msra.gmra.mrb[16].mxu1 %v1876_v11 }
 0x148   : > { %v1651_v12 = vpop.f32.mrb[0].mxu0 }
 0x149   : > { %v1691_v13 = vpop.f32.mrb[0].mxu1  ;;  %v1652_v14 = vpop.f32.mrb[1].mxu0 }
 0x14a   : > { %v1653_v15 = vadd.f32 %v1652_v14, %v1651_v12  ;;  %v1692_v16 = vpop.f32.mrb[1].mxu1  ;;  %v1654_v17 = vpop.f32.mrb[2].mxu0 }
 0x14b   : > { %v1693_v18 = vadd.f32 %v1692_v16, %v1691_v13  ;;  %v1694_v19 = vpop.f32.mrb[2].mxu1  ;;  %v1655_v20 = vpop.f32.mrb[3].mxu0 }
 0x14c   : > { %v1656_v21 = vadd.f32 %v1655_v20, %v1654_v17  ;;  %v1695_v22 = vpop.f32.mrb[3].mxu1 }
 0x14d   : > { %v1696_v23 = vadd.f32 %v1695_v22, %v1694_v19  ;;  %v1161_v24 = vadd.f32 %v1693_v18, %v1653_v15 }
 0x14f   : > { %v2256_v25 = vadd.f32 %v1696_v23, %v1656_v21 }
 0x150   : > { %v1657_v26 = vpop.f32.mrb[4].mxu0 }
 0x151   : > { %v1697_v27 = vpop.f32.mrb[4].mxu1  ;;  %v1658_v28 = vpop.f32.mrb[5].mxu0 }
 0x152   : > { %v1659_v29 = vadd.f32 %v1658_v28, %v1657_v26  ;;  %v1698_v30 = vpop.f32.mrb[5].mxu1  ;;  %v1660_v31 = vpop.f32.mrb[6].mxu0 }
 0x153   : > { %v1699_v32 = vadd.f32 %v1698_v30, %v1697_v27  ;;  %v1700_v33 = vpop.f32.mrb[6].mxu1  ;;  %v1661_v34 = vpop.f32.mrb[7].mxu0 }
 0x154   : > { %v1662_v35 = vadd.f32 %v1661_v34, %v1660_v31  ;;  %v1701_v36 = vpop.f32.mrb[7].mxu1 }
 0x155   : > { %v1702_v37 = vadd.f32 %v1701_v36, %v1700_v33  ;;  %v1169_v38 = vadd.f32 %v1699_v32, %v1659_v29 }
 0x157   : > { %v1172_v39 = vadd.f32 %v1702_v37, %v1662_v35 }
 0x158   : > { %v1663_v40 = vpop.f32.mrb[8].mxu0 }
 0x159   : > { %v1703_v41 = vpop.f32.mrb[8].mxu1  ;;  %v1664_v42 = vpop.f32.mrb[9].mxu0 }
 0x15a   : > { %v1665_v43 = vadd.f32 %v1664_v42, %v1663_v40  ;;  %v1704_v44 = vpop.f32.mrb[9].mxu1  ;;  %v1666_v45 = vpop.f32.mrb[10].mxu0 }
 0x15b   : > { %v1705_v46 = vadd.f32 %v1704_v44, %v1703_v41  ;;  %v1706_v47 = vpop.f32.mrb[10].mxu1  ;;  %v1667_v48 = vpop.f32.mrb[11].mxu0 }
 0x15c   : > { %v1668_v49 = vadd.f32 %v1667_v48, %v1666_v45  ;;  %v1707_v50 = vpop.f32.mrb[11].mxu1 }
 0x15d   : > { %v1708_v51 = vadd.f32 %v1707_v50, %v1706_v47  ;;  %v1177_v52 = vadd.f32 %v1705_v46, %v1665_v43 }
 0x15f   : > { %v1180_v53 = vadd.f32 %v1708_v51, %v1668_v49 }
 0x160   : > { %v1669_v54 = vpop.f32.mrb[12].mxu0 }
 0x161   : > { %v1709_v55 = vpop.f32.mrb[12].mxu1  ;;  %v1670_v56 = vpop.f32.mrb[13].mxu0 }
 0x162   : > { %v1671_v57 = vadd.f32 %v1670_v56, %v1669_v54  ;;  %v1710_v58 = vpop.f32.mrb[13].mxu1  ;;  %v1672_v59 = vpop.f32.mrb[14].mxu0 }
 0x163   : > { %v1711_v60 = vadd.f32 %v1710_v58, %v1709_v55  ;;  %v1712_v61 = vpop.f32.mrb[14].mxu1  ;;  %v1673_v62 = vpop.f32.mrb[15].mxu0 }
 0x164   : > { %v1674_v63 = vadd.f32 %v1673_v62, %v1672_v59  ;;  %v1713_v0 = vpop.f32.mrb[15].mxu1 }
 0x165   : > { %v1714_v1 = vadd.f32 %v1713_v0, %v1712_v61  ;;  %v1185_v2 = vadd.f32 %v1711_v60, %v1671_v57 }
 0x167   : > { %v1188_v3 = vadd.f32 %v1714_v1, %v1674_v63 }
 0x168   : > { %v1745_v4 = vpop.f32.mrb[16].mxu0 }
 0x169   : > { %v1234_v6 = vadd.f32 %v1745_v4, %v1169_v38  ;;  %v1749_v7 = vpop.f32.mrb[16].mxu1  ;;  %v1225_v8 = vpop.f32.mrb[17].mxu0 }
 0x16a   : > { %v1250_v9 = vadd.f32 %v1749_v7, %v1185_v2  ;;  %v1226_v10 = vadd.f32 %v1225_v8, %v1161_v24  ;;  %v1241_v11 = vpop.f32.mrb[17].mxu1  ;;  %v1746_v12 = vpop.f32.mrb[18].mxu0 }
 0x16b   : > { %v1292_v13 = vadd.f32 %v1591_v5, %v1234_v6  ;;  %v1242_v14 = vadd.f32 %v1241_v11, %v1177_v52  ;;  %v1237_v15 = vadd.f32 %v1746_v12, %v1172_v39  ;;  %v1750_v16 = vpop.f32.mrb[18].mxu1  ;;  %v1228_v17 = vpop.f32.mrb[19].mxu0 }
 0x16c   : > { %v1296_v18 = vadd.f32 %v1591_v5, %v1250_v9  ;;  %v1290_v19 = vadd.f32 %v1591_v5, %v1226_v10  ;;  %v1253_v20 = vadd.f32 %v1750_v16, %v1188_v3  ;;  %v1229_v21 = vadd.f32 %v1228_v17, %v2256_v25  ;;  %v1244_v22 = vpop.f32.mrb[19].mxu1 }
 0x16d   : > { %v1294_v23 = vadd.f32 %v1591_v5, %v1242_v14  ;;  %v1293_v26 = vadd.f32 %v1591_v5, %v1237_v15  ;;  %v1245_v27 = vadd.f32 %v1244_v22, %v1180_v53  ;;  %v1300_v29 = vmax.f32 %v1292_v13, 0.0 }
 0x16e   : > { %v1297_v28 = vadd.f32 %v1591_v5, %v1253_v20  ;;  %v1291_v24 = vadd.f32 %v1591_v5, %v1229_v21  ;;  %v1304_v32 = vmax.f32 %v1296_v18, 0.0  ;;  %v1298_v33 = vmax.f32 %v1290_v19, 0.0 }
 0x16f   : > { %v1301_v30 = vmax.f32 %v1293_v26, 0.0  ;;  %v1295_v31 = vadd.f32 %v1591_v5, %v1245_v27  ;;  %v1302_v36 = vmax.f32 %v1294_v23, 0.0  ;;  %1352 = sbr.rel (!%p1972_p6) target bundleno = 384 (0x180), region = 85 }
 0x170   : > { %v1305_v34 = vmax.f32 %v1297_v28, 0.0  ;;  %v1299_v35 = vmax.f32 %v1291_v24, 0.0 }
 0x171   : > { %v1620_v37 = vpack.c.bf16 %v1301_v30, %v1300_v29  ;;  %v1303_v38 = vmax.f32 %v1295_v31, 0.0 }
 0x172   : > { %v1630_v39 = vpack.c.bf16 %v1305_v34, %v1304_v32  ;;  %v1615_v25 = vpack.c.bf16 %v1299_v35, %v1298_v33 }
 0x173   : > { %1632 = vst [vmem:[%s576_s24 + $0x8] sm:$0xff] %v1620_v37   ;;  %v1625_v40 = vpack.c.bf16 %v1303_v38, %v1302_v36 }
 0x174   : > { %1634 = vst [vmem:[%s576_s24 + $0x18] sm:$0xff] %v1630_v39   ;;  %1616 = vst [vmem:[%s576_s24] sm:$0xff] %v1615_v25  }
 0x175   : > { %1633 = vst [vmem:[%s576_s24 + $0x10] sm:$0xff] %v1625_v40  }
 0x17a   : > { %v1377_v43 = vld [vmem:[%s576_s24 + $0x8] sm:$0xf]  ;;  %v1379_v44 = vld [vmem:[%s576_s24 + $0xc] sm:$0xf] }
 0x17b   : > { %v1373_v41 = vld [vmem:[%s576_s24] sm:$0xf]  ;;  %v1375_v42 = vld [vmem:[%s576_s24 + $0x4] sm:$0xf]  ;;  %1378 = vst [vmem:[%s1357_s26 + $0x10] sm:$0xf] %v1377_v43 }
 0x17c   : > { %v1381_v45 = vld [vmem:[%s576_s24 + $0x10] sm:$0xf]  ;;  %1374 = vst [vmem:[%s1357_s26] sm:$0xf] %v1373_v41  ;;  %1376 = vst [vmem:[%s1357_s26 + $0x8] sm:$0xf] %v1375_v42 }
 0x17d   : > { %1380 = vst [vmem:[%s1357_s26 + $0x18] sm:$0xf] %v1379_v44  ;;  %1382 = vst [vmem:[%s1357_s26 + $0x20] sm:$0xf] %v1381_v45  ;;  %v1383_v46 = vld [vmem:[%s576_s24 + $0x14] sm:$0xf] }
 0x17e   : > { %v1385_v47 = vld [vmem:[%s576_s24 + $0x18] sm:$0xf]  ;;  %v1387_v48 = vld [vmem:[%s576_s24 + $0x1c] sm:$0xf]  ;;  %1384 = vst [vmem:[%s1357_s26 + $0x28] sm:$0xf] %v1383_v46 }
 0x17f   : > { %1386 = vst [vmem:[%s1357_s26 + $0x30] sm:$0xf] %v1385_v47  ;;  %1388 = vst [vmem:[%s1357_s26 + $0x38] sm:$0xf] %v1387_v48 }
 0x180 PF: > { %s13_s16 = sadd.s32 1, %s1915_s16   ;;  %s2292_s12 = smov %s1903_s13 }
 0x181   : > { %p10_p12 = scmp.ge.s32.totalorder %s13_s16, 4   ;;  %s2293_s13 = smov %s1977_s22 }
 0x182   : > { %s2294_s14 = smov %s1911_s15  ;;  %s2295_s15 = smov %s2297_s17 }
 0x183   :  { %12 = sbr.rel (!%p10_p12) target bundleno = 3 (0x3), region = 164 }

// kernel: wav2phoneme_forward.12
= control target key start
LH: loop header
LB: loop body
LE: loop exit
PB: predicated region body
PF: predicated region fallthrough
CT: control target
= control target key end

     0   :  { %s3957_s12 = smov 0   ;;  %s3959_s13 = smov 0   ;;  %s4813_s0 = inlined_call_operand.vmem [shape: bf16[1,64,1792], index: 0, kind: input, shape index: {}]   ;;  %s4814_s1 = inlined_call_operand.vmem [shape: bf16[1792,256], index: 1, kind: input, shape index: {}]   ;;  %s4815_s2 = inlined_call_operand.vmem [shape: f32[1,256], index: 2, kind: input, shape index: {}]   ;;  %s4816_s3 = inlined_call_operand.vmem [shape: bf16[64,256], index: 3, kind: output, shape index: {}]  }
   0x1   :  { %s3961_s14 = smov 0   ;;  %s3963_s15 = smov 0  }
   0x2   :  { %s3965_s16 = smov 0  }
   0x3 LB: > { %s28_s17 = sadd.s32 1, %s3931_s15  ;;  %s3143_s18 = sadd.s32 4294967295, %s3935_s16   ;;  %s3935_s16 = sphi %s3965_s16, %s13_s16   ;;  %s3931_s15 = sphi %s3963_s15, %s4821_s15   ;;  %s3927_s14 = sphi %s3961_s14, %s4820_s14   ;;  %s3923_s13 = sphi %s3959_s13, %s4819_s13   ;;  %s3919_s12 = sphi %s3957_s12, %s4818_s12  }
   0x4   : > { %p30_p0 = scmp.ge.s32.totalorder %s28_s17, 2  ;;  %p74_p1 = scmp.ne.s32.totalorder %s3923_s13, %s3919_s12 }
   0x5   : > { %p75_p2 = scmp.eq.s32.totalorder %s3935_s16, 0  ;;  %p132_p4 = scmp.eq.s32.totalorder %s3143_s18, 1 }
   0x6   : > { %s4823_s17 = smov (%p30_p0, %s28_s17), 0  ;;  %s67_s20 = sadd.s32 1, %s3923_s13 }
   0x7   : > { %p76_p3 = por %p75_p2, %p74_p1  ;;  %s63_s19 = ssub.s32 %s3931_s15, %s4823_s17 }
   0x8   : > { %p65_p5 = scmp.eq.s32.totalorder %s63_s19, 0  ;;  %p3992_p6 = por %p132_p4, %p74_p1 }
   0x9   : > { %p3147_p7 = scmp.ge.s32.totalorder %s3935_s16, 2 }
   0xa   : > { %s3997_s22 = scalar_select %p65_p5, %s3923_s13, %s67_s20  }
   0xb   : > { %164 = sbr.rel (%p3147_p7) target bundleno = 171 (0xab), region = 20 }
  0x12   : > { %167 = sbr.rel (!%p76_p3) target bundleno = 171 (0xab), region = 24  ;;  %s169_s23 = sand.u32 (%p76_p3), 1, %s3923_s13  }
  0x13   : > { %s3148_s24 = sshll.u32 (%p76_p3), %s3931_s15, 2  ;;  %s3659_s25 = smul.u32 (%p76_p3), 896, %s169_s23 }
  0x14   : > { %s4005_s28 = scalar_lea.vmem (%p76_p3), %s4814_s1, %s3148_s24 }
  0x15   : > { %v192_v0 = vld [vmem:[%s4005_s28] sm:$0xf] (%p76_p3)  ;;  %v194_v1 = vld [vmem:[%s4005_s28 + $0x8] sm:$0xf] (%p76_p3)  ;;  %v196_v2 = vld [vmem:[%s4005_s28 + $0x10] sm:$0xf] (%p76_p3) }
  0x16   : > { %v198_v3 = vld [vmem:[%s4005_s28 + $0x18] sm:$0xf] (%p76_p3)  ;;  %v200_v4 = vld [vmem:[%s4005_s28 + $0x20] sm:$0xf] (%p76_p3)  ;;  %s4012_s29 = scalar_lea.vmem (%p76_p3), [#allocation3], %s3659_s25 }
  0x17   : > { %193 = vst [vmem:[%s4012_s29] sm:$0xf] (%p76_p3), %v192_v0  ;;  %195 = vst [vmem:[%s4012_s29 + $0x4] sm:$0xf] (%p76_p3), %v194_v1  ;;  %v202_v5 = vld [vmem:[%s4005_s28 + $0x28] sm:$0xf] (%p76_p3) }
  0x18   : > { %197 = vst [vmem:[%s4012_s29 + $0x8] sm:$0xf] (%p76_p3), %v196_v2  ;;  %199 = vst [vmem:[%s4012_s29 + $0xc] sm:$0xf] (%p76_p3), %v198_v3  ;;  %v204_v6 = vld [vmem:[%s4005_s28 + $0x30] sm:$0xf] (%p76_p3) }
  0x19   : > { %201 = vst [vmem:[%s4012_s29 + $0x10] sm:$0xf] %v200_v4  ;;  %v206_v7 = vld [vmem:[%s4005_s28 + $0x38] sm:$0xf]  ;;  %203 = vst [vmem:[%s4012_s29 + $0x14] sm:$0xf] %v202_v5 }
  0x1a   : > { %205 = vst [vmem:[%s4012_s29 + $0x18] sm:$0xf] %v204_v6  ;;  %207 = vst [vmem:[%s4012_s29 + $0x1c] sm:$0xf] %v206_v7  ;;  %v208_v8 = vld [vmem:[%s4005_s28 + $0x40] sm:$0xf] }
  0x1b   : > { %v210_v9 = vld [vmem:[%s4005_s28 + $0x48] sm:$0xf]  ;;  %v212_v10 = vld [vmem:[%s4005_s28 + $0x50] sm:$0xf]  ;;  %209 = vst [vmem:[%s4012_s29 + $0x20] sm:$0xf] %v208_v8 }
  0x1c   : > { %211 = vst [vmem:[%s4012_s29 + $0x24] sm:$0xf] %v210_v9  ;;  %213 = vst [vmem:[%s4012_s29 + $0x28] sm:$0xf] %v212_v10  ;;  %v214_v11 = vld [vmem:[%s4005_s28 + $0x58] sm:$0xf] }
  0x1d   : > { %v216_v12 = vld [vmem:[%s4005_s28 + $0x60] sm:$0xf]  ;;  %v218_v13 = vld [vmem:[%s4005_s28 + $0x68] sm:$0xf]  ;;  %215 = vst [vmem:[%s4012_s29 + $0x2c] sm:$0xf] %v214_v11 }
  0x1e   : > { %217 = vst [vmem:[%s4012_s29 + $0x30] sm:$0xf] %v216_v12  ;;  %219 = vst [vmem:[%s4012_s29 + $0x34] sm:$0xf] %v218_v13  ;;  %v220_v14 = vld [vmem:[%s4005_s28 + $0x70] sm:$0xf] }
  0x1f   : > { %v222_v15 = vld [vmem:[%s4005_s28 + $0x78] sm:$0xf]  ;;  %v224_v16 = vld [vmem:[%s4005_s28 + $0x80] sm:$0xf]  ;;  %221 = vst [vmem:[%s4012_s29 + $0x38] sm:$0xf] %v220_v14 }
  0x20   : > { %223 = vst [vmem:[%s4012_s29 + $0x3c] sm:$0xf] %v222_v15  ;;  %225 = vst [vmem:[%s4012_s29 + $0x40] sm:$0xf] %v224_v16  ;;  %v226_v17 = vld [vmem:[%s4005_s28 + $0x88] sm:$0xf] }
  0x21   : > { %v228_v18 = vld [vmem:[%s4005_s28 + $0x90] sm:$0xf]  ;;  %v230_v19 = vld [vmem:[%s4005_s28 + $0x98] sm:$0xf]  ;;  %227 = vst [vmem:[%s4012_s29 + $0x44] sm:$0xf] %v226_v17 }
  0x22   : > { %229 = vst [vmem:[%s4012_s29 + $0x48] sm:$0xf] %v228_v18  ;;  %231 = vst [vmem:[%s4012_s29 + $0x4c] sm:$0xf] %v230_v19  ;;  %v232_v20 = vld [vmem:[%s4005_s28 + $0xa0] sm:$0xf] }
  0x23   : > { %v234_v21 = vld [vmem:[%s4005_s28 + $0xa8] sm:$0xf]  ;;  %v236_v22 = vld [vmem:[%s4005_s28 + $0xb0] sm:$0xf]  ;;  %233 = vst [vmem:[%s4012_s29 + $0x50] sm:$0xf] %v232_v20 }
  0x24   : > { %235 = vst [vmem:[%s4012_s29 + $0x54] sm:$0xf] %v234_v21  ;;  %237 = vst [vmem:[%s4012_s29 + $0x58] sm:$0xf] %v236_v22  ;;  %v238_v23 = vld [vmem:[%s4005_s28 + $0xb8] sm:$0xf] }
  0x25   : > { %v240_v24 = vld [vmem:[%s4005_s28 + $0xc0] sm:$0xf]  ;;  %v242_v25 = vld [vmem:[%s4005_s28 + $0xc8] sm:$0xf]  ;;  %239 = vst [vmem:[%s4012_s29 + $0x5c] sm:$0xf] %v238_v23 }
  0x26   : > { %241 = vst [vmem:[%s4012_s29 + $0x60] sm:$0xf] %v240_v24  ;;  %243 = vst [vmem:[%s4012_s29 + $0x64] sm:$0xf] %v242_v25  ;;  %v244_v26 = vld [vmem:[%s4005_s28 + $0xd0] sm:$0xf] }
  0x27   : > { %v246_v27 = vld [vmem:[%s4005_s28 + $0xd8] sm:$0xf]  ;;  %v248_v28 = vld [vmem:[%s4005_s28 + $0xe0] sm:$0xf]  ;;  %245 = vst [vmem:[%s4012_s29 + $0x68] sm:$0xf] %v244_v26 }
  0x28   : > { %247 = vst [vmem:[%s4012_s29 + $0x6c] sm:$0xf] %v246_v27  ;;  %249 = vst [vmem:[%s4012_s29 + $0x70] sm:$0xf] %v248_v28  ;;  %v250_v29 = vld [vmem:[%s4005_s28 + $0xe8] sm:$0xf] }
  0x29   : > { %v252_v30 = vld [vmem:[%s4005_s28 + $0xf0] sm:$0xf]  ;;  %v254_v31 = vld [vmem:[%s4005_s28 + $0xf8] sm:$0xf]  ;;  %251 = vst [vmem:[%s4012_s29 + $0x74] sm:$0xf] %v250_v29 }
  0x2a   : > { %253 = vst [vmem:[%s4012_s29 + $0x78] sm:$0xf] %v252_v30  ;;  %255 = vst [vmem:[%s4012_s29 + $0x7c] sm:$0xf] %v254_v31  ;;  %v256_v32 = vld [vmem:[%s4005_s28 + $0x100] sm:$0xf] }
  0x2b   : > { %v258_v33 = vld [vmem:[%s4005_s28 + $0x108] sm:$0xf]  ;;  %v260_v34 = vld [vmem:[%s4005_s28 + $0x110] sm:$0xf]  ;;  %257 = vst [vmem:[%s4012_s29 + $0x80] sm:$0xf] %v256_v32 }
  0x2c   : > { %259 = vst [vmem:[%s4012_s29 + $0x84] sm:$0xf] %v258_v33  ;;  %261 = vst [vmem:[%s4012_s29 + $0x88] sm:$0xf] %v260_v34  ;;  %v262_v35 = vld [vmem:[%s4005_s28 + $0x118] sm:$0xf] }
  0x2d   : > { %v264_v36 = vld [vmem:[%s4005_s28 + $0x120] sm:$0xf]  ;;  %v266_v37 = vld [vmem:[%s4005_s28 + $0x128] sm:$0xf]  ;;  %263 = vst [vmem:[%s4012_s29 + $0x8c] sm:$0xf] %v262_v35 }
  0x2e   : > { %265 = vst [vmem:[%s4012_s29 + $0x90] sm:$0xf] %v264_v36  ;;  %267 = vst [vmem:[%s4012_s29 + $0x94] sm:$0xf] %v266_v37  ;;  %v268_v38 = vld [vmem:[%s4005_s28 + $0x130] sm:$0xf] }
  0x2f   : > { %v270_v39 = vld [vmem:[%s4005_s28 + $0x138] sm:$0xf]  ;;  %v272_v40 = vld [vmem:[%s4005_s28 + $0x140] sm:$0xf]  ;;  %269 = vst [vmem:[%s4012_s29 + $0x98] sm:$0xf] %v268_v38 }
  0x30   : > { %271 = vst [vmem:[%s4012_s29 + $0x9c] sm:$0xf] %v270_v39  ;;  %273 = vst [vmem:[%s4012_s29 + $0xa0] sm:$0xf] %v272_v40  ;;  %v274_v41 = vld [vmem:[%s4005_s28 + $0x148] sm:$0xf] }
  0x31   : > { %v276_v42 = vld [vmem:[%s4005_s28 + $0x150] sm:$0xf]  ;;  %v278_v43 = vld [vmem:[%s4005_s28 + $0x158] sm:$0xf]  ;;  %275 = vst [vmem:[%s4012_s29 + $0xa4] sm:$0xf] %v274_v41 }
  0x32   : > { %277 = vst [vmem:[%s4012_s29 + $0xa8] sm:$0xf] %v276_v42  ;;  %279 = vst [vmem:[%s4012_s29 + $0xac] sm:$0xf] %v278_v43  ;;  %v280_v44 = vld [vmem:[%s4005_s28 + $0x160] sm:$0xf] }
  0x33   : > { %v282_v45 = vld [vmem:[%s4005_s28 + $0x168] sm:$0xf]  ;;  %v284_v46 = vld [vmem:[%s4005_s28 + $0x170] sm:$0xf]  ;;  %281 = vst [vmem:[%s4012_s29 + $0xb0] sm:$0xf] %v280_v44 }
  0x34   : > { %283 = vst [vmem:[%s4012_s29 + $0xb4] sm:$0xf] %v282_v45  ;;  %285 = vst [vmem:[%s4012_s29 + $0xb8] sm:$0xf] %v284_v46  ;;  %v286_v47 = vld [vmem:[%s4005_s28 + $0x178] sm:$0xf] }
  0x35   : > { %v288_v48 = vld [vmem:[%s4005_s28 + $0x180] sm:$0xf]  ;;  %v290_v49 = vld [vmem:[%s4005_s28 + $0x188] sm:$0xf]  ;;  %287 = vst [vmem:[%s4012_s29 + $0xbc] sm:$0xf] %v286_v47 }
  0x36   : > { %289 = vst [vmem:[%s4012_s29 + $0xc0] sm:$0xf] %v288_v48  ;;  %291 = vst [vmem:[%s4012_s29 + $0xc4] sm:$0xf] %v290_v49  ;;  %v292_v50 = vld [vmem:[%s4005_s28 + $0x190] sm:$0xf] }
  0x37   : > { %v294_v51 = vld [vmem:[%s4005_s28 + $0x198] sm:$0xf]  ;;  %v296_v52 = vld [vmem:[%s4005_s28 + $0x1a0] sm:$0xf]  ;;  %293 = vst [vmem:[%s4012_s29 + $0xc8] sm:$0xf] %v292_v50 }
  0x38   : > { %295 = vst [vmem:[%s4012_s29 + $0xcc] sm:$0xf] %v294_v51  ;;  %297 = vst [vmem:[%s4012_s29 + $0xd0] sm:$0xf] %v296_v52  ;;  %v298_v53 = vld [vmem:[%s4005_s28 + $0x1a8] sm:$0xf] }
  0x39   : > { %v300_v54 = vld [vmem:[%s4005_s28 + $0x1b0] sm:$0xf]  ;;  %v302_v55 = vld [vmem:[%s4005_s28 + $0x1b8] sm:$0xf]  ;;  %299 = vst [vmem:[%s4012_s29 + $0xd4] sm:$0xf] %v298_v53 }
  0x3a   : > { %301 = vst [vmem:[%s4012_s29 + $0xd8] sm:$0xf] %v300_v54  ;;  %303 = vst [vmem:[%s4012_s29 + $0xdc] sm:$0xf] %v302_v55  ;;  %v304_v56 = vld [vmem:[%s4005_s28 + $0x1c0] sm:$0xf] }
  0x3b   : > { %v306_v57 = vld [vmem:[%s4005_s28 + $0x1c8] sm:$0xf]  ;;  %v308_v58 = vld [vmem:[%s4005_s28 + $0x1d0] sm:$0xf]  ;;  %305 = vst [vmem:[%s4012_s29 + $0xe0] sm:$0xf] %v304_v56 }
  0x3c   : > { %307 = vst [vmem:[%s4012_s29 + $0xe4] sm:$0xf] %v306_v57  ;;  %309 = vst [vmem:[%s4012_s29 + $0xe8] sm:$0xf] %v308_v58  ;;  %v310_v59 = vld [vmem:[%s4005_s28 + $0x1d8] sm:$0xf] }
  0x3d   : > { %v312_v60 = vld [vmem:[%s4005_s28 + $0x1e0] sm:$0xf]  ;;  %v314_v61 = vld [vmem:[%s4005_s28 + $0x1e8] sm:$0xf]  ;;  %311 = vst [vmem:[%s4012_s29 + $0xec] sm:$0xf] %v310_v59 }
  0x3e   : > { %313 = vst [vmem:[%s4012_s29 + $0xf0] sm:$0xf] %v312_v60  ;;  %315 = vst [vmem:[%s4012_s29 + $0xf4] sm:$0xf] %v314_v61  ;;  %v316_v62 = vld [vmem:[%s4005_s28 + $0x1f0] sm:$0xf] }
  0x3f   : > { %v318_v63 = vld [vmem:[%s4005_s28 + $0x1f8] sm:$0xf]  ;;  %v320_v0 = vld [vmem:[%s4005_s28 + $0x200] sm:$0xf]  ;;  %317 = vst [vmem:[%s4012_s29 + $0xf8] sm:$0xf] %v316_v62 }
  0x40   : > { %319 = vst [vmem:[%s4012_s29 + $0xfc] sm:$0xf] %v318_v63  ;;  %321 = vst [vmem:[%s4012_s29 + $0x100] sm:$0xf] %v320_v0  ;;  %v322_v1 = vld [vmem:[%s4005_s28 + $0x208] sm:$0xf] }
  0x41   : > { %v324_v2 = vld [vmem:[%s4005_s28 + $0x210] sm:$0xf]  ;;  %v326_v3 = vld [vmem:[%s4005_s28 + $0x218] sm:$0xf]  ;;  %323 = vst [vmem:[%s4012_s29 + $0x104] sm:$0xf] %v322_v1 }
  0x42   : > { %325 = vst [vmem:[%s4012_s29 + $0x108] sm:$0xf] %v324_v2  ;;  %327 = vst [vmem:[%s4012_s29 + $0x10c] sm:$0xf] %v326_v3  ;;  %v328_v4 = vld [vmem:[%s4005_s28 + $0x220] sm:$0xf] }
  0x43   : > { %v330_v5 = vld [vmem:[%s4005_s28 + $0x228] sm:$0xf]  ;;  %v332_v6 = vld [vmem:[%s4005_s28 + $0x230] sm:$0xf]  ;;  %329 = vst [vmem:[%s4012_s29 + $0x110] sm:$0xf] %v328_v4 }
  0x44   : > { %331 = vst [vmem:[%s4012_s29 + $0x114] sm:$0xf] %v330_v5  ;;  %333 = vst [vmem:[%s4012_s29 + $0x118] sm:$0xf] %v332_v6  ;;  %v334_v7 = vld [vmem:[%s4005_s28 + $0x238] sm:$0xf] }
  0x45   : > { %v336_v8 = vld [vmem:[%s4005_s28 + $0x240] sm:$0xf]  ;;  %v338_v9 = vld [vmem:[%s4005_s28 + $0x248] sm:$0xf]  ;;  %335 = vst [vmem:[%s4012_s29 + $0x11c] sm:$0xf] %v334_v7 }
  0x46   : > { %337 = vst [vmem:[%s4012_s29 + $0x120] sm:$0xf] %v336_v8  ;;  %339 = vst [vmem:[%s4012_s29 + $0x124] sm:$0xf] %v338_v9  ;;  %v340_v10 = vld [vmem:[%s4005_s28 + $0x250] sm:$0xf] }
  0x47   : > { %v342_v11 = vld [vmem:[%s4005_s28 + $0x258] sm:$0xf]  ;;  %v344_v12 = vld [vmem:[%s4005_s28 + $0x260] sm:$0xf]  ;;  %341 = vst [vmem:[%s4012_s29 + $0x128] sm:$0xf] %v340_v10 }
  0x48   : > { %343 = vst [vmem:[%s4012_s29 + $0x12c] sm:$0xf] %v342_v11  ;;  %345 = vst [vmem:[%s4012_s29 + $0x130] sm:$0xf] %v344_v12  ;;  %v346_v13 = vld [vmem:[%s4005_s28 + $0x268] sm:$0xf] }
  0x49   : > { %v348_v14 = vld [vmem:[%s4005_s28 + $0x270] sm:$0xf]  ;;  %v350_v15 = vld [vmem:[%s4005_s28 + $0x278] sm:$0xf]  ;;  %347 = vst [vmem:[%s4012_s29 + $0x134] sm:$0xf] %v346_v13 }
  0x4a   : > { %349 = vst [vmem:[%s4012_s29 + $0x138] sm:$0xf] %v348_v14  ;;  %351 = vst [vmem:[%s4012_s29 + $0x13c] sm:$0xf] %v350_v15  ;;  %v352_v16 = vld [vmem:[%s4005_s28 + $0x280] sm:$0xf] }
  0x4b   : > { %v354_v17 = vld [vmem:[%s4005_s28 + $0x288] sm:$0xf]  ;;  %v356_v18 = vld [vmem:[%s4005_s28 + $0x290] sm:$0xf]  ;;  %353 = vst [vmem:[%s4012_s29 + $0x140] sm:$0xf] %v352_v16 }
  0x4c   : > { %355 = vst [vmem:[%s4012_s29 + $0x144] sm:$0xf] %v354_v17  ;;  %357 = vst [vmem:[%s4012_s29 + $0x148] sm:$0xf] %v356_v18  ;;  %v358_v19 = vld [vmem:[%s4005_s28 + $0x298] sm:$0xf] }
  0x4d   : > { %v360_v20 = vld [vmem:[%s4005_s28 + $0x2a0] sm:$0xf]  ;;  %v362_v21 = vld [vmem:[%s4005_s28 + $0x2a8] sm:$0xf]  ;;  %359 = vst [vmem:[%s4012_s29 + $0x14c] sm:$0xf] %v358_v19 }
  0x4e   : > { %361 = vst [vmem:[%s4012_s29 + $0x150] sm:$0xf] %v360_v20  ;;  %363 = vst [vmem:[%s4012_s29 + $0x154] sm:$0xf] %v362_v21  ;;  %v364_v22 = vld [vmem:[%s4005_s28 + $0x2b0] sm:$0xf] }
  0x4f   : > { %v366_v23 = vld [vmem:[%s4005_s28 + $0x2b8] sm:$0xf]  ;;  %v368_v24 = vld [vmem:[%s4005_s28 + $0x2c0] sm:$0xf]  ;;  %365 = vst [vmem:[%s4012_s29 + $0x158] sm:$0xf] %v364_v22 }
  0x50   : > { %367 = vst [vmem:[%s4012_s29 + $0x15c] sm:$0xf] %v366_v23  ;;  %369 = vst [vmem:[%s4012_s29 + $0x160] sm:$0xf] %v368_v24  ;;  %v370_v25 = vld [vmem:[%s4005_s28 + $0x2c8] sm:$0xf] }
  0x51   : > { %v372_v26 = vld [vmem:[%s4005_s28 + $0x2d0] sm:$0xf]  ;;  %v374_v27 = vld [vmem:[%s4005_s28 + $0x2d8] sm:$0xf]  ;;  %371 = vst [vmem:[%s4012_s29 + $0x164] sm:$0xf] %v370_v25 }
  0x52   : > { %373 = vst [vmem:[%s4012_s29 + $0x168] sm:$0xf] %v372_v26  ;;  %375 = vst [vmem:[%s4012_s29 + $0x16c] sm:$0xf] %v374_v27  ;;  %v376_v28 = vld [vmem:[%s4005_s28 + $0x2e0] sm:$0xf] }
  0x53   : > { %v378_v29 = vld [vmem:[%s4005_s28 + $0x2e8] sm:$0xf]  ;;  %v380_v30 = vld [vmem:[%s4005_s28 + $0x2f0] sm:$0xf]  ;;  %377 = vst [vmem:[%s4012_s29 + $0x170] sm:$0xf] %v376_v28 }
  0x54   : > { %379 = vst [vmem:[%s4012_s29 + $0x174] sm:$0xf] %v378_v29  ;;  %381 = vst [vmem:[%s4012_s29 + $0x178] sm:$0xf] %v380_v30  ;;  %v382_v31 = vld [vmem:[%s4005_s28 + $0x2f8] sm:$0xf] }
  0x55   : > { %v384_v32 = vld [vmem:[%s4005_s28 + $0x300] sm:$0xf]  ;;  %v386_v33 = vld [vmem:[%s4005_s28 + $0x308] sm:$0xf]  ;;  %383 = vst [vmem:[%s4012_s29 + $0x17c] sm:$0xf] %v382_v31 }
  0x56   : > { %385 = vst [vmem:[%s4012_s29 + $0x180] sm:$0xf] %v384_v32  ;;  %387 = vst [vmem:[%s4012_s29 + $0x184] sm:$0xf] %v386_v33  ;;  %v388_v34 = vld [vmem:[%s4005_s28 + $0x310] sm:$0xf] }
  0x57   : > { %v390_v35 = vld [vmem:[%s4005_s28 + $0x318] sm:$0xf]  ;;  %v392_v36 = vld [vmem:[%s4005_s28 + $0x320] sm:$0xf]  ;;  %389 = vst [vmem:[%s4012_s29 + $0x188] sm:$0xf] %v388_v34 }
  0x58   : > { %391 = vst [vmem:[%s4012_s29 + $0x18c] sm:$0xf] %v390_v35  ;;  %393 = vst [vmem:[%s4012_s29 + $0x190] sm:$0xf] %v392_v36  ;;  %v394_v37 = vld [vmem:[%s4005_s28 + $0x328] sm:$0xf] }
  0x59   : > { %v396_v38 = vld [vmem:[%s4005_s28 + $0x330] sm:$0xf]  ;;  %v398_v39 = vld [vmem:[%s4005_s28 + $0x338] sm:$0xf]  ;;  %395 = vst [vmem:[%s4012_s29 + $0x194] sm:$0xf] %v394_v37 }
  0x5a   : > { %397 = vst [vmem:[%s4012_s29 + $0x198] sm:$0xf] %v396_v38  ;;  %399 = vst [vmem:[%s4012_s29 + $0x19c] sm:$0xf] %v398_v39  ;;  %v400_v40 = vld [vmem:[%s4005_s28 + $0x340] sm:$0xf] }
  0x5b   : > { %v402_v41 = vld [vmem:[%s4005_s28 + $0x348] sm:$0xf]  ;;  %v404_v42 = vld [vmem:[%s4005_s28 + $0x350] sm:$0xf]  ;;  %401 = vst [vmem:[%s4012_s29 + $0x1a0] sm:$0xf] %v400_v40 }
  0x5c   : > { %403 = vst [vmem:[%s4012_s29 + $0x1a4] sm:$0xf] %v402_v41  ;;  %405 = vst [vmem:[%s4012_s29 + $0x1a8] sm:$0xf] %v404_v42  ;;  %v406_v43 = vld [vmem:[%s4005_s28 + $0x358] sm:$0xf] }
  0x5d   : > { %v408_v44 = vld [vmem:[%s4005_s28 + $0x360] sm:$0xf]  ;;  %v410_v45 = vld [vmem:[%s4005_s28 + $0x368] sm:$0xf]  ;;  %407 = vst [vmem:[%s4012_s29 + $0x1ac] sm:$0xf] %v406_v43 }
  0x5e   : > { %409 = vst [vmem:[%s4012_s29 + $0x1b0] sm:$0xf] %v408_v44  ;;  %411 = vst [vmem:[%s4012_s29 + $0x1b4] sm:$0xf] %v410_v45  ;;  %v412_v46 = vld [vmem:[%s4005_s28 + $0x370] sm:$0xf] }
  0x5f   : > { %v414_v47 = vld [vmem:[%s4005_s28 + $0x378] sm:$0xf]  ;;  %v416_v48 = vld [vmem:[%s4005_s28 + $0x380] sm:$0xf]  ;;  %413 = vst [vmem:[%s4012_s29 + $0x1b8] sm:$0xf] %v412_v46 }
  0x60   : > { %415 = vst [vmem:[%s4012_s29 + $0x1bc] sm:$0xf] %v414_v47  ;;  %417 = vst [vmem:[%s4012_s29 + $0x1c0] sm:$0xf] %v416_v48  ;;  %v418_v49 = vld [vmem:[%s4005_s28 + $0x388] sm:$0xf] }
  0x61   : > { %v420_v50 = vld [vmem:[%s4005_s28 + $0x390] sm:$0xf]  ;;  %v422_v51 = vld [vmem:[%s4005_s28 + $0x398] sm:$0xf]  ;;  %419 = vst [vmem:[%s4012_s29 + $0x1c4] sm:$0xf] %v418_v49 }
  0x62   : > { %421 = vst [vmem:[%s4012_s29 + $0x1c8] sm:$0xf] %v420_v50  ;;  %423 = vst [vmem:[%s4012_s29 + $0x1cc] sm:$0xf] %v422_v51  ;;  %v424_v52 = vld [vmem:[%s4005_s28 + $0x3a0] sm:$0xf] }
  0x63   : > { %v426_v53 = vld [vmem:[%s4005_s28 + $0x3a8] sm:$0xf]  ;;  %v428_v54 = vld [vmem:[%s4005_s28 + $0x3b0] sm:$0xf]  ;;  %425 = vst [vmem:[%s4012_s29 + $0x1d0] sm:$0xf] %v424_v52 }
  0x64   : > { %427 = vst [vmem:[%s4012_s29 + $0x1d4] sm:$0xf] %v426_v53  ;;  %429 = vst [vmem:[%s4012_s29 + $0x1d8] sm:$0xf] %v428_v54  ;;  %v430_v55 = vld [vmem:[%s4005_s28 + $0x3b8] sm:$0xf] }
  0x65   : > { %v432_v56 = vld [vmem:[%s4005_s28 + $0x3c0] sm:$0xf]  ;;  %v434_v57 = vld [vmem:[%s4005_s28 + $0x3c8] sm:$0xf]  ;;  %431 = vst [vmem:[%s4012_s29 + $0x1dc] sm:$0xf] %v430_v55 }
  0x66   : > { %433 = vst [vmem:[%s4012_s29 + $0x1e0] sm:$0xf] %v432_v56  ;;  %435 = vst [vmem:[%s4012_s29 + $0x1e4] sm:$0xf] %v434_v57  ;;  %v436_v58 = vld [vmem:[%s4005_s28 + $0x3d0] sm:$0xf] }
  0x67   : > { %v438_v59 = vld [vmem:[%s4005_s28 + $0x3d8] sm:$0xf]  ;;  %v440_v60 = vld [vmem:[%s4005_s28 + $0x3e0] sm:$0xf]  ;;  %437 = vst [vmem:[%s4012_s29 + $0x1e8] sm:$0xf] %v436_v58 }
  0x68   : > { %439 = vst [vmem:[%s4012_s29 + $0x1ec] sm:$0xf] %v438_v59  ;;  %441 = vst [vmem:[%s4012_s29 + $0x1f0] sm:$0xf] %v440_v60  ;;  %v442_v61 = vld [vmem:[%s4005_s28 + $0x3e8] sm:$0xf] }
  0x69   : > { %v444_v62 = vld [vmem:[%s4005_s28 + $0x3f0] sm:$0xf]  ;;  %v446_v63 = vld [vmem:[%s4005_s28 + $0x3f8] sm:$0xf]  ;;  %443 = vst [vmem:[%s4012_s29 + $0x1f4] sm:$0xf] %v442_v61 }
  0x6a   : > { %445 = vst [vmem:[%s4012_s29 + $0x1f8] sm:$0xf] %v444_v62  ;;  %447 = vst [vmem:[%s4012_s29 + $0x1fc] sm:$0xf] %v446_v63  ;;  %v448_v0 = vld [vmem:[%s4005_s28 + $0x400] sm:$0xf] }
  0x6b   : > { %v450_v1 = vld [vmem:[%s4005_s28 + $0x408] sm:$0xf]  ;;  %v452_v2 = vld [vmem:[%s4005_s28 + $0x410] sm:$0xf]  ;;  %449 = vst [vmem:[%s4012_s29 + $0x200] sm:$0xf] %v448_v0 }
  0x6c   : > { %451 = vst [vmem:[%s4012_s29 + $0x204] sm:$0xf] %v450_v1  ;;  %453 = vst [vmem:[%s4012_s29 + $0x208] sm:$0xf] %v452_v2  ;;  %v454_v3 = vld [vmem:[%s4005_s28 + $0x418] sm:$0xf] }
  0x6d   : > { %v456_v4 = vld [vmem:[%s4005_s28 + $0x420] sm:$0xf]  ;;  %v458_v5 = vld [vmem:[%s4005_s28 + $0x428] sm:$0xf]  ;;  %455 = vst [vmem:[%s4012_s29 + $0x20c] sm:$0xf] %v454_v3 }
  0x6e   : > { %457 = vst [vmem:[%s4012_s29 + $0x210] sm:$0xf] %v456_v4  ;;  %459 = vst [vmem:[%s4012_s29 + $0x214] sm:$0xf] %v458_v5  ;;  %v460_v6 = vld [vmem:[%s4005_s28 + $0x430] sm:$0xf] }
  0x6f   : > { %v462_v7 = vld [vmem:[%s4005_s28 + $0x438] sm:$0xf]  ;;  %v464_v8 = vld [vmem:[%s4005_s28 + $0x440] sm:$0xf]  ;;  %461 = vst [vmem:[%s4012_s29 + $0x218] sm:$0xf] %v460_v6 }
  0x70   : > { %463 = vst [vmem:[%s4012_s29 + $0x21c] sm:$0xf] %v462_v7  ;;  %465 = vst [vmem:[%s4012_s29 + $0x220] sm:$0xf] %v464_v8  ;;  %v466_v9 = vld [vmem:[%s4005_s28 + $0x448] sm:$0xf] }
  0x71   : > { %v468_v10 = vld [vmem:[%s4005_s28 + $0x450] sm:$0xf]  ;;  %v470_v11 = vld [vmem:[%s4005_s28 + $0x458] sm:$0xf]  ;;  %467 = vst [vmem:[%s4012_s29 + $0x224] sm:$0xf] %v466_v9 }
  0x72   : > { %469 = vst [vmem:[%s4012_s29 + $0x228] sm:$0xf] %v468_v10  ;;  %471 = vst [vmem:[%s4012_s29 + $0x22c] sm:$0xf] %v470_v11  ;;  %v472_v12 = vld [vmem:[%s4005_s28 + $0x460] sm:$0xf] }
  0x73   : > { %v474_v13 = vld [vmem:[%s4005_s28 + $0x468] sm:$0xf]  ;;  %v476_v14 = vld [vmem:[%s4005_s28 + $0x470] sm:$0xf]  ;;  %473 = vst [vmem:[%s4012_s29 + $0x230] sm:$0xf] %v472_v12 }
  0x74   : > { %475 = vst [vmem:[%s4012_s29 + $0x234] sm:$0xf] %v474_v13  ;;  %477 = vst [vmem:[%s4012_s29 + $0x238] sm:$0xf] %v476_v14  ;;  %v478_v15 = vld [vmem:[%s4005_s28 + $0x478] sm:$0xf] }
  0x75   : > { %v480_v16 = vld [vmem:[%s4005_s28 + $0x480] sm:$0xf]  ;;  %v482_v17 = vld [vmem:[%s4005_s28 + $0x488] sm:$0xf]  ;;  %479 = vst [vmem:[%s4012_s29 + $0x23c] sm:$0xf] %v478_v15 }
  0x76   : > { %481 = vst [vmem:[%s4012_s29 + $0x240] sm:$0xf] %v480_v16  ;;  %483 = vst [vmem:[%s4012_s29 + $0x244] sm:$0xf] %v482_v17  ;;  %v484_v18 = vld [vmem:[%s4005_s28 + $0x490] sm:$0xf] }
  0x77   : > { %v486_v19 = vld [vmem:[%s4005_s28 + $0x498] sm:$0xf]  ;;  %v488_v20 = vld [vmem:[%s4005_s28 + $0x4a0] sm:$0xf]  ;;  %485 = vst [vmem:[%s4012_s29 + $0x248] sm:$0xf] %v484_v18 }
  0x78   : > { %487 = vst [vmem:[%s4012_s29 + $0x24c] sm:$0xf] %v486_v19  ;;  %489 = vst [vmem:[%s4012_s29 + $0x250] sm:$0xf] %v488_v20  ;;  %v490_v21 = vld [vmem:[%s4005_s28 + $0x4a8] sm:$0xf] }
  0x79   : > { %v492_v22 = vld [vmem:[%s4005_s28 + $0x4b0] sm:$0xf]  ;;  %v494_v23 = vld [vmem:[%s4005_s28 + $0x4b8] sm:$0xf]  ;;  %491 = vst [vmem:[%s4012_s29 + $0x254] sm:$0xf] %v490_v21 }
  0x7a   : > { %493 = vst [vmem:[%s4012_s29 + $0x258] sm:$0xf] %v492_v22  ;;  %495 = vst [vmem:[%s4012_s29 + $0x25c] sm:$0xf] %v494_v23  ;;  %v496_v24 = vld [vmem:[%s4005_s28 + $0x4c0] sm:$0xf] }
  0x7b   : > { %v498_v25 = vld [vmem:[%s4005_s28 + $0x4c8] sm:$0xf]  ;;  %v500_v26 = vld [vmem:[%s4005_s28 + $0x4d0] sm:$0xf]  ;;  %497 = vst [vmem:[%s4012_s29 + $0x260] sm:$0xf] %v496_v24 }
  0x7c   : > { %499 = vst [vmem:[%s4012_s29 + $0x264] sm:$0xf] %v498_v25  ;;  %501 = vst [vmem:[%s4012_s29 + $0x268] sm:$0xf] %v500_v26  ;;  %v502_v27 = vld [vmem:[%s4005_s28 + $0x4d8] sm:$0xf] }
  0x7d   : > { %v504_v28 = vld [vmem:[%s4005_s28 + $0x4e0] sm:$0xf]  ;;  %v506_v29 = vld [vmem:[%s4005_s28 + $0x4e8] sm:$0xf]  ;;  %503 = vst [vmem:[%s4012_s29 + $0x26c] sm:$0xf] %v502_v27 }
  0x7e   : > { %505 = vst [vmem:[%s4012_s29 + $0x270] sm:$0xf] %v504_v28  ;;  %507 = vst [vmem:[%s4012_s29 + $0x274] sm:$0xf] %v506_v29  ;;  %v508_v30 = vld [vmem:[%s4005_s28 + $0x4f0] sm:$0xf] }
  0x7f   : > { %v510_v31 = vld [vmem:[%s4005_s28 + $0x4f8] sm:$0xf]  ;;  %v512_v32 = vld [vmem:[%s4005_s28 + $0x500] sm:$0xf]  ;;  %509 = vst [vmem:[%s4012_s29 + $0x278] sm:$0xf] %v508_v30 }
  0x80   : > { %511 = vst [vmem:[%s4012_s29 + $0x27c] sm:$0xf] %v510_v31  ;;  %513 = vst [vmem:[%s4012_s29 + $0x280] sm:$0xf] %v512_v32  ;;  %v514_v33 = vld [vmem:[%s4005_s28 + $0x508] sm:$0xf] }
  0x81   : > { %v516_v34 = vld [vmem:[%s4005_s28 + $0x510] sm:$0xf]  ;;  %v518_v35 = vld [vmem:[%s4005_s28 + $0x518] sm:$0xf]  ;;  %515 = vst [vmem:[%s4012_s29 + $0x284] sm:$0xf] %v514_v33 }
  0x82   : > { %517 = vst [vmem:[%s4012_s29 + $0x288] sm:$0xf] %v516_v34  ;;  %519 = vst [vmem:[%s4012_s29 + $0x28c] sm:$0xf] %v518_v35  ;;  %v520_v36 = vld [vmem:[%s4005_s28 + $0x520] sm:$0xf] }
  0x83   : > { %v522_v37 = vld [vmem:[%s4005_s28 + $0x528] sm:$0xf]  ;;  %v524_v38 = vld [vmem:[%s4005_s28 + $0x530] sm:$0xf]  ;;  %521 = vst [vmem:[%s4012_s29 + $0x290] sm:$0xf] %v520_v36 }
  0x84   : > { %523 = vst [vmem:[%s4012_s29 + $0x294] sm:$0xf] %v522_v37  ;;  %525 = vst [vmem:[%s4012_s29 + $0x298] sm:$0xf] %v524_v38  ;;  %v526_v39 = vld [vmem:[%s4005_s28 + $0x538] sm:$0xf] }
  0x85   : > { %v528_v40 = vld [vmem:[%s4005_s28 + $0x540] sm:$0xf]  ;;  %v530_v41 = vld [vmem:[%s4005_s28 + $0x548] sm:$0xf]  ;;  %527 = vst [vmem:[%s4012_s29 + $0x29c] sm:$0xf] %v526_v39 }
  0x86   : > { %529 = vst [vmem:[%s4012_s29 + $0x2a0] sm:$0xf] %v528_v40  ;;  %531 = vst [vmem:[%s4012_s29 + $0x2a4] sm:$0xf] %v530_v41  ;;  %v532_v42 = vld [vmem:[%s4005_s28 + $0x550] sm:$0xf] }
  0x87   : > { %v534_v43 = vld [vmem:[%s4005_s28 + $0x558] sm:$0xf]  ;;  %v536_v44 = vld [vmem:[%s4005_s28 + $0x560] sm:$0xf]  ;;  %533 = vst [vmem:[%s4012_s29 + $0x2a8] sm:$0xf] %v532_v42 }
  0x88   : > { %535 = vst [vmem:[%s4012_s29 + $0x2ac] sm:$0xf] %v534_v43  ;;  %537 = vst [vmem:[%s4012_s29 + $0x2b0] sm:$0xf] %v536_v44  ;;  %v538_v45 = vld [vmem:[%s4005_s28 + $0x568] sm:$0xf] }
  0x89   : > { %v540_v46 = vld [vmem:[%s4005_s28 + $0x570] sm:$0xf]  ;;  %v542_v47 = vld [vmem:[%s4005_s28 + $0x578] sm:$0xf]  ;;  %539 = vst [vmem:[%s4012_s29 + $0x2b4] sm:$0xf] %v538_v45 }
  0x8a   : > { %541 = vst [vmem:[%s4012_s29 + $0x2b8] sm:$0xf] %v540_v46  ;;  %543 = vst [vmem:[%s4012_s29 + $0x2bc] sm:$0xf] %v542_v47  ;;  %v544_v48 = vld [vmem:[%s4005_s28 + $0x580] sm:$0xf] }
  0x8b   : > { %v546_v49 = vld [vmem:[%s4005_s28 + $0x588] sm:$0xf]  ;;  %v548_v50 = vld [vmem:[%s4005_s28 + $0x590] sm:$0xf]  ;;  %545 = vst [vmem:[%s4012_s29 + $0x2c0] sm:$0xf] %v544_v48 }
  0x8c   : > { %547 = vst [vmem:[%s4012_s29 + $0x2c4] sm:$0xf] %v546_v49  ;;  %549 = vst [vmem:[%s4012_s29 + $0x2c8] sm:$0xf] %v548_v50  ;;  %v550_v51 = vld [vmem:[%s4005_s28 + $0x598] sm:$0xf] }
  0x8d   : > { %v552_v52 = vld [vmem:[%s4005_s28 + $0x5a0] sm:$0xf]  ;;  %v554_v53 = vld [vmem:[%s4005_s28 + $0x5a8] sm:$0xf]  ;;  %551 = vst [vmem:[%s4012_s29 + $0x2cc] sm:$0xf] %v550_v51 }
  0x8e   : > { %553 = vst [vmem:[%s4012_s29 + $0x2d0] sm:$0xf] %v552_v52  ;;  %555 = vst [vmem:[%s4012_s29 + $0x2d4] sm:$0xf] %v554_v53  ;;  %v556_v54 = vld [vmem:[%s4005_s28 + $0x5b0] sm:$0xf] }
  0x8f   : > { %v558_v55 = vld [vmem:[%s4005_s28 + $0x5b8] sm:$0xf]  ;;  %v560_v56 = vld [vmem:[%s4005_s28 + $0x5c0] sm:$0xf]  ;;  %557 = vst [vmem:[%s4012_s29 + $0x2d8] sm:$0xf] %v556_v54 }
  0x90   : > { %559 = vst [vmem:[%s4012_s29 + $0x2dc] sm:$0xf] %v558_v55  ;;  %561 = vst [vmem:[%s4012_s29 + $0x2e0] sm:$0xf] %v560_v56  ;;  %v562_v57 = vld [vmem:[%s4005_s28 + $0x5c8] sm:$0xf] }
  0x91   : > { %v564_v58 = vld [vmem:[%s4005_s28 + $0x5d0] sm:$0xf]  ;;  %v566_v59 = vld [vmem:[%s4005_s28 + $0x5d8] sm:$0xf]  ;;  %563 = vst [vmem:[%s4012_s29 + $0x2e4] sm:$0xf] %v562_v57 }
  0x92   : > { %565 = vst [vmem:[%s4012_s29 + $0x2e8] sm:$0xf] %v564_v58  ;;  %567 = vst [vmem:[%s4012_s29 + $0x2ec] sm:$0xf] %v566_v59  ;;  %v568_v60 = vld [vmem:[%s4005_s28 + $0x5e0] sm:$0xf] }
  0x93   : > { %v570_v61 = vld [vmem:[%s4005_s28 + $0x5e8] sm:$0xf]  ;;  %v572_v62 = vld [vmem:[%s4005_s28 + $0x5f0] sm:$0xf]  ;;  %569 = vst [vmem:[%s4012_s29 + $0x2f0] sm:$0xf] %v568_v60 }
  0x94   : > { %571 = vst [vmem:[%s4012_s29 + $0x2f4] sm:$0xf] %v570_v61  ;;  %573 = vst [vmem:[%s4012_s29 + $0x2f8] sm:$0xf] %v572_v62  ;;  %v574_v63 = vld [vmem:[%s4005_s28 + $0x5f8] sm:$0xf] }
  0x95   : > { %v576_v0 = vld [vmem:[%s4005_s28 + $0x600] sm:$0xf]  ;;  %v578_v1 = vld [vmem:[%s4005_s28 + $0x608] sm:$0xf]  ;;  %575 = vst [vmem:[%s4012_s29 + $0x2fc] sm:$0xf] %v574_v63 }
  0x96   : > { %577 = vst [vmem:[%s4012_s29 + $0x300] sm:$0xf] %v576_v0  ;;  %579 = vst [vmem:[%s4012_s29 + $0x304] sm:$0xf] %v578_v1  ;;  %v580_v2 = vld [vmem:[%s4005_s28 + $0x610] sm:$0xf] }
  0x97   : > { %v582_v3 = vld [vmem:[%s4005_s28 + $0x618] sm:$0xf]  ;;  %v584_v4 = vld [vmem:[%s4005_s28 + $0x620] sm:$0xf]  ;;  %581 = vst [vmem:[%s4012_s29 + $0x308] sm:$0xf] %v580_v2 }
  0x98   : > { %583 = vst [vmem:[%s4012_s29 + $0x30c] sm:$0xf] %v582_v3  ;;  %585 = vst [vmem:[%s4012_s29 + $0x310] sm:$0xf] %v584_v4  ;;  %v586_v5 = vld [vmem:[%s4005_s28 + $0x628] sm:$0xf] }
  0x99   : > { %v588_v6 = vld [vmem:[%s4005_s28 + $0x630] sm:$0xf]  ;;  %v590_v7 = vld [vmem:[%s4005_s28 + $0x638] sm:$0xf]  ;;  %587 = vst [vmem:[%s4012_s29 + $0x314] sm:$0xf] %v586_v5 }
  0x9a   : > { %589 = vst [vmem:[%s4012_s29 + $0x318] sm:$0xf] %v588_v6  ;;  %591 = vst [vmem:[%s4012_s29 + $0x31c] sm:$0xf] %v590_v7  ;;  %v592_v8 = vld [vmem:[%s4005_s28 + $0x640] sm:$0xf] }
  0x9b   : > { %v594_v9 = vld [vmem:[%s4005_s28 + $0x648] sm:$0xf]  ;;  %v596_v10 = vld [vmem:[%s4005_s28 + $0x650] sm:$0xf]  ;;  %593 = vst [vmem:[%s4012_s29 + $0x320] sm:$0xf] %v592_v8 }
  0x9c   : > { %595 = vst [vmem:[%s4012_s29 + $0x324] sm:$0xf] %v594_v9  ;;  %597 = vst [vmem:[%s4012_s29 + $0x328] sm:$0xf] %v596_v10  ;;  %v598_v11 = vld [vmem:[%s4005_s28 + $0x658] sm:$0xf] }
  0x9d   : > { %v600_v12 = vld [vmem:[%s4005_s28 + $0x660] sm:$0xf]  ;;  %v602_v13 = vld [vmem:[%s4005_s28 + $0x668] sm:$0xf]  ;;  %599 = vst [vmem:[%s4012_s29 + $0x32c] sm:$0xf] %v598_v11 }
  0x9e   : > { %601 = vst [vmem:[%s4012_s29 + $0x330] sm:$0xf] %v600_v12  ;;  %603 = vst [vmem:[%s4012_s29 + $0x334] sm:$0xf] %v602_v13  ;;  %v604_v14 = vld [vmem:[%s4005_s28 + $0x670] sm:$0xf] }
  0x9f   : > { %v606_v15 = vld [vmem:[%s4005_s28 + $0x678] sm:$0xf]  ;;  %v608_v16 = vld [vmem:[%s4005_s28 + $0x680] sm:$0xf]  ;;  %605 = vst [vmem:[%s4012_s29 + $0x338] sm:$0xf] %v604_v14 }
  0xa0   : > { %607 = vst [vmem:[%s4012_s29 + $0x33c] sm:$0xf] %v606_v15  ;;  %609 = vst [vmem:[%s4012_s29 + $0x340] sm:$0xf] %v608_v16  ;;  %v610_v17 = vld [vmem:[%s4005_s28 + $0x688] sm:$0xf] }
  0xa1   : > { %v612_v18 = vld [vmem:[%s4005_s28 + $0x690] sm:$0xf]  ;;  %v614_v19 = vld [vmem:[%s4005_s28 + $0x698] sm:$0xf]  ;;  %611 = vst [vmem:[%s4012_s29 + $0x344] sm:$0xf] %v610_v17 }
  0xa2   : > { %613 = vst [vmem:[%s4012_s29 + $0x348] sm:$0xf] %v612_v18  ;;  %615 = vst [vmem:[%s4012_s29 + $0x34c] sm:$0xf] %v614_v19  ;;  %v616_v20 = vld [vmem:[%s4005_s28 + $0x6a0] sm:$0xf] }
  0xa3   : > { %v618_v21 = vld [vmem:[%s4005_s28 + $0x6a8] sm:$0xf]  ;;  %v620_v22 = vld [vmem:[%s4005_s28 + $0x6b0] sm:$0xf]  ;;  %617 = vst [vmem:[%s4012_s29 + $0x350] sm:$0xf] %v616_v20 }
  0xa4   : > { %619 = vst [vmem:[%s4012_s29 + $0x354] sm:$0xf] %v618_v21  ;;  %621 = vst [vmem:[%s4012_s29 + $0x358] sm:$0xf] %v620_v22  ;;  %v622_v23 = vld [vmem:[%s4005_s28 + $0x6b8] sm:$0xf] }
  0xa5   : > { %v624_v24 = vld [vmem:[%s4005_s28 + $0x6c0] sm:$0xf]  ;;  %v626_v25 = vld [vmem:[%s4005_s28 + $0x6c8] sm:$0xf]  ;;  %623 = vst [vmem:[%s4012_s29 + $0x35c] sm:$0xf] %v622_v23 }
  0xa6   : > { %625 = vst [vmem:[%s4012_s29 + $0x360] sm:$0xf] %v624_v24  ;;  %627 = vst [vmem:[%s4012_s29 + $0x364] sm:$0xf] %v626_v25  ;;  %v628_v26 = vld [vmem:[%s4005_s28 + $0x6d0] sm:$0xf] }
  0xa7   : > { %v630_v27 = vld [vmem:[%s4005_s28 + $0x6d8] sm:$0xf]  ;;  %v632_v28 = vld [vmem:[%s4005_s28 + $0x6e0] sm:$0xf]  ;;  %629 = vst [vmem:[%s4012_s29 + $0x368] sm:$0xf] %v628_v26 }
  0xa8   : > { %631 = vst [vmem:[%s4012_s29 + $0x36c] sm:$0xf] %v630_v27  ;;  %633 = vst [vmem:[%s4012_s29 + $0x370] sm:$0xf] %v632_v28  ;;  %v634_v29 = vld [vmem:[%s4005_s28 + $0x6e8] sm:$0xf] }
  0xa9   : > { %v636_v30 = vld [vmem:[%s4005_s28 + $0x6f0] sm:$0xf]  ;;  %v638_v31 = vld [vmem:[%s4005_s28 + $0x6f8] sm:$0xf]  ;;  %635 = vst [vmem:[%s4012_s29 + $0x374] sm:$0xf] %v634_v29 }
  0xaa   : > { %637 = vst [vmem:[%s4012_s29 + $0x378] sm:$0xf] %v636_v30  ;;  %639 = vst [vmem:[%s4012_s29 + $0x37c] sm:$0xf] %v638_v31 }
  0xab PF: > { %p3149_p8 = scmp.ge.s32.totalorder %s3935_s16, 1  ;;  %p1115_p9 = scmp.lt.s32.totalorder %s3935_s16, 3 }
  0xad   : > { %p1116_p10 = pnand %p3149_p8, %p1115_p9 }
  0xae   : > { %s1122_s30 = sand.u32 (!%p1116_p10), 1, %s3919_s12   ;;  %v3735_v32 = vld [vmem:[%s4813_s0 + $0x4] ss:$56 sps:$4 sm:$0xff] (!%p1116_p10)   ;;  %v3733_v0 = vld [vmem:[%s4813_s0] ss:$56 sps:$4 sm:$0xff] (!%p1116_p10)   ;;  %p1161_p11 = scmp.lt.s32.totalorder (!%p1116_p10), %s3927_s14, 1 }
  0xaf   : > { %1119 = sbr.rel (%p1116_p10) target bundleno = 553 (0x229), region = 69  ;;  %v3738_v33 = vld [vmem:[%s4813_s0 + $0xc] ss:$56 sps:$4 sm:$0xff] (!%p1116_p10)   ;;  %2453 = vmatprep.mubr.bf16.mxu0 (!%p1116_p10), %v3735_v32  ;;  %v3736_v2 = vld [vmem:[%s4813_s0 + $0x8] ss:$56 sps:$4 sm:$0xff] (!%p1116_p10)   ;;  %s3150_s27 = sshll.u32 (!%p1116_p10), %s1122_s30, 5 }
  0xb0   : > { %s3660_s4 = smul.u32 (!%p1116_p10), 896, %s1122_s30  ;;  %2518 = vmatprep.mubr.bf16.mxu1 (!%p1116_p10), %v3738_v33  ;;  %v3747_v4 = vld [vmem:[%s4813_s0 + $0x74] ss:$56 sps:$4 sm:$0xff] (!%p1116_p10)   ;;  %v3751_v14 = vld [vmem:[%s4813_s0 + $0x70] ss:$56 sps:$4 sm:$0xff] (!%p1116_p10)   ;;  %s4777_s12 = scalar_lea.vmem (!%p1116_p10), [#allocation4], %s3150_s27 }
  0xb1   : > { %v3749_v13 = vld [vmem:[%s4813_s0 + $0x7c] ss:$56 sps:$4 sm:$0xff] (!%p1116_p10)   ;;  %v3752_v15 = vld [vmem:[%s4813_s0 + $0x78] ss:$56 sps:$4 sm:$0xff] (!%p1116_p10)   ;;  %v3763_v25 = vld [vmem:[%s4813_s0 + $0xec] ss:$56 sps:$4 sm:$0xff] (!%p1116_p10)  }
  0xb2   : > { %s4468_s9 = scalar_lea.vmem (!%p1116_p10), [#allocation3], %s3660_s4  ;;  %v3761_v24 = vld [vmem:[%s4813_s0 + $0xe4] ss:$56 sps:$4 sm:$0xff] (!%p1116_p10)   ;;  %v3765_v26 = vld [vmem:[%s4813_s0 + $0xe0] ss:$56 sps:$4 sm:$0xff] (!%p1116_p10)  }
  0xb3   : > { %v3701_v34 = vld [vmem:[%s4468_s9 + $0x40] sm:$0xff] (!%p1116_p10)   ;;  %v3705_v38 = vld [vmem:[%s4468_s9 + $0x48] sm:$0xff] (!%p1116_p10)   ;;  %v3709_v42 = vld [vmem:[%s4468_s9 + $0x50] sm:$0xff] (!%p1116_p10)  }
  0xb4   : > { %v3702_v35 = vld [vmem:[%s4468_s9 + $0xc0] sm:$0xff] (!%p1116_p10)   ;;  %3363 = vmatprep.subr.bf16.mxu0 (!%p1116_p10), %v3701_v34  ;;  %v3706_v39 = vld [vmem:[%s4468_s9 + $0xc8] sm:$0xff] (!%p1116_p10)   ;;  %v3710_v43 = vld [vmem:[%s4468_s9 + $0xd0] sm:$0xff] (!%p1116_p10)  }
  0xb5   : > { %v3703_v36 = vld [vmem:[%s4468_s9] sm:$0xff] (!%p1116_p10)   ;;  %3403 = vmatprep.subr.bf16.mxu1 (!%p1116_p10), %v3702_v35  ;;  %v3707_v40 = vld [vmem:[%s4468_s9 + $0x8] sm:$0xff] (!%p1116_p10)   ;;  %v3711_v44 = vld [vmem:[%s4468_s9 + $0x10] sm:$0xff] (!%p1116_p10)  }
  0xb6   : > { %v3704_v37 = vld [vmem:[%s4468_s9 + $0x80] sm:$0xff]   ;;  %3364 = vmatpush3.bf16.msra.mxu0 %v3703_v36  ;;  %v3708_v41 = vld [vmem:[%s4468_s9 + $0x88] sm:$0xff]   ;;  %v3712_v45 = vld [vmem:[%s4468_s9 + $0x90] sm:$0xff]   ;;  %s1162_s23 = scalar_select %p1161_p11, %s3927_s14, 1 }
  0xb7   : > { %3404 = vmatpush3.bf16.msra.mxu1 %v3704_v37  ;;  %3365 = vmatprep.subr.bf16.mxu0 %v3705_v38  ;;  %v3713_v46 = vld [vmem:[%s4468_s9 + $0x58] sm:$0xff]   ;;  %v3717_v50 = vld [vmem:[%s4468_s9 + $0x60] sm:$0xff]   ;;  %v3721_v54 = vld [vmem:[%s4468_s9 + $0x68] sm:$0xff]   ;;  %s3329_s30 = sshll.u32 (%p3992_p6), %s3927_s14, 2 }
  0xb8   : > { %3405 = vmatprep.subr.bf16.mxu1 %v3706_v39  ;;  %v3714_v47 = vld [vmem:[%s4468_s9 + $0xd8] sm:$0xff]   ;;  %v3718_v51 = vld [vmem:[%s4468_s9 + $0xe0] sm:$0xff]   ;;  %v3722_v55 = vld [vmem:[%s4468_s9 + $0xe8] sm:$0xff]   ;;  %s1163_s26 = scalar_lea.vmem %s4815_s2, %s1162_s23  ;;  %s2977_s4 = scalar_lea.vmem (%p3992_p6), %s4816_s3, %s3329_s30 }
  0xb9   : > { %v3715_v48 = vld [vmem:[%s4468_s9 + $0x18] sm:$0xff]   ;;  %v3719_v52 = vld [vmem:[%s4468_s9 + $0x20] sm:$0xff]   ;;  %v3723_v56 = vld [vmem:[%s4468_s9 + $0x28] sm:$0xff]  }
  0xba   : > { %3366 = vmatpush3.bf16.msra.mxu0 %v3707_v40  ;;  %v3716_v49 = vld [vmem:[%s4468_s9 + $0x98] sm:$0xff]   ;;  %v3720_v53 = vld [vmem:[%s4468_s9 + $0xa0] sm:$0xff]   ;;  %v3724_v57 = vld [vmem:[%s4468_s9 + $0xa8] sm:$0xff]  }
  0xbb   : > { %3406 = vmatpush3.bf16.msra.mxu1 %v3708_v41  ;;  %3367 = vmatprep.subr.bf16.mxu0 %v3709_v42  ;;  %v3725_v58 = vld [vmem:[%s4468_s9 + $0x70] sm:$0xff]   ;;  %v3729_v62 = vld [vmem:[%s4468_s9 + $0x78] sm:$0xff]   ;;  %v3739_v5 = vld [vmem:[%s4468_s9 + $0x140] sm:$0xff]  }
  0xbc   : > { %3407 = vmatprep.subr.bf16.mxu1 %v3710_v43  ;;  %v3726_v59 = vld [vmem:[%s4468_s9 + $0xf0] sm:$0xff]   ;;  %v3730_v63 = vld [vmem:[%s4468_s9 + $0xf8] sm:$0xff]   ;;  %v3740_v6 = vld [vmem:[%s4468_s9 + $0x1c0] sm:$0xff]  }
  0xbd   : > { %v3727_v60 = vld [vmem:[%s4468_s9 + $0x30] sm:$0xff]   ;;  %v3731_v1 = vld [vmem:[%s4468_s9 + $0x38] sm:$0xff]   ;;  %v3741_v7 = vld [vmem:[%s4468_s9 + $0x100] sm:$0xff]  }
  0xbe   : > { %3368 = vmatpush3.bf16.msra.mxu0 %v3711_v44  ;;  %v3728_v61 = vld [vmem:[%s4468_s9 + $0xb0] sm:$0xff]   ;;  %v3732_v3 = vld [vmem:[%s4468_s9 + $0xb8] sm:$0xff]   ;;  %v3742_v8 = vld [vmem:[%s4468_s9 + $0x180] sm:$0xff]  }
  0xbf   : > { %3408 = vmatpush3.bf16.msra.mxu1 %v3712_v45  ;;  %3369 = vmatprep.subr.bf16.mxu0 %v3713_v46  ;;  %v3743_v9 = vld [vmem:[%s4468_s9 + $0x148] sm:$0xff]   ;;  %v3753_v16 = vld [vmem:[%s4468_s9 + $0x150] sm:$0xff]   ;;  %v3757_v20 = vld [vmem:[%s4468_s9 + $0x158] sm:$0xff]  }
  0xc0   : > { %3409 = vmatprep.subr.bf16.mxu1 %v3714_v47  ;;  %v3744_v10 = vld [vmem:[%s4468_s9 + $0x1c8] sm:$0xff]   ;;  %v3754_v17 = vld [vmem:[%s4468_s9 + $0x1d0] sm:$0xff]   ;;  %v3758_v21 = vld [vmem:[%s4468_s9 + $0x1d8] sm:$0xff]  }
  0xc1   : > { %v3745_v11 = vld [vmem:[%s4468_s9 + $0x108] sm:$0xff]   ;;  %v3755_v18 = vld [vmem:[%s4468_s9 + $0x110] sm:$0xff]   ;;  %v3759_v22 = vld [vmem:[%s4468_s9 + $0x118] sm:$0xff]  }
  0xc2   : > { %3370 = vmatpush3.bf16.msra.mxu0 %v3715_v48  ;;  %v3746_v12 = vld [vmem:[%s4468_s9 + $0x188] sm:$0xff]   ;;  %v3756_v19 = vld [vmem:[%s4468_s9 + $0x190] sm:$0xff]   ;;  %v3760_v23 = vld [vmem:[%s4468_s9 + $0x198] sm:$0xff]  }
  0xc3   : > { %3410 = vmatpush3.bf16.msra.mxu1 %v3716_v49  ;;  %3371 = vmatprep.subr.bf16.mxu0 %v3717_v50  ;;  %v3766_v27 = vld [vmem:[%s4813_s0 + $0xe8] ss:$56 sps:$4 sm:$0xff]   ;;  %v3775_v36 = vld [vmem:[%s4813_s0 + $0x154] ss:$56 sps:$4 sm:$0xff]   ;;  %v3780_v39 = vld [vmem:[%s4813_s0 + $0x158] ss:$56 sps:$4 sm:$0xff]  }
  0xc4   : > { %3411 = vmatprep.subr.bf16.mxu1 %v3718_v51  ;;  %v3767_v28 = vld [vmem:[%s4468_s9 + $0x160] sm:$0xff]   ;;  %v3771_v32 = vld [vmem:[%s4468_s9 + $0x168] sm:$0xff]   ;;  %v3777_v37 = vld [vmem:[%s4813_s0 + $0x15c] ss:$56 sps:$4 sm:$0xff]  }
  0xc5   : > { %v3768_v29 = vld [vmem:[%s4468_s9 + $0x1e0] sm:$0xff]   ;;  %v3772_v33 = vld [vmem:[%s4468_s9 + $0x1e8] sm:$0xff]   ;;  %v3781_v40 = vld [vmem:[%s4468_s9 + $0x170] sm:$0xff]  }
  0xc6   : > { %3372 = vmatpush3.bf16.msra.mxu0 %v3719_v52  ;;  %v3769_v30 = vld [vmem:[%s4468_s9 + $0x120] sm:$0xff]   ;;  %v3773_v34 = vld [vmem:[%s4468_s9 + $0x128] sm:$0xff]   ;;  %v3782_v41 = vld [vmem:[%s4468_s9 + $0x1f0] sm:$0xff]  }
  0xc7   : > { %3412 = vmatpush3.bf16.msra.mxu1 %v3720_v53  ;;  %3373 = vmatprep.subr.bf16.mxu0 %v3721_v54  ;;  %v3770_v31 = vld [vmem:[%s4468_s9 + $0x1a0] sm:$0xff]   ;;  %v3774_v35 = vld [vmem:[%s4468_s9 + $0x1a8] sm:$0xff]   ;;  %v3783_v42 = vld [vmem:[%s4468_s9 + $0x130] sm:$0xff]  }
  0xc8   : > { %3413 = vmatprep.subr.bf16.mxu1 %v3722_v55  ;;  %v3779_v38 = vld [vmem:[%s4813_s0 + $0x150] ss:$56 sps:$4 sm:$0xff]   ;;  %v3785_v44 = vld [vmem:[%s4468_s9 + $0x178] sm:$0xff]   ;;  %v3791_v49 = vld [vmem:[%s4813_s0 + $0x14] ss:$56 sps:$4 sm:$0xff]  }
  0xc9   : > { %v3784_v43 = vld [vmem:[%s4468_s9 + $0x1b0] sm:$0xff]   ;;  %v3786_v45 = vld [vmem:[%s4468_s9 + $0x1f8] sm:$0xff]   ;;  %v3795_v52 = vld [vmem:[%s4468_s9 + $0x240] sm:$0xff]  }
  0xca   : > { %3374 = vmatpush3.bf16.msra.mxu0 %v3723_v56  ;;  %v3787_v46 = vld [vmem:[%s4468_s9 + $0x138] sm:$0xff]   ;;  %v3789_v48 = vld [vmem:[%s4813_s0 + $0x10] ss:$56 sps:$4 sm:$0xff]   ;;  %v3796_v53 = vld [vmem:[%s4468_s9 + $0x2c0] sm:$0xff]  }
  0xcb   : > { %3414 = vmatpush3.bf16.msra.mxu1 %v3724_v57  ;;  %3375 = vmatprep.subr.bf16.mxu0 %v3725_v58  ;;  %v3788_v47 = vld [vmem:[%s4468_s9 + $0x1b8] sm:$0xff]   ;;  %v3797_v54 = vld [vmem:[%s4468_s9 + $0x200] sm:$0xff]   ;;  %v3799_v56 = vld [vmem:[%s4468_s9 + $0x248] sm:$0xff]  }
  0xcc   : > { %3415 = vmatprep.subr.bf16.mxu1 %v3726_v59  ;;  %v3792_v50 = vld [vmem:[%s4813_s0 + $0x18] ss:$56 sps:$4 sm:$0xff]   ;;  %v3794_v51 = vld [vmem:[%s4813_s0 + $0x1c] ss:$56 sps:$4 sm:$0xff]   ;;  %v3798_v55 = vld [vmem:[%s4468_s9 + $0x280] sm:$0xff]  }
  0xcd   : > { %v3800_v57 = vld [vmem:[%s4468_s9 + $0x2c8] sm:$0xff]  }
  0xce   : > { %3376 = vmatpush3.bf16.msra.mxu0 %v3727_v60  ;;  %v3801_v58 = vld [vmem:[%s4468_s9 + $0x208] sm:$0xff]   ;;  %v3803_v60 = vld [vmem:[%s4813_s0 + $0x84] ss:$56 sps:$4 sm:$0xff]  }
  0xcf   : > { %3416 = vmatpush3.bf16.msra.mxu1 %v3728_v61  ;;  %3377 = vmatprep.subr.bf16.mxu0 %v3729_v62  ;;  %v3802_v59 = vld [vmem:[%s4468_s9 + $0x288] sm:$0xff]   ;;  %v3807_v62 = vld [vmem:[%s4813_s0 + $0x80] ss:$56 sps:$4 sm:$0xff]  }
  0xd0   : > { %3417 = vmatprep.subr.bf16.mxu1 %v3730_v63  ;;  %v3805_v61 = vld [vmem:[%s4813_s0 + $0x8c] ss:$56 sps:$4 sm:$0xff]   ;;  %v3808_v63 = vld [vmem:[%s4813_s0 + $0x88] ss:$56 sps:$4 sm:$0xff]  }
  0xd2   : > { %3378 = vmatpush3.bf16.msra.mxu0 %v3731_v1  ;;  %v3810_v1 = vld [vmem:[%s4468_s9 + $0x2d0] sm:$0xff]  }
  0xd3   : > { %3418 = vmatpush3.bf16.msra.mxu1 %v3732_v3  ;;  %3443 = vmatprep.subr.bf16.mxu0 %v3739_v5  ;;  %v3812_v3 = vld [vmem:[%s4468_s9 + $0x290] sm:$0xff]   ;;  %v3814_v5 = vld [vmem:[%s4468_s9 + $0x2d8] sm:$0xff]  }
  0xd4   : > { %3483 = vmatprep.subr.bf16.mxu1 %v3740_v6  ;;  %v3815_v6 = vld [vmem:[%s4468_s9 + $0x218] sm:$0xff]  }
  0xd5   : > { %2454 = vmatmul.mubr.bf16.vlgmr.msra.gmra.mrb[0].mxu0 %v3733_v0  ;;  %v3809_v0 = vld [vmem:[%s4468_s9 + $0x250] sm:$0xff]  }
  0xd6   : > { %2519 = vmatmul.mubr.bf16.vlgmr.msra.gmra.mrb[0].mxu1 %v3736_v2  ;;  %3444 = vmatpush3.bf16.msra.mxu0 %v3741_v7  ;;  %v3811_v2 = vld [vmem:[%s4468_s9 + $0x210] sm:$0xff]   ;;  %v3816_v7 = vld [vmem:[%s4468_s9 + $0x298] sm:$0xff]  }
  0xd7   : > { %3484 = vmatpush3.bf16.msra.mxu1 %v3742_v8  ;;  %2461 = vmatprep.mubr.bf16.mxu0 %v3747_v4  ;;  %v3813_v4 = vld [vmem:[%s4468_s9 + $0x258] sm:$0xff]   ;;  %v3817_v8 = vld [vmem:[%s4813_s0 + $0xf4] ss:$56 sps:$4 sm:$0xff]  }
  0xd8   : > { %3445 = vmatprep.subr.bf16.mxu0 %v3743_v9  ;;  %3485 = vmatprep.subr.bf16.mxu1 %v3744_v10  ;;  %v3819_v9 = vld [vmem:[%s4813_s0 + $0xfc] ss:$56 sps:$4 sm:$0xff]   ;;  %v3821_v10 = vld [vmem:[%s4813_s0 + $0xf0] ss:$56 sps:$4 sm:$0xff]  }
  0xd9   : > { %2526 = vmatprep.mubr.bf16.mxu1 %v3749_v13  ;;  %v3824_v13 = vld [vmem:[%s4468_s9 + $0x2e0] sm:$0xff]  }
  0xda   : > { %3446 = vmatpush3.bf16.msra.mxu0 %v3745_v11  ;;  %v3822_v11 = vld [vmem:[%s4813_s0 + $0xf8] ss:$56 sps:$4 sm:$0xff]  }
  0xdb   : > { %3486 = vmatpush3.bf16.msra.mxu1 %v3746_v12  ;;  %3447 = vmatprep.subr.bf16.mxu0 %v3753_v16  ;;  %v3823_v12 = vld [vmem:[%s4468_s9 + $0x260] sm:$0xff]   ;;  %v3827_v16 = vld [vmem:[%s4468_s9 + $0x268] sm:$0xff]  }
  0xdc   : > { %3487 = vmatprep.subr.bf16.mxu1 %v3754_v17  ;;  %v3828_v17 = vld [vmem:[%s4468_s9 + $0x2e8] sm:$0xff]  }
  0xdd   : > { %2462 = vmatmul.mubr.bf16.gmra.mrb[4].mxu0 %v3751_v14  ;;  %v3825_v14 = vld [vmem:[%s4468_s9 + $0x220] sm:$0xff]  }
  0xde   : > { %2527 = vmatmul.mubr.bf16.gmra.mrb[4].mxu1 %v3752_v15  ;;  %3448 = vmatpush3.bf16.msra.mxu0 %v3755_v18  ;;  %v3826_v15 = vld [vmem:[%s4468_s9 + $0x2a0] sm:$0xff]   ;;  %v3829_v18 = vld [vmem:[%s4468_s9 + $0x228] sm:$0xff]  }
  0xdf   : > { %3488 = vmatpush3.bf16.msra.mxu1 %v3756_v19  ;;  %3449 = vmatprep.subr.bf16.mxu0 %v3757_v20  ;;  %v3830_v19 = vld [vmem:[%s4468_s9 + $0x2a8] sm:$0xff]   ;;  %v3831_v20 = vld [vmem:[%s4813_s0 + $0x164] ss:$56 sps:$4 sm:$0xff]  }
  0xe0   : > { %3489 = vmatprep.subr.bf16.mxu1 %v3758_v21  ;;  %2469 = vmatprep.mubr.bf16.mxu0 %v3761_v24  ;;  %v3833_v21 = vld [vmem:[%s4813_s0 + $0x16c] ss:$56 sps:$4 sm:$0xff]   ;;  %v3837_v24 = vld [vmem:[%s4468_s9 + $0x270] sm:$0xff]  }
  0xe1   : > { %2534 = vmatprep.mubr.bf16.mxu1 %v3763_v25  ;;  %v3838_v25 = vld [vmem:[%s4468_s9 + $0x2f0] sm:$0xff]  }
  0xe2   : > { %3450 = vmatpush3.bf16.msra.mxu0 %v3759_v22  ;;  %v3835_v22 = vld [vmem:[%s4813_s0 + $0x160] ss:$56 sps:$4 sm:$0xff]  }
  0xe3   : > { %3490 = vmatpush3.bf16.msra.mxu1 %v3760_v23  ;;  %3451 = vmatprep.subr.bf16.mxu0 %v3767_v28  ;;  %v3836_v23 = vld [vmem:[%s4813_s0 + $0x168] ss:$56 sps:$4 sm:$0xff]   ;;  %v3841_v28 = vld [vmem:[%s4468_s9 + $0x278] sm:$0xff]  }
  0xe4   : > { %3491 = vmatprep.subr.bf16.mxu1 %v3768_v29  ;;  %v3842_v29 = vld [vmem:[%s4468_s9 + $0x2f8] sm:$0xff]  }
  0xe5   : > { %2470 = vmatmul.mubr.bf16.gmra.mrb[8].mxu0 %v3765_v26  ;;  %v3839_v26 = vld [vmem:[%s4468_s9 + $0x230] sm:$0xff]  }
  0xe6   : > { %2535 = vmatmul.mubr.bf16.gmra.mrb[8].mxu1 %v3766_v27  ;;  %3452 = vmatpush3.bf16.msra.mxu0 %v3769_v30  ;;  %v3840_v27 = vld [vmem:[%s4468_s9 + $0x2b0] sm:$0xff]   ;;  %v3843_v30 = vld [vmem:[%s4468_s9 + $0x238] sm:$0xff]  }
  0xe7   : > { %3492 = vmatpush3.bf16.msra.mxu1 %v3770_v31  ;;  %3453 = vmatprep.subr.bf16.mxu0 %v3771_v32  ;;  %v3844_v31 = vld [vmem:[%s4468_s9 + $0x2b8] sm:$0xff]  }
  0xe8   : > { %3493 = vmatprep.subr.bf16.mxu1 %v3772_v33  ;;  %2477 = vmatprep.mubr.bf16.mxu0 %v3775_v36  ;;  %v3845_v32 = vld [vmem:[%s4813_s0 + $0x20] ss:$56 sps:$4 sm:$0xff]   ;;  %v3847_v33 = vld [vmem:[%s4813_s0 + $0x24] ss:$56 sps:$4 sm:$0xff]  }
  0xe9   : > { %2542 = vmatprep.mubr.bf16.mxu1 %v3777_v37  ;;  %v3851_v36 = vld [vmem:[%s4468_s9 + $0x340] sm:$0xff]  }
  0xea   : > { %3454 = vmatpush3.bf16.msra.mxu0 %v3773_v34  ;;  %v3848_v34 = vld [vmem:[%s4813_s0 + $0x28] ss:$56 sps:$4 sm:$0xff]  }
  0xeb   : > { %3494 = vmatpush3.bf16.msra.mxu1 %v3774_v35  ;;  %3455 = vmatprep.subr.bf16.mxu0 %v3781_v40  ;;  %v3850_v35 = vld [vmem:[%s4813_s0 + $0x2c] ss:$56 sps:$4 sm:$0xff]  }
  0xec   : > { %3495 = vmatprep.subr.bf16.mxu1 %v3782_v41  ;;  %v3852_v37 = vld [vmem:[%s4468_s9 + $0x300] sm:$0xff]   ;;  %v3855_v40 = vld [vmem:[%s4813_s0 + $0x94] ss:$56 sps:$4 sm:$0xff]  }
  0xed   : > { %2478 = vmatmul.mubr.bf16.gmra.mrb[12].mxu0 %v3779_v38  ;;  %v3853_v38 = vld [vmem:[%s4468_s9 + $0x348] sm:$0xff]   ;;  %v3857_v41 = vld [vmem:[%s4813_s0 + $0x9c] ss:$56 sps:$4 sm:$0xff]  }
  0xee   : > { %2543 = vmatmul.mubr.bf16.gmra.mrb[12].mxu1 %v3780_v39  ;;  %3456 = vmatpush3.bf16.msra.mxu0 %v3783_v42  ;;  %v3854_v39 = vld [vmem:[%s4468_s9 + $0x308] sm:$0xff]  }
  0xef   : > { %3496 = vmatpush3.bf16.msra.mxu1 %v3784_v43  ;;  %3457 = vmatprep.subr.bf16.mxu0 %v3785_v44  ;;  %v3859_v42 = vld [vmem:[%s4813_s0 + $0x90] ss:$56 sps:$4 sm:$0xff]  }
  0xf0   : > { %3497 = vmatprep.subr.bf16.mxu1 %v3786_v45  ;;  %2583 = vmatprep.mubr.bf16.mxu0 %v3791_v49  ;;  %v3860_v43 = vld [vmem:[%s4813_s0 + $0x98] ss:$56 sps:$4 sm:$0xff]   ;;  %v3867_v49 = vld [vmem:[%s4813_s0 + $0x10c] ss:$56 sps:$4 sm:$0xff]  }
  0xf1   : > { %2648 = vmatprep.mubr.bf16.mxu1 %v3794_v51  ;;  %v3861_v44 = vld [vmem:[%s4468_s9 + $0x350] sm:$0xff]   ;;  %v3870_v51 = vld [vmem:[%s4813_s0 + $0x108] ss:$56 sps:$4 sm:$0xff]  }
  0xf2   : > { %3458 = vmatpush3.bf16.msra.mxu0 %v3787_v46  ;;  %v3862_v45 = vld [vmem:[%s4468_s9 + $0x310] sm:$0xff]   ;;  %v3863_v46 = vld [vmem:[%s4468_s9 + $0x358] sm:$0xff]  }
  0xf3   : > { %3498 = vmatpush3.bf16.msra.mxu1 %v3788_v47  ;;  %3523 = vmatprep.subr.bf16.mxu0 %v3795_v52  ;;  %v3864_v47 = vld [vmem:[%s4468_s9 + $0x318] sm:$0xff]   ;;  %v3871_v52 = vld [vmem:[%s4468_s9 + $0x360] sm:$0xff]  }
  0xf4   : > { %3563 = vmatprep.subr.bf16.mxu1 %v3796_v53  ;;  %v3872_v53 = vld [vmem:[%s4468_s9 + $0x320] sm:$0xff]  }
  0xf5   : > { %2584 = vmatmul.mubr.bf16.vlgmr.msra.gmra.mrb[16].mxu0 %v3789_v48  ;;  %v3865_v48 = vld [vmem:[%s4813_s0 + $0x104] ss:$56 sps:$4 sm:$0xff]  }
  0xf6   : > { %2649 = vmatmul.mubr.bf16.vlgmr.msra.gmra.mrb[16].mxu1 %v3792_v50  ;;  %3524 = vmatpush3.bf16.msra.mxu0 %v3797_v54  ;;  %v3869_v50 = vld [vmem:[%s4813_s0 + $0x100] ss:$56 sps:$4 sm:$0xff]   ;;  %v3873_v54 = vld [vmem:[%s4468_s9 + $0x368] sm:$0xff]  }
  0xf7   : > { %3564 = vmatpush3.bf16.msra.mxu1 %v3798_v55  ;;  %3525 = vmatprep.subr.bf16.mxu0 %v3799_v56  ;;  %v3875_v55 = vld [vmem:[%s4813_s0 + $0x174] ss:$56 sps:$4 sm:$0xff]  }
  0xf8   : > { %3565 = vmatprep.subr.bf16.mxu1 %v3800_v57  ;;  %2591 = vmatprep.mubr.bf16.mxu0 %v3803_v60  ;;  %v3874_v56 = vld [vmem:[%s4468_s9 + $0x328] sm:$0xff]   ;;  %v3877_v57 = vld [vmem:[%s4813_s0 + $0x17c] ss:$56 sps:$4 sm:$0xff]   ;;  %v3880_v60 = vld [vmem:[%s4813_s0 + $0x178] ss:$56 sps:$4 sm:$0xff]  }
  0xf9   : > { %2656 = vmatprep.mubr.bf16.mxu1 %v3805_v61  ;;  %v3882_v61 = vld [vmem:[%s4468_s9 + $0x330] sm:$0xff]  }
  0xfa   : > { %3526 = vmatpush3.bf16.msra.mxu0 %v3801_v58  ;;  %v3881_v58 = vld [vmem:[%s4468_s9 + $0x370] sm:$0xff]  }
  0xfb   : > { %3566 = vmatpush3.bf16.msra.mxu1 %v3802_v59  ;;  %3527 = vmatprep.subr.bf16.mxu0 %v3809_v0  ;;  %v3879_v59 = vld [vmem:[%s4813_s0 + $0x170] ss:$56 sps:$4 sm:$0xff]   ;;  %v3890_v0 = vld [vmem:[%s4813_s0 + $0x114] ss:$56 sps:$4 sm:$0xff]  }
  0xfc   : > { %3567 = vmatprep.subr.bf16.mxu1 %v3810_v1  ;;  %v3884_v1 = vld [vmem:[%s4468_s9 + $0x338] sm:$0xff]  }
  0xfd   : > { %2592 = vmatmul.mubr.bf16.gmra.mrb[20].mxu0 %v3807_v62  ;;  %v3883_v62 = vld [vmem:[%s4468_s9 + $0x378] sm:$0xff]  }
  0xfe   : > { %2657 = vmatmul.mubr.bf16.gmra.mrb[20].mxu1 %v3808_v63  ;;  %3528 = vmatpush3.bf16.msra.mxu0 %v3811_v2  ;;  %v3887_v63 = vld [vmem:[%s4813_s0 + $0x34] ss:$56 sps:$4 sm:$0xff]   ;;  %v3885_v2 = vld [vmem:[%s4813_s0 + $0x30] ss:$56 sps:$4 sm:$0xff]  }
  0xff   : > { %3568 = vmatpush3.bf16.msra.mxu1 %v3812_v3  ;;  %3529 = vmatprep.subr.bf16.mxu0 %v3813_v4  ;;  %v3888_v3 = vld [vmem:[%s4813_s0 + $0x110] ss:$56 sps:$4 sm:$0xff]   ;;  %v3891_v4 = vld [vmem:[%s4813_s0 + $0xa4] ss:$56 sps:$4 sm:$0xff]  }
 0x100   : > { %3569 = vmatprep.subr.bf16.mxu1 %v3814_v5  ;;  %2599 = vmatprep.mubr.bf16.mxu0 %v3817_v8  ;;  %v3893_v5 = vld [vmem:[%s4813_s0 + $0x184] ss:$56 sps:$4 sm:$0xff]  }
 0x101   : > { %2664 = vmatprep.mubr.bf16.mxu1 %v3819_v9 }
 0x102   : > { %3530 = vmatpush3.bf16.msra.mxu0 %v3815_v6  ;;  %v3895_v6 = vld [vmem:[%s4813_s0 + $0xa0] ss:$56 sps:$4 sm:$0xff]  }
 0x103   : > { %3570 = vmatpush3.bf16.msra.mxu1 %v3816_v7  ;;  %3531 = vmatprep.subr.bf16.mxu0 %v3823_v12  ;;  %v3896_v7 = vld [vmem:[%s4813_s0 + $0x180] ss:$56 sps:$4 sm:$0xff]  }
 0x104   : > { %3571 = vmatprep.subr.bf16.mxu1 %v3824_v13 }
 0x105   : > { %2600 = vmatmul.mubr.bf16.gmra.mrb[24].mxu0 %v3821_v10 }
 0x106   : > { %2665 = vmatmul.mubr.bf16.gmra.mrb[24].mxu1 %v3822_v11  ;;  %3532 = vmatpush3.bf16.msra.mxu0 %v3825_v14 }
 0x107   : > { %3572 = vmatpush3.bf16.msra.mxu1 %v3826_v15  ;;  %3533 = vmatprep.subr.bf16.mxu0 %v3827_v16 }
 0x108   : > { %3573 = vmatprep.subr.bf16.mxu1 %v3828_v17  ;;  %2607 = vmatprep.mubr.bf16.mxu0 %v3831_v20 }
 0x109   : > { %2672 = vmatprep.mubr.bf16.mxu1 %v3833_v21 }
 0x10a   : > { %3534 = vmatpush3.bf16.msra.mxu0 %v3829_v18 }
 0x10b   : > { %3574 = vmatpush3.bf16.msra.mxu1 %v3830_v19  ;;  %3535 = vmatprep.subr.bf16.mxu0 %v3837_v24 }
 0x10c   : > { %3575 = vmatprep.subr.bf16.mxu1 %v3838_v25 }
 0x10d   : > { %2608 = vmatmul.mubr.bf16.gmra.mrb[28].mxu0 %v3835_v22 }
 0x10e   : > { %2673 = vmatmul.mubr.bf16.gmra.mrb[28].mxu1 %v3836_v23  ;;  %3536 = vmatpush3.bf16.msra.mxu0 %v3839_v26 }
 0x10f   : > { %3576 = vmatpush3.bf16.msra.mxu1 %v3840_v27  ;;  %3537 = vmatprep.subr.bf16.mxu0 %v3841_v28 }
 0x110   : > { %3577 = vmatprep.subr.bf16.mxu1 %v3842_v29  ;;  %2713 = vmatprep.mubr.bf16.mxu0 %v3847_v33 }
 0x111   : > { %2778 = vmatprep.mubr.bf16.mxu1 %v3850_v35 }
 0x112   : > { %3538 = vmatpush3.bf16.msra.mxu0 %v3843_v30 }
 0x113   : > { %3578 = vmatpush3.bf16.msra.mxu1 %v3844_v31  ;;  %3603 = vmatprep.subr.bf16.mxu0 %v3851_v36 }
 0x114   : > { %3643 = vmatprep.subr.bf16.mxu1 %v3851_v36 }
 0x115   : > { %2714 = vmatmul.mubr.bf16.vlgmr.msra.gmra.mrb[32].mxu0 %v3845_v32 }
 0x116   : > { %2779 = vmatmul.mubr.bf16.vlgmr.msra.gmra.mrb[32].mxu1 %v3848_v34  ;;  %3604 = vmatpush3.bf16.msra.mxu0 %v3852_v37 }
 0x117   : > { %3651 = vmatpush3.bf16.msra.mxu1 %v3852_v37  ;;  %3605 = vmatprep.subr.bf16.mxu0 %v3853_v38 }
 0x118   : > { %3644 = vmatprep.subr.bf16.mxu1 %v3853_v38  ;;  %2721 = vmatprep.mubr.bf16.mxu0 %v3855_v40 }
 0x119   : > { %2786 = vmatprep.mubr.bf16.mxu1 %v3857_v41 }
 0x11a   : > { %3606 = vmatpush3.bf16.msra.mxu0 %v3854_v39 }
 0x11b   : > { %3652 = vmatpush3.bf16.msra.mxu1 %v3854_v39  ;;  %3607 = vmatprep.subr.bf16.mxu0 %v3861_v44 }
 0x11c   : > { %3645 = vmatprep.subr.bf16.mxu1 %v3861_v44 }
 0x11d   : > { %2722 = vmatmul.mubr.bf16.gmra.mrb[36].mxu0 %v3859_v42 }
 0x11e   : > { %2787 = vmatmul.mubr.bf16.gmra.mrb[36].mxu1 %v3860_v43  ;;  %3608 = vmatpush3.bf16.msra.mxu0 %v3862_v45 }
 0x11f   : > { %3653 = vmatpush3.bf16.msra.mxu1 %v3862_v45  ;;  %3609 = vmatprep.subr.bf16.mxu0 %v3863_v46 }
 0x120   : > { %3646 = vmatprep.subr.bf16.mxu1 %v3863_v46  ;;  %2729 = vmatprep.mubr.bf16.mxu0 %v3865_v48 }
 0x121   : > { %2794 = vmatprep.mubr.bf16.mxu1 %v3867_v49 }
 0x122   : > { %3610 = vmatpush3.bf16.msra.mxu0 %v3864_v47 }
 0x123   : > { %3654 = vmatpush3.bf16.msra.mxu1 %v3864_v47  ;;  %3611 = vmatprep.subr.bf16.mxu0 %v3871_v52 }
 0x124   : > { %3647 = vmatprep.subr.bf16.mxu1 %v3871_v52 }
 0x125   : > { %2730 = vmatmul.mubr.bf16.gmra.mrb[40].mxu0 %v3869_v50 }
 0x126   : > { %2795 = vmatmul.mubr.bf16.gmra.mrb[40].mxu1 %v3870_v51  ;;  %3612 = vmatpush3.bf16.msra.mxu0 %v3872_v53 }
 0x127   : > { %3655 = vmatpush3.bf16.msra.mxu1 %v3872_v53  ;;  %3613 = vmatprep.subr.bf16.mxu0 %v3873_v54 }
 0x128   : > { %3648 = vmatprep.subr.bf16.mxu1 %v3873_v54  ;;  %2737 = vmatprep.mubr.bf16.mxu0 %v3875_v55 }
 0x129   : > { %2802 = vmatprep.mubr.bf16.mxu1 %v3877_v57 }
 0x12a   : > { %3614 = vmatpush3.bf16.msra.mxu0 %v3874_v56 }
 0x12b   : > { %3656 = vmatpush3.bf16.msra.mxu1 %v3874_v56  ;;  %3615 = vmatprep.subr.bf16.mxu0 %v3881_v58 }
 0x12c   : > { %3649 = vmatprep.subr.bf16.mxu1 %v3881_v58 }
 0x12d   : > { %2738 = vmatmul.mubr.bf16.gmra.mrb[44].mxu0 %v3879_v59 }
 0x12e   : > { %2803 = vmatmul.mubr.bf16.gmra.mrb[44].mxu1 %v3880_v60  ;;  %3616 = vmatpush3.bf16.msra.mxu0 %v3882_v61 }
 0x12f   : > { %2843 = vmatprep.mubr.bf16.mxu0 %v3887_v63  ;;  %3657 = vmatpush3.bf16.msra.mxu1 %v3882_v61 }
 0x130   : > { %3617 = vmatprep.subr.bf16.mxu0 %v3883_v62  ;;  %3650 = vmatprep.subr.bf16.mxu1 %v3883_v62 }
 0x131   : > { %2859 = vmatprep.mubr.bf16.mxu1 %v3890_v0 }
 0x132   : > { %3618 = vmatpush3.bf16.msra.mxu0 %v3884_v1 }
 0x133   : > { %3658 = vmatpush3.bf16.msra.mxu1 %v3884_v1 }
 0x135   : > { %2844 = vmatmul.mubr.bf16.vlgmr.msra.gmra.mrb[48].mxu0 %v3885_v2 }
 0x136   : > { %2860 = vmatmul.mubr.bf16.vlgmr.msra.gmra.mrb[48].mxu1 %v3888_v3  ;;  %2851 = vmatprep.mubr.bf16.mxu0 %v3891_v4 }
 0x137   : > { %2867 = vmatprep.mubr.bf16.mxu1 %v3893_v5 }
 0x13d   : > { %2852 = vmatmul.mubr.bf16.gmra.mrb[52].mxu0 %v3895_v6 }
 0x13e   : > { %2868 = vmatmul.mubr.bf16.gmra.mrb[52].mxu1 %v3896_v7 }
 0x1a8   : > { %v3379_v8 = vpop.f32.mrb[0].mxu0 }
 0x1a9   : > { %v3419_v9 = vpop.f32.mrb[0].mxu1  ;;  %v3380_v10 = vpop.f32.mrb[1].mxu0 }
 0x1aa   : > { %v3381_v11 = vadd.f32 %v3380_v10, %v3379_v8  ;;  %v3420_v12 = vpop.f32.mrb[1].mxu1  ;;  %v3382_v13 = vpop.f32.mrb[2].mxu0 }
 0x1ab   : > { %v3421_v14 = vadd.f32 %v3420_v12, %v3419_v9  ;;  %v3422_v15 = vpop.f32.mrb[2].mxu1  ;;  %v3383_v16 = vpop.f32.mrb[3].mxu0 }
 0x1ac   : > { %v3384_v17 = vadd.f32 %v3383_v16, %v3382_v13  ;;  %v3423_v18 = vpop.f32.mrb[3].mxu1 }
 0x1ad   : > { %v2521_v19 = vadd.f32 %v3421_v14, %v3381_v11  ;;  %v3424_v20 = vadd.f32 %v3423_v18, %v3422_v15 }
 0x1af   : > { %v2524_v21 = vadd.f32 %v3424_v20, %v3384_v17 }
 0x1b0   : > { %v3385_v22 = vpop.f32.mrb[4].mxu0 }
 0x1b1   : > { %v3425_v23 = vpop.f32.mrb[4].mxu1  ;;  %v3386_v24 = vpop.f32.mrb[5].mxu0 }
 0x1b2   : > { %v3387_v25 = vadd.f32 %v3386_v24, %v3385_v22  ;;  %v3426_v26 = vpop.f32.mrb[5].mxu1  ;;  %v3388_v27 = vpop.f32.mrb[6].mxu0 }
 0x1b3   : > { %v3427_v28 = vadd.f32 %v3426_v26, %v3425_v23  ;;  %v3428_v29 = vpop.f32.mrb[6].mxu1  ;;  %v3389_v30 = vpop.f32.mrb[7].mxu0 }
 0x1b4   : > { %v3390_v31 = vadd.f32 %v3389_v30, %v3388_v27  ;;  %v3429_v32 = vpop.f32.mrb[7].mxu1 }
 0x1b5   : > { %v2529_v33 = vadd.f32 %v3427_v28, %v3387_v25  ;;  %v3430_v34 = vadd.f32 %v3429_v32, %v3428_v29 }
 0x1b7   : > { %v2532_v35 = vadd.f32 %v3430_v34, %v3390_v31 }
 0x1b8   : > { %v3391_v36 = vpop.f32.mrb[8].mxu0 }
 0x1b9   : > { %v3431_v37 = vpop.f32.mrb[8].mxu1  ;;  %v3392_v38 = vpop.f32.mrb[9].mxu0 }
 0x1ba   : > { %v3393_v39 = vadd.f32 %v3392_v38, %v3391_v36  ;;  %v3432_v40 = vpop.f32.mrb[9].mxu1  ;;  %v3394_v41 = vpop.f32.mrb[10].mxu0 }
 0x1bb   : > { %v3433_v42 = vadd.f32 %v3432_v40, %v3431_v37  ;;  %v3434_v43 = vpop.f32.mrb[10].mxu1  ;;  %v3395_v44 = vpop.f32.mrb[11].mxu0 }
 0x1bc   : > { %v3396_v45 = vadd.f32 %v3395_v44, %v3394_v41  ;;  %v3435_v46 = vpop.f32.mrb[11].mxu1 }
 0x1bd   : > { %v2537_v47 = vadd.f32 %v3433_v42, %v3393_v39  ;;  %v3436_v48 = vadd.f32 %v3435_v46, %v3434_v43 }
 0x1bf   : > { %v2540_v49 = vadd.f32 %v3436_v48, %v3396_v45 }
 0x1c0   : > { %v3397_v50 = vpop.f32.mrb[12].mxu0 }
 0x1c1   : > { %v3437_v51 = vpop.f32.mrb[12].mxu1  ;;  %v3398_v52 = vpop.f32.mrb[13].mxu0 }
 0x1c2   : > { %v3438_v53 = vpop.f32.mrb[13].mxu1  ;;  %v3399_v54 = vadd.f32 %v3398_v52, %v3397_v50  ;;  %v3400_v56 = vpop.f32.mrb[14].mxu0 }
 0x1c3   : > { %v3439_v55 = vadd.f32 %v3438_v53, %v3437_v51  ;;  %v3440_v57 = vpop.f32.mrb[14].mxu1  ;;  %v3401_v58 = vpop.f32.mrb[15].mxu0 }
 0x1c4   : > { %v3441_v59 = vpop.f32.mrb[15].mxu1  ;;  %v3402_v61 = vadd.f32 %v3401_v58, %v3400_v56 }
 0x1c5   : > { %v2545_v60 = vadd.f32 %v3439_v55, %v3399_v54  ;;  %v3442_v62 = vadd.f32 %v3441_v59, %v3440_v57 }
 0x1c7   : > { %v4744_v63 = vadd.f32 %v3442_v62, %v3402_v61 }
 0x1c8   : > { %v3459_v0 = vpop.f32.mrb[16].mxu0 }
 0x1c9   : > { %v3460_v1 = vpop.f32.mrb[17].mxu0  ;;  %v3499_v2 = vpop.f32.mrb[16].mxu1 }
 0x1ca   : > { %v3461_v3 = vadd.f32 %v3460_v1, %v3459_v0  ;;  %v3462_v4 = vpop.f32.mrb[18].mxu0  ;;  %v3500_v5 = vpop.f32.mrb[17].mxu1 }
 0x1cb   : > { %v3463_v6 = vpop.f32.mrb[19].mxu0  ;;  %v3501_v8 = vadd.f32 %v3500_v5, %v3499_v2  ;;  %v3502_v9 = vpop.f32.mrb[18].mxu1 }
 0x1cc   : > { %v2586_v7 = vadd.f32 %v3461_v3, %v2521_v19  ;;  %v3464_v10 = vadd.f32 %v3463_v6, %v3462_v4  ;;  %v3503_v11 = vpop.f32.mrb[19].mxu1 }
 0x1cd   : > { %v3504_v14 = vadd.f32 %v3503_v11, %v3502_v9 }
 0x1ce   : > { %v2651_v12 = vadd.f32 %v3501_v8, %v2586_v7  ;;  %v2589_v13 = vadd.f32 %v3464_v10, %v2524_v21 }
 0x1d0   : > { %v4746_v15 = vadd.f32 %v3504_v14, %v2589_v13  ;;  %v3465_v16 = vpop.f32.mrb[20].mxu0 }
 0x1d1   : > { %v3505_v17 = vpop.f32.mrb[20].mxu1  ;;  %v3466_v18 = vpop.f32.mrb[21].mxu0 }
 0x1d2   : > { %v3467_v20 = vadd.f32 %v3466_v18, %v3465_v16  ;;  %v3506_v22 = vpop.f32.mrb[21].mxu1  ;;  %v3468_v23 = vpop.f32.mrb[22].mxu0 }
 0x1d3   : > { %v3507_v24 = vadd.f32 %v3506_v22, %v3505_v17  ;;  %v3508_v25 = vpop.f32.mrb[22].mxu1  ;;  %v3469_v26 = vpop.f32.mrb[23].mxu0 }
 0x1d4   : > { %v2594_v27 = vadd.f32 %v3467_v20, %v2529_v33  ;;  %v3470_v19 = vadd.f32 %v3469_v26, %v3468_v23  ;;  %v3509_v28 = vpop.f32.mrb[23].mxu1 }
 0x1d5   : > { %v3510_v29 = vadd.f32 %v3509_v28, %v3508_v25 }
 0x1d6   : > { %v2659_v30 = vadd.f32 %v3507_v24, %v2594_v27  ;;  %v2597_v31 = vadd.f32 %v3470_v19, %v2532_v35 }
 0x1d8   : > { %v4748_v32 = vadd.f32 %v3510_v29, %v2597_v31  ;;  %v3471_v21 = vpop.f32.mrb[24].mxu0 }
 0x1d9   : > { %v3511_v34 = vpop.f32.mrb[24].mxu1  ;;  %v3472_v36 = vpop.f32.mrb[25].mxu0 }
 0x1da   : > { %v3512_v37 = vpop.f32.mrb[25].mxu1  ;;  %v3473_v38 = vadd.f32 %v3472_v36, %v3471_v21  ;;  %v3474_v40 = vpop.f32.mrb[26].mxu0 }
 0x1db   : > { %v3513_v39 = vadd.f32 %v3512_v37, %v3511_v34  ;;  %v3514_v41 = vpop.f32.mrb[26].mxu1  ;;  %v3475_v42 = vpop.f32.mrb[27].mxu0 }
 0x1dc   : > { %v3515_v43 = vpop.f32.mrb[27].mxu1  ;;  %v2602_v44 = vadd.f32 %v3473_v38, %v2537_v47  ;;  %v3476_v45 = vadd.f32 %v3475_v42, %v3474_v40 }
 0x1dd   : > { %v3516_v33 = vadd.f32 %v3515_v43, %v3514_v41 }
 0x1de   : > { %v2667_v46 = vadd.f32 %v3513_v39, %v2602_v44  ;;  %v2605_v48 = vadd.f32 %v3476_v45, %v2540_v49 }
 0x1e0   : > { %v4750_v50 = vadd.f32 %v3516_v33, %v2605_v48  ;;  %v3477_v35 = vpop.f32.mrb[28].mxu0 }
 0x1e1   : > { %v3517_v51 = vpop.f32.mrb[28].mxu1  ;;  %v3478_v52 = vpop.f32.mrb[29].mxu0 }
 0x1e2   : > { %v3479_v53 = vadd.f32 %v3478_v52, %v3477_v35  ;;  %v3518_v54 = vpop.f32.mrb[29].mxu1  ;;  %v3480_v55 = vpop.f32.mrb[30].mxu0 }
 0x1e3   : > { %v3519_v56 = vadd.f32 %v3518_v54, %v3517_v51  ;;  %v3520_v57 = vpop.f32.mrb[30].mxu1  ;;  %v3481_v58 = vpop.f32.mrb[31].mxu0 }
 0x1e4   : > { %v2610_v59 = vadd.f32 %v3479_v53, %v2545_v60  ;;  %v3482_v61 = vadd.f32 %v3481_v58, %v3480_v55  ;;  %v3521_v62 = vpop.f32.mrb[31].mxu1 }
 0x1e5   : > { %v3522_v0 = vadd.f32 %v3521_v62, %v3520_v57 }
 0x1e6   : > { %v2675_v47 = vadd.f32 %v3519_v56, %v2610_v59  ;;  %v2613_v1 = vadd.f32 %v3482_v61, %v4744_v63 }
 0x1e8   : > { %v4753_v2 = vadd.f32 %v3522_v0, %v2613_v1  ;;  %v3539_v49 = vpop.f32.mrb[32].mxu0 }
 0x1e9   : > { %v3579_v3 = vpop.f32.mrb[32].mxu1  ;;  %v3540_v4 = vpop.f32.mrb[33].mxu0 }
 0x1ea   : > { %v3541_v5 = vadd.f32 %v3540_v4, %v3539_v49  ;;  %v3580_v6 = vpop.f32.mrb[33].mxu1  ;;  %v3542_v7 = vpop.f32.mrb[34].mxu0 }
 0x1eb   : > { %v3581_v8 = vadd.f32 %v3580_v6, %v3579_v3  ;;  %v3582_v9 = vpop.f32.mrb[34].mxu1  ;;  %v3543_v10 = vpop.f32.mrb[35].mxu0 }
 0x1ec   : > { %v2716_v11 = vadd.f32 %v3541_v5, %v2651_v12  ;;  %v3544_v13 = vadd.f32 %v3543_v10, %v3542_v7  ;;  %v3583_v60 = vpop.f32.mrb[35].mxu1 }
 0x1ed   : > { %v3584_v14 = vadd.f32 %v3583_v60, %v3582_v9 }
 0x1ee   : > { %v4755_v16 = vadd.f32 %v3581_v8, %v2716_v11  ;;  %v2719_v17 = vadd.f32 %v3544_v13, %v4746_v15 }
 0x1f0   : > { %v4758_v63 = vadd.f32 %v3584_v14, %v2719_v17  ;;  %v3545_v18 = vpop.f32.mrb[36].mxu0 }
 0x1f1   : > { %v3585_v20 = vpop.f32.mrb[36].mxu1  ;;  %v3546_v22 = vpop.f32.mrb[37].mxu0 }
 0x1f2   : > { %v3547_v23 = vadd.f32 %v3546_v22, %v3545_v18  ;;  %v3586_v24 = vpop.f32.mrb[37].mxu1  ;;  %v3548_v25 = vpop.f32.mrb[38].mxu0 }
 0x1f3   : > { %v3587_v26 = vadd.f32 %v3586_v24, %v3585_v20  ;;  %v3588_v27 = vpop.f32.mrb[38].mxu1  ;;  %v3549_v19 = vpop.f32.mrb[39].mxu0 }
 0x1f4   : > { %v2724_v28 = vadd.f32 %v3547_v23, %v2659_v30  ;;  %v3550_v12 = vadd.f32 %v3549_v19, %v3548_v25  ;;  %v3589_v29 = vpop.f32.mrb[39].mxu1 }
 0x1f5   : > { %v3590_v31 = vadd.f32 %v3589_v29, %v3588_v27 }
 0x1f6   : > { %v4760_v21 = vadd.f32 %v3587_v26, %v2724_v28  ;;  %v2727_v34 = vadd.f32 %v3550_v12, %v4748_v32 }
 0x1f8   : > { %v4763_v15 = vadd.f32 %v3590_v31, %v2727_v34  ;;  %v3551_v36 = vpop.f32.mrb[40].mxu0 }
 0x1f9   : > { %v3591_v37 = vpop.f32.mrb[40].mxu1  ;;  %v3552_v38 = vpop.f32.mrb[41].mxu0 }
 0x1fa   : > { %v3553_v39 = vadd.f32 %v3552_v38, %v3551_v36  ;;  %v3592_v40 = vpop.f32.mrb[41].mxu1  ;;  %v3554_v41 = vpop.f32.mrb[42].mxu0 }
 0x1fb   : > { %v3593_v42 = vadd.f32 %v3592_v40, %v3591_v37  ;;  %v3594_v43 = vpop.f32.mrb[42].mxu1  ;;  %v3555_v44 = vpop.f32.mrb[43].mxu0 }
 0x1fc   : > { %v2732_v30 = vadd.f32 %v3553_v39, %v2667_v46  ;;  %v3556_v45 = vadd.f32 %v3555_v44, %v3554_v41  ;;  %v3595_v33 = vpop.f32.mrb[43].mxu1 }
 0x1fd   : > { %v3596_v48 = vadd.f32 %v3595_v33, %v3594_v43 }
 0x1fe   : > { %v2797_v35 = vadd.f32 %v3593_v42, %v2732_v30  ;;  %v2735_v51 = vadd.f32 %v3556_v45, %v4750_v50 }
 0x200   : > { %v2800_v32 = vadd.f32 %v3596_v48, %v2735_v51  ;;  %v3557_v52 = vpop.f32.mrb[44].mxu0 }
 0x201   : > { %v3597_v53 = vpop.f32.mrb[44].mxu1  ;;  %v3558_v54 = vpop.f32.mrb[45].mxu0 }
 0x202   : > { %v3559_v55 = vadd.f32 %v3558_v54, %v3557_v52  ;;  %v3598_v56 = vpop.f32.mrb[45].mxu1  ;;  %v3560_v57 = vpop.f32.mrb[46].mxu0 }
 0x203   : > { %v3599_v58 = vadd.f32 %v3598_v56, %v3597_v53  ;;  %v3600_v59 = vpop.f32.mrb[46].mxu1  ;;  %v3561_v61 = vpop.f32.mrb[47].mxu0 }
 0x204   : > { %v2740_v62 = vadd.f32 %v3559_v55, %v2675_v47  ;;  %v3562_v46 = vadd.f32 %v3561_v61, %v3560_v57  ;;  %v3601_v0 = vpop.f32.mrb[47].mxu1  ;;  %v3319_v47 = vld [vmem:[%s1163_s26] ss:$0 sm:$0xff] }
 0x205   : > { %v3602_v1 = vadd.f32 %v3601_v0, %v3600_v59 }
 0x206   : > { %v2805_v49 = vadd.f32 %v3599_v58, %v2740_v62  ;;  %v2743_v50 = vadd.f32 %v3562_v46, %v4753_v2 }
 0x208   : > { %v2808_v3 = vadd.f32 %v3602_v1, %v2743_v50  ;;  %v3619_v4 = vpop.f32.mrb[48].mxu0 }
 0x209   : > { %v3631_v5 = vpop.f32.mrb[48].mxu1  ;;  %v3620_v6 = vpop.f32.mrb[49].mxu0 }
 0x20a   : > { %v3621_v7 = vadd.f32 %v3620_v6, %v3619_v4  ;;  %v3632_v8 = vpop.f32.mrb[49].mxu1  ;;  %v3622_v9 = vpop.f32.mrb[50].mxu0 }
 0x20b   : > { %v3633_v10 = vadd.f32 %v3632_v8, %v3631_v5  ;;  %v3634_v11 = vpop.f32.mrb[50].mxu1  ;;  %v3623_v13 = vpop.f32.mrb[51].mxu0 }
 0x20c   : > { %v2846_v60 = vadd.f32 %v3621_v7, %v4755_v16  ;;  %v3624_v14 = vadd.f32 %v3623_v13, %v3622_v9  ;;  %v3635_v2 = vpop.f32.mrb[51].mxu1 }
 0x20d   : > { %v2862_v17 = vadd.f32 %v3633_v10, %v2797_v35  ;;  %v3636_v18 = vadd.f32 %v3635_v2, %v3634_v11 }
 0x20e   : > { %v2910_v20 = vadd.f32 %v3319_v47, %v2846_v60  ;;  %v2849_v22 = vadd.f32 %v3624_v14, %v4758_v63 }
 0x20f   : > { %v2914_v23 = vadd.f32 %v3319_v47, %v2862_v17  ;;  %v2865_v24 = vadd.f32 %v3636_v18, %v2800_v32 }
 0x210   : > { %v2911_v25 = vadd.f32 %v3319_v47, %v2849_v22  ;;  %v3625_v26 = vpop.f32.mrb[52].mxu0  ;;  %v2918_v12 = vmax.f32 %v2910_v20, 0.0 }
 0x211   : > { %v2915_v27 = vadd.f32 %v3319_v47, %v2865_v24  ;;  %v3637_v19 = vpop.f32.mrb[52].mxu1  ;;  %v3626_v28 = vpop.f32.mrb[53].mxu0  ;;  %v2922_v36 = vmax.f32 %v2914_v23, 0.0 }
 0x212   : > { %v2919_v29 = vmax.f32 %v2911_v25, 0.0  ;;  %v3627_v31 = vadd.f32 %v3626_v28, %v3625_v26  ;;  %v3638_v16 = vpop.f32.mrb[53].mxu1  ;;  %v3628_v34 = vpop.f32.mrb[54].mxu0 }
 0x213   : > { %v2923_v37 = vmax.f32 %v2915_v27, 0.0  ;;  %v3639_v38 = vadd.f32 %v3638_v16, %v3637_v19  ;;  %v3640_v39 = vpop.f32.mrb[54].mxu1  ;;  %v3629_v40 = vpop.f32.mrb[55].mxu0 }
 0x214   : > { %v3343_v63 = vpack.c.bf16 %v2919_v29, %v2918_v12  ;;  %v2854_v41 = vadd.f32 %v3627_v31, %v4760_v21  ;;  %v3630_v42 = vadd.f32 %v3629_v40, %v3628_v34  ;;  %v3641_v43 = vpop.f32.mrb[55].mxu1 }
 0x215   : > { %v3353_v44 = vpack.c.bf16 %v2923_v37, %v2922_v36  ;;  %v2870_v30 = vadd.f32 %v3639_v38, %v2805_v49  ;;  %v3642_v45 = vadd.f32 %v3641_v43, %v3640_v39 }
 0x216   : > { %3344 = vst [vmem:[%s4777_s12] sm:$0xff] %v3343_v63   ;;  %v2912_v33 = vadd.f32 %v3319_v47, %v2854_v41  ;;  %v2857_v48 = vadd.f32 %v3630_v42, %v4763_v15 }
 0x217   : > { %3361 = vst [vmem:[%s4777_s12 + $0x10] sm:$0xff] %v3353_v44   ;;  %v2916_v35 = vadd.f32 %v3319_v47, %v2870_v30  ;;  %v2873_v51 = vadd.f32 %v3642_v45, %v2808_v3 }
 0x218   : > { %v2913_v32 = vadd.f32 %v3319_v47, %v2857_v48  ;;  %v2920_v52 = vmax.f32 %v2912_v33, 0.0 }
 0x219   : > { %v2917_v21 = vadd.f32 %v3319_v47, %v2873_v51  ;;  %v2924_v54 = vmax.f32 %v2916_v35, 0.0  ;;  %2972 = sbr.rel (!%p3992_p6) target bundleno = 553 (0x229), region = 85 }
 0x21a   : > { %v2921_v53 = vmax.f32 %v2913_v32, 0.0 }
 0x21b   : > { %v2925_v55 = vmax.f32 %v2917_v21, 0.0 }
 0x21c   : > { %v3348_v56 = vpack.c.bf16 %v2921_v53, %v2920_v52 }
 0x21d   : > { %v3358_v57 = vpack.c.bf16 %v2925_v55, %v2924_v54  ;;  %v2993_v15 = vld [vmem:[%s4777_s12] sm:$0xf] (%p3992_p6)  ;;  %v2995_v58 = vld [vmem:[%s4777_s12 + $0x4] sm:$0xf] (%p3992_p6) }
 0x21e   : > { %3360 = vst [vmem:[%s4777_s12 + $0x8] sm:$0xff] %v3348_v56   ;;  %v3001_v62 = vld [vmem:[%s4777_s12 + $0x10] sm:$0xf] (%p3992_p6)  ;;  %2994 = vst [vmem:[%s2977_s4] sm:$0xf] (%p3992_p6), %v2993_v15  ;;  %v3003_v46 = vld [vmem:[%s4777_s12 + $0x14] sm:$0xf] (%p3992_p6) }
 0x21f   : > { %3362 = vst [vmem:[%s4777_s12 + $0x18] sm:$0xff] %v3358_v57   ;;  %2996 = vst [vmem:[%s2977_s4 + $0x8] sm:$0xf] (%p3992_p6), %v2995_v58 }
 0x220   : > { %3002 = vst [vmem:[%s2977_s4 + $0x20] sm:$0xf] %v3001_v62  ;;  %3004 = vst [vmem:[%s2977_s4 + $0x28] sm:$0xf] %v3003_v46 }
 0x225   : > { %v2997_v59 = vld [vmem:[%s4777_s12 + $0x8] sm:$0xf]  ;;  %v2999_v61 = vld [vmem:[%s4777_s12 + $0xc] sm:$0xf] }
 0x226   : > { %2998 = vst [vmem:[%s2977_s4 + $0x10] sm:$0xf] %v2997_v59  ;;  %3000 = vst [vmem:[%s2977_s4 + $0x18] sm:$0xf] %v2999_v61  ;;  %v3005_v0 = vld [vmem:[%s4777_s12 + $0x18] sm:$0xf] }
 0x227   : > { %v3007_v1 = vld [vmem:[%s4777_s12 + $0x1c] sm:$0xf]  ;;  %3006 = vst [vmem:[%s2977_s4 + $0x30] sm:$0xf] %v3005_v0 }
 0x228   : > { %3008 = vst [vmem:[%s2977_s4 + $0x38] sm:$0xf] %v3007_v1 }
 0x229 PF: > { %s13_s16 = sadd.s32 1, %s3935_s16   ;;  %s4818_s12 = smov %s3923_s13 }
 0x22a   : > { %p10_p12 = scmp.ge.s32.totalorder %s13_s16, 4   ;;  %s4819_s13 = smov %s3997_s22 }
 0x22b   : > { %s4820_s14 = smov %s3931_s15  ;;  %s4821_s15 = smov %s4823_s17 }
 0x22c   :  { %12 = sbr.rel (!%p10_p12) target bundleno = 3 (0x3), region = 164 }

// kernel: wav2phoneme_forward.19
= control target key start
LH: loop header
LB: loop body
LE: loop exit
PB: predicated region body
PF: predicated region fallthrough
CT: control target
= control target key end

     0   :  { %s8269_s0 = inlined_call_operand.hbm [shape: bf16[4,64,2048], index: 0, kind: input, shape index: {}]   ;;  %s8270_s1 = inlined_call_operand.hbm [shape: bf16[8192,2048], index: 1, kind: input, shape index: {}]   ;;  %s8271_s2 = inlined_call_operand.vmem [shape: f32[1,2048], index: 2, kind: input, shape index: {}]   ;;  %s8272_s3 = inlined_call_operand.vmem [shape: bf16[64,2048], index: 3, kind: output, shape index: {}]  }
   0x1   :  { %8282 = sst [smem:[#allocation13_spill]] %s8269_s0 }
   0x2   :  { %8 = vsyncpa [#allocation4], 0 }
   0x3   :  { %9 = vsyncpa [#allocation6], 0 }
   0x4   :  { %11 = vsyncpa [#allocation6 + $0x1], 0  ;;  %s7322_s12 = smov 0   ;;  %s7324_s13 = smov 0  }
   0x5   :  { %s7326_s14 = smov 0   ;;  %s7328_s15 = smov 0  }
   0x6   :  { %s7330_s16 = smov 0   ;;  %s7332_s17 = smov 0  }
   0x7   :  { %s7334_s18 = smov 0   ;;  %s7336_s19 = smov 0  }
   0x8   :  { %s7338_s20 = smov 0   ;;  %s7340_s21 = smov 0  }
   0x9 LB: > { %8283 = sst [smem:[#allocation10_spill]] %s7293_s21  ;;  %s5419_s22 = sadd.s32 4294967295, %s7293_s21   ;;  %s7293_s21 = sphi %s7340_s21, %s17_s21   ;;  %s7289_s20 = sphi %s7338_s20, %s8313_s20   ;;  %s7285_s19 = sphi %s7336_s19, %s8312_s19   ;;  %s7281_s18 = sphi %s7334_s18, %s8311_s18   ;;  %s7277_s17 = sphi %s7332_s17, %s8310_s17   ;;  %s7273_s16 = sphi %s7330_s16, %s8309_s16   ;;  %s7269_s15 = sphi %s7328_s15, %s8308_s15   ;;  %s7265_s14 = sphi %s7326_s14, %s8307_s14   ;;  %s7261_s13 = sphi %s7324_s13, %s8306_s13   ;;  %s7257_s12 = sphi %s7322_s12, %s8305_s12  }
   0xa   : > { %p78_p0 = scmp.ne.s32.totalorder %s7273_s16, %s7269_s15  ;;  %p79_p1 = scmp.eq.s32.totalorder %s7293_s21, 0 }
   0xb   : > { %p84_p2 = scmp.ne.s32.totalorder %s7269_s15, %s7265_s14  ;;  %p7376_p3 = scmp.eq.s32.totalorder %s5419_s22, 0 }
   0xc   : > { %p7380_p4 = por %p79_p1, %p78_p0  ;;  %p135_p6 = scmp.ne.s32.totalorder %s7261_s13, %s7257_s12 }
   0xd   : > { %s8284_s24 = scalar_select %p7376_p3, 1, 0 }
   0xe   : > { %p7387_p5 = por %p7376_p3, %p84_p2  ;;  %p136_p7 = scmp.eq.s32.totalorder %s5419_s22, 15 }
   0xf   : > { %p5421_p8 = scmp.ge.s32.totalorder %s7293_s21, 1  ;;  %p149_p9 = scmp.lt.s32.totalorder %s7293_s21, 17 }
  0x10   : > { %s8286_s27 = scalar_select %p7387_p5, 1, 0 }
  0x11   : > { %p7395_p10 = por %p136_p7, %p135_p6  ;;  %p7399_p11 = pnand %p5421_p8, %p149_p9 }
  0x12   : > { %s7295_s30 = smov [#allocation3]   ;;  %p6293_p13 = scmp.lt.s32.totalorder %s7293_s21, 16 }
  0x13   : > { %s8287_s28 = scalar_select %p7395_p10, 1, 0 }
  0x14   : > { %s8288_s29 = scalar_select %p7399_p11, 1, 0 }
  0x15   : > { %s165_s4 = sshll.u32 %s7295_s30, 4  ;;  %p6284_p12 = pneg %p7399_p11  ;;  %s166_s4 = int_to_ptr.vmem [resolvable:$true] %s165_s4 }
  0x16   : > { %p7414_p1 = pnand %p6293_p13, %p7380_p4  ;;  %s8291_s0 = sld [smem:[#allocation13_spill]] }
  0x17   : > { %p7408_p0 = pnand %p6284_p12, %p7376_p3 }
  0x18   : > { %s8290_s6 = scalar_select %p7414_p1, 1, 0 }
  0x19   : > { %p7151_p6 = pneg %p7408_p0 }
  0x1c   : > { %s7149_s9 = scalar_lea.hbm %s8291_s0, 32768 }
  0x1d   : > { %p7150_p2 = scmp.ne.s32.totalorder %s8291_s0, %s7149_s9  ;;  %p7156_p9 = scmp.lt.u32.totalorder %s7149_s9, %s8291_s0 }
  0x1f   : > { %p7152_p7 = pnand %p7151_p6, %p7150_p2 }
  0x21   : > { %p7153_p8 = pneg %p7152_p7 }
  0x23   : > { %p7158_p4 = pnand %p7156_p9, %p7153_p8 }
  0x25   : > { %7161 = shalt.err (!%p7158_p4)
}
  0x26   : > { %s7162_s25 = scalar_lea.vmem %s166_s4, 32768  ;;  %p7170_p5 = scmp.lt.s32.totalorder %s166_s4, %s166_s4 }
  0x27   : > { %p7163_p12 = scmp.ne.s32.totalorder %s166_s4, %s7162_s25  ;;  %p7171_p3 = scmp.lt.s32.totalorder %s7162_s25, %s7162_s25 }
  0x29   : > { %p7165_p13 = pnand %p7163_p12, %p7151_p6  ;;  %p7172_p11 = por %p7171_p3, %p7170_p5 }
  0x2b   : > { %p7166_p10 = pneg %p7165_p13 }
  0x2d   : > { %p7173_p1 = pnand %p7172_p11, %p7166_p10 }
  0x2f   : > { %7176 = shalt.err (!%p7173_p1)
}
  0x30   : > { %s8278_s30 = smov 1024   ;;  %s7297_s7 = smov 64  }
  0x31   : > { %6287 = dma.hbm_to_vmem [thread:$0]  (!%p7408_p0), %s8291_s0, 32768, %s166_s4, [#allocation4], %s8278_s30, %s8278_s30, %s7297_s7  }
  0x32   : > { %s29_s10 = sadd.s32 1, %s7285_s19  ;;  %s32_s11 = sadd.s32 1, %s7289_s20 }
  0x33   : > { %p30_p3 = scmp.ge.s32.totalorder %s29_s10, 4  ;;  %s179_s14 = sand.u32 1, %s7273_s16  }
  0x34   : > { %s5424_s22 = sshll.u32 %s179_s14, 12  ;;  %s5426_s5 = sshll.u32 %s7289_s20, 2 }
  0x35   : > { %s8315_s10 = smov (%p30_p3, %s29_s10), 0  ;;  %s8317_s11 = smov (!%p30_p3, %s32_s11), %s7289_s20 }
  0x36   : > { %8292 = sst [smem:[#allocation11_spill]] %s8315_s10  ;;  %s66_s25 = ssub.s32 %s7285_s19, %s8315_s10 }
  0x37   : > { %p34_p5 = scmp.ge.s32.totalorder %s8317_s11, 4  ;;  %s6035_s23 = sshll.u32 %s7285_s19, 12 }
  0x38   : > { %s183_s8 = scalar_lea.vmem [#allocation5], %s5424_s22  ;;  %s190_s7 = sadd.s32 %s6035_s23, %s5426_s5 }
  0x39   : > { %s193_s4 = sshll.u32 %s183_s8, 4  ;;  %s8319_s11 = smov (%p34_p5, %s8317_s11), 0  ;;  %s7448_s4 = int_to_ptr.vmem [resolvable:$true] %s193_s4 }
  0x3a   : > { %8293 = sst [smem:[#allocation12_spill]] %s8319_s11  ;;  %s67_s9 = ssub.s32 %s7289_s20, %s8319_s11 }
  0x3b   : > { %s5428_s30 = sshll.u32 %s190_s7, 6  ;;  %s68_s26 = sor.u32 %s67_s9, %s66_s25 }
  0x3c   : > { %p123_p10 = scmp.eq.s32.totalorder %s67_s9, 0  ;;  %p69_p11 = scmp.eq.s32.totalorder %s68_s26, 0 }
  0x3d   : > { %s7455_s21 = scalar_lea.hbm %s8270_s1, %s5428_s30  ;;  %s8294_s22 = sadd.s32 1, %s7261_s13 }
  0x3e   : > { %s7460_s8 = scalar_select %p123_p10, %s7261_s13, %s8294_s22  }
  0x3f   : > { %s8295_s23 = sadd.s32 1, %s7273_s16  ;;  %s7467_s11 = scalar_lea.sflag [#allocation6], %s179_s14 }
  0x40   : > { %s7465_s5 = scalar_select %p69_p11, %s7273_s16, %s8295_s23  }
  0x41   : > { %s7177_s25 = scalar_lea.hbm %s7455_s21, 65536  ;;  %p8296_p1 = scmp.ne.s32.totalorder %s8290_s6, 0 }
  0x42   : > { %p7178_p0 = scmp.ne.s32.totalorder %s7455_s21, %s7177_s25  ;;  %s7182_s30 = scalar_lea.hbm %s8270_s1, 1048576 }
  0x43   : > { %p7179_p2 = pneg %p8296_p1  ;;  %p7183_p8 = scmp.lt.u32.totalorder %s7455_s21, %s8270_s1 }
  0x44   : > { %p7184_p9 = scmp.lt.u32.totalorder %s7182_s30, %s7177_s25  ;;  %p7186_p12 = scmp.lt.u32.totalorder %s7177_s25, %s7455_s21 }
  0x45   : > { %p7180_p6 = pnand %p7179_p2, %p7178_p0 }
  0x46   : > { %p7185_p4 = por %p7184_p9, %p7183_p8 }
  0x47   : > { %p7181_p7 = pneg %p7180_p6 }
  0x48   : > { %p7187_p13 = por %p7186_p12, %p7185_p4 }
  0x4a   : > { %p7188_p3 = pnand %p7187_p13, %p7181_p7 }
  0x4c   : > { %7191 = shalt.err (!%p7188_p3)
}
  0x4d   : > { %s7192_s14 = scalar_lea.vmem %s7448_s4, 65536  ;;  %s7298_s9 = smov [#allocation5]  }
  0x4e   : > { %p7193_p5 = scmp.ne.s32.totalorder %s7448_s4, %s7192_s14  ;;  %s7197_s22 = sshll.u32 %s7298_s9, 4  ;;  %s7198_s22 = int_to_ptr.vmem [resolvable:$false] %s7197_s22 }
  0x4f   : > { %s7199_s23 = scalar_lea.vmem %s7198_s22, 131072  ;;  %p7200_p0 = scmp.lt.s32.totalorder %s7448_s4, %s7198_s22 }
  0x50   : > { %p7195_p10 = pnand %p7193_p5, %p7179_p2  ;;  %p7201_p6 = scmp.lt.s32.totalorder %s7199_s23, %s7192_s14 }
  0x52   : > { %p7196_p11 = pneg %p7195_p10  ;;  %p7202_p8 = por %p7201_p6, %p7200_p0 }
  0x54   : > { %p7203_p9 = pnand %p7202_p8, %p7196_p11 }
  0x56   : > { %7206 = shalt.err (!%p7203_p9)
}
  0x57   : > { %s7299_s25 = smov 256   ;;  %s7300_s0 = smov 16  }
  0x58   : > { %s8297_s26 = smov 1024   ;;  %p8298_p2 = scmp.ne.s32.totalorder %s8288_s29, 0 }
  0x59   : > { %6291 = dma.hbm_to_vmem [thread:$0]  (!%p8296_p1), %s7455_s21, 65536, %s7448_s4, %s7467_s11, %s8297_s26, %s7299_s25, %s7300_s0  }
  0x5a   : > { %213 = sbr.rel (%p8298_p2) target bundleno = 905 (0x389), region = 32  ;;  %p8299_p7 = scmp.ne.s32.totalorder (!%p8298_p2), %s8284_s24, 0 }
  0x61   : > { %7248 = dma.done.wait (%p8299_p7), [#allocation4], 32768  }
  0x62   : > { %7250 = vsyncadd (%p8299_p7), [#allocation4], 4294934528  ;;  %s219_s30 = sand.u32 1, %s7269_s15   ;;  %p8300_p4 = scmp.ne.s32.totalorder %s8286_s27, 0 }
  0x63   : > { %s5431_s10 = sshll.u32 %s219_s30, 12  ;;  %s220_s7 = scalar_lea.sflag [#allocation6], %s219_s30 }
  0x64   : > { %s7503_s14 = scalar_lea.vmem [#allocation5], %s5431_s10 }
  0x65   : > { %7252 = dma.done.wait (%p8300_p4), %s220_s7, 65536  }
  0x66   : > { %7254 = vsyncadd (%p8300_p4), %s220_s7, 4294901760  ;;  %s246_s21 = sand.u32 1, %s7257_s12   ;;  %s5433_s29 = sshll.u32 %s7281_s18, 2 }
  0x67   : > { %s5432_s6 = sshll.u32 %s246_s21, 7  ;;  %p253_p1 = scmp.lt.s32.totalorder %s5433_s29, 15 }
  0x68   : > { %s7517_s9 = scalar_lea.vmem [#allocation7], %s5432_s6  ;;  %p5434_p12 = scmp.ne.s32.totalorder %s7277_s17, 0 }
  0x69   : > { %s8321_s29 = smov (!%p253_p1, %s5433_s29), 15  ;;  %v7301_v0 = vmov (!%p5434_p12), 0.0  }
  0x6a   : > { %s255_s4 = scalar_lea.vmem %s8271_s2, %s8321_s29  ;;  %262 = sbr.rel (%p5434_p12) target bundleno = 122 (0x7a), region = 44  ;;  %263 = vst [vmem:[#allocation2] sm:$0xff] (!%p5434_p12), %v7301_v0  ;;  %264 = vst [vmem:[#allocation2 + $0x8] sm:$0xff] (!%p5434_p12), %v7301_v0 }
  0x6b   : > { %265 = vst [vmem:[#allocation2 + $0x10] sm:$0xff] (!%p5434_p12), %v7301_v0  ;;  %266 = vst [vmem:[#allocation2 + $0x18] sm:$0xff] (!%p5434_p12), %v7301_v0 }
  0x6c   : > { %267 = vst [vmem:[#allocation2 + $0x20] sm:$0xff] (!%p5434_p12), %v7301_v0  ;;  %268 = vst [vmem:[#allocation2 + $0x28] sm:$0xff] (!%p5434_p12), %v7301_v0 }
  0x6d   : > { %269 = vst [vmem:[#allocation2 + $0x30] sm:$0xff] (!%p5434_p12), %v7301_v0  ;;  %270 = vst [vmem:[#allocation2 + $0x38] sm:$0xff] (!%p5434_p12), %v7301_v0 }
  0x6e   : > { %271 = vst [vmem:[#allocation2 + $0x40] sm:$0xff] (!%p5434_p12), %v7301_v0  ;;  %272 = vst [vmem:[#allocation2 + $0x48] sm:$0xff] (!%p5434_p12), %v7301_v0 }
  0x6f   : > { %273 = vst [vmem:[#allocation2 + $0x50] sm:$0xff] (!%p5434_p12), %v7301_v0  ;;  %274 = vst [vmem:[#allocation2 + $0x58] sm:$0xff] (!%p5434_p12), %v7301_v0 }
  0x70   : > { %275 = vst [vmem:[#allocation2 + $0x60] sm:$0xff] (!%p5434_p12), %v7301_v0  ;;  %276 = vst [vmem:[#allocation2 + $0x68] sm:$0xff] (!%p5434_p12), %v7301_v0 }
  0x71   : > { %277 = vst [vmem:[#allocation2 + $0x70] sm:$0xff] %v7301_v0  ;;  %278 = vst [vmem:[#allocation2 + $0x78] sm:$0xff] %v7301_v0 }
  0x72   : > { %279 = vst [vmem:[#allocation2 + $0x80] sm:$0xff] %v7301_v0  ;;  %280 = vst [vmem:[#allocation2 + $0x88] sm:$0xff] %v7301_v0 }
  0x73   : > { %281 = vst [vmem:[#allocation2 + $0x90] sm:$0xff] %v7301_v0  ;;  %282 = vst [vmem:[#allocation2 + $0x98] sm:$0xff] %v7301_v0 }
  0x74   : > { %283 = vst [vmem:[#allocation2 + $0xa0] sm:$0xff] %v7301_v0  ;;  %284 = vst [vmem:[#allocation2 + $0xa8] sm:$0xff] %v7301_v0 }
  0x75   : > { %285 = vst [vmem:[#allocation2 + $0xb0] sm:$0xff] %v7301_v0  ;;  %286 = vst [vmem:[#allocation2 + $0xb8] sm:$0xff] %v7301_v0 }
  0x76   : > { %287 = vst [vmem:[#allocation2 + $0xc0] sm:$0xff] %v7301_v0  ;;  %288 = vst [vmem:[#allocation2 + $0xc8] sm:$0xff] %v7301_v0 }
  0x77   : > { %289 = vst [vmem:[#allocation2 + $0xd0] sm:$0xff] %v7301_v0  ;;  %290 = vst [vmem:[#allocation2 + $0xd8] sm:$0xff] %v7301_v0 }
  0x78   : > { %291 = vst [vmem:[#allocation2 + $0xe0] sm:$0xff] %v7301_v0  ;;  %292 = vst [vmem:[#allocation2 + $0xe8] sm:$0xff] %v7301_v0 }
  0x79   : > { %293 = vst [vmem:[#allocation2 + $0xf0] sm:$0xff] %v7301_v0  ;;  %294 = vst [vmem:[#allocation2 + $0xf8] sm:$0xff] %v7301_v0 }
  0x7a PF: > { %v6381_v1 = vld [vmem:[%s7503_s14 + $0x4] ss:$16 sps:$4 sm:$0xff]   ;;  %v6383_v2 = vld [vmem:[%s7503_s14 + $0xc] ss:$16 sps:$4 sm:$0xff]   ;;  %v6385_v3 = vld [vmem:[%s7503_s14] ss:$16 sps:$4 sm:$0xff]  }
  0x7b   : > { %3786 = vmatprep.subr.bf16.mxu0 %v6381_v1  ;;  %v6386_v4 = vld [vmem:[%s7503_s14 + $0x8] ss:$16 sps:$4 sm:$0xff]   ;;  %4370 = vmatprep.subr.bf16.mxu1 %v6383_v2  ;;  %v6387_v5 = vld [vmem:[%s7503_s14 + $0x24] ss:$16 sps:$4 sm:$0xff]   ;;  %v6389_v6 = vld [vmem:[%s7503_s14 + $0x2c] ss:$16 sps:$4 sm:$0xff]  }
  0x7c   : > { %3787 = vmatpush1.bf16.msra.mxu0 %v6385_v3  ;;  %4371 = vmatpush1.bf16.msra.mxu1 %v6386_v4  ;;  %v6391_v7 = vld [vmem:[%s7503_s14 + $0x20] ss:$16 sps:$4 sm:$0xff]   ;;  %v6392_v8 = vld [vmem:[%s7503_s14 + $0x28] ss:$16 sps:$4 sm:$0xff]   ;;  %v6393_v9 = vld [vmem:[%s7503_s14 + $0x44] ss:$16 sps:$4 sm:$0xff]  }
  0x7d   : > { %3788 = vmatprep.subr.bf16.mxu0 %v6387_v5  ;;  %4372 = vmatprep.subr.bf16.mxu1 %v6389_v6  ;;  %v6395_v10 = vld [vmem:[%s7503_s14 + $0x4c] ss:$16 sps:$4 sm:$0xff]   ;;  %v6397_v11 = vld [vmem:[%s7503_s14 + $0x40] ss:$16 sps:$4 sm:$0xff]   ;;  %v6398_v12 = vld [vmem:[%s7503_s14 + $0x48] ss:$16 sps:$4 sm:$0xff]  }
  0x7e   : > { %v6399_v13 = vld [vmem:[%s7503_s14 + $0x64] ss:$16 sps:$4 sm:$0xff]   ;;  %v6401_v14 = vld [vmem:[%s7503_s14 + $0x6c] ss:$16 sps:$4 sm:$0xff]   ;;  %v6403_v15 = vld [vmem:[%s7503_s14 + $0x60] ss:$16 sps:$4 sm:$0xff]  }
  0x7f   : > { %v6404_v16 = vld [vmem:[%s7503_s14 + $0x68] ss:$16 sps:$4 sm:$0xff]   ;;  %v6405_v17 = vld [vmem:[%s7503_s14 + $0x84] ss:$16 sps:$4 sm:$0xff]   ;;  %v6407_v18 = vld [vmem:[%s7503_s14 + $0x8c] ss:$16 sps:$4 sm:$0xff]  }
  0x80   : > { %3789 = vmatpush1.bf16.msra.mxu0 %v6391_v7  ;;  %4373 = vmatpush1.bf16.msra.mxu1 %v6392_v8  ;;  %v6409_v19 = vld [vmem:[%s7503_s14 + $0x80] ss:$16 sps:$4 sm:$0xff]   ;;  %v6410_v20 = vld [vmem:[%s7503_s14 + $0x88] ss:$16 sps:$4 sm:$0xff]   ;;  %v6411_v21 = vld [vmem:[%s7503_s14 + $0xa4] ss:$16 sps:$4 sm:$0xff]  }
  0x81   : > { %3790 = vmatprep.subr.bf16.mxu0 %v6393_v9  ;;  %4374 = vmatprep.subr.bf16.mxu1 %v6395_v10  ;;  %v6413_v22 = vld [vmem:[%s7503_s14 + $0xac] ss:$16 sps:$4 sm:$0xff]   ;;  %v6415_v23 = vld [vmem:[%s7503_s14 + $0xa0] ss:$16 sps:$4 sm:$0xff]   ;;  %v6416_v24 = vld [vmem:[%s7503_s14 + $0xa8] ss:$16 sps:$4 sm:$0xff]  }
  0x82   : > { %v6417_v25 = vld [vmem:[%s7503_s14 + $0xc4] ss:$16 sps:$4 sm:$0xff]   ;;  %v6419_v26 = vld [vmem:[%s7503_s14 + $0xcc] ss:$16 sps:$4 sm:$0xff]   ;;  %v6421_v27 = vld [vmem:[%s7503_s14 + $0xc0] ss:$16 sps:$4 sm:$0xff]  }
  0x83   : > { %v6422_v28 = vld [vmem:[%s7503_s14 + $0xc8] ss:$16 sps:$4 sm:$0xff]   ;;  %v6423_v29 = vld [vmem:[%s7503_s14 + $0xe4] ss:$16 sps:$4 sm:$0xff]   ;;  %v6425_v30 = vld [vmem:[%s7503_s14 + $0xec] ss:$16 sps:$4 sm:$0xff]  }
  0x84   : > { %3791 = vmatpush1.bf16.msra.mxu0 %v6397_v11  ;;  %4375 = vmatpush1.bf16.msra.mxu1 %v6398_v12  ;;  %v6427_v31 = vld [vmem:[%s7503_s14 + $0xe0] ss:$16 sps:$4 sm:$0xff]   ;;  %v6428_v32 = vld [vmem:[%s7503_s14 + $0xe8] ss:$16 sps:$4 sm:$0xff]   ;;  %v6429_v33 = vld [vmem:[%s7503_s14 + $0x104] ss:$16 sps:$4 sm:$0xff]  }
  0x85   : > { %3792 = vmatprep.subr.bf16.mxu0 %v6399_v13  ;;  %4376 = vmatprep.subr.bf16.mxu1 %v6401_v14  ;;  %v6431_v34 = vld [vmem:[%s7503_s14 + $0x10c] ss:$16 sps:$4 sm:$0xff]   ;;  %v6433_v35 = vld [vmem:[%s7503_s14 + $0x100] ss:$16 sps:$4 sm:$0xff]   ;;  %v6434_v36 = vld [vmem:[%s7503_s14 + $0x108] ss:$16 sps:$4 sm:$0xff]  }
  0x86   : > { %v6435_v37 = vld [vmem:[%s7503_s14 + $0x124] ss:$16 sps:$4 sm:$0xff]   ;;  %v6437_v38 = vld [vmem:[%s7503_s14 + $0x12c] ss:$16 sps:$4 sm:$0xff]   ;;  %v6439_v39 = vld [vmem:[%s7503_s14 + $0x120] ss:$16 sps:$4 sm:$0xff]  }
  0x87   : > { %v6440_v40 = vld [vmem:[%s7503_s14 + $0x128] ss:$16 sps:$4 sm:$0xff]   ;;  %v6441_v41 = vld [vmem:[%s7503_s14 + $0x144] ss:$16 sps:$4 sm:$0xff]   ;;  %s6036_s12 = sshll.u32 %s7277_s17, 9  ;;  %p6013_p13 = scmp.ne.s32.totalorder %s7277_s17, 3 }
  0x88   : > { %3793 = vmatpush1.bf16.msra.mxu0 %v6403_v15  ;;  %4377 = vmatpush1.bf16.msra.mxu1 %v6404_v16  ;;  %v6443_v42 = vld [vmem:[%s7503_s14 + $0x14c] ss:$16 sps:$4 sm:$0xff]   ;;  %v6445_v43 = vld [vmem:[%s7503_s14 + $0x140] ss:$16 sps:$4 sm:$0xff]   ;;  %v6446_v44 = vld [vmem:[%s7503_s14 + $0x148] ss:$16 sps:$4 sm:$0xff]  }
  0x89   : > { %3794 = vmatprep.subr.bf16.mxu0 %v6405_v17  ;;  %4378 = vmatprep.subr.bf16.mxu1 %v6407_v18  ;;  %v6447_v45 = vld [vmem:[%s7503_s14 + $0x164] ss:$16 sps:$4 sm:$0xff]   ;;  %v6449_v46 = vld [vmem:[%s7503_s14 + $0x16c] ss:$16 sps:$4 sm:$0xff]   ;;  %s7567_s27 = scalar_lea.vmem [#allocation3], %s6036_s12 }
  0x8a   : > { %v330_v47 = vld [vmem:[%s7567_s27] sm:$0xff]  ;;  %v6452_v50 = vld [vmem:[%s7503_s14 + $0x168] ss:$16 sps:$4 sm:$0xff]   ;;  %v6455_v53 = vld [vmem:[%s7503_s14 + $0x18c] ss:$16 sps:$4 sm:$0xff]  }
  0x8b   : > { %v338_v48 = vld [vmem:[%s7567_s27 + $0x40] sm:$0xff]  ;;  %v6458_v55 = vld [vmem:[%s7503_s14 + $0x188] ss:$16 sps:$4 sm:$0xff]   ;;  %v6461_v57 = vld [vmem:[%s7503_s14 + $0x1ac] ss:$16 sps:$4 sm:$0xff]  }
  0x8c   : > { %3795 = vmatpush1.bf16.msra.mxu0 %v6409_v19  ;;  %4379 = vmatpush1.bf16.msra.mxu1 %v6410_v20  ;;  %v6451_v49 = vld [vmem:[%s7503_s14 + $0x160] ss:$16 sps:$4 sm:$0xff]   ;;  %v5438_v51 = vcombine.high %v330_v47, %v338_v48  ;;  %v6453_v52 = vld [vmem:[%s7503_s14 + $0x184] ss:$16 sps:$4 sm:$0xff]   ;;  %v6464_v59 = vld [vmem:[%s7503_s14 + $0x1a8] ss:$16 sps:$4 sm:$0xff]   ;;  %v5437_v6 = vcombine.low %v330_v47, %v338_v48 }
  0x8d   : > { %3796 = vmatprep.subr.bf16.mxu0 %v6411_v21  ;;  %4380 = vmatprep.subr.bf16.mxu1 %v6413_v22  ;;  %v6457_v54 = vld [vmem:[%s7503_s14 + $0x180] ss:$16 sps:$4 sm:$0xff]   ;;  %v6459_v56 = vld [vmem:[%s7503_s14 + $0x1a4] ss:$16 sps:$4 sm:$0xff]   ;;  %v6467_v61 = vld [vmem:[%s7503_s14 + $0x1cc] ss:$16 sps:$4 sm:$0xff]  }
  0x8e   : > { %3818 = vmatprep.mubr.bf16.mxu0 %v5438_v51  ;;  %4402 = vmatprep.mubr.bf16.mxu1 %v5438_v51  ;;  %v6463_v58 = vld [vmem:[%s7503_s14 + $0x1a0] ss:$16 sps:$4 sm:$0xff]   ;;  %v6465_v60 = vld [vmem:[%s7503_s14 + $0x1c4] ss:$16 sps:$4 sm:$0xff]   ;;  %v6470_v63 = vld [vmem:[%s7503_s14 + $0x1c8] ss:$16 sps:$4 sm:$0xff]  }
  0x8f   : > { %v6469_v62 = vld [vmem:[%s7503_s14 + $0x1c0] ss:$16 sps:$4 sm:$0xff]   ;;  %v6471_v0 = vld [vmem:[%s7503_s14 + $0x1e4] ss:$16 sps:$4 sm:$0xff]   ;;  %v6473_v1 = vld [vmem:[%s7503_s14 + $0x1ec] ss:$16 sps:$4 sm:$0xff]  }
  0x90   : > { %3797 = vmatpush1.bf16.msra.mxu0 %v6415_v23  ;;  %4381 = vmatpush1.bf16.msra.mxu1 %v6416_v24  ;;  %v6475_v2 = vld [vmem:[%s7503_s14 + $0x1e0] ss:$16 sps:$4 sm:$0xff]   ;;  %v6476_v3 = vld [vmem:[%s7503_s14 + $0x1e8] ss:$16 sps:$4 sm:$0xff]   ;;  %v6479_v4 = vld [vmem:[%s7503_s14 + $0x204] ss:$16 sps:$4 sm:$0xff]  }
  0x91   : > { %3798 = vmatprep.subr.bf16.mxu0 %v6417_v25  ;;  %4382 = vmatprep.subr.bf16.mxu1 %v6419_v26  ;;  %v6482_v5 = vld [vmem:[%s7503_s14 + $0x20c] ss:$16 sps:$4 sm:$0xff]   ;;  %v6477_v7 = vld [vmem:[%s7503_s14 + $0x200] ss:$16 sps:$4 sm:$0xff]   ;;  %v6480_v8 = vld [vmem:[%s7503_s14 + $0x208] ss:$16 sps:$4 sm:$0xff]  }
  0x92   : > { %v6485_v9 = vld [vmem:[%s7503_s14 + $0x224] ss:$16 sps:$4 sm:$0xff]   ;;  %v6488_v10 = vld [vmem:[%s7503_s14 + $0x22c] ss:$16 sps:$4 sm:$0xff]   ;;  %v6483_v11 = vld [vmem:[%s7503_s14 + $0x220] ss:$16 sps:$4 sm:$0xff]  }
  0x93   : > { %v6486_v12 = vld [vmem:[%s7503_s14 + $0x228] ss:$16 sps:$4 sm:$0xff]   ;;  %v6491_v13 = vld [vmem:[%s7503_s14 + $0x244] ss:$16 sps:$4 sm:$0xff]   ;;  %v6494_v14 = vld [vmem:[%s7503_s14 + $0x24c] ss:$16 sps:$4 sm:$0xff]  }
  0x94   : > { %3799 = vmatpush1.bf16.msra.mxu0 %v6421_v27  ;;  %4383 = vmatpush1.bf16.msra.mxu1 %v6422_v28  ;;  %v346_v15 = vld [vmem:[%s7567_s27 + $0x80] sm:$0xff]  ;;  %v6492_v18 = vld [vmem:[%s7503_s14 + $0x248] ss:$16 sps:$4 sm:$0xff]   ;;  %v6500_v22 = vld [vmem:[%s7503_s14 + $0x26c] ss:$16 sps:$4 sm:$0xff]  }
  0x95   : > { %3800 = vmatprep.subr.bf16.mxu0 %v6423_v29  ;;  %4384 = vmatprep.subr.bf16.mxu1 %v6425_v30  ;;  %v354_v16 = vld [vmem:[%s7567_s27 + $0xc0] sm:$0xff]  ;;  %v6498_v24 = vld [vmem:[%s7503_s14 + $0x268] ss:$16 sps:$4 sm:$0xff]   ;;  %v6506_v28 = vld [vmem:[%s7503_s14 + $0x28c] ss:$16 sps:$4 sm:$0xff]  }
  0x96   : > { %v6489_v17 = vld [vmem:[%s7503_s14 + $0x240] ss:$16 sps:$4 sm:$0xff]   ;;  %v5454_v19 = vcombine.high %v346_v15, %v354_v16  ;;  %v5453_v20 = vcombine.low %v346_v15, %v354_v16  ;;  %v6497_v21 = vld [vmem:[%s7503_s14 + $0x264] ss:$16 sps:$4 sm:$0xff]   ;;  %v6524_v48 = vld [vmem:[%s7503_s14 + $0x2ec] ss:$16 sps:$4 sm:$0xff]  }
  0x97   : > { %v6495_v23 = vld [vmem:[%s7503_s14 + $0x260] ss:$16 sps:$4 sm:$0xff]   ;;  %v6503_v27 = vld [vmem:[%s7503_s14 + $0x284] ss:$16 sps:$4 sm:$0xff]   ;;  %v6522_v51 = vld [vmem:[%s7503_s14 + $0x2e8] ss:$16 sps:$4 sm:$0xff]  }
  0x98   : > { %3801 = vmatpush1.bf16.msra.mxu0 %v6427_v31  ;;  %4385 = vmatpush1.bf16.msra.mxu1 %v6428_v32  ;;  %v362_v25 = vld [vmem:[%s7567_s27 + $0x100] sm:$0xff]  ;;  %v6504_v32 = vld [vmem:[%s7503_s14 + $0x288] ss:$16 sps:$4 sm:$0xff]  }
  0x99   : > { %3802 = vmatprep.subr.bf16.mxu0 %v6429_v33  ;;  %4386 = vmatprep.subr.bf16.mxu1 %v6431_v34  ;;  %v370_v26 = vld [vmem:[%s7567_s27 + $0x140] sm:$0xff]  ;;  %v6512_v34 = vld [vmem:[%s7503_s14 + $0x2ac] ss:$16 sps:$4 sm:$0xff]   ;;  %v6564_v15 = vld [vmem:[%s7503_s14 + $0x3c8] ss:$16 sps:$4 sm:$0xff]  }
  0x9a   : > { %v5470_v29 = vcombine.high %v362_v25, %v370_v26  ;;  %v5469_v30 = vcombine.low %v362_v25, %v370_v26  ;;  %v6501_v31 = vld [vmem:[%s7503_s14 + $0x280] ss:$16 sps:$4 sm:$0xff]   ;;  %v6509_v33 = vld [vmem:[%s7503_s14 + $0x2a4] ss:$16 sps:$4 sm:$0xff]   ;;  %v347_v25 = vld [vmem:[%s7567_s27 + $0x88] sm:$0xff] }
  0x9b   : > { %v6521_v47 = vld [vmem:[%s7503_s14 + $0x2e4] ss:$16 sps:$4 sm:$0xff]   ;;  %v355_v26 = vld [vmem:[%s7567_s27 + $0xc8] sm:$0xff] }
  0x9c   : > { %3803 = vmatpush1.bf16.msra.mxu0 %v6433_v35  ;;  %4387 = vmatpush1.bf16.msra.mxu1 %v6434_v36  ;;  %v378_v35 = vld [vmem:[%s7567_s27 + $0x180] sm:$0xff] }
  0x9d   : > { %3804 = vmatprep.subr.bf16.mxu0 %v6435_v37  ;;  %4388 = vmatprep.subr.bf16.mxu1 %v6437_v38  ;;  %v386_v36 = vld [vmem:[%s7567_s27 + $0x1c0] sm:$0xff]  ;;  %v6510_v38 = vld [vmem:[%s7503_s14 + $0x2a8] ss:$16 sps:$4 sm:$0xff]  }
  0x9e   : > { %v6507_v37 = vld [vmem:[%s7503_s14 + $0x2a0] ss:$16 sps:$4 sm:$0xff]   ;;  %v6569_v16 = vld [vmem:[%s7503_s14 + $0x3e4] ss:$16 sps:$4 sm:$0xff]  }
  0xa0   : > { %3805 = vmatpush1.bf16.msra.mxu0 %v6439_v39  ;;  %4389 = vmatpush1.bf16.msra.mxu1 %v6440_v40  ;;  %v5486_v39 = vcombine.high %v378_v35, %v386_v36  ;;  %v6515_v40 = vld [vmem:[%s7503_s14 + $0x2c4] ss:$16 sps:$4 sm:$0xff]  }
  0xa1   : > { %3806 = vmatprep.subr.bf16.mxu0 %v6441_v41  ;;  %4390 = vmatprep.subr.bf16.mxu1 %v6443_v42  ;;  %v6518_v41 = vld [vmem:[%s7503_s14 + $0x2cc] ss:$16 sps:$4 sm:$0xff]   ;;  %v6513_v42 = vld [vmem:[%s7503_s14 + $0x2c0] ss:$16 sps:$4 sm:$0xff]  }
  0xa4   : > { %3807 = vmatpush1.bf16.msra.mxu0 %v6445_v43  ;;  %4391 = vmatpush1.bf16.msra.mxu1 %v6446_v44  ;;  %v6516_v43 = vld [vmem:[%s7503_s14 + $0x2c8] ss:$16 sps:$4 sm:$0xff]   ;;  %v5485_v44 = vcombine.low %v378_v35, %v386_v36  ;;  %v5455_v35 = vcombine.low %v347_v25, %v355_v26 }
  0xa5   : > { %3808 = vmatprep.subr.bf16.mxu0 %v6447_v45  ;;  %4392 = vmatprep.subr.bf16.mxu1 %v6449_v46  ;;  %v7624_v45 = vld [vmem:[%s7567_s27 + $0x8] sm:$0xff] }
  0xa6   : > { %v7627_v46 = vld [vmem:[%s7567_s27 + $0x48] sm:$0xff] }
  0xa7   : > { %v371_v36 = vld [vmem:[%s7567_s27 + $0x148] sm:$0xff] }
  0xa8   : > { %3809 = vmatpush1.bf16.msra.mxu0 %v6451_v49  ;;  %4393 = vmatpush1.bf16.msra.mxu1 %v6452_v50  ;;  %v5440_v49 = vcombine.high %v7624_v45, %v7627_v46  ;;  %v6519_v50 = vld [vmem:[%s7503_s14 + $0x2e0] ss:$16 sps:$4 sm:$0xff]  }
  0xa9   : > { %3810 = vmatprep.subr.bf16.mxu0 %v6453_v52  ;;  %4394 = vmatprep.subr.bf16.mxu1 %v6455_v53  ;;  %v6527_v52 = vld [vmem:[%s7503_s14 + $0x304] ss:$16 sps:$4 sm:$0xff]   ;;  %v6530_v53 = vld [vmem:[%s7503_s14 + $0x30c] ss:$16 sps:$4 sm:$0xff]  }
  0xac   : > { %3811 = vmatpush1.bf16.msra.mxu0 %v6457_v54  ;;  %4395 = vmatpush1.bf16.msra.mxu1 %v6458_v55  ;;  %v6525_v54 = vld [vmem:[%s7503_s14 + $0x300] ss:$16 sps:$4 sm:$0xff]   ;;  %v6528_v55 = vld [vmem:[%s7503_s14 + $0x308] ss:$16 sps:$4 sm:$0xff]  }
  0xad   : > { %3812 = vmatprep.subr.bf16.mxu0 %v6459_v56  ;;  %4396 = vmatprep.subr.bf16.mxu1 %v6461_v57  ;;  %v6533_v56 = vld [vmem:[%s7503_s14 + $0x324] ss:$16 sps:$4 sm:$0xff]   ;;  %v6536_v57 = vld [vmem:[%s7503_s14 + $0x32c] ss:$16 sps:$4 sm:$0xff]  }
  0xb0   : > { %3813 = vmatpush1.bf16.msra.mxu0 %v6463_v58  ;;  %4397 = vmatpush1.bf16.msra.mxu1 %v6464_v59  ;;  %v6531_v58 = vld [vmem:[%s7503_s14 + $0x320] ss:$16 sps:$4 sm:$0xff]   ;;  %v6534_v59 = vld [vmem:[%s7503_s14 + $0x328] ss:$16 sps:$4 sm:$0xff]  }
  0xb1   : > { %3814 = vmatprep.subr.bf16.mxu0 %v6465_v60  ;;  %4398 = vmatprep.subr.bf16.mxu1 %v6467_v61  ;;  %v6539_v60 = vld [vmem:[%s7503_s14 + $0x344] ss:$16 sps:$4 sm:$0xff]   ;;  %v6542_v61 = vld [vmem:[%s7503_s14 + $0x34c] ss:$16 sps:$4 sm:$0xff]  }
  0xb4   : > { %3815 = vmatpush1.bf16.msra.mxu0 %v6469_v62  ;;  %4399 = vmatpush1.bf16.msra.mxu1 %v6470_v63  ;;  %v6537_v62 = vld [vmem:[%s7503_s14 + $0x340] ss:$16 sps:$4 sm:$0xff]   ;;  %v6540_v63 = vld [vmem:[%s7503_s14 + $0x348] ss:$16 sps:$4 sm:$0xff]  }
  0xb5   : > { %3816 = vmatprep.subr.bf16.mxu0 %v6471_v0  ;;  %4400 = vmatprep.subr.bf16.mxu1 %v6473_v1  ;;  %v6545_v0 = vld [vmem:[%s7503_s14 + $0x364] ss:$16 sps:$4 sm:$0xff]   ;;  %v6548_v1 = vld [vmem:[%s7503_s14 + $0x36c] ss:$16 sps:$4 sm:$0xff]  }
  0xb8   : > { %3817 = vmatpush1.bf16.msra.mxu0 %v6475_v2  ;;  %4401 = vmatpush1.bf16.msra.mxu1 %v6476_v3  ;;  %v6543_v2 = vld [vmem:[%s7503_s14 + $0x360] ss:$16 sps:$4 sm:$0xff]   ;;  %v6546_v3 = vld [vmem:[%s7503_s14 + $0x368] ss:$16 sps:$4 sm:$0xff]  }
  0xb9   : > { %3859 = vmatprep.subr.bf16.mxu0 %v6479_v4  ;;  %4443 = vmatprep.subr.bf16.mxu1 %v6482_v5  ;;  %v6551_v4 = vld [vmem:[%s7503_s14 + $0x384] ss:$16 sps:$4 sm:$0xff]   ;;  %v6554_v5 = vld [vmem:[%s7503_s14 + $0x38c] ss:$16 sps:$4 sm:$0xff]  }
  0xbb   : > { %3819 = vmatmul.mubr.bf16.vlgmr.msra.gmra.mrb[0].mxu0 %v5437_v6  ;;  %4403 = vmatmul.mubr.bf16.vlgmr.msra.gmra.mrb[0].mxu1 %v5437_v6  ;;  %v6549_v6 = vld [vmem:[%s7503_s14 + $0x380] ss:$16 sps:$4 sm:$0xff]  }
  0xbc   : > { %3860 = vmatpush1.bf16.msra.mxu0 %v6477_v7  ;;  %4444 = vmatpush1.bf16.msra.mxu1 %v6480_v8  ;;  %v6552_v7 = vld [vmem:[%s7503_s14 + $0x388] ss:$16 sps:$4 sm:$0xff]   ;;  %v6557_v8 = vld [vmem:[%s7503_s14 + $0x3a4] ss:$16 sps:$4 sm:$0xff]  }
  0xbd   : > { %3861 = vmatprep.subr.bf16.mxu0 %v6485_v9  ;;  %4445 = vmatprep.subr.bf16.mxu1 %v6488_v10  ;;  %v6560_v9 = vld [vmem:[%s7503_s14 + $0x3ac] ss:$16 sps:$4 sm:$0xff]   ;;  %v6555_v10 = vld [vmem:[%s7503_s14 + $0x3a0] ss:$16 sps:$4 sm:$0xff]  }
  0xbe   : > { %3828 = vmatprep.mubr.bf16.mxu0 %v5454_v19  ;;  %4412 = vmatprep.mubr.bf16.mxu1 %v5454_v19  ;;  %v6570_v19 = vld [vmem:[%s7503_s14 + $0x3e8] ss:$16 sps:$4 sm:$0xff]  }
  0xc0   : > { %3862 = vmatpush1.bf16.msra.mxu0 %v6483_v11  ;;  %4446 = vmatpush1.bf16.msra.mxu1 %v6486_v12  ;;  %v6558_v11 = vld [vmem:[%s7503_s14 + $0x3a8] ss:$16 sps:$4 sm:$0xff]   ;;  %v6563_v12 = vld [vmem:[%s7503_s14 + $0x3c4] ss:$16 sps:$4 sm:$0xff]  }
  0xc1   : > { %3863 = vmatprep.subr.bf16.mxu0 %v6491_v13  ;;  %4447 = vmatprep.subr.bf16.mxu1 %v6494_v14  ;;  %v6566_v13 = vld [vmem:[%s7503_s14 + $0x3cc] ss:$16 sps:$4 sm:$0xff]   ;;  %v6561_v14 = vld [vmem:[%s7503_s14 + $0x3c0] ss:$16 sps:$4 sm:$0xff]  }
  0xc3   : > { %3829 = vmatmul.mubr.bf16.gmra.mrb[4].mxu0 %v5453_v20  ;;  %4413 = vmatmul.mubr.bf16.gmra.mrb[4].mxu1 %v5453_v20  ;;  %v6575_v20 = vld [vmem:[%s7503_s14 + $0x404] ss:$16 sps:$4 sm:$0xff]  }
  0xc4   : > { %3864 = vmatpush1.bf16.msra.mxu0 %v6489_v17  ;;  %4448 = vmatpush1.bf16.msra.mxu1 %v6492_v18  ;;  %v6572_v17 = vld [vmem:[%s7503_s14 + $0x3ec] ss:$16 sps:$4 sm:$0xff]   ;;  %v6567_v18 = vld [vmem:[%s7503_s14 + $0x3e0] ss:$16 sps:$4 sm:$0xff]  }
  0xc5   : > { %3865 = vmatprep.subr.bf16.mxu0 %v6497_v21  ;;  %4449 = vmatprep.subr.bf16.mxu1 %v6500_v22  ;;  %v6578_v21 = vld [vmem:[%s7503_s14 + $0x40c] ss:$16 sps:$4 sm:$0xff]   ;;  %v6573_v22 = vld [vmem:[%s7503_s14 + $0x400] ss:$16 sps:$4 sm:$0xff]  }
  0xc6   : > { %3838 = vmatprep.mubr.bf16.mxu0 %v5470_v29  ;;  %4422 = vmatprep.mubr.bf16.mxu1 %v5470_v29  ;;  %v5456_v29 = vcombine.high %v347_v25, %v355_v26  ;;  %v6656_v25 = vld [vmem:[%s7503_s14 + $0x5ac] ss:$16 sps:$4 sm:$0xff]   ;;  %v6651_v26 = vld [vmem:[%s7503_s14 + $0x5a0] ss:$16 sps:$4 sm:$0xff]  }
  0xc8   : > { %3866 = vmatpush1.bf16.msra.mxu0 %v6495_v23  ;;  %4450 = vmatpush1.bf16.msra.mxu1 %v6498_v24  ;;  %v5439_v23 = vcombine.low %v7624_v45, %v7627_v46  ;;  %v6576_v24 = vld [vmem:[%s7503_s14 + $0x408] ss:$16 sps:$4 sm:$0xff]   ;;  %v6602_v45 = vld [vmem:[%s7503_s14 + $0x48c] ss:$16 sps:$4 sm:$0xff]  }
  0xc9   : > { %3867 = vmatprep.subr.bf16.mxu0 %v6503_v27  ;;  %4451 = vmatprep.subr.bf16.mxu1 %v6506_v28  ;;  %v6581_v27 = vld [vmem:[%s7503_s14 + $0x424] ss:$16 sps:$4 sm:$0xff]   ;;  %v6584_v28 = vld [vmem:[%s7503_s14 + $0x42c] ss:$16 sps:$4 sm:$0xff]  }
  0xca   : > { %v379_v46 = vld [vmem:[%s7567_s27 + $0x188] sm:$0xff] }
  0xcb   : > { %3839 = vmatmul.mubr.bf16.gmra.mrb[8].mxu0 %v5469_v30  ;;  %4423 = vmatmul.mubr.bf16.gmra.mrb[8].mxu1 %v5469_v30  ;;  %v6579_v30 = vld [vmem:[%s7503_s14 + $0x420] ss:$16 sps:$4 sm:$0xff]  }
  0xcc   : > { %3868 = vmatpush1.bf16.msra.mxu0 %v6501_v31  ;;  %4452 = vmatpush1.bf16.msra.mxu1 %v6504_v32  ;;  %v6582_v31 = vld [vmem:[%s7503_s14 + $0x428] ss:$16 sps:$4 sm:$0xff]   ;;  %v6587_v32 = vld [vmem:[%s7503_s14 + $0x444] ss:$16 sps:$4 sm:$0xff]  }
  0xcd   : > { %3869 = vmatprep.subr.bf16.mxu0 %v6509_v33  ;;  %4453 = vmatprep.subr.bf16.mxu1 %v6512_v34  ;;  %v6590_v33 = vld [vmem:[%s7503_s14 + $0x44c] ss:$16 sps:$4 sm:$0xff]  }
  0xce   : > { %3848 = vmatprep.mubr.bf16.mxu0 %v5486_v39  ;;  %4432 = vmatprep.mubr.bf16.mxu1 %v5486_v39  ;;  %v363_v34 = vld [vmem:[%s7567_s27 + $0x108] sm:$0xff]  ;;  %v6593_v39 = vld [vmem:[%s7503_s14 + $0x464] ss:$16 sps:$4 sm:$0xff]  }
  0xd0   : > { %3870 = vmatpush1.bf16.msra.mxu0 %v6507_v37  ;;  %4454 = vmatpush1.bf16.msra.mxu1 %v6510_v38  ;;  %v6585_v37 = vld [vmem:[%s7503_s14 + $0x440] ss:$16 sps:$4 sm:$0xff]   ;;  %v6588_v38 = vld [vmem:[%s7503_s14 + $0x448] ss:$16 sps:$4 sm:$0xff]  }
  0xd1   : > { %3871 = vmatprep.subr.bf16.mxu0 %v6515_v40  ;;  %4455 = vmatprep.subr.bf16.mxu1 %v6518_v41  ;;  %v6596_v40 = vld [vmem:[%s7503_s14 + $0x46c] ss:$16 sps:$4 sm:$0xff]   ;;  %v5472_v41 = vcombine.high %v363_v34, %v371_v36 }
  0xd3   : > { %3849 = vmatmul.mubr.bf16.gmra.mrb[12].mxu0 %v5485_v44  ;;  %4433 = vmatmul.mubr.bf16.gmra.mrb[12].mxu1 %v5485_v44  ;;  %v6599_v44 = vld [vmem:[%s7503_s14 + $0x484] ss:$16 sps:$4 sm:$0xff]  }
  0xd4   : > { %3872 = vmatpush1.bf16.msra.mxu0 %v6513_v42  ;;  %4456 = vmatpush1.bf16.msra.mxu1 %v6516_v43  ;;  %v6591_v42 = vld [vmem:[%s7503_s14 + $0x460] ss:$16 sps:$4 sm:$0xff]   ;;  %v6594_v43 = vld [vmem:[%s7503_s14 + $0x468] ss:$16 sps:$4 sm:$0xff]  }
  0xd5   : > { %3873 = vmatprep.subr.bf16.mxu0 %v6521_v47  ;;  %4457 = vmatprep.subr.bf16.mxu1 %v6524_v48  ;;  %v5471_v47 = vcombine.low %v363_v34, %v371_v36  ;;  %v387_v48 = vld [vmem:[%s7567_s27 + $0x1c8] sm:$0xff]  ;;  %v6663_v34 = vld [vmem:[%s7503_s14 + $0x5e0] ss:$16 sps:$4 sm:$0xff]   ;;  %v6671_v36 = vld [vmem:[%s7503_s14 + $0x604] ss:$16 sps:$4 sm:$0xff]  }
  0xd6   : > { %3891 = vmatprep.mubr.bf16.mxu0 %v5440_v49  ;;  %4475 = vmatprep.mubr.bf16.mxu1 %v5440_v49  ;;  %v6597_v49 = vld [vmem:[%s7503_s14 + $0x480] ss:$16 sps:$4 sm:$0xff]  }
  0xd8   : > { %3874 = vmatpush1.bf16.msra.mxu0 %v6519_v50  ;;  %4458 = vmatpush1.bf16.msra.mxu1 %v6522_v51  ;;  %v6600_v50 = vld [vmem:[%s7503_s14 + $0x488] ss:$16 sps:$4 sm:$0xff]   ;;  %v6605_v51 = vld [vmem:[%s7503_s14 + $0x4a4] ss:$16 sps:$4 sm:$0xff]  }
  0xd9   : > { %3875 = vmatprep.subr.bf16.mxu0 %v6527_v52  ;;  %4459 = vmatprep.subr.bf16.mxu1 %v6530_v53  ;;  %v6608_v52 = vld [vmem:[%s7503_s14 + $0x4ac] ss:$16 sps:$4 sm:$0xff]   ;;  %v5488_v53 = vcombine.high %v379_v46, %v387_v48 }
  0xdc   : > { %3876 = vmatpush1.bf16.msra.mxu0 %v6525_v54  ;;  %4460 = vmatpush1.bf16.msra.mxu1 %v6528_v55  ;;  %v6603_v54 = vld [vmem:[%s7503_s14 + $0x4a0] ss:$16 sps:$4 sm:$0xff]   ;;  %v6606_v55 = vld [vmem:[%s7503_s14 + $0x4a8] ss:$16 sps:$4 sm:$0xff]  }
  0xdd   : > { %3877 = vmatprep.subr.bf16.mxu0 %v6533_v56  ;;  %4461 = vmatprep.subr.bf16.mxu1 %v6536_v57  ;;  %v6611_v56 = vld [vmem:[%s7503_s14 + $0x4c4] ss:$16 sps:$4 sm:$0xff]   ;;  %v6614_v57 = vld [vmem:[%s7503_s14 + $0x4cc] ss:$16 sps:$4 sm:$0xff]  }
  0xe0   : > { %3878 = vmatpush1.bf16.msra.mxu0 %v6531_v58  ;;  %4462 = vmatpush1.bf16.msra.mxu1 %v6534_v59  ;;  %v7702_v58 = vld [vmem:[%s7567_s27 + $0x10] sm:$0xff]  ;;  %v5487_v59 = vcombine.low %v379_v46, %v387_v48 }
  0xe1   : > { %3879 = vmatprep.subr.bf16.mxu0 %v6539_v60  ;;  %4463 = vmatprep.subr.bf16.mxu1 %v6542_v61  ;;  %v7705_v60 = vld [vmem:[%s7567_s27 + $0x50] sm:$0xff] }
  0xe2   : > { %v6609_v61 = vld [vmem:[%s7503_s14 + $0x4c0] ss:$16 sps:$4 sm:$0xff]   ;;  %v6683_v48 = vld [vmem:[%s7503_s14 + $0x644] ss:$16 sps:$4 sm:$0xff]  }
  0xe3   : > { %v6675_v46 = vld [vmem:[%s7503_s14 + $0x620] ss:$16 sps:$4 sm:$0xff]  }
  0xe4   : > { %3880 = vmatpush1.bf16.msra.mxu0 %v6537_v62  ;;  %4464 = vmatpush1.bf16.msra.mxu1 %v6540_v63  ;;  %v6612_v62 = vld [vmem:[%s7503_s14 + $0x4c8] ss:$16 sps:$4 sm:$0xff]   ;;  %v6617_v63 = vld [vmem:[%s7503_s14 + $0x4e4] ss:$16 sps:$4 sm:$0xff]  }
  0xe5   : > { %3881 = vmatprep.subr.bf16.mxu0 %v6545_v0  ;;  %4465 = vmatprep.subr.bf16.mxu1 %v6548_v1  ;;  %v6620_v0 = vld [vmem:[%s7503_s14 + $0x4ec] ss:$16 sps:$4 sm:$0xff]   ;;  %v5442_v1 = vcombine.high %v7702_v58, %v7705_v60 }
  0xe8   : > { %3882 = vmatpush1.bf16.msra.mxu0 %v6543_v2  ;;  %4466 = vmatpush1.bf16.msra.mxu1 %v6546_v3  ;;  %v6615_v2 = vld [vmem:[%s7503_s14 + $0x4e0] ss:$16 sps:$4 sm:$0xff]   ;;  %v6618_v3 = vld [vmem:[%s7503_s14 + $0x4e8] ss:$16 sps:$4 sm:$0xff]  }
  0xe9   : > { %3883 = vmatprep.subr.bf16.mxu0 %v6551_v4  ;;  %4467 = vmatprep.subr.bf16.mxu1 %v6554_v5  ;;  %v6623_v4 = vld [vmem:[%s7503_s14 + $0x504] ss:$16 sps:$4 sm:$0xff]   ;;  %v6626_v5 = vld [vmem:[%s7503_s14 + $0x50c] ss:$16 sps:$4 sm:$0xff]  }
  0xec   : > { %3884 = vmatpush1.bf16.msra.mxu0 %v6549_v6  ;;  %4468 = vmatpush1.bf16.msra.mxu1 %v6552_v7  ;;  %v6621_v6 = vld [vmem:[%s7503_s14 + $0x500] ss:$16 sps:$4 sm:$0xff]   ;;  %v6624_v7 = vld [vmem:[%s7503_s14 + $0x508] ss:$16 sps:$4 sm:$0xff]  }
  0xed   : > { %3885 = vmatprep.subr.bf16.mxu0 %v6557_v8  ;;  %4469 = vmatprep.subr.bf16.mxu1 %v6560_v9  ;;  %v6629_v8 = vld [vmem:[%s7503_s14 + $0x524] ss:$16 sps:$4 sm:$0xff]   ;;  %v6632_v9 = vld [vmem:[%s7503_s14 + $0x52c] ss:$16 sps:$4 sm:$0xff]  }
  0xf0   : > { %3886 = vmatpush1.bf16.msra.mxu0 %v6555_v10  ;;  %4470 = vmatpush1.bf16.msra.mxu1 %v6558_v11  ;;  %v6627_v10 = vld [vmem:[%s7503_s14 + $0x520] ss:$16 sps:$4 sm:$0xff]   ;;  %v6630_v11 = vld [vmem:[%s7503_s14 + $0x528] ss:$16 sps:$4 sm:$0xff]  }
  0xf1   : > { %3887 = vmatprep.subr.bf16.mxu0 %v6563_v12  ;;  %4471 = vmatprep.subr.bf16.mxu1 %v6566_v13  ;;  %v6635_v12 = vld [vmem:[%s7503_s14 + $0x544] ss:$16 sps:$4 sm:$0xff]   ;;  %v6638_v13 = vld [vmem:[%s7503_s14 + $0x54c] ss:$16 sps:$4 sm:$0xff]  }
  0xf4   : > { %3888 = vmatpush1.bf16.msra.mxu0 %v6561_v14  ;;  %4472 = vmatpush1.bf16.msra.mxu1 %v6564_v15  ;;  %v6633_v14 = vld [vmem:[%s7503_s14 + $0x540] ss:$16 sps:$4 sm:$0xff]   ;;  %v6636_v15 = vld [vmem:[%s7503_s14 + $0x548] ss:$16 sps:$4 sm:$0xff]  }
  0xf5   : > { %3889 = vmatprep.subr.bf16.mxu0 %v6569_v16  ;;  %4473 = vmatprep.subr.bf16.mxu1 %v6572_v17  ;;  %v6641_v16 = vld [vmem:[%s7503_s14 + $0x564] ss:$16 sps:$4 sm:$0xff]   ;;  %v6644_v17 = vld [vmem:[%s7503_s14 + $0x56c] ss:$16 sps:$4 sm:$0xff]  }
  0xf8   : > { %3890 = vmatpush1.bf16.msra.mxu0 %v6567_v18  ;;  %4474 = vmatpush1.bf16.msra.mxu1 %v6570_v19  ;;  %v6639_v18 = vld [vmem:[%s7503_s14 + $0x560] ss:$16 sps:$4 sm:$0xff]   ;;  %v6642_v19 = vld [vmem:[%s7503_s14 + $0x568] ss:$16 sps:$4 sm:$0xff]  }
  0xf9   : > { %3932 = vmatprep.subr.bf16.mxu0 %v6575_v20  ;;  %4516 = vmatprep.subr.bf16.mxu1 %v6578_v21  ;;  %v6647_v20 = vld [vmem:[%s7503_s14 + $0x584] ss:$16 sps:$4 sm:$0xff]   ;;  %v6650_v21 = vld [vmem:[%s7503_s14 + $0x58c] ss:$16 sps:$4 sm:$0xff]  }
  0xfb   : > { %3892 = vmatmul.mubr.bf16.vlgmr.msra.gmra.mrb[0].mxu0 %v5439_v23  ;;  %4476 = vmatmul.mubr.bf16.vlgmr.msra.gmra.mrb[0].mxu1 %v5439_v23  ;;  %v6648_v23 = vld [vmem:[%s7503_s14 + $0x588] ss:$16 sps:$4 sm:$0xff]  }
  0xfc   : > { %3933 = vmatpush1.bf16.msra.mxu0 %v6573_v22  ;;  %4517 = vmatpush1.bf16.msra.mxu1 %v6576_v24  ;;  %v6645_v22 = vld [vmem:[%s7503_s14 + $0x580] ss:$16 sps:$4 sm:$0xff]   ;;  %v6653_v24 = vld [vmem:[%s7503_s14 + $0x5a4] ss:$16 sps:$4 sm:$0xff]  }
  0xfd   : > { %3934 = vmatprep.subr.bf16.mxu0 %v6581_v27  ;;  %4518 = vmatprep.subr.bf16.mxu1 %v6584_v28  ;;  %v6654_v27 = vld [vmem:[%s7503_s14 + $0x5a8] ss:$16 sps:$4 sm:$0xff]   ;;  %v6659_v28 = vld [vmem:[%s7503_s14 + $0x5c4] ss:$16 sps:$4 sm:$0xff]  }
  0xfe   : > { %3901 = vmatprep.mubr.bf16.mxu0 %v5456_v29  ;;  %4485 = vmatprep.mubr.bf16.mxu1 %v5456_v29  ;;  %v6662_v29 = vld [vmem:[%s7503_s14 + $0x5cc] ss:$16 sps:$4 sm:$0xff]  }
 0x100   : > { %3935 = vmatpush1.bf16.msra.mxu0 %v6579_v30  ;;  %4519 = vmatpush1.bf16.msra.mxu1 %v6582_v31  ;;  %v6657_v30 = vld [vmem:[%s7503_s14 + $0x5c0] ss:$16 sps:$4 sm:$0xff]   ;;  %v6660_v31 = vld [vmem:[%s7503_s14 + $0x5c8] ss:$16 sps:$4 sm:$0xff]  }
 0x101   : > { %3936 = vmatprep.subr.bf16.mxu0 %v6587_v32  ;;  %4520 = vmatprep.subr.bf16.mxu1 %v6590_v33  ;;  %v6665_v32 = vld [vmem:[%s7503_s14 + $0x5e4] ss:$16 sps:$4 sm:$0xff]   ;;  %v6668_v33 = vld [vmem:[%s7503_s14 + $0x5ec] ss:$16 sps:$4 sm:$0xff]  }
 0x103   : > { %3902 = vmatmul.mubr.bf16.gmra.mrb[4].mxu0 %v5455_v35  ;;  %4486 = vmatmul.mubr.bf16.gmra.mrb[4].mxu1 %v5455_v35  ;;  %v6666_v35 = vld [vmem:[%s7503_s14 + $0x5e8] ss:$16 sps:$4 sm:$0xff]  }
 0x104   : > { %3937 = vmatpush1.bf16.msra.mxu0 %v6585_v37  ;;  %4521 = vmatpush1.bf16.msra.mxu1 %v6588_v38  ;;  %v6674_v37 = vld [vmem:[%s7503_s14 + $0x60c] ss:$16 sps:$4 sm:$0xff]   ;;  %v348_v38 = vld [vmem:[%s7567_s27 + $0x90] sm:$0xff] }
 0x105   : > { %3938 = vmatprep.subr.bf16.mxu0 %v6593_v39  ;;  %4522 = vmatprep.subr.bf16.mxu1 %v6596_v40  ;;  %v5441_v39 = vcombine.low %v7702_v58, %v7705_v60  ;;  %v356_v40 = vld [vmem:[%s7567_s27 + $0xd0] sm:$0xff] }
 0x106   : > { %3911 = vmatprep.mubr.bf16.mxu0 %v5472_v41  ;;  %4495 = vmatprep.mubr.bf16.mxu1 %v5472_v41  ;;  %v6669_v41 = vld [vmem:[%s7503_s14 + $0x600] ss:$16 sps:$4 sm:$0xff]   ;;  %v6695_v60 = vld [vmem:[%s7503_s14 + $0x684] ss:$16 sps:$4 sm:$0xff]  }
 0x107   : > { %v6687_v58 = vld [vmem:[%s7503_s14 + $0x660] ss:$16 sps:$4 sm:$0xff]  }
 0x108   : > { %3939 = vmatpush1.bf16.msra.mxu0 %v6591_v42  ;;  %4523 = vmatpush1.bf16.msra.mxu1 %v6594_v43  ;;  %v6672_v42 = vld [vmem:[%s7503_s14 + $0x608] ss:$16 sps:$4 sm:$0xff]   ;;  %v6677_v43 = vld [vmem:[%s7503_s14 + $0x624] ss:$16 sps:$4 sm:$0xff]  }
 0x109   : > { %3940 = vmatprep.subr.bf16.mxu0 %v6599_v44  ;;  %4524 = vmatprep.subr.bf16.mxu1 %v6602_v45  ;;  %v6680_v44 = vld [vmem:[%s7503_s14 + $0x62c] ss:$16 sps:$4 sm:$0xff]   ;;  %v5458_v45 = vcombine.high %v348_v38, %v356_v40 }
 0x10b   : > { %3912 = vmatmul.mubr.bf16.gmra.mrb[8].mxu0 %v5471_v47  ;;  %4496 = vmatmul.mubr.bf16.gmra.mrb[8].mxu1 %v5471_v47  ;;  %v6678_v47 = vld [vmem:[%s7503_s14 + $0x628] ss:$16 sps:$4 sm:$0xff]  }
 0x10c   : > { %3941 = vmatpush1.bf16.msra.mxu0 %v6597_v49  ;;  %4525 = vmatpush1.bf16.msra.mxu1 %v6600_v50  ;;  %v6686_v49 = vld [vmem:[%s7503_s14 + $0x64c] ss:$16 sps:$4 sm:$0xff]   ;;  %v364_v50 = vld [vmem:[%s7567_s27 + $0x110] sm:$0xff] }
 0x10d   : > { %3942 = vmatprep.subr.bf16.mxu0 %v6605_v51  ;;  %4526 = vmatprep.subr.bf16.mxu1 %v6608_v52  ;;  %v5457_v51 = vcombine.low %v348_v38, %v356_v40  ;;  %v372_v52 = vld [vmem:[%s7567_s27 + $0x150] sm:$0xff] }
 0x10e   : > { %3921 = vmatprep.mubr.bf16.mxu0 %v5488_v53  ;;  %4505 = vmatprep.mubr.bf16.mxu1 %v5488_v53  ;;  %v6681_v53 = vld [vmem:[%s7503_s14 + $0x640] ss:$16 sps:$4 sm:$0xff]   ;;  %v6749_v40 = vld [vmem:[%s7503_s14 + $0x7a4] ss:$16 sps:$4 sm:$0xff]  }
 0x10f   : > { %v6741_v38 = vld [vmem:[%s7503_s14 + $0x780] ss:$16 sps:$4 sm:$0xff]  }
 0x110   : > { %3943 = vmatpush1.bf16.msra.mxu0 %v6603_v54  ;;  %4527 = vmatpush1.bf16.msra.mxu1 %v6606_v55  ;;  %v6684_v54 = vld [vmem:[%s7503_s14 + $0x648] ss:$16 sps:$4 sm:$0xff]   ;;  %v6689_v55 = vld [vmem:[%s7503_s14 + $0x664] ss:$16 sps:$4 sm:$0xff]  }
 0x111   : > { %3944 = vmatprep.subr.bf16.mxu0 %v6611_v56  ;;  %4528 = vmatprep.subr.bf16.mxu1 %v6614_v57  ;;  %v6692_v56 = vld [vmem:[%s7503_s14 + $0x66c] ss:$16 sps:$4 sm:$0xff]   ;;  %v5474_v57 = vcombine.high %v364_v50, %v372_v52 }
 0x113   : > { %3922 = vmatmul.mubr.bf16.gmra.mrb[12].mxu0 %v5487_v59  ;;  %4506 = vmatmul.mubr.bf16.gmra.mrb[12].mxu1 %v5487_v59  ;;  %v6690_v59 = vld [vmem:[%s7503_s14 + $0x668] ss:$16 sps:$4 sm:$0xff]  }
 0x114   : > { %3945 = vmatpush1.bf16.msra.mxu0 %v6609_v61  ;;  %4529 = vmatpush1.bf16.msra.mxu1 %v6612_v62  ;;  %v6698_v61 = vld [vmem:[%s7503_s14 + $0x68c] ss:$16 sps:$4 sm:$0xff]   ;;  %v6693_v62 = vld [vmem:[%s7503_s14 + $0x680] ss:$16 sps:$4 sm:$0xff]  }
 0x115   : > { %3946 = vmatprep.subr.bf16.mxu0 %v6617_v63  ;;  %4530 = vmatprep.subr.bf16.mxu1 %v6620_v0  ;;  %v6696_v63 = vld [vmem:[%s7503_s14 + $0x688] ss:$16 sps:$4 sm:$0xff]   ;;  %v5473_v0 = vcombine.low %v364_v50, %v372_v52  ;;  %v6759_v50 = vld [vmem:[%s7503_s14 + $0x7e0] ss:$16 sps:$4 sm:$0xff]   ;;  %v6767_v52 = vld [vmem:[%s7503_s14 + $0x804] ss:$16 sps:$4 sm:$0xff]  }
 0x116   : > { %3964 = vmatprep.mubr.bf16.mxu0 %v5442_v1  ;;  %4548 = vmatprep.mubr.bf16.mxu1 %v5442_v1  ;;  %v380_v1 = vld [vmem:[%s7567_s27 + $0x190] sm:$0xff] }
 0x118   : > { %3947 = vmatpush1.bf16.msra.mxu0 %v6615_v2  ;;  %4531 = vmatpush1.bf16.msra.mxu1 %v6618_v3  ;;  %v388_v2 = vld [vmem:[%s7567_s27 + $0x1d0] sm:$0xff] }
 0x119   : > { %3948 = vmatprep.subr.bf16.mxu0 %v6623_v4  ;;  %4532 = vmatprep.subr.bf16.mxu1 %v6626_v5  ;;  %v6701_v3 = vld [vmem:[%s7503_s14 + $0x6a4] ss:$16 sps:$4 sm:$0xff]   ;;  %v6704_v4 = vld [vmem:[%s7503_s14 + $0x6ac] ss:$16 sps:$4 sm:$0xff]   ;;  %v5490_v5 = vcombine.high %v380_v1, %v388_v2 }
 0x11c   : > { %3949 = vmatpush1.bf16.msra.mxu0 %v6621_v6  ;;  %4533 = vmatpush1.bf16.msra.mxu1 %v6624_v7  ;;  %v6699_v6 = vld [vmem:[%s7503_s14 + $0x6a0] ss:$16 sps:$4 sm:$0xff]   ;;  %v6702_v7 = vld [vmem:[%s7503_s14 + $0x6a8] ss:$16 sps:$4 sm:$0xff]  }
 0x11d   : > { %3950 = vmatprep.subr.bf16.mxu0 %v6629_v8  ;;  %4534 = vmatprep.subr.bf16.mxu1 %v6632_v9  ;;  %v6707_v8 = vld [vmem:[%s7503_s14 + $0x6c4] ss:$16 sps:$4 sm:$0xff]   ;;  %v6710_v9 = vld [vmem:[%s7503_s14 + $0x6cc] ss:$16 sps:$4 sm:$0xff]  }
 0x120   : > { %3951 = vmatpush1.bf16.msra.mxu0 %v6627_v10  ;;  %4535 = vmatpush1.bf16.msra.mxu1 %v6630_v11  ;;  %v7782_v10 = vld [vmem:[%s7567_s27 + $0x18] sm:$0xff]  ;;  %v5489_v11 = vcombine.low %v380_v1, %v388_v2  ;;  %v6777_v2 = vld [vmem:[%s7503_s14 + $0x840] ss:$16 sps:$4 sm:$0xff]  }
 0x121   : > { %3952 = vmatprep.subr.bf16.mxu0 %v6635_v12  ;;  %4536 = vmatprep.subr.bf16.mxu1 %v6638_v13  ;;  %v7785_v12 = vld [vmem:[%s7567_s27 + $0x58] sm:$0xff]  ;;  %v6705_v13 = vld [vmem:[%s7503_s14 + $0x6c0] ss:$16 sps:$4 sm:$0xff]  }
 0x122   : > { %v6782_v1 = vld [vmem:[%s7503_s14 + $0x84c] ss:$16 sps:$4 sm:$0xff]  }
 0x124   : > { %3953 = vmatpush1.bf16.msra.mxu0 %v6633_v14  ;;  %4537 = vmatpush1.bf16.msra.mxu1 %v6636_v15  ;;  %v6708_v14 = vld [vmem:[%s7503_s14 + $0x6c8] ss:$16 sps:$4 sm:$0xff]   ;;  %v6713_v15 = vld [vmem:[%s7503_s14 + $0x6e4] ss:$16 sps:$4 sm:$0xff]  }
 0x125   : > { %3954 = vmatprep.subr.bf16.mxu0 %v6641_v16  ;;  %4538 = vmatprep.subr.bf16.mxu1 %v6644_v17  ;;  %v6716_v16 = vld [vmem:[%s7503_s14 + $0x6ec] ss:$16 sps:$4 sm:$0xff]   ;;  %v5444_v17 = vcombine.high %v7782_v10, %v7785_v12 }
 0x128   : > { %3955 = vmatpush1.bf16.msra.mxu0 %v6639_v18  ;;  %4539 = vmatpush1.bf16.msra.mxu1 %v6642_v19  ;;  %v6711_v18 = vld [vmem:[%s7503_s14 + $0x6e0] ss:$16 sps:$4 sm:$0xff]   ;;  %v6714_v19 = vld [vmem:[%s7503_s14 + $0x6e8] ss:$16 sps:$4 sm:$0xff]  }
 0x129   : > { %3956 = vmatprep.subr.bf16.mxu0 %v6647_v20  ;;  %4540 = vmatprep.subr.bf16.mxu1 %v6650_v21  ;;  %v6719_v20 = vld [vmem:[%s7503_s14 + $0x704] ss:$16 sps:$4 sm:$0xff]   ;;  %v6722_v21 = vld [vmem:[%s7503_s14 + $0x70c] ss:$16 sps:$4 sm:$0xff]  }
 0x12c   : > { %3957 = vmatpush1.bf16.msra.mxu0 %v6645_v22  ;;  %4541 = vmatpush1.bf16.msra.mxu1 %v6648_v23  ;;  %v6717_v22 = vld [vmem:[%s7503_s14 + $0x700] ss:$16 sps:$4 sm:$0xff]   ;;  %v6720_v23 = vld [vmem:[%s7503_s14 + $0x708] ss:$16 sps:$4 sm:$0xff]  }
 0x12d   : > { %3958 = vmatprep.subr.bf16.mxu0 %v6653_v24  ;;  %4542 = vmatprep.subr.bf16.mxu1 %v6656_v25  ;;  %v6725_v24 = vld [vmem:[%s7503_s14 + $0x724] ss:$16 sps:$4 sm:$0xff]   ;;  %v6728_v25 = vld [vmem:[%s7503_s14 + $0x72c] ss:$16 sps:$4 sm:$0xff]  }
 0x130   : > { %3959 = vmatpush1.bf16.msra.mxu0 %v6651_v26  ;;  %4543 = vmatpush1.bf16.msra.mxu1 %v6654_v27  ;;  %v6723_v26 = vld [vmem:[%s7503_s14 + $0x720] ss:$16 sps:$4 sm:$0xff]   ;;  %v6726_v27 = vld [vmem:[%s7503_s14 + $0x728] ss:$16 sps:$4 sm:$0xff]  }
 0x131   : > { %3960 = vmatprep.subr.bf16.mxu0 %v6659_v28  ;;  %4544 = vmatprep.subr.bf16.mxu1 %v6662_v29  ;;  %v6731_v28 = vld [vmem:[%s7503_s14 + $0x744] ss:$16 sps:$4 sm:$0xff]   ;;  %v6734_v29 = vld [vmem:[%s7503_s14 + $0x74c] ss:$16 sps:$4 sm:$0xff]  }
 0x134   : > { %3961 = vmatpush1.bf16.msra.mxu0 %v6657_v30  ;;  %4545 = vmatpush1.bf16.msra.mxu1 %v6660_v31  ;;  %v6729_v30 = vld [vmem:[%s7503_s14 + $0x740] ss:$16 sps:$4 sm:$0xff]   ;;  %v6732_v31 = vld [vmem:[%s7503_s14 + $0x748] ss:$16 sps:$4 sm:$0xff]  }
 0x135   : > { %3962 = vmatprep.subr.bf16.mxu0 %v6665_v32  ;;  %4546 = vmatprep.subr.bf16.mxu1 %v6668_v33  ;;  %v6737_v32 = vld [vmem:[%s7503_s14 + $0x764] ss:$16 sps:$4 sm:$0xff]   ;;  %v6740_v33 = vld [vmem:[%s7503_s14 + $0x76c] ss:$16 sps:$4 sm:$0xff]  }
 0x138   : > { %3963 = vmatpush1.bf16.msra.mxu0 %v6663_v34  ;;  %4547 = vmatpush1.bf16.msra.mxu1 %v6666_v35  ;;  %v6735_v34 = vld [vmem:[%s7503_s14 + $0x760] ss:$16 sps:$4 sm:$0xff]   ;;  %v6738_v35 = vld [vmem:[%s7503_s14 + $0x768] ss:$16 sps:$4 sm:$0xff]  }
 0x139   : > { %4005 = vmatprep.subr.bf16.mxu0 %v6671_v36  ;;  %4589 = vmatprep.subr.bf16.mxu1 %v6674_v37  ;;  %v6743_v36 = vld [vmem:[%s7503_s14 + $0x784] ss:$16 sps:$4 sm:$0xff]   ;;  %v6746_v37 = vld [vmem:[%s7503_s14 + $0x78c] ss:$16 sps:$4 sm:$0xff]  }
 0x13b   : > { %3965 = vmatmul.mubr.bf16.vlgmr.msra.gmra.mrb[0].mxu0 %v5441_v39  ;;  %4549 = vmatmul.mubr.bf16.vlgmr.msra.gmra.mrb[0].mxu1 %v5441_v39  ;;  %v6744_v39 = vld [vmem:[%s7503_s14 + $0x788] ss:$16 sps:$4 sm:$0xff]  }
 0x13c   : > { %4006 = vmatpush1.bf16.msra.mxu0 %v6669_v41  ;;  %4590 = vmatpush1.bf16.msra.mxu1 %v6672_v42  ;;  %v6752_v41 = vld [vmem:[%s7503_s14 + $0x7ac] ss:$16 sps:$4 sm:$0xff]   ;;  %v6747_v42 = vld [vmem:[%s7503_s14 + $0x7a0] ss:$16 sps:$4 sm:$0xff]  }
 0x13d   : > { %4007 = vmatprep.subr.bf16.mxu0 %v6677_v43  ;;  %4591 = vmatprep.subr.bf16.mxu1 %v6680_v44  ;;  %v6750_v43 = vld [vmem:[%s7503_s14 + $0x7a8] ss:$16 sps:$4 sm:$0xff]   ;;  %v6755_v44 = vld [vmem:[%s7503_s14 + $0x7c4] ss:$16 sps:$4 sm:$0xff]  }
 0x13e   : > { %3974 = vmatprep.mubr.bf16.mxu0 %v5458_v45  ;;  %4558 = vmatprep.mubr.bf16.mxu1 %v5458_v45  ;;  %v6758_v45 = vld [vmem:[%s7503_s14 + $0x7cc] ss:$16 sps:$4 sm:$0xff]  }
 0x140   : > { %4008 = vmatpush1.bf16.msra.mxu0 %v6675_v46  ;;  %4592 = vmatpush1.bf16.msra.mxu1 %v6678_v47  ;;  %v6753_v46 = vld [vmem:[%s7503_s14 + $0x7c0] ss:$16 sps:$4 sm:$0xff]   ;;  %v6756_v47 = vld [vmem:[%s7503_s14 + $0x7c8] ss:$16 sps:$4 sm:$0xff]  }
 0x141   : > { %4009 = vmatprep.subr.bf16.mxu0 %v6683_v48  ;;  %4593 = vmatprep.subr.bf16.mxu1 %v6686_v49  ;;  %v6761_v48 = vld [vmem:[%s7503_s14 + $0x7e4] ss:$16 sps:$4 sm:$0xff]   ;;  %v6764_v49 = vld [vmem:[%s7503_s14 + $0x7ec] ss:$16 sps:$4 sm:$0xff]  }
 0x143   : > { %3975 = vmatmul.mubr.bf16.gmra.mrb[4].mxu0 %v5457_v51  ;;  %4559 = vmatmul.mubr.bf16.gmra.mrb[4].mxu1 %v5457_v51  ;;  %v6762_v51 = vld [vmem:[%s7503_s14 + $0x7e8] ss:$16 sps:$4 sm:$0xff]  }
 0x144   : > { %4010 = vmatpush1.bf16.msra.mxu0 %v6681_v53  ;;  %4594 = vmatpush1.bf16.msra.mxu1 %v6684_v54  ;;  %v6770_v53 = vld [vmem:[%s7503_s14 + $0x80c] ss:$16 sps:$4 sm:$0xff]   ;;  %v6765_v54 = vld [vmem:[%s7503_s14 + $0x800] ss:$16 sps:$4 sm:$0xff]  }
 0x145   : > { %4011 = vmatprep.subr.bf16.mxu0 %v6689_v55  ;;  %4595 = vmatprep.subr.bf16.mxu1 %v6692_v56  ;;  %v5443_v55 = vcombine.low %v7782_v10, %v7785_v12  ;;  %v349_v56 = vld [vmem:[%s7567_s27 + $0x98] sm:$0xff]  ;;  %v6783_v10 = vld [vmem:[%s7503_s14 + $0x860] ss:$16 sps:$4 sm:$0xff]   ;;  %v6791_v12 = vld [vmem:[%s7503_s14 + $0x884] ss:$16 sps:$4 sm:$0xff]  }
 0x146   : > { %3984 = vmatprep.mubr.bf16.mxu0 %v5474_v57  ;;  %4568 = vmatprep.mubr.bf16.mxu1 %v5474_v57  ;;  %v357_v57 = vld [vmem:[%s7567_s27 + $0xd8] sm:$0xff] }
 0x148   : > { %4012 = vmatpush1.bf16.msra.mxu0 %v6687_v58  ;;  %4596 = vmatpush1.bf16.msra.mxu1 %v6690_v59  ;;  %v6768_v58 = vld [vmem:[%s7503_s14 + $0x808] ss:$16 sps:$4 sm:$0xff]   ;;  %v6773_v59 = vld [vmem:[%s7503_s14 + $0x824] ss:$16 sps:$4 sm:$0xff]  }
 0x149   : > { %4013 = vmatprep.subr.bf16.mxu0 %v6695_v60  ;;  %4597 = vmatprep.subr.bf16.mxu1 %v6698_v61  ;;  %v6776_v60 = vld [vmem:[%s7503_s14 + $0x82c] ss:$16 sps:$4 sm:$0xff]   ;;  %v5460_v61 = vcombine.high %v349_v56, %v357_v57 }
 0x14b   : > { %3985 = vmatmul.mubr.bf16.gmra.mrb[8].mxu0 %v5473_v0  ;;  %4569 = vmatmul.mubr.bf16.gmra.mrb[8].mxu1 %v5473_v0  ;;  %v6779_v0 = vld [vmem:[%s7503_s14 + $0x844] ss:$16 sps:$4 sm:$0xff]  }
 0x14c   : > { %4014 = vmatpush1.bf16.msra.mxu0 %v6693_v62  ;;  %4598 = vmatpush1.bf16.msra.mxu1 %v6696_v63  ;;  %v6771_v62 = vld [vmem:[%s7503_s14 + $0x820] ss:$16 sps:$4 sm:$0xff]   ;;  %v6774_v63 = vld [vmem:[%s7503_s14 + $0x828] ss:$16 sps:$4 sm:$0xff]  }
 0x14d   : > { %4015 = vmatprep.subr.bf16.mxu0 %v6701_v3  ;;  %4599 = vmatprep.subr.bf16.mxu1 %v6704_v4  ;;  %v6780_v3 = vld [vmem:[%s7503_s14 + $0x848] ss:$16 sps:$4 sm:$0xff]   ;;  %v5459_v4 = vcombine.low %v349_v56, %v357_v57  ;;  %v6845_v56 = vld [vmem:[%s7503_s14 + $0x9a4] ss:$16 sps:$4 sm:$0xff]   ;;  %v6848_v57 = vld [vmem:[%s7503_s14 + $0x9ac] ss:$16 sps:$4 sm:$0xff]  }
 0x14e   : > { %3994 = vmatprep.mubr.bf16.mxu0 %v5490_v5  ;;  %4578 = vmatprep.mubr.bf16.mxu1 %v5490_v5  ;;  %v365_v5 = vld [vmem:[%s7567_s27 + $0x118] sm:$0xff] }
 0x150   : > { %4016 = vmatpush1.bf16.msra.mxu0 %v6699_v6  ;;  %4600 = vmatpush1.bf16.msra.mxu1 %v6702_v7  ;;  %v373_v6 = vld [vmem:[%s7567_s27 + $0x158] sm:$0xff]  ;;  %v6785_v7 = vld [vmem:[%s7503_s14 + $0x864] ss:$16 sps:$4 sm:$0xff]  }
 0x151   : > { %4017 = vmatprep.subr.bf16.mxu0 %v6707_v8  ;;  %4601 = vmatprep.subr.bf16.mxu1 %v6710_v9  ;;  %v6788_v8 = vld [vmem:[%s7503_s14 + $0x86c] ss:$16 sps:$4 sm:$0xff]   ;;  %v5476_v9 = vcombine.high %v365_v5, %v373_v6 }
 0x153   : > { %3995 = vmatmul.mubr.bf16.gmra.mrb[12].mxu0 %v5489_v11  ;;  %4579 = vmatmul.mubr.bf16.gmra.mrb[12].mxu1 %v5489_v11  ;;  %v6786_v11 = vld [vmem:[%s7503_s14 + $0x868] ss:$16 sps:$4 sm:$0xff]  }
 0x154   : > { %4018 = vmatpush1.bf16.msra.mxu0 %v6705_v13  ;;  %4602 = vmatpush1.bf16.msra.mxu1 %v6708_v14  ;;  %v6794_v13 = vld [vmem:[%s7503_s14 + $0x88c] ss:$16 sps:$4 sm:$0xff]  }
 0x155   : > { %4019 = vmatprep.subr.bf16.mxu0 %v6713_v15  ;;  %4603 = vmatprep.subr.bf16.mxu1 %v6716_v16  ;;  %v381_v14 = vld [vmem:[%s7567_s27 + $0x198] sm:$0xff]  ;;  %v5475_v15 = vcombine.low %v365_v5, %v373_v6  ;;  %v350_v6 = vld [vmem:[%s7567_s27 + $0xa0] sm:$0xff] }
 0x156   : > { %4037 = vmatprep.mubr.bf16.mxu0 %v5444_v17  ;;  %4621 = vmatprep.mubr.bf16.mxu1 %v5444_v17  ;;  %v389_v16 = vld [vmem:[%s7567_s27 + $0x1d8] sm:$0xff]  ;;  %v6789_v17 = vld [vmem:[%s7503_s14 + $0x880] ss:$16 sps:$4 sm:$0xff]  }
 0x157   : > { %v6866_v5 = vld [vmem:[%s7503_s14 + $0xa0c] ss:$16 sps:$4 sm:$0xff]  }
 0x158   : > { %4020 = vmatpush1.bf16.msra.mxu0 %v6711_v18  ;;  %4604 = vmatpush1.bf16.msra.mxu1 %v6714_v19  ;;  %v6792_v18 = vld [vmem:[%s7503_s14 + $0x888] ss:$16 sps:$4 sm:$0xff]   ;;  %v6797_v19 = vld [vmem:[%s7503_s14 + $0x8a4] ss:$16 sps:$4 sm:$0xff]  }
 0x159   : > { %4021 = vmatprep.subr.bf16.mxu0 %v6719_v20  ;;  %4605 = vmatprep.subr.bf16.mxu1 %v6722_v21  ;;  %v6800_v20 = vld [vmem:[%s7503_s14 + $0x8ac] ss:$16 sps:$4 sm:$0xff]   ;;  %v5492_v21 = vcombine.high %v381_v14, %v389_v16 }
 0x15c   : > { %4022 = vmatpush1.bf16.msra.mxu0 %v6717_v22  ;;  %4606 = vmatpush1.bf16.msra.mxu1 %v6720_v23  ;;  %v6795_v22 = vld [vmem:[%s7503_s14 + $0x8a0] ss:$16 sps:$4 sm:$0xff]   ;;  %v6798_v23 = vld [vmem:[%s7503_s14 + $0x8a8] ss:$16 sps:$4 sm:$0xff]  }
 0x15d   : > { %4023 = vmatprep.subr.bf16.mxu0 %v6725_v24  ;;  %4607 = vmatprep.subr.bf16.mxu1 %v6728_v25  ;;  %v6803_v24 = vld [vmem:[%s7503_s14 + $0x8c4] ss:$16 sps:$4 sm:$0xff]   ;;  %v6806_v25 = vld [vmem:[%s7503_s14 + $0x8cc] ss:$16 sps:$4 sm:$0xff]  }
 0x160   : > { %4024 = vmatpush1.bf16.msra.mxu0 %v6723_v26  ;;  %4608 = vmatpush1.bf16.msra.mxu1 %v6726_v27  ;;  %v7862_v26 = vld [vmem:[%s7567_s27 + $0x20] sm:$0xff]  ;;  %v5491_v27 = vcombine.low %v381_v14, %v389_v16  ;;  %v6870_v14 = vld [vmem:[%s7503_s14 + $0xa28] ss:$16 sps:$4 sm:$0xff]  }
 0x161   : > { %4025 = vmatprep.subr.bf16.mxu0 %v6731_v28  ;;  %4609 = vmatprep.subr.bf16.mxu1 %v6734_v29  ;;  %v7865_v28 = vld [vmem:[%s7567_s27 + $0x60] sm:$0xff] }
 0x162   : > { %v6801_v29 = vld [vmem:[%s7503_s14 + $0x8c0] ss:$16 sps:$4 sm:$0xff]   ;;  %v6875_v16 = vld [vmem:[%s7503_s14 + $0xa44] ss:$16 sps:$4 sm:$0xff]  }
 0x164   : > { %4026 = vmatpush1.bf16.msra.mxu0 %v6729_v30  ;;  %4610 = vmatpush1.bf16.msra.mxu1 %v6732_v31  ;;  %v6804_v30 = vld [vmem:[%s7503_s14 + $0x8c8] ss:$16 sps:$4 sm:$0xff]   ;;  %v6809_v31 = vld [vmem:[%s7503_s14 + $0x8e4] ss:$16 sps:$4 sm:$0xff]  }
 0x165   : > { %4027 = vmatprep.subr.bf16.mxu0 %v6737_v32  ;;  %4611 = vmatprep.subr.bf16.mxu1 %v6740_v33  ;;  %v6812_v32 = vld [vmem:[%s7503_s14 + $0x8ec] ss:$16 sps:$4 sm:$0xff]   ;;  %v5446_v33 = vcombine.high %v7862_v26, %v7865_v28 }
 0x168   : > { %4028 = vmatpush1.bf16.msra.mxu0 %v6735_v34  ;;  %4612 = vmatpush1.bf16.msra.mxu1 %v6738_v35  ;;  %v6807_v34 = vld [vmem:[%s7503_s14 + $0x8e0] ss:$16 sps:$4 sm:$0xff]   ;;  %v6810_v35 = vld [vmem:[%s7503_s14 + $0x8e8] ss:$16 sps:$4 sm:$0xff]  }
 0x169   : > { %4029 = vmatprep.subr.bf16.mxu0 %v6743_v36  ;;  %4613 = vmatprep.subr.bf16.mxu1 %v6746_v37  ;;  %v6815_v36 = vld [vmem:[%s7503_s14 + $0x904] ss:$16 sps:$4 sm:$0xff]   ;;  %v6818_v37 = vld [vmem:[%s7503_s14 + $0x90c] ss:$16 sps:$4 sm:$0xff]  }
 0x16c   : > { %4030 = vmatpush1.bf16.msra.mxu0 %v6741_v38  ;;  %4614 = vmatpush1.bf16.msra.mxu1 %v6744_v39  ;;  %v6813_v38 = vld [vmem:[%s7503_s14 + $0x900] ss:$16 sps:$4 sm:$0xff]   ;;  %v6816_v39 = vld [vmem:[%s7503_s14 + $0x908] ss:$16 sps:$4 sm:$0xff]  }
 0x16d   : > { %4031 = vmatprep.subr.bf16.mxu0 %v6749_v40  ;;  %4615 = vmatprep.subr.bf16.mxu1 %v6752_v41  ;;  %v6821_v40 = vld [vmem:[%s7503_s14 + $0x924] ss:$16 sps:$4 sm:$0xff]   ;;  %v6824_v41 = vld [vmem:[%s7503_s14 + $0x92c] ss:$16 sps:$4 sm:$0xff]  }
 0x170   : > { %4032 = vmatpush1.bf16.msra.mxu0 %v6747_v42  ;;  %4616 = vmatpush1.bf16.msra.mxu1 %v6750_v43  ;;  %v6819_v42 = vld [vmem:[%s7503_s14 + $0x920] ss:$16 sps:$4 sm:$0xff]   ;;  %v6822_v43 = vld [vmem:[%s7503_s14 + $0x928] ss:$16 sps:$4 sm:$0xff]  }
 0x171   : > { %4033 = vmatprep.subr.bf16.mxu0 %v6755_v44  ;;  %4617 = vmatprep.subr.bf16.mxu1 %v6758_v45  ;;  %v6827_v44 = vld [vmem:[%s7503_s14 + $0x944] ss:$16 sps:$4 sm:$0xff]   ;;  %v6830_v45 = vld [vmem:[%s7503_s14 + $0x94c] ss:$16 sps:$4 sm:$0xff]  }
 0x174   : > { %4034 = vmatpush1.bf16.msra.mxu0 %v6753_v46  ;;  %4618 = vmatpush1.bf16.msra.mxu1 %v6756_v47  ;;  %v6825_v46 = vld [vmem:[%s7503_s14 + $0x940] ss:$16 sps:$4 sm:$0xff]   ;;  %v6828_v47 = vld [vmem:[%s7503_s14 + $0x948] ss:$16 sps:$4 sm:$0xff]  }
 0x175   : > { %4035 = vmatprep.subr.bf16.mxu0 %v6761_v48  ;;  %4619 = vmatprep.subr.bf16.mxu1 %v6764_v49  ;;  %v6833_v48 = vld [vmem:[%s7503_s14 + $0x964] ss:$16 sps:$4 sm:$0xff]   ;;  %v6836_v49 = vld [vmem:[%s7503_s14 + $0x96c] ss:$16 sps:$4 sm:$0xff]  }
 0x178   : > { %4036 = vmatpush1.bf16.msra.mxu0 %v6759_v50  ;;  %4620 = vmatpush1.bf16.msra.mxu1 %v6762_v51  ;;  %v6831_v50 = vld [vmem:[%s7503_s14 + $0x960] ss:$16 sps:$4 sm:$0xff]   ;;  %v6834_v51 = vld [vmem:[%s7503_s14 + $0x968] ss:$16 sps:$4 sm:$0xff]  }
 0x179   : > { %4078 = vmatprep.subr.bf16.mxu0 %v6767_v52  ;;  %4662 = vmatprep.subr.bf16.mxu1 %v6770_v53  ;;  %v6839_v52 = vld [vmem:[%s7503_s14 + $0x984] ss:$16 sps:$4 sm:$0xff]   ;;  %v6842_v53 = vld [vmem:[%s7503_s14 + $0x98c] ss:$16 sps:$4 sm:$0xff]  }
 0x17b   : > { %4038 = vmatmul.mubr.bf16.vlgmr.msra.gmra.mrb[0].mxu0 %v5443_v55  ;;  %4622 = vmatmul.mubr.bf16.vlgmr.msra.gmra.mrb[0].mxu1 %v5443_v55  ;;  %v6840_v55 = vld [vmem:[%s7503_s14 + $0x988] ss:$16 sps:$4 sm:$0xff]  }
 0x17c   : > { %4079 = vmatpush1.bf16.msra.mxu0 %v6765_v54  ;;  %4663 = vmatpush1.bf16.msra.mxu1 %v6768_v58  ;;  %v6837_v54 = vld [vmem:[%s7503_s14 + $0x980] ss:$16 sps:$4 sm:$0xff]  }
 0x17d   : > { %4080 = vmatprep.subr.bf16.mxu0 %v6773_v59  ;;  %4664 = vmatprep.subr.bf16.mxu1 %v6776_v60  ;;  %v6843_v58 = vld [vmem:[%s7503_s14 + $0x9a0] ss:$16 sps:$4 sm:$0xff]   ;;  %v6846_v59 = vld [vmem:[%s7503_s14 + $0x9a8] ss:$16 sps:$4 sm:$0xff]   ;;  %v6851_v60 = vld [vmem:[%s7503_s14 + $0x9c4] ss:$16 sps:$4 sm:$0xff]  }
 0x17e   : > { %4047 = vmatprep.mubr.bf16.mxu0 %v5460_v61  ;;  %4631 = vmatprep.mubr.bf16.mxu1 %v5460_v61  ;;  %v6854_v61 = vld [vmem:[%s7503_s14 + $0x9cc] ss:$16 sps:$4 sm:$0xff]  }
 0x180   : > { %4081 = vmatpush1.bf16.msra.mxu0 %v6771_v62  ;;  %4665 = vmatpush1.bf16.msra.mxu1 %v6774_v63  ;;  %v6849_v62 = vld [vmem:[%s7503_s14 + $0x9c0] ss:$16 sps:$4 sm:$0xff]   ;;  %v6852_v63 = vld [vmem:[%s7503_s14 + $0x9c8] ss:$16 sps:$4 sm:$0xff]  }
 0x181   : > { %4082 = vmatprep.subr.bf16.mxu0 %v6779_v0  ;;  %4666 = vmatprep.subr.bf16.mxu1 %v6782_v1  ;;  %v6857_v0 = vld [vmem:[%s7503_s14 + $0x9e4] ss:$16 sps:$4 sm:$0xff]   ;;  %v6860_v1 = vld [vmem:[%s7503_s14 + $0x9ec] ss:$16 sps:$4 sm:$0xff]  }
 0x183   : > { %4048 = vmatmul.mubr.bf16.gmra.mrb[4].mxu0 %v5459_v4  ;;  %4632 = vmatmul.mubr.bf16.gmra.mrb[4].mxu1 %v5459_v4  ;;  %v6863_v4 = vld [vmem:[%s7503_s14 + $0xa04] ss:$16 sps:$4 sm:$0xff]  }
 0x184   : > { %4083 = vmatpush1.bf16.msra.mxu0 %v6777_v2  ;;  %4667 = vmatpush1.bf16.msra.mxu1 %v6780_v3  ;;  %v6855_v2 = vld [vmem:[%s7503_s14 + $0x9e0] ss:$16 sps:$4 sm:$0xff]   ;;  %v6858_v3 = vld [vmem:[%s7503_s14 + $0x9e8] ss:$16 sps:$4 sm:$0xff]  }
 0x185   : > { %4084 = vmatprep.subr.bf16.mxu0 %v6785_v7  ;;  %4668 = vmatprep.subr.bf16.mxu1 %v6788_v8  ;;  %v358_v7 = vld [vmem:[%s7567_s27 + $0xe0] sm:$0xff]  ;;  %v5445_v8 = vcombine.low %v7862_v26, %v7865_v28  ;;  %v6882_v26 = vld [vmem:[%s7503_s14 + $0xa68] ss:$16 sps:$4 sm:$0xff]  }
 0x186   : > { %4057 = vmatprep.mubr.bf16.mxu0 %v5476_v9  ;;  %4641 = vmatprep.mubr.bf16.mxu1 %v5476_v9  ;;  %v6861_v9 = vld [vmem:[%s7503_s14 + $0xa00] ss:$16 sps:$4 sm:$0xff]   ;;  %v6887_v28 = vld [vmem:[%s7503_s14 + $0xa84] ss:$16 sps:$4 sm:$0xff]  }
 0x188   : > { %4085 = vmatpush1.bf16.msra.mxu0 %v6783_v10  ;;  %4669 = vmatpush1.bf16.msra.mxu1 %v6786_v11  ;;  %v6864_v10 = vld [vmem:[%s7503_s14 + $0xa08] ss:$16 sps:$4 sm:$0xff]   ;;  %v6869_v11 = vld [vmem:[%s7503_s14 + $0xa24] ss:$16 sps:$4 sm:$0xff]  }
 0x189   : > { %4086 = vmatprep.subr.bf16.mxu0 %v6791_v12  ;;  %4670 = vmatprep.subr.bf16.mxu1 %v6794_v13  ;;  %v6872_v12 = vld [vmem:[%s7503_s14 + $0xa2c] ss:$16 sps:$4 sm:$0xff]   ;;  %v6867_v13 = vld [vmem:[%s7503_s14 + $0xa20] ss:$16 sps:$4 sm:$0xff]  }
 0x18b   : > { %4058 = vmatmul.mubr.bf16.gmra.mrb[8].mxu0 %v5475_v15  ;;  %4642 = vmatmul.mubr.bf16.gmra.mrb[8].mxu1 %v5475_v15  ;;  %v5462_v15 = vcombine.high %v350_v6, %v358_v7 }
 0x18c   : > { %4087 = vmatpush1.bf16.msra.mxu0 %v6789_v17  ;;  %4671 = vmatpush1.bf16.msra.mxu1 %v6792_v18  ;;  %v6878_v17 = vld [vmem:[%s7503_s14 + $0xa4c] ss:$16 sps:$4 sm:$0xff]   ;;  %v366_v18 = vld [vmem:[%s7567_s27 + $0x120] sm:$0xff] }
 0x18d   : > { %4088 = vmatprep.subr.bf16.mxu0 %v6797_v19  ;;  %4672 = vmatprep.subr.bf16.mxu1 %v6800_v20  ;;  %v374_v19 = vld [vmem:[%s7567_s27 + $0x160] sm:$0xff]  ;;  %v5461_v20 = vcombine.low %v350_v6, %v358_v7  ;;  %v6936_v7 = vld [vmem:[%s7503_s14 + $0xb88] ss:$16 sps:$4 sm:$0xff]  }
 0x18e   : > { %4067 = vmatprep.mubr.bf16.mxu0 %v5492_v21  ;;  %4651 = vmatprep.mubr.bf16.mxu1 %v5492_v21  ;;  %v6873_v21 = vld [vmem:[%s7503_s14 + $0xa40] ss:$16 sps:$4 sm:$0xff]  }
 0x18f   : > { %v6933_v6 = vld [vmem:[%s7503_s14 + $0xb80] ss:$16 sps:$4 sm:$0xff]  }
 0x190   : > { %4089 = vmatpush1.bf16.msra.mxu0 %v6795_v22  ;;  %4673 = vmatpush1.bf16.msra.mxu1 %v6798_v23  ;;  %v6876_v22 = vld [vmem:[%s7503_s14 + $0xa48] ss:$16 sps:$4 sm:$0xff]   ;;  %v6881_v23 = vld [vmem:[%s7503_s14 + $0xa64] ss:$16 sps:$4 sm:$0xff]  }
 0x191   : > { %4090 = vmatprep.subr.bf16.mxu0 %v6803_v24  ;;  %4674 = vmatprep.subr.bf16.mxu1 %v6806_v25  ;;  %v6884_v24 = vld [vmem:[%s7503_s14 + $0xa6c] ss:$16 sps:$4 sm:$0xff]   ;;  %v6879_v25 = vld [vmem:[%s7503_s14 + $0xa60] ss:$16 sps:$4 sm:$0xff]  }
 0x193   : > { %4068 = vmatmul.mubr.bf16.gmra.mrb[12].mxu0 %v5491_v27  ;;  %4652 = vmatmul.mubr.bf16.gmra.mrb[12].mxu1 %v5491_v27  ;;  %v5478_v27 = vcombine.high %v366_v18, %v374_v19 }
 0x194   : > { %4091 = vmatpush1.bf16.msra.mxu0 %v6801_v29  ;;  %4675 = vmatpush1.bf16.msra.mxu1 %v6804_v30  ;;  %v6890_v29 = vld [vmem:[%s7503_s14 + $0xa8c] ss:$16 sps:$4 sm:$0xff]   ;;  %v382_v30 = vld [vmem:[%s7567_s27 + $0x1a0] sm:$0xff] }
 0x195   : > { %4092 = vmatprep.subr.bf16.mxu0 %v6809_v31  ;;  %4676 = vmatprep.subr.bf16.mxu1 %v6812_v32  ;;  %v390_v31 = vld [vmem:[%s7567_s27 + $0x1e0] sm:$0xff]  ;;  %v5477_v32 = vcombine.low %v366_v18, %v374_v19  ;;  %v6954_v19 = vld [vmem:[%s7503_s14 + $0xbe8] ss:$16 sps:$4 sm:$0xff]  }
 0x196   : > { %4110 = vmatprep.mubr.bf16.mxu0 %v5446_v33  ;;  %4694 = vmatprep.mubr.bf16.mxu1 %v5446_v33  ;;  %v6885_v33 = vld [vmem:[%s7503_s14 + $0xa80] ss:$16 sps:$4 sm:$0xff]  }
 0x197   : > { %v6951_v18 = vld [vmem:[%s7503_s14 + $0xbe0] ss:$16 sps:$4 sm:$0xff]  }
 0x198   : > { %4093 = vmatpush1.bf16.msra.mxu0 %v6807_v34  ;;  %4677 = vmatpush1.bf16.msra.mxu1 %v6810_v35  ;;  %v6888_v34 = vld [vmem:[%s7503_s14 + $0xa88] ss:$16 sps:$4 sm:$0xff]   ;;  %v6893_v35 = vld [vmem:[%s7503_s14 + $0xaa4] ss:$16 sps:$4 sm:$0xff]  }
 0x199   : > { %4094 = vmatprep.subr.bf16.mxu0 %v6815_v36  ;;  %4678 = vmatprep.subr.bf16.mxu1 %v6818_v37  ;;  %v6896_v36 = vld [vmem:[%s7503_s14 + $0xaac] ss:$16 sps:$4 sm:$0xff]   ;;  %v6891_v37 = vld [vmem:[%s7503_s14 + $0xaa0] ss:$16 sps:$4 sm:$0xff]  }
 0x19c   : > { %4095 = vmatpush1.bf16.msra.mxu0 %v6813_v38  ;;  %4679 = vmatpush1.bf16.msra.mxu1 %v6816_v39  ;;  %v6894_v38 = vld [vmem:[%s7503_s14 + $0xaa8] ss:$16 sps:$4 sm:$0xff]   ;;  %v5494_v39 = vcombine.high %v382_v30, %v390_v31 }
 0x19d   : > { %4096 = vmatprep.subr.bf16.mxu0 %v6821_v40  ;;  %4680 = vmatprep.subr.bf16.mxu1 %v6824_v41  ;;  %v6899_v40 = vld [vmem:[%s7503_s14 + $0xac4] ss:$16 sps:$4 sm:$0xff]   ;;  %v6902_v41 = vld [vmem:[%s7503_s14 + $0xacc] ss:$16 sps:$4 sm:$0xff]  }
 0x1a0   : > { %4097 = vmatpush1.bf16.msra.mxu0 %v6819_v42  ;;  %4681 = vmatpush1.bf16.msra.mxu1 %v6822_v43  ;;  %v7942_v42 = vld [vmem:[%s7567_s27 + $0x28] sm:$0xff] }
 0x1a1   : > { %4098 = vmatprep.subr.bf16.mxu0 %v6827_v44  ;;  %4682 = vmatprep.subr.bf16.mxu1 %v6830_v45  ;;  %v7945_v43 = vld [vmem:[%s7567_s27 + $0x68] sm:$0xff]  ;;  %v5493_v44 = vcombine.low %v382_v30, %v390_v31  ;;  %v6897_v45 = vld [vmem:[%s7503_s14 + $0xac0] ss:$16 sps:$4 sm:$0xff]  }
 0x1a2   : > { %v6963_v30 = vld [vmem:[%s7503_s14 + $0xc20] ss:$16 sps:$4 sm:$0xff]   ;;  %v6966_v31 = vld [vmem:[%s7503_s14 + $0xc28] ss:$16 sps:$4 sm:$0xff]  }
 0x1a4   : > { %4099 = vmatpush1.bf16.msra.mxu0 %v6825_v46  ;;  %4683 = vmatpush1.bf16.msra.mxu1 %v6828_v47  ;;  %v6900_v46 = vld [vmem:[%s7503_s14 + $0xac8] ss:$16 sps:$4 sm:$0xff]   ;;  %v6905_v47 = vld [vmem:[%s7503_s14 + $0xae4] ss:$16 sps:$4 sm:$0xff]  }
 0x1a5   : > { %4100 = vmatprep.subr.bf16.mxu0 %v6833_v48  ;;  %4684 = vmatprep.subr.bf16.mxu1 %v6836_v49  ;;  %v6908_v48 = vld [vmem:[%s7503_s14 + $0xaec] ss:$16 sps:$4 sm:$0xff]   ;;  %v5448_v49 = vcombine.high %v7942_v42, %v7945_v43 }
 0x1a8   : > { %4101 = vmatpush1.bf16.msra.mxu0 %v6831_v50  ;;  %4685 = vmatpush1.bf16.msra.mxu1 %v6834_v51  ;;  %v6903_v50 = vld [vmem:[%s7503_s14 + $0xae0] ss:$16 sps:$4 sm:$0xff]   ;;  %v6906_v51 = vld [vmem:[%s7503_s14 + $0xae8] ss:$16 sps:$4 sm:$0xff]  }
 0x1a9   : > { %4102 = vmatprep.subr.bf16.mxu0 %v6839_v52  ;;  %4686 = vmatprep.subr.bf16.mxu1 %v6842_v53  ;;  %v6911_v52 = vld [vmem:[%s7503_s14 + $0xb04] ss:$16 sps:$4 sm:$0xff]   ;;  %v6914_v53 = vld [vmem:[%s7503_s14 + $0xb0c] ss:$16 sps:$4 sm:$0xff]  }
 0x1ac   : > { %4103 = vmatpush1.bf16.msra.mxu0 %v6837_v54  ;;  %4687 = vmatpush1.bf16.msra.mxu1 %v6840_v55  ;;  %v6909_v54 = vld [vmem:[%s7503_s14 + $0xb00] ss:$16 sps:$4 sm:$0xff]   ;;  %v6912_v55 = vld [vmem:[%s7503_s14 + $0xb08] ss:$16 sps:$4 sm:$0xff]  }
 0x1ad   : > { %4104 = vmatprep.subr.bf16.mxu0 %v6845_v56  ;;  %4688 = vmatprep.subr.bf16.mxu1 %v6848_v57  ;;  %v6917_v56 = vld [vmem:[%s7503_s14 + $0xb24] ss:$16 sps:$4 sm:$0xff]   ;;  %v6920_v57 = vld [vmem:[%s7503_s14 + $0xb2c] ss:$16 sps:$4 sm:$0xff]  }
 0x1b0   : > { %4105 = vmatpush1.bf16.msra.mxu0 %v6843_v58  ;;  %4689 = vmatpush1.bf16.msra.mxu1 %v6846_v59  ;;  %v6915_v58 = vld [vmem:[%s7503_s14 + $0xb20] ss:$16 sps:$4 sm:$0xff]   ;;  %v6918_v59 = vld [vmem:[%s7503_s14 + $0xb28] ss:$16 sps:$4 sm:$0xff]  }
 0x1b1   : > { %4106 = vmatprep.subr.bf16.mxu0 %v6851_v60  ;;  %4690 = vmatprep.subr.bf16.mxu1 %v6854_v61  ;;  %v6923_v60 = vld [vmem:[%s7503_s14 + $0xb44] ss:$16 sps:$4 sm:$0xff]   ;;  %v6926_v61 = vld [vmem:[%s7503_s14 + $0xb4c] ss:$16 sps:$4 sm:$0xff]  }
 0x1b4   : > { %4107 = vmatpush1.bf16.msra.mxu0 %v6849_v62  ;;  %4691 = vmatpush1.bf16.msra.mxu1 %v6852_v63  ;;  %v6921_v62 = vld [vmem:[%s7503_s14 + $0xb40] ss:$16 sps:$4 sm:$0xff]   ;;  %v6924_v63 = vld [vmem:[%s7503_s14 + $0xb48] ss:$16 sps:$4 sm:$0xff]  }
 0x1b5   : > { %4108 = vmatprep.subr.bf16.mxu0 %v6857_v0  ;;  %4692 = vmatprep.subr.bf16.mxu1 %v6860_v1  ;;  %v6929_v0 = vld [vmem:[%s7503_s14 + $0xb64] ss:$16 sps:$4 sm:$0xff]   ;;  %v6932_v1 = vld [vmem:[%s7503_s14 + $0xb6c] ss:$16 sps:$4 sm:$0xff]  }
 0x1b8   : > { %4109 = vmatpush1.bf16.msra.mxu0 %v6855_v2  ;;  %4693 = vmatpush1.bf16.msra.mxu1 %v6858_v3  ;;  %v6927_v2 = vld [vmem:[%s7503_s14 + $0xb60] ss:$16 sps:$4 sm:$0xff]   ;;  %v6930_v3 = vld [vmem:[%s7503_s14 + $0xb68] ss:$16 sps:$4 sm:$0xff]  }
 0x1b9   : > { %4151 = vmatprep.subr.bf16.mxu0 %v6863_v4  ;;  %4735 = vmatprep.subr.bf16.mxu1 %v6866_v5  ;;  %v6935_v4 = vld [vmem:[%s7503_s14 + $0xb84] ss:$16 sps:$4 sm:$0xff]   ;;  %v6938_v5 = vld [vmem:[%s7503_s14 + $0xb8c] ss:$16 sps:$4 sm:$0xff]  }
 0x1bb   : > { %4111 = vmatmul.mubr.bf16.vlgmr.msra.gmra.mrb[0].mxu0 %v5445_v8  ;;  %4695 = vmatmul.mubr.bf16.vlgmr.msra.gmra.mrb[0].mxu1 %v5445_v8  ;;  %v6941_v8 = vld [vmem:[%s7503_s14 + $0xba4] ss:$16 sps:$4 sm:$0xff]  }
 0x1bc   : > { %4152 = vmatpush1.bf16.msra.mxu0 %v6861_v9  ;;  %4736 = vmatpush1.bf16.msra.mxu1 %v6864_v10  ;;  %v6944_v9 = vld [vmem:[%s7503_s14 + $0xbac] ss:$16 sps:$4 sm:$0xff]   ;;  %v6939_v10 = vld [vmem:[%s7503_s14 + $0xba0] ss:$16 sps:$4 sm:$0xff]  }
 0x1bd   : > { %4153 = vmatprep.subr.bf16.mxu0 %v6869_v11  ;;  %4737 = vmatprep.subr.bf16.mxu1 %v6872_v12  ;;  %v6942_v11 = vld [vmem:[%s7503_s14 + $0xba8] ss:$16 sps:$4 sm:$0xff]   ;;  %v6947_v12 = vld [vmem:[%s7503_s14 + $0xbc4] ss:$16 sps:$4 sm:$0xff]  }
 0x1be   : > { %4120 = vmatprep.mubr.bf16.mxu0 %v5462_v15  ;;  %4704 = vmatprep.mubr.bf16.mxu1 %v5462_v15  ;;  %v6948_v15 = vld [vmem:[%s7503_s14 + $0xbc8] ss:$16 sps:$4 sm:$0xff]  }
 0x1c0   : > { %4154 = vmatpush1.bf16.msra.mxu0 %v6867_v13  ;;  %4738 = vmatpush1.bf16.msra.mxu1 %v6870_v14  ;;  %v6950_v13 = vld [vmem:[%s7503_s14 + $0xbcc] ss:$16 sps:$4 sm:$0xff]   ;;  %v6945_v14 = vld [vmem:[%s7503_s14 + $0xbc0] ss:$16 sps:$4 sm:$0xff]  }
 0x1c1   : > { %4155 = vmatprep.subr.bf16.mxu0 %v6875_v16  ;;  %4739 = vmatprep.subr.bf16.mxu1 %v6878_v17  ;;  %v6953_v16 = vld [vmem:[%s7503_s14 + $0xbe4] ss:$16 sps:$4 sm:$0xff]   ;;  %v6956_v17 = vld [vmem:[%s7503_s14 + $0xbec] ss:$16 sps:$4 sm:$0xff]  }
 0x1c3   : > { %4121 = vmatmul.mubr.bf16.gmra.mrb[4].mxu0 %v5461_v20  ;;  %4705 = vmatmul.mubr.bf16.gmra.mrb[4].mxu1 %v5461_v20  ;;  %v6959_v20 = vld [vmem:[%s7503_s14 + $0xc04] ss:$16 sps:$4 sm:$0xff]  }
 0x1c4   : > { %4156 = vmatpush1.bf16.msra.mxu0 %v6873_v21  ;;  %4740 = vmatpush1.bf16.msra.mxu1 %v6876_v22  ;;  %v6962_v21 = vld [vmem:[%s7503_s14 + $0xc0c] ss:$16 sps:$4 sm:$0xff]   ;;  %v5447_v22 = vcombine.low %v7942_v42, %v7945_v43  ;;  %v6975_v42 = vld [vmem:[%s7503_s14 + $0xc60] ss:$16 sps:$4 sm:$0xff]   ;;  %v6978_v43 = vld [vmem:[%s7503_s14 + $0xc68] ss:$16 sps:$4 sm:$0xff]  }
 0x1c5   : > { %4157 = vmatprep.subr.bf16.mxu0 %v6881_v23  ;;  %4741 = vmatprep.subr.bf16.mxu1 %v6884_v24  ;;  %v351_v23 = vld [vmem:[%s7567_s27 + $0xa8] sm:$0xff] }
 0x1c6   : > { %4130 = vmatprep.mubr.bf16.mxu0 %v5478_v27  ;;  %4714 = vmatprep.mubr.bf16.mxu1 %v5478_v27  ;;  %v359_v24 = vld [vmem:[%s7567_s27 + $0xe8] sm:$0xff]  ;;  %v6965_v27 = vld [vmem:[%s7503_s14 + $0xc24] ss:$16 sps:$4 sm:$0xff]  }
 0x1c8   : > { %4158 = vmatpush1.bf16.msra.mxu0 %v6879_v25  ;;  %4742 = vmatpush1.bf16.msra.mxu1 %v6882_v26  ;;  %v6957_v25 = vld [vmem:[%s7503_s14 + $0xc00] ss:$16 sps:$4 sm:$0xff]   ;;  %v6960_v26 = vld [vmem:[%s7503_s14 + $0xc08] ss:$16 sps:$4 sm:$0xff]  }
 0x1c9   : > { %4159 = vmatprep.subr.bf16.mxu0 %v6887_v28  ;;  %4743 = vmatprep.subr.bf16.mxu1 %v6890_v29  ;;  %v6968_v28 = vld [vmem:[%s7503_s14 + $0xc2c] ss:$16 sps:$4 sm:$0xff]   ;;  %v5464_v29 = vcombine.high %v351_v23, %v359_v24 }
 0x1cb   : > { %4131 = vmatmul.mubr.bf16.gmra.mrb[8].mxu0 %v5477_v32  ;;  %4715 = vmatmul.mubr.bf16.gmra.mrb[8].mxu1 %v5477_v32  ;;  %v6971_v32 = vld [vmem:[%s7503_s14 + $0xc44] ss:$16 sps:$4 sm:$0xff]  }
 0x1cc   : > { %4160 = vmatpush1.bf16.msra.mxu0 %v6885_v33  ;;  %4744 = vmatpush1.bf16.msra.mxu1 %v6888_v34  ;;  %v6974_v33 = vld [vmem:[%s7503_s14 + $0xc4c] ss:$16 sps:$4 sm:$0xff]   ;;  %v5463_v34 = vcombine.low %v351_v23, %v359_v24  ;;  %v7032_v23 = vld [vmem:[%s7503_s14 + $0xd88] ss:$16 sps:$4 sm:$0xff]   ;;  %v7037_v24 = vld [vmem:[%s7503_s14 + $0xda4] ss:$16 sps:$4 sm:$0xff]  }
 0x1cd   : > { %4161 = vmatprep.subr.bf16.mxu0 %v6893_v35  ;;  %4745 = vmatprep.subr.bf16.mxu1 %v6896_v36  ;;  %v367_v35 = vld [vmem:[%s7567_s27 + $0x128] sm:$0xff] }
 0x1ce   : > { %4140 = vmatprep.mubr.bf16.mxu0 %v5494_v39  ;;  %4724 = vmatprep.mubr.bf16.mxu1 %v5494_v39  ;;  %v375_v36 = vld [vmem:[%s7567_s27 + $0x168] sm:$0xff]  ;;  %v6977_v39 = vld [vmem:[%s7503_s14 + $0xc64] ss:$16 sps:$4 sm:$0xff]  }
 0x1d0   : > { %4162 = vmatpush1.bf16.msra.mxu0 %v6891_v37  ;;  %4746 = vmatpush1.bf16.msra.mxu1 %v6894_v38  ;;  %v6969_v37 = vld [vmem:[%s7503_s14 + $0xc40] ss:$16 sps:$4 sm:$0xff]   ;;  %v6972_v38 = vld [vmem:[%s7503_s14 + $0xc48] ss:$16 sps:$4 sm:$0xff]  }
 0x1d1   : > { %4163 = vmatprep.subr.bf16.mxu0 %v6899_v40  ;;  %4747 = vmatprep.subr.bf16.mxu1 %v6902_v41  ;;  %v6980_v40 = vld [vmem:[%s7503_s14 + $0xc6c] ss:$16 sps:$4 sm:$0xff]   ;;  %v5480_v41 = vcombine.high %v367_v35, %v375_v36 }
 0x1d3   : > { %4141 = vmatmul.mubr.bf16.gmra.mrb[12].mxu0 %v5493_v44  ;;  %4725 = vmatmul.mubr.bf16.gmra.mrb[12].mxu1 %v5493_v44  ;;  %v6983_v44 = vld [vmem:[%s7503_s14 + $0xc84] ss:$16 sps:$4 sm:$0xff]  }
 0x1d4   : > { %4164 = vmatpush1.bf16.msra.mxu0 %v6897_v45  ;;  %4748 = vmatpush1.bf16.msra.mxu1 %v6900_v46  ;;  %v6986_v45 = vld [vmem:[%s7503_s14 + $0xc8c] ss:$16 sps:$4 sm:$0xff]   ;;  %v5479_v46 = vcombine.low %v367_v35, %v375_v36  ;;  %v7050_v35 = vld [vmem:[%s7503_s14 + $0xde8] ss:$16 sps:$4 sm:$0xff]   ;;  %v7055_v36 = vld [vmem:[%s7503_s14 + $0xe04] ss:$16 sps:$4 sm:$0xff]  }
 0x1d5   : > { %4165 = vmatprep.subr.bf16.mxu0 %v6905_v47  ;;  %4749 = vmatprep.subr.bf16.mxu1 %v6908_v48  ;;  %v383_v47 = vld [vmem:[%s7567_s27 + $0x1a8] sm:$0xff] }
 0x1d6   : > { %4183 = vmatprep.mubr.bf16.mxu0 %v5448_v49  ;;  %4767 = vmatprep.mubr.bf16.mxu1 %v5448_v49  ;;  %v391_v48 = vld [vmem:[%s7567_s27 + $0x1e8] sm:$0xff]  ;;  %v6981_v49 = vld [vmem:[%s7503_s14 + $0xc80] ss:$16 sps:$4 sm:$0xff]  }
 0x1d8   : > { %4166 = vmatpush1.bf16.msra.mxu0 %v6903_v50  ;;  %4750 = vmatpush1.bf16.msra.mxu1 %v6906_v51  ;;  %v6984_v50 = vld [vmem:[%s7503_s14 + $0xc88] ss:$16 sps:$4 sm:$0xff]   ;;  %v6989_v51 = vld [vmem:[%s7503_s14 + $0xca4] ss:$16 sps:$4 sm:$0xff]  }
 0x1d9   : > { %4167 = vmatprep.subr.bf16.mxu0 %v6911_v52  ;;  %4751 = vmatprep.subr.bf16.mxu1 %v6914_v53  ;;  %v6992_v52 = vld [vmem:[%s7503_s14 + $0xcac] ss:$16 sps:$4 sm:$0xff]   ;;  %v5496_v53 = vcombine.high %v383_v47, %v391_v48 }
 0x1dc   : > { %4168 = vmatpush1.bf16.msra.mxu0 %v6909_v54  ;;  %4752 = vmatpush1.bf16.msra.mxu1 %v6912_v55  ;;  %v6987_v54 = vld [vmem:[%s7503_s14 + $0xca0] ss:$16 sps:$4 sm:$0xff]   ;;  %v6990_v55 = vld [vmem:[%s7503_s14 + $0xca8] ss:$16 sps:$4 sm:$0xff]  }
 0x1dd   : > { %4169 = vmatprep.subr.bf16.mxu0 %v6917_v56  ;;  %4753 = vmatprep.subr.bf16.mxu1 %v6920_v57  ;;  %v6995_v56 = vld [vmem:[%s7503_s14 + $0xcc4] ss:$16 sps:$4 sm:$0xff]   ;;  %v6998_v57 = vld [vmem:[%s7503_s14 + $0xccc] ss:$16 sps:$4 sm:$0xff]  }
 0x1e0   : > { %4170 = vmatpush1.bf16.msra.mxu0 %v6915_v58  ;;  %4754 = vmatpush1.bf16.msra.mxu1 %v6918_v59  ;;  %v5495_v58 = vcombine.low %v383_v47, %v391_v48  ;;  %v8022_v59 = vld [vmem:[%s7567_s27 + $0x30] sm:$0xff]  ;;  %v7062_v47 = vld [vmem:[%s7503_s14 + $0xe28] ss:$16 sps:$4 sm:$0xff]  }
 0x1e1   : > { %4171 = vmatprep.subr.bf16.mxu0 %v6923_v60  ;;  %4755 = vmatprep.subr.bf16.mxu1 %v6926_v61  ;;  %v8025_v60 = vld [vmem:[%s7567_s27 + $0x70] sm:$0xff] }
 0x1e2   : > { %v6993_v61 = vld [vmem:[%s7503_s14 + $0xcc0] ss:$16 sps:$4 sm:$0xff]   ;;  %v7067_v48 = vld [vmem:[%s7503_s14 + $0xe44] ss:$16 sps:$4 sm:$0xff]  }
 0x1e4   : > { %4172 = vmatpush1.bf16.msra.mxu0 %v6921_v62  ;;  %4756 = vmatpush1.bf16.msra.mxu1 %v6924_v63  ;;  %v6996_v62 = vld [vmem:[%s7503_s14 + $0xcc8] ss:$16 sps:$4 sm:$0xff]   ;;  %v7001_v63 = vld [vmem:[%s7503_s14 + $0xce4] ss:$16 sps:$4 sm:$0xff]  }
 0x1e5   : > { %4173 = vmatprep.subr.bf16.mxu0 %v6929_v0  ;;  %4757 = vmatprep.subr.bf16.mxu1 %v6932_v1  ;;  %v7004_v0 = vld [vmem:[%s7503_s14 + $0xcec] ss:$16 sps:$4 sm:$0xff]   ;;  %v5450_v1 = vcombine.high %v8022_v59, %v8025_v60 }
 0x1e8   : > { %4174 = vmatpush1.bf16.msra.mxu0 %v6927_v2  ;;  %4758 = vmatpush1.bf16.msra.mxu1 %v6930_v3  ;;  %v6999_v2 = vld [vmem:[%s7503_s14 + $0xce0] ss:$16 sps:$4 sm:$0xff]   ;;  %v7002_v3 = vld [vmem:[%s7503_s14 + $0xce8] ss:$16 sps:$4 sm:$0xff]  }
 0x1e9   : > { %4175 = vmatprep.subr.bf16.mxu0 %v6935_v4  ;;  %4759 = vmatprep.subr.bf16.mxu1 %v6938_v5  ;;  %v7007_v4 = vld [vmem:[%s7503_s14 + $0xd04] ss:$16 sps:$4 sm:$0xff]   ;;  %v7010_v5 = vld [vmem:[%s7503_s14 + $0xd0c] ss:$16 sps:$4 sm:$0xff]  }
 0x1ec   : > { %4176 = vmatpush1.bf16.msra.mxu0 %v6933_v6  ;;  %4760 = vmatpush1.bf16.msra.mxu1 %v6936_v7  ;;  %v7005_v6 = vld [vmem:[%s7503_s14 + $0xd00] ss:$16 sps:$4 sm:$0xff]   ;;  %v7008_v7 = vld [vmem:[%s7503_s14 + $0xd08] ss:$16 sps:$4 sm:$0xff]  }
 0x1ed   : > { %4177 = vmatprep.subr.bf16.mxu0 %v6941_v8  ;;  %4761 = vmatprep.subr.bf16.mxu1 %v6944_v9  ;;  %v7013_v8 = vld [vmem:[%s7503_s14 + $0xd24] ss:$16 sps:$4 sm:$0xff]   ;;  %v7016_v9 = vld [vmem:[%s7503_s14 + $0xd2c] ss:$16 sps:$4 sm:$0xff]  }
 0x1f0   : > { %4178 = vmatpush1.bf16.msra.mxu0 %v6939_v10  ;;  %4762 = vmatpush1.bf16.msra.mxu1 %v6942_v11  ;;  %v7011_v10 = vld [vmem:[%s7503_s14 + $0xd20] ss:$16 sps:$4 sm:$0xff]   ;;  %v7014_v11 = vld [vmem:[%s7503_s14 + $0xd28] ss:$16 sps:$4 sm:$0xff]  }
 0x1f1   : > { %4179 = vmatprep.subr.bf16.mxu0 %v6947_v12  ;;  %4763 = vmatprep.subr.bf16.mxu1 %v6950_v13  ;;  %v7019_v12 = vld [vmem:[%s7503_s14 + $0xd44] ss:$16 sps:$4 sm:$0xff]   ;;  %v7022_v13 = vld [vmem:[%s7503_s14 + $0xd4c] ss:$16 sps:$4 sm:$0xff]  }
 0x1f4   : > { %4180 = vmatpush1.bf16.msra.mxu0 %v6945_v14  ;;  %4764 = vmatpush1.bf16.msra.mxu1 %v6948_v15  ;;  %v7017_v14 = vld [vmem:[%s7503_s14 + $0xd40] ss:$16 sps:$4 sm:$0xff]   ;;  %v7020_v15 = vld [vmem:[%s7503_s14 + $0xd48] ss:$16 sps:$4 sm:$0xff]  }
 0x1f5   : > { %4181 = vmatprep.subr.bf16.mxu0 %v6953_v16  ;;  %4765 = vmatprep.subr.bf16.mxu1 %v6956_v17  ;;  %v7025_v16 = vld [vmem:[%s7503_s14 + $0xd64] ss:$16 sps:$4 sm:$0xff]   ;;  %v7028_v17 = vld [vmem:[%s7503_s14 + $0xd6c] ss:$16 sps:$4 sm:$0xff]  }
 0x1f8   : > { %4182 = vmatpush1.bf16.msra.mxu0 %v6951_v18  ;;  %4766 = vmatpush1.bf16.msra.mxu1 %v6954_v19  ;;  %v7023_v18 = vld [vmem:[%s7503_s14 + $0xd60] ss:$16 sps:$4 sm:$0xff]   ;;  %v7026_v19 = vld [vmem:[%s7503_s14 + $0xd68] ss:$16 sps:$4 sm:$0xff]  }
 0x1f9   : > { %4224 = vmatprep.subr.bf16.mxu0 %v6959_v20  ;;  %4808 = vmatprep.subr.bf16.mxu1 %v6962_v21  ;;  %v7031_v20 = vld [vmem:[%s7503_s14 + $0xd84] ss:$16 sps:$4 sm:$0xff]   ;;  %v7034_v21 = vld [vmem:[%s7503_s14 + $0xd8c] ss:$16 sps:$4 sm:$0xff]  }
 0x1fb   : > { %4184 = vmatmul.mubr.bf16.vlgmr.msra.gmra.mrb[0].mxu0 %v5447_v22  ;;  %4768 = vmatmul.mubr.bf16.vlgmr.msra.gmra.mrb[0].mxu1 %v5447_v22  ;;  %v7029_v22 = vld [vmem:[%s7503_s14 + $0xd80] ss:$16 sps:$4 sm:$0xff]  }
 0x1fc   : > { %4225 = vmatpush1.bf16.msra.mxu0 %v6957_v25  ;;  %4809 = vmatpush1.bf16.msra.mxu1 %v6960_v26  ;;  %v7040_v25 = vld [vmem:[%s7503_s14 + $0xdac] ss:$16 sps:$4 sm:$0xff]   ;;  %v7035_v26 = vld [vmem:[%s7503_s14 + $0xda0] ss:$16 sps:$4 sm:$0xff]  }
 0x1fd   : > { %4226 = vmatprep.subr.bf16.mxu0 %v6965_v27  ;;  %4810 = vmatprep.subr.bf16.mxu1 %v6968_v28  ;;  %v7038_v27 = vld [vmem:[%s7503_s14 + $0xda8] ss:$16 sps:$4 sm:$0xff]   ;;  %v7043_v28 = vld [vmem:[%s7503_s14 + $0xdc4] ss:$16 sps:$4 sm:$0xff]  }
 0x1fe   : > { %4193 = vmatprep.mubr.bf16.mxu0 %v5464_v29  ;;  %4777 = vmatprep.mubr.bf16.mxu1 %v5464_v29  ;;  %v7046_v29 = vld [vmem:[%s7503_s14 + $0xdcc] ss:$16 sps:$4 sm:$0xff]  }
 0x200   : > { %4227 = vmatpush1.bf16.msra.mxu0 %v6963_v30  ;;  %4811 = vmatpush1.bf16.msra.mxu1 %v6966_v31  ;;  %v7041_v30 = vld [vmem:[%s7503_s14 + $0xdc0] ss:$16 sps:$4 sm:$0xff]   ;;  %v7044_v31 = vld [vmem:[%s7503_s14 + $0xdc8] ss:$16 sps:$4 sm:$0xff]  }
 0x201   : > { %4228 = vmatprep.subr.bf16.mxu0 %v6971_v32  ;;  %4812 = vmatprep.subr.bf16.mxu1 %v6974_v33  ;;  %v7049_v32 = vld [vmem:[%s7503_s14 + $0xde4] ss:$16 sps:$4 sm:$0xff]   ;;  %v7052_v33 = vld [vmem:[%s7503_s14 + $0xdec] ss:$16 sps:$4 sm:$0xff]  }
 0x203   : > { %4194 = vmatmul.mubr.bf16.gmra.mrb[4].mxu0 %v5463_v34  ;;  %4778 = vmatmul.mubr.bf16.gmra.mrb[4].mxu1 %v5463_v34  ;;  %v7047_v34 = vld [vmem:[%s7503_s14 + $0xde0] ss:$16 sps:$4 sm:$0xff]  }
 0x204   : > { %4229 = vmatpush1.bf16.msra.mxu0 %v6969_v37  ;;  %4813 = vmatpush1.bf16.msra.mxu1 %v6972_v38  ;;  %v7058_v37 = vld [vmem:[%s7503_s14 + $0xe0c] ss:$16 sps:$4 sm:$0xff]   ;;  %v5449_v38 = vcombine.low %v8022_v59, %v8025_v60  ;;  %v7074_v59 = vld [vmem:[%s7503_s14 + $0xe68] ss:$16 sps:$4 sm:$0xff]   ;;  %v7079_v60 = vld [vmem:[%s7503_s14 + $0xe84] ss:$16 sps:$4 sm:$0xff]  }
 0x205   : > { %4230 = vmatprep.subr.bf16.mxu0 %v6977_v39  ;;  %4814 = vmatprep.subr.bf16.mxu1 %v6980_v40  ;;  %v352_v39 = vld [vmem:[%s7567_s27 + $0xb0] sm:$0xff] }
 0x206   : > { %4203 = vmatprep.mubr.bf16.mxu0 %v5480_v41  ;;  %4787 = vmatprep.mubr.bf16.mxu1 %v5480_v41  ;;  %v360_v40 = vld [vmem:[%s7567_s27 + $0xf0] sm:$0xff] }
 0x207   : > { %v7053_v41 = vld [vmem:[%s7503_s14 + $0xe00] ss:$16 sps:$4 sm:$0xff]  }
 0x208   : > { %4231 = vmatpush1.bf16.msra.mxu0 %v6975_v42  ;;  %4815 = vmatpush1.bf16.msra.mxu1 %v6978_v43  ;;  %v7056_v42 = vld [vmem:[%s7503_s14 + $0xe08] ss:$16 sps:$4 sm:$0xff]   ;;  %v7061_v43 = vld [vmem:[%s7503_s14 + $0xe24] ss:$16 sps:$4 sm:$0xff]  }
 0x209   : > { %4232 = vmatprep.subr.bf16.mxu0 %v6983_v44  ;;  %4816 = vmatprep.subr.bf16.mxu1 %v6986_v45  ;;  %v7064_v44 = vld [vmem:[%s7503_s14 + $0xe2c] ss:$16 sps:$4 sm:$0xff]   ;;  %v5466_v45 = vcombine.high %v352_v39, %v360_v40 }
 0x20b   : > { %4204 = vmatmul.mubr.bf16.gmra.mrb[8].mxu0 %v5479_v46  ;;  %4788 = vmatmul.mubr.bf16.gmra.mrb[8].mxu1 %v5479_v46  ;;  %v7059_v46 = vld [vmem:[%s7503_s14 + $0xe20] ss:$16 sps:$4 sm:$0xff]  }
 0x20c   : > { %4233 = vmatpush1.bf16.msra.mxu0 %v6981_v49  ;;  %4817 = vmatpush1.bf16.msra.mxu1 %v6984_v50  ;;  %v7070_v49 = vld [vmem:[%s7503_s14 + $0xe4c] ss:$16 sps:$4 sm:$0xff]   ;;  %v5465_v50 = vcombine.low %v352_v39, %v360_v40  ;;  %v7128_v39 = vld [vmem:[%s7503_s14 + $0xf88] ss:$16 sps:$4 sm:$0xff]   ;;  %v7133_v40 = vld [vmem:[%s7503_s14 + $0xfa4] ss:$16 sps:$4 sm:$0xff]  }
 0x20d   : > { %4234 = vmatprep.subr.bf16.mxu0 %v6989_v51  ;;  %4818 = vmatprep.subr.bf16.mxu1 %v6992_v52  ;;  %v368_v51 = vld [vmem:[%s7567_s27 + $0x130] sm:$0xff] }
 0x20e   : > { %4213 = vmatprep.mubr.bf16.mxu0 %v5496_v53  ;;  %4797 = vmatprep.mubr.bf16.mxu1 %v5496_v53  ;;  %v376_v52 = vld [vmem:[%s7567_s27 + $0x170] sm:$0xff] }
 0x20f   : > { %v7065_v53 = vld [vmem:[%s7503_s14 + $0xe40] ss:$16 sps:$4 sm:$0xff]  }
 0x210   : > { %4235 = vmatpush1.bf16.msra.mxu0 %v6987_v54  ;;  %4819 = vmatpush1.bf16.msra.mxu1 %v6990_v55  ;;  %v7068_v54 = vld [vmem:[%s7503_s14 + $0xe48] ss:$16 sps:$4 sm:$0xff]   ;;  %v7073_v55 = vld [vmem:[%s7503_s14 + $0xe64] ss:$16 sps:$4 sm:$0xff]  }
 0x211   : > { %4236 = vmatprep.subr.bf16.mxu0 %v6995_v56  ;;  %4820 = vmatprep.subr.bf16.mxu1 %v6998_v57  ;;  %v7076_v56 = vld [vmem:[%s7503_s14 + $0xe6c] ss:$16 sps:$4 sm:$0xff]   ;;  %v5482_v57 = vcombine.high %v368_v51, %v376_v52 }
 0x213   : > { %4214 = vmatmul.mubr.bf16.gmra.mrb[12].mxu0 %v5495_v58  ;;  %4798 = vmatmul.mubr.bf16.gmra.mrb[12].mxu1 %v5495_v58  ;;  %v7071_v58 = vld [vmem:[%s7503_s14 + $0xe60] ss:$16 sps:$4 sm:$0xff]  }
 0x214   : > { %4237 = vmatpush1.bf16.msra.mxu0 %v6993_v61  ;;  %4821 = vmatpush1.bf16.msra.mxu1 %v6996_v62  ;;  %v7082_v61 = vld [vmem:[%s7503_s14 + $0xe8c] ss:$16 sps:$4 sm:$0xff]   ;;  %v5481_v62 = vcombine.low %v368_v51, %v376_v52  ;;  %v7146_v51 = vld [vmem:[%s7503_s14 + $0xfe8] ss:$16 sps:$4 sm:$0xff]  }
 0x215   : > { %4238 = vmatprep.subr.bf16.mxu0 %v7001_v63  ;;  %4822 = vmatprep.subr.bf16.mxu1 %v7004_v0  ;;  %v384_v63 = vld [vmem:[%s7567_s27 + $0x1b0] sm:$0xff]  ;;  %v353_v52 = vld [vmem:[%s7567_s27 + $0xb8] sm:$0xff] }
 0x216   : > { %4256 = vmatprep.mubr.bf16.mxu0 %v5450_v1  ;;  %4840 = vmatprep.mubr.bf16.mxu1 %v5450_v1  ;;  %v392_v0 = vld [vmem:[%s7567_s27 + $0x1f0] sm:$0xff] }
 0x217   : > { %v7077_v1 = vld [vmem:[%s7503_s14 + $0xe80] ss:$16 sps:$4 sm:$0xff]  }
 0x218   : > { %4239 = vmatpush1.bf16.msra.mxu0 %v6999_v2  ;;  %4823 = vmatpush1.bf16.msra.mxu1 %v7002_v3  ;;  %v7080_v2 = vld [vmem:[%s7503_s14 + $0xe88] ss:$16 sps:$4 sm:$0xff]   ;;  %v7085_v3 = vld [vmem:[%s7503_s14 + $0xea4] ss:$16 sps:$4 sm:$0xff]  }
 0x219   : > { %4240 = vmatprep.subr.bf16.mxu0 %v7007_v4  ;;  %4824 = vmatprep.subr.bf16.mxu1 %v7010_v5  ;;  %v7088_v4 = vld [vmem:[%s7503_s14 + $0xeac] ss:$16 sps:$4 sm:$0xff]   ;;  %v5498_v5 = vcombine.high %v384_v63, %v392_v0 }
 0x21c   : > { %4241 = vmatpush1.bf16.msra.mxu0 %v7005_v6  ;;  %4825 = vmatpush1.bf16.msra.mxu1 %v7008_v7  ;;  %v7083_v6 = vld [vmem:[%s7503_s14 + $0xea0] ss:$16 sps:$4 sm:$0xff]   ;;  %v7086_v7 = vld [vmem:[%s7503_s14 + $0xea8] ss:$16 sps:$4 sm:$0xff]  }
 0x21d   : > { %4242 = vmatprep.subr.bf16.mxu0 %v7013_v8  ;;  %4826 = vmatprep.subr.bf16.mxu1 %v7016_v9  ;;  %v7091_v8 = vld [vmem:[%s7503_s14 + $0xec4] ss:$16 sps:$4 sm:$0xff]   ;;  %v7094_v9 = vld [vmem:[%s7503_s14 + $0xecc] ss:$16 sps:$4 sm:$0xff]  }
 0x220   : > { %4243 = vmatpush1.bf16.msra.mxu0 %v7011_v10  ;;  %4827 = vmatpush1.bf16.msra.mxu1 %v7014_v11  ;;  %v5497_v10 = vcombine.low %v384_v63, %v392_v0  ;;  %v8102_v11 = vld [vmem:[%s7567_s27 + $0x38] sm:$0xff] }
 0x221   : > { %4244 = vmatprep.subr.bf16.mxu0 %v7019_v12  ;;  %4828 = vmatprep.subr.bf16.mxu1 %v7022_v13  ;;  %v8105_v12 = vld [vmem:[%s7567_s27 + $0x78] sm:$0xff]  ;;  %v7089_v13 = vld [vmem:[%s7503_s14 + $0xec0] ss:$16 sps:$4 sm:$0xff]  }
 0x224   : > { %4245 = vmatpush1.bf16.msra.mxu0 %v7017_v14  ;;  %4829 = vmatpush1.bf16.msra.mxu1 %v7020_v15  ;;  %v7092_v14 = vld [vmem:[%s7503_s14 + $0xec8] ss:$16 sps:$4 sm:$0xff]   ;;  %v7097_v15 = vld [vmem:[%s7503_s14 + $0xee4] ss:$16 sps:$4 sm:$0xff]  }
 0x225   : > { %4246 = vmatprep.subr.bf16.mxu0 %v7025_v16  ;;  %4830 = vmatprep.subr.bf16.mxu1 %v7028_v17  ;;  %v7100_v16 = vld [vmem:[%s7503_s14 + $0xeec] ss:$16 sps:$4 sm:$0xff]   ;;  %v5452_v17 = vcombine.high %v8102_v11, %v8105_v12 }
 0x228   : > { %4247 = vmatpush1.bf16.msra.mxu0 %v7023_v18  ;;  %4831 = vmatpush1.bf16.msra.mxu1 %v7026_v19  ;;  %v7095_v18 = vld [vmem:[%s7503_s14 + $0xee0] ss:$16 sps:$4 sm:$0xff]   ;;  %v7098_v19 = vld [vmem:[%s7503_s14 + $0xee8] ss:$16 sps:$4 sm:$0xff]  }
 0x229   : > { %4248 = vmatprep.subr.bf16.mxu0 %v7031_v20  ;;  %4832 = vmatprep.subr.bf16.mxu1 %v7034_v21  ;;  %v7103_v20 = vld [vmem:[%s7503_s14 + $0xf04] ss:$16 sps:$4 sm:$0xff]   ;;  %v7106_v21 = vld [vmem:[%s7503_s14 + $0xf0c] ss:$16 sps:$4 sm:$0xff]  }
 0x22c   : > { %4249 = vmatpush1.bf16.msra.mxu0 %v7029_v22  ;;  %4833 = vmatpush1.bf16.msra.mxu1 %v7032_v23  ;;  %v7101_v22 = vld [vmem:[%s7503_s14 + $0xf00] ss:$16 sps:$4 sm:$0xff]   ;;  %v7104_v23 = vld [vmem:[%s7503_s14 + $0xf08] ss:$16 sps:$4 sm:$0xff]  }
 0x22d   : > { %4250 = vmatprep.subr.bf16.mxu0 %v7037_v24  ;;  %4834 = vmatprep.subr.bf16.mxu1 %v7040_v25  ;;  %v7109_v24 = vld [vmem:[%s7503_s14 + $0xf24] ss:$16 sps:$4 sm:$0xff]   ;;  %v7112_v25 = vld [vmem:[%s7503_s14 + $0xf2c] ss:$16 sps:$4 sm:$0xff]  }
 0x230   : > { %4251 = vmatpush1.bf16.msra.mxu0 %v7035_v26  ;;  %4835 = vmatpush1.bf16.msra.mxu1 %v7038_v27  ;;  %v7107_v26 = vld [vmem:[%s7503_s14 + $0xf20] ss:$16 sps:$4 sm:$0xff]   ;;  %v7110_v27 = vld [vmem:[%s7503_s14 + $0xf28] ss:$16 sps:$4 sm:$0xff]  }
 0x231   : > { %4252 = vmatprep.subr.bf16.mxu0 %v7043_v28  ;;  %4836 = vmatprep.subr.bf16.mxu1 %v7046_v29  ;;  %v7115_v28 = vld [vmem:[%s7503_s14 + $0xf44] ss:$16 sps:$4 sm:$0xff]   ;;  %v7118_v29 = vld [vmem:[%s7503_s14 + $0xf4c] ss:$16 sps:$4 sm:$0xff]  }
 0x234   : > { %4253 = vmatpush1.bf16.msra.mxu0 %v7041_v30  ;;  %4837 = vmatpush1.bf16.msra.mxu1 %v7044_v31  ;;  %v7113_v30 = vld [vmem:[%s7503_s14 + $0xf40] ss:$16 sps:$4 sm:$0xff]   ;;  %v7116_v31 = vld [vmem:[%s7503_s14 + $0xf48] ss:$16 sps:$4 sm:$0xff]  }
 0x235   : > { %4254 = vmatprep.subr.bf16.mxu0 %v7049_v32  ;;  %4838 = vmatprep.subr.bf16.mxu1 %v7052_v33  ;;  %v7121_v32 = vld [vmem:[%s7503_s14 + $0xf64] ss:$16 sps:$4 sm:$0xff]   ;;  %v7124_v33 = vld [vmem:[%s7503_s14 + $0xf6c] ss:$16 sps:$4 sm:$0xff]  }
 0x238   : > { %4255 = vmatpush1.bf16.msra.mxu0 %v7047_v34  ;;  %4839 = vmatpush1.bf16.msra.mxu1 %v7050_v35  ;;  %v7119_v34 = vld [vmem:[%s7503_s14 + $0xf60] ss:$16 sps:$4 sm:$0xff]   ;;  %v7122_v35 = vld [vmem:[%s7503_s14 + $0xf68] ss:$16 sps:$4 sm:$0xff]  }
 0x239   : > { %4297 = vmatprep.subr.bf16.mxu0 %v7055_v36  ;;  %4881 = vmatprep.subr.bf16.mxu1 %v7058_v37  ;;  %v7127_v36 = vld [vmem:[%s7503_s14 + $0xf84] ss:$16 sps:$4 sm:$0xff]   ;;  %v7130_v37 = vld [vmem:[%s7503_s14 + $0xf8c] ss:$16 sps:$4 sm:$0xff]  }
 0x23b   : > { %4257 = vmatmul.mubr.bf16.vlgmr.msra.gmra.mrb[0].mxu0 %v5449_v38  ;;  %4841 = vmatmul.mubr.bf16.vlgmr.msra.gmra.mrb[0].mxu1 %v5449_v38  ;;  %v7125_v38 = vld [vmem:[%s7503_s14 + $0xf80] ss:$16 sps:$4 sm:$0xff]  }
 0x23c   : > { %4298 = vmatpush1.bf16.msra.mxu0 %v7053_v41  ;;  %4882 = vmatpush1.bf16.msra.mxu1 %v7056_v42  ;;  %v7136_v41 = vld [vmem:[%s7503_s14 + $0xfac] ss:$16 sps:$4 sm:$0xff]   ;;  %v7131_v42 = vld [vmem:[%s7503_s14 + $0xfa0] ss:$16 sps:$4 sm:$0xff]  }
 0x23d   : > { %4299 = vmatprep.subr.bf16.mxu0 %v7061_v43  ;;  %4883 = vmatprep.subr.bf16.mxu1 %v7064_v44  ;;  %v7134_v43 = vld [vmem:[%s7503_s14 + $0xfa8] ss:$16 sps:$4 sm:$0xff]   ;;  %v7139_v44 = vld [vmem:[%s7503_s14 + $0xfc4] ss:$16 sps:$4 sm:$0xff]  }
 0x23e   : > { %4266 = vmatprep.mubr.bf16.mxu0 %v5466_v45  ;;  %4850 = vmatprep.mubr.bf16.mxu1 %v5466_v45  ;;  %v7142_v45 = vld [vmem:[%s7503_s14 + $0xfcc] ss:$16 sps:$4 sm:$0xff]  }
 0x240   : > { %4300 = vmatpush1.bf16.msra.mxu0 %v7059_v46  ;;  %4884 = vmatpush1.bf16.msra.mxu1 %v7062_v47  ;;  %v7137_v46 = vld [vmem:[%s7503_s14 + $0xfc0] ss:$16 sps:$4 sm:$0xff]   ;;  %v7140_v47 = vld [vmem:[%s7503_s14 + $0xfc8] ss:$16 sps:$4 sm:$0xff]  }
 0x241   : > { %4301 = vmatprep.subr.bf16.mxu0 %v7067_v48  ;;  %4885 = vmatprep.subr.bf16.mxu1 %v7070_v49  ;;  %v7145_v48 = vld [vmem:[%s7503_s14 + $0xfe4] ss:$16 sps:$4 sm:$0xff]   ;;  %v7148_v49 = vld [vmem:[%s7503_s14 + $0xfec] ss:$16 sps:$4 sm:$0xff]  }
 0x243   : > { %4267 = vmatmul.mubr.bf16.gmra.mrb[4].mxu0 %v5465_v50  ;;  %4851 = vmatmul.mubr.bf16.gmra.mrb[4].mxu1 %v5465_v50  ;;  %v7143_v50 = vld [vmem:[%s7503_s14 + $0xfe0] ss:$16 sps:$4 sm:$0xff]  }
 0x244   : > { %4302 = vmatpush1.bf16.msra.mxu0 %v7065_v53  ;;  %4886 = vmatpush1.bf16.msra.mxu1 %v7068_v54  ;;  %v361_v53 = vld [vmem:[%s7567_s27 + $0xf8] sm:$0xff]  ;;  %v5451_v54 = vcombine.low %v8102_v11, %v8105_v12 }
 0x245   : > { %4303 = vmatprep.subr.bf16.mxu0 %v7073_v55  ;;  %4887 = vmatprep.subr.bf16.mxu1 %v7076_v56  ;;  %v5468_v55 = vcombine.high %v353_v52, %v361_v53  ;;  %v369_v56 = vld [vmem:[%s7567_s27 + $0x138] sm:$0xff] }
 0x246   : > { %4276 = vmatprep.mubr.bf16.mxu0 %v5482_v57  ;;  %4860 = vmatprep.mubr.bf16.mxu1 %v5482_v57  ;;  %v377_v57 = vld [vmem:[%s7567_s27 + $0x178] sm:$0xff] }
 0x248   : > { %4304 = vmatpush1.bf16.msra.mxu0 %v7071_v58  ;;  %4888 = vmatpush1.bf16.msra.mxu1 %v7074_v59  ;;  %v5467_v58 = vcombine.low %v353_v52, %v361_v53  ;;  %v5484_v59 = vcombine.high %v369_v56, %v377_v57  ;;  %v314_v52 = vld [vmem:[#allocation2 + $0x98] sm:$0xff] }
 0x249   : > { %4305 = vmatprep.subr.bf16.mxu0 %v7079_v60  ;;  %4889 = vmatprep.subr.bf16.mxu1 %v7082_v61  ;;  %v385_v60 = vld [vmem:[%s7567_s27 + $0x1b8] sm:$0xff] }
 0x24a   : > { %v393_v61 = vld [vmem:[%s7567_s27 + $0x1f8] sm:$0xff] }
 0x24b   : > { %4277 = vmatmul.mubr.bf16.gmra.mrb[8].mxu0 %v5481_v62  ;;  %4861 = vmatmul.mubr.bf16.gmra.mrb[8].mxu1 %v5481_v62  ;;  %v5483_v62 = vcombine.low %v369_v56, %v377_v57  ;;  %v5500_v63 = vcombine.high %v385_v60, %v393_v61  ;;  %v5499_v0 = vcombine.low %v385_v60, %v393_v61  ;;  %v317_v56 = vld [vmem:[#allocation2 + $0xb0] sm:$0xff]  ;;  %v316_v61 = vld [vmem:[#allocation2 + $0xa8] sm:$0xff] }
 0x24c   : > { %4306 = vmatpush1.bf16.msra.mxu0 %v7077_v1  ;;  %4890 = vmatpush1.bf16.msra.mxu1 %v7080_v2  ;;  %v295_v1 = vld [vmem:[#allocation2] sm:$0xff]  ;;  %v297_v2 = vld [vmem:[#allocation2 + $0x10] sm:$0xff] }
 0x24d   : > { %4307 = vmatprep.subr.bf16.mxu0 %v7085_v3  ;;  %4891 = vmatprep.subr.bf16.mxu1 %v7088_v4  ;;  %v296_v3 = vld [vmem:[#allocation2 + $0x8] sm:$0xff]  ;;  %v298_v4 = vld [vmem:[#allocation2 + $0x18] sm:$0xff] }
 0x24e   : > { %4286 = vmatprep.mubr.bf16.mxu0 %v5498_v5  ;;  %4870 = vmatprep.mubr.bf16.mxu1 %v5498_v5 }
 0x250   : > { %4308 = vmatpush1.bf16.msra.mxu0 %v7083_v6  ;;  %4892 = vmatpush1.bf16.msra.mxu1 %v7086_v7  ;;  %v299_v7 = vld [vmem:[#allocation2 + $0x20] sm:$0xff] }
 0x251   : > { %4309 = vmatprep.subr.bf16.mxu0 %v7091_v8  ;;  %4893 = vmatprep.subr.bf16.mxu1 %v7094_v9  ;;  %v301_v8 = vld [vmem:[#allocation2 + $0x30] sm:$0xff] }
 0x253   : > { %4287 = vmatmul.mubr.bf16.gmra.mrb[12].mxu0 %v5497_v10  ;;  %4871 = vmatmul.mubr.bf16.gmra.mrb[12].mxu1 %v5497_v10 }
 0x254   : > { %4310 = vmatpush1.bf16.msra.mxu0 %v7089_v13  ;;  %4894 = vmatpush1.bf16.msra.mxu1 %v7092_v14  ;;  %v300_v13 = vld [vmem:[#allocation2 + $0x28] sm:$0xff]  ;;  %v302_v14 = vld [vmem:[#allocation2 + $0x38] sm:$0xff] }
 0x255   : > { %4311 = vmatprep.subr.bf16.mxu0 %v7097_v15  ;;  %4895 = vmatprep.subr.bf16.mxu1 %v7100_v16 }
 0x256   : > { %4329 = vmatprep.mubr.bf16.mxu0 %v5452_v17  ;;  %4913 = vmatprep.mubr.bf16.mxu1 %v5452_v17 }
 0x258   : > { %4312 = vmatpush1.bf16.msra.mxu0 %v7095_v18  ;;  %4896 = vmatpush1.bf16.msra.mxu1 %v7098_v19 }
 0x259   : > { %4313 = vmatprep.subr.bf16.mxu0 %v7103_v20  ;;  %4897 = vmatprep.subr.bf16.mxu1 %v7106_v21 }
 0x25c   : > { %4314 = vmatpush1.bf16.msra.mxu0 %v7101_v22  ;;  %4898 = vmatpush1.bf16.msra.mxu1 %v7104_v23 }
 0x25d   : > { %4315 = vmatprep.subr.bf16.mxu0 %v7109_v24  ;;  %4899 = vmatprep.subr.bf16.mxu1 %v7112_v25  ;;  %v303_v25 = vld [vmem:[#allocation2 + $0x40] sm:$0xff] }
 0x260   : > { %4316 = vmatpush1.bf16.msra.mxu0 %v7107_v26  ;;  %4900 = vmatpush1.bf16.msra.mxu1 %v7110_v27  ;;  %v305_v26 = vld [vmem:[#allocation2 + $0x50] sm:$0xff]  ;;  %v304_v27 = vld [vmem:[#allocation2 + $0x48] sm:$0xff] }
 0x261   : > { %4317 = vmatprep.subr.bf16.mxu0 %v7115_v28  ;;  %4901 = vmatprep.subr.bf16.mxu1 %v7118_v29  ;;  %v306_v28 = vld [vmem:[#allocation2 + $0x58] sm:$0xff] }
 0x264   : > { %4318 = vmatpush1.bf16.msra.mxu0 %v7113_v30  ;;  %4902 = vmatpush1.bf16.msra.mxu1 %v7116_v31  ;;  %v307_v31 = vld [vmem:[#allocation2 + $0x60] sm:$0xff] }
 0x265   : > { %4319 = vmatprep.subr.bf16.mxu0 %v7121_v32  ;;  %4903 = vmatprep.subr.bf16.mxu1 %v7124_v33  ;;  %v309_v32 = vld [vmem:[#allocation2 + $0x70] sm:$0xff] }
 0x268   : > { %4320 = vmatpush1.bf16.msra.mxu0 %v7119_v34  ;;  %4904 = vmatpush1.bf16.msra.mxu1 %v7122_v35 }
 0x269   : > { %4321 = vmatprep.subr.bf16.mxu0 %v7127_v36  ;;  %4905 = vmatprep.subr.bf16.mxu1 %v7130_v37  ;;  %v308_v37 = vld [vmem:[#allocation2 + $0x68] sm:$0xff] }
 0x26c   : > { %4322 = vmatpush1.bf16.msra.mxu0 %v7125_v38  ;;  %4906 = vmatpush1.bf16.msra.mxu1 %v7128_v39  ;;  %v310_v38 = vld [vmem:[#allocation2 + $0x78] sm:$0xff] }
 0x26d   : > { %4323 = vmatprep.subr.bf16.mxu0 %v7133_v40  ;;  %4907 = vmatprep.subr.bf16.mxu1 %v7136_v41 }
 0x270   : > { %4324 = vmatpush1.bf16.msra.mxu0 %v7131_v42  ;;  %4908 = vmatpush1.bf16.msra.mxu1 %v7134_v43 }
 0x271   : > { %4325 = vmatprep.subr.bf16.mxu0 %v7139_v44  ;;  %4909 = vmatprep.subr.bf16.mxu1 %v7142_v45 }
 0x274   : > { %4326 = vmatpush1.bf16.msra.mxu0 %v7137_v46  ;;  %4910 = vmatpush1.bf16.msra.mxu1 %v7140_v47 }
 0x275   : > { %4327 = vmatprep.subr.bf16.mxu0 %v7145_v48  ;;  %4911 = vmatprep.subr.bf16.mxu1 %v7148_v49  ;;  %v311_v49 = vld [vmem:[#allocation2 + $0x80] sm:$0xff] }
 0x278   : > { %4328 = vmatpush1.bf16.msra.mxu0 %v7143_v50  ;;  %4912 = vmatpush1.bf16.msra.mxu1 %v7146_v51  ;;  %v313_v50 = vld [vmem:[#allocation2 + $0x90] sm:$0xff]  ;;  %v312_v51 = vld [vmem:[#allocation2 + $0x88] sm:$0xff] }
 0x27b   : > { %4330 = vmatmul.mubr.bf16.vlgmr.msra.gmra.mrb[0].mxu0 %v5451_v54  ;;  %4914 = vmatmul.mubr.bf16.vlgmr.msra.gmra.mrb[0].mxu1 %v5451_v54 }
 0x27c   : > { %4339 = vmatprep.mubr.bf16.mxu0 %v5468_v55  ;;  %4923 = vmatprep.mubr.bf16.mxu1 %v5468_v55  ;;  %v315_v55 = vld [vmem:[#allocation2 + $0xa0] sm:$0xff] }
 0x283   : > { %4340 = vmatmul.mubr.bf16.gmra.mrb[4].mxu0 %v5467_v58  ;;  %4924 = vmatmul.mubr.bf16.gmra.mrb[4].mxu1 %v5467_v58 }
 0x284   : > { %4349 = vmatprep.mubr.bf16.mxu0 %v5484_v59  ;;  %4933 = vmatprep.mubr.bf16.mxu1 %v5484_v59 }
 0x28b   : > { %4350 = vmatmul.mubr.bf16.gmra.mrb[8].mxu0 %v5483_v62  ;;  %4934 = vmatmul.mubr.bf16.gmra.mrb[8].mxu1 %v5483_v62  ;;  %v318_v62 = vld [vmem:[#allocation2 + $0xb8] sm:$0xff] }
 0x28c   : > { %4359 = vmatprep.mubr.bf16.mxu0 %v5500_v63  ;;  %4943 = vmatprep.mubr.bf16.mxu1 %v5500_v63 }
 0x293   : > { %4360 = vmatmul.mubr.bf16.gmra.mrb[12].mxu0 %v5499_v0  ;;  %4944 = vmatmul.mubr.bf16.gmra.mrb[12].mxu1 %v5499_v0 }
 0x34e   : > { %v4331_v5 = vpop.f32.mrb[0].mxu0  ;;  %v4915_v6 = vpop.f32.mrb[0].mxu1 }
 0x34f   : > { %v4954_v9 = vadd.f32 %v4331_v5, %v295_v1  ;;  %v4956_v10 = vadd.f32 %v4915_v6, %v297_v2  ;;  %v4333_v11 = vpop.f32.mrb[1].mxu0  ;;  %v4917_v12 = vpop.f32.mrb[1].mxu1 }
 0x350   : > { %v4955_v15 = vadd.f32 %v4333_v11, %v296_v3  ;;  %v4957_v16 = vadd.f32 %v4917_v12, %v298_v4  ;;  %v4335_v17 = vpop.f32.mrb[2].mxu0  ;;  %v4919_v18 = vpop.f32.mrb[2].mxu1  ;;  %v320_v11 = vld [vmem:[#allocation2 + $0xc8] sm:$0xff]  ;;  %v322_v12 = vld [vmem:[#allocation2 + $0xd8] sm:$0xff] }
 0x351   : > { %4986 = vst [vmem:[#allocation2] sm:$0xff] %v4954_v9  ;;  %4988 = vst [vmem:[#allocation2 + $0x10] sm:$0xff] %v4956_v10  ;;  %v4958_v19 = vadd.f32 %v4335_v17, %v299_v7  ;;  %v4960_v20 = vadd.f32 %v4919_v18, %v301_v8  ;;  %v4337_v21 = vpop.f32.mrb[3].mxu0  ;;  %v4921_v22 = vpop.f32.mrb[3].mxu1  ;;  %v319_v9 = vld [vmem:[#allocation2 + $0xc0] sm:$0xff]  ;;  %v321_v10 = vld [vmem:[#allocation2 + $0xd0] sm:$0xff] }
 0x352   : > { %4987 = vst [vmem:[#allocation2 + $0x8] sm:$0xff] %v4955_v15  ;;  %4989 = vst [vmem:[#allocation2 + $0x18] sm:$0xff] %v4957_v16  ;;  %v4959_v23 = vadd.f32 %v4337_v21, %v300_v13  ;;  %v4961_v24 = vadd.f32 %v4921_v22, %v302_v14  ;;  %v323_v15 = vld [vmem:[#allocation2 + $0xe0] sm:$0xff]  ;;  %v325_v16 = vld [vmem:[#allocation2 + $0xf0] sm:$0xff] }
 0x353   : > { %4990 = vst [vmem:[#allocation2 + $0x20] sm:$0xff] %v4958_v19  ;;  %4992 = vst [vmem:[#allocation2 + $0x30] sm:$0xff] %v4960_v20  ;;  %v324_v21 = vld [vmem:[#allocation2 + $0xe8] sm:$0xff]  ;;  %v326_v22 = vld [vmem:[#allocation2 + $0xf8] sm:$0xff] }
 0x354   : > { %4991 = vst [vmem:[#allocation2 + $0x28] sm:$0xff] %v4959_v23  ;;  %4993 = vst [vmem:[#allocation2 + $0x38] sm:$0xff] %v4961_v24 }
 0x356   : > { %v4341_v29 = vpop.f32.mrb[4].mxu0  ;;  %v4925_v30 = vpop.f32.mrb[4].mxu1 }
 0x357   : > { %v4962_v33 = vadd.f32 %v4341_v29, %v303_v25  ;;  %v4964_v34 = vadd.f32 %v4925_v30, %v305_v26  ;;  %v4343_v35 = vpop.f32.mrb[5].mxu0  ;;  %v4927_v36 = vpop.f32.mrb[5].mxu1 }
 0x358   : > { %v4963_v39 = vadd.f32 %v4343_v35, %v304_v27  ;;  %v4965_v40 = vadd.f32 %v4927_v36, %v306_v28  ;;  %v4345_v41 = vpop.f32.mrb[6].mxu0  ;;  %v4929_v42 = vpop.f32.mrb[6].mxu1  ;;  %v5054_v35 = vld [vmem:[%s255_s4] sm:$0xf] (!%p6013_p13) }
 0x359   : > { %4994 = vst [vmem:[#allocation2 + $0x40] sm:$0xff] %v4962_v33  ;;  %4996 = vst [vmem:[#allocation2 + $0x50] sm:$0xff] %v4964_v34  ;;  %v4966_v43 = vadd.f32 %v4345_v41, %v307_v31  ;;  %v4968_v44 = vadd.f32 %v4929_v42, %v309_v32  ;;  %v4347_v45 = vpop.f32.mrb[7].mxu0  ;;  %v4931_v46 = vpop.f32.mrb[7].mxu1  ;;  %v5056_v33 = vlaneseq (!%p6013_p13)  ;;  %v5022_v36 = vld [vmem:[#allocation2] sm:$0xff] (!%p6013_p13)  ;;  %v5024_v42 = vld [vmem:[#allocation2 + $0x10] sm:$0xff] (!%p6013_p13) }
 0x35a   : > { %4995 = vst [vmem:[#allocation2 + $0x48] sm:$0xff] %v4963_v39  ;;  %4997 = vst [vmem:[#allocation2 + $0x58] sm:$0xff] %v4965_v40  ;;  %v4967_v47 = vadd.f32 %v4347_v45, %v308_v37  ;;  %v4969_v48 = vadd.f32 %v4931_v46, %v310_v38  ;;  %v5023_v37 = vld [vmem:[#allocation2 + $0x8] sm:$0xff] (!%p6013_p13) }
 0x35b   : > { %4998 = vst [vmem:[#allocation2 + $0x60] sm:$0xff] %v4966_v43  ;;  %5000 = vst [vmem:[#allocation2 + $0x70] sm:$0xff] %v4968_v44  ;;  %v5057_v34 = vshrl.u32 (!%p6013_p13), %v5056_v33, 7  ;;  %v5025_v43 = vld [vmem:[#allocation2 + $0x18] sm:$0xff] (!%p6013_p13)  ;;  %v5026_v44 = vld [vmem:[#allocation2 + $0x20] sm:$0xff] (!%p6013_p13) }
 0x35c   : > { %4999 = vst [vmem:[#allocation2 + $0x68] sm:$0xff] %v4967_v47  ;;  %5001 = vst [vmem:[#allocation2 + $0x78] sm:$0xff] %v4969_v48 }
 0x35d   : > { %v5058_v38 = vsub.s32 (!%p6013_p13), 0, %v5057_v34  ;;  %v5062_v39 = vsub.s32 (!%p6013_p13), 1, %v5057_v34  ;;  %v5066_v40 = vsub.s32 (!%p6013_p13), 2, %v5057_v34  ;;  %v5070_v41 = vsub.s32 (!%p6013_p13), 3, %v5057_v34 }
 0x35e   : > { %v4351_v53 = vpop.f32.mrb[8].mxu0  ;;  %v4935_v54 = vpop.f32.mrb[8].mxu1 }
 0x35f   : > { %v4970_v57 = vadd.f32 %v4351_v53, %v311_v49  ;;  %v4972_v58 = vadd.f32 %v4935_v54, %v313_v50  ;;  %v4353_v59 = vpop.f32.mrb[9].mxu0  ;;  %v4937_v60 = vpop.f32.mrb[9].mxu1  ;;  %v8161_v45 = vrot.slane (!%p6013_p13), %v5054_v35, %v5058_v38  ;;  %v8163_v46 = vrot.slane (!%p6013_p13), %v5054_v35, %v5062_v39  ;;  %v5027_v49 = vld [vmem:[#allocation2 + $0x28] sm:$0xff] (!%p6013_p13)  ;;  %v5028_v50 = vld [vmem:[#allocation2 + $0x30] sm:$0xff] (!%p6013_p13) }
 0x360   : > { %v4971_v63 = vadd.f32 %v4353_v59, %v312_v51  ;;  %v4973_v0 = vadd.f32 %v4937_v60, %v314_v52  ;;  %v4355_v1 = vpop.f32.mrb[10].mxu0  ;;  %v4939_v2 = vpop.f32.mrb[10].mxu1  ;;  %v8165_v47 = vrot.slane (!%p6013_p13), %v5054_v35, %v5066_v40  ;;  %v8167_v48 = vrot.slane (!%p6013_p13), %v5054_v35, %v5070_v41  ;;  %v5029_v51 = vld [vmem:[#allocation2 + $0x38] sm:$0xff] (!%p6013_p13)  ;;  %v5030_v60 = vld [vmem:[#allocation2 + $0x40] sm:$0xff] (!%p6013_p13) }
 0x361   : > { %5002 = vst [vmem:[#allocation2 + $0x80] sm:$0xff] %v4970_v57  ;;  %5004 = vst [vmem:[#allocation2 + $0x90] sm:$0xff] %v4972_v58  ;;  %v4974_v3 = vadd.f32 %v4355_v1, %v315_v55  ;;  %v4976_v4 = vadd.f32 %v4939_v2, %v317_v56  ;;  %v4357_v5 = vpop.f32.mrb[11].mxu0  ;;  %v4941_v6 = vpop.f32.mrb[11].mxu1  ;;  %v5076_v52 = vadd.f32 (!%p6013_p13), %v8161_v45, %v5022_v36  ;;  %v5032_v2 = vld [vmem:[#allocation2 + $0x50] sm:$0xff] (!%p6013_p13) }
 0x362   : > { %5003 = vst [vmem:[#allocation2 + $0x88] sm:$0xff] %v4971_v63  ;;  %5005 = vst [vmem:[#allocation2 + $0x98] sm:$0xff] %v4973_v0  ;;  %v4975_v7 = vadd.f32 %v4357_v5, %v316_v61  ;;  %v4977_v8 = vadd.f32 %v4941_v6, %v318_v62  ;;  %v5077_v53 = vadd.f32 (!%p6013_p13), %v8163_v46, %v5023_v37  ;;  %v5031_v61 = vld [vmem:[#allocation2 + $0x48] sm:$0xff] (!%p6013_p13) }
 0x363   : > { %5006 = vst [vmem:[#allocation2 + $0xa0] sm:$0xff] %v4974_v3  ;;  %5008 = vst [vmem:[#allocation2 + $0xb0] sm:$0xff] %v4976_v4  ;;  %v5078_v54 = vadd.f32 (!%p6013_p13), %v8165_v47, %v5024_v42  ;;  %v5079_v55 = vadd.f32 (!%p6013_p13), %v8167_v48, %v5025_v43  ;;  %v5080_v56 = vadd.f32 (!%p6013_p13), %v8161_v45, %v5026_v44  ;;  %v5108_v62 = vmax.f32 (!%p6013_p13), %v5076_v52, 0.0  ;;  %v5033_v3 = vld [vmem:[#allocation2 + $0x58] sm:$0xff] (!%p6013_p13) }
 0x364   : > { %5007 = vst [vmem:[#allocation2 + $0xa8] sm:$0xff] %v4975_v7  ;;  %5009 = vst [vmem:[#allocation2 + $0xb8] sm:$0xff] %v4977_v8  ;;  %v5081_v57 = vadd.f32 (!%p6013_p13), %v8163_v46, %v5027_v49  ;;  %v5082_v58 = vadd.f32 (!%p6013_p13), %v8165_v47, %v5028_v50  ;;  %v5083_v59 = vadd.f32 (!%p6013_p13), %v8167_v48, %v5029_v51  ;;  %v5109_v63 = vmax.f32 (!%p6013_p13), %v5077_v53, 0.0  ;;  %v5034_v8 = vld [vmem:[#allocation2 + $0x60] sm:$0xff] (!%p6013_p13) }
 0x365   : > { %v5110_v0 = vmax.f32 (!%p6013_p13), %v5078_v54, 0.0  ;;  %v5111_v1 = vmax.f32 (!%p6013_p13), %v5079_v55, 0.0  ;;  %v5112_v4 = vmax.f32 (!%p6013_p13), %v5080_v56, 0.0 }
 0x366   : > { %v4361_v13 = vpop.f32.mrb[12].mxu0  ;;  %v4945_v14 = vpop.f32.mrb[12].mxu1  ;;  %5021 = sbr.rel (%p6013_p13) target bundleno = 894 (0x37e), region = 48  ;;  %v5113_v5 = vmax.f32 (!%p6013_p13), %v5081_v57, 0.0  ;;  %v5114_v6 = vmax.f32 (!%p6013_p13), %v5082_v58, 0.0  ;;  %v5115_v7 = vmax.f32 (!%p6013_p13), %v5083_v59, 0.0 }
 0x367   : > { %v4978_v17 = vadd.f32 %v4361_v13, %v319_v9  ;;  %v4980_v18 = vadd.f32 %v4945_v14, %v321_v10  ;;  %v4363_v19 = vpop.f32.mrb[13].mxu0  ;;  %v4947_v20 = vpop.f32.mrb[13].mxu1  ;;  %v5035_v9 = vld [vmem:[#allocation2 + $0x68] sm:$0xff] (!%p6013_p13)  ;;  %v6037_v10 = vpack.c.bf16 (!%p6013_p13), %v5109_v63, %v5108_v62  ;;  %v5085_v13 = vadd.f32 (!%p6013_p13), %v8163_v46, %v5031_v61  ;;  %v5036_v14 = vld [vmem:[#allocation2 + $0x70] sm:$0xff] (!%p6013_p13) }
 0x368   : > { %v4979_v23 = vadd.f32 %v4363_v19, %v320_v11  ;;  %v4981_v24 = vadd.f32 %v4947_v20, %v322_v12  ;;  %v4365_v25 = vpop.f32.mrb[14].mxu0  ;;  %v4949_v26 = vpop.f32.mrb[14].mxu1  ;;  %v6038_v11 = vpack.c.bf16 (!%p6013_p13), %v5111_v1, %v5110_v0  ;;  %v5084_v12 = vadd.f32 (!%p6013_p13), %v8161_v45, %v5030_v60  ;;  %v5038_v20 = vld [vmem:[#allocation2 + $0x80] sm:$0xff] (!%p6013_p13) }
 0x369   : > { %5010 = vst [vmem:[#allocation2 + $0xc0] sm:$0xff] %v4978_v17  ;;  %5012 = vst [vmem:[#allocation2 + $0xd0] sm:$0xff] %v4980_v18  ;;  %v4982_v27 = vadd.f32 %v4365_v25, %v323_v15  ;;  %v4984_v28 = vadd.f32 %v4949_v26, %v325_v16  ;;  %v4367_v29 = vpop.f32.mrb[15].mxu0  ;;  %v4951_v30 = vpop.f32.mrb[15].mxu1  ;;  %v5037_v15 = vld [vmem:[#allocation2 + $0x78] sm:$0xff] (!%p6013_p13)  ;;  %v6039_v16 = vpack.c.bf16 (!%p6013_p13), %v5113_v5, %v5112_v4  ;;  %v5039_v25 = vld [vmem:[#allocation2 + $0x88] sm:$0xff] (!%p6013_p13) }
 0x36a   : > { %5011 = vst [vmem:[#allocation2 + $0xc8] sm:$0xff] %v4979_v23  ;;  %5013 = vst [vmem:[#allocation2 + $0xd8] sm:$0xff] %v4981_v24  ;;  %v4983_v31 = vadd.f32 %v4367_v29, %v324_v21  ;;  %v4985_v32 = vadd.f32 %v4951_v30, %v326_v22  ;;  %v6040_v17 = vpack.c.bf16 (!%p6013_p13), %v5115_v7, %v5114_v6  ;;  %v5116_v21 = vmax.f32 (!%p6013_p13), %v5084_v12, 0.0  ;;  %v5040_v30 = vld [vmem:[#allocation2 + $0x90] sm:$0xff] (!%p6013_p13)  ;;  %v5042_v36 = vld [vmem:[#allocation2 + $0xa0] sm:$0xff] (!%p6013_p13) }
 0x36b   : > { %5014 = vst [vmem:[#allocation2 + $0xe0] sm:$0xff] %v4982_v27  ;;  %5016 = vst [vmem:[#allocation2 + $0xf0] sm:$0xff] %v4984_v28  ;;  %v5086_v18 = vadd.f32 (!%p6013_p13), %v8165_v47, %v5032_v2  ;;  %v5087_v19 = vadd.f32 (!%p6013_p13), %v8167_v48, %v5033_v3  ;;  %v5117_v22 = vmax.f32 (!%p6013_p13), %v5085_v13, 0.0  ;;  %v5088_v23 = vadd.f32 (!%p6013_p13), %v8161_v45, %v5034_v8  ;;  %v5043_v37 = vld [vmem:[#allocation2 + $0xa8] sm:$0xff] (!%p6013_p13)  ;;  %v5044_v42 = vld [vmem:[#allocation2 + $0xb0] sm:$0xff] (!%p6013_p13) }
 0x36c   : > { %5015 = vst [vmem:[#allocation2 + $0xe8] sm:$0xff] %v4983_v31  ;;  %5017 = vst [vmem:[#allocation2 + $0xf8] sm:$0xff] %v4985_v32  ;;  %v5089_v24 = vadd.f32 (!%p6013_p13), %v8163_v46, %v5035_v9  ;;  %v5090_v28 = vadd.f32 (!%p6013_p13), %v8165_v47, %v5036_v14  ;;  %v5091_v29 = vadd.f32 (!%p6013_p13), %v8167_v48, %v5037_v15  ;;  %v5041_v31 = vld [vmem:[#allocation2 + $0x98] sm:$0xff] (!%p6013_p13) }
 0x36d   : > { %5236 = vst [vmem:[%s7517_s9] sm:$0xff] %v6037_v10  ;;  %5237 = vst [vmem:[%s7517_s9 + $0x8] sm:$0xff] %v6038_v11  ;;  %v5118_v26 = vmax.f32 %v5086_v18, 0.0  ;;  %v5119_v27 = vmax.f32 %v5087_v19, 0.0  ;;  %v6041_v32 = vpack.c.bf16 %v5117_v22, %v5116_v21  ;;  %v5120_v33 = vmax.f32 %v5088_v23, 0.0  ;;  %v5045_v43 = vld [vmem:[#allocation2 + $0xb8] sm:$0xff] }
 0x36e   : > { %5238 = vst [vmem:[%s7517_s9 + $0x10] sm:$0xff] %v6039_v16  ;;  %5239 = vst [vmem:[%s7517_s9 + $0x18] sm:$0xff] %v6040_v17  ;;  %v5121_v34 = vmax.f32 %v5089_v24, 0.0  ;;  %v5092_v35 = vadd.f32 %v8161_v45, %v5038_v20  ;;  %v5122_v39 = vmax.f32 %v5090_v28, 0.0  ;;  %v5123_v40 = vmax.f32 %v5091_v29, 0.0 }
 0x36f   : > { %v6042_v38 = vpack.c.bf16 %v5119_v27, %v5118_v26  ;;  %v5093_v41 = vadd.f32 %v8163_v46, %v5039_v25  ;;  %5240 = vst [vmem:[%s7517_s9 + $0x20] sm:$0xff] %v6041_v32  ;;  %v5094_v50 = vadd.f32 %v8165_v47, %v5040_v30  ;;  %v5095_v51 = vadd.f32 %v8167_v48, %v5041_v31 }
 0x370   : > { %v6043_v44 = vpack.c.bf16 %v5121_v34, %v5120_v33  ;;  %v5124_v49 = vmax.f32 %v5092_v35, 0.0  ;;  %v5046_v52 = vld [vmem:[#allocation2 + $0xc0] sm:$0xff]  ;;  %v6044_v53 = vpack.c.bf16 %v5123_v40, %v5122_v39  ;;  %v5096_v55 = vadd.f32 %v8161_v45, %v5042_v36  ;;  %v5048_v62 = vld [vmem:[#allocation2 + $0xd0] sm:$0xff] }
 0x371   : > { %5241 = vst [vmem:[%s7517_s9 + $0x28] sm:$0xff] %v6042_v38  ;;  %v5125_v54 = vmax.f32 %v5093_v41, 0.0  ;;  %v5097_v56 = vadd.f32 %v8163_v46, %v5043_v37  ;;  %v5047_v57 = vld [vmem:[#allocation2 + $0xc8] sm:$0xff]  ;;  %v5126_v58 = vmax.f32 %v5094_v50, 0.0  ;;  %v5127_v59 = vmax.f32 %v5095_v51, 0.0  ;;  %v5049_v63 = vld [vmem:[#allocation2 + $0xd8] sm:$0xff] }
 0x372   : > { %5242 = vst [vmem:[%s7517_s9 + $0x30] sm:$0xff] %v6043_v44  ;;  %v5098_v60 = vadd.f32 %v8165_v47, %v5044_v42  ;;  %v5099_v61 = vadd.f32 %v8167_v48, %v5045_v43  ;;  %5243 = vst [vmem:[%s7517_s9 + $0x38] sm:$0xff] %v6044_v53  ;;  %v5128_v1 = vmax.f32 %v5096_v55, 0.0  ;;  %v5100_v3 = vadd.f32 %v8161_v45, %v5046_v52  ;;  %v5050_v4 = vld [vmem:[#allocation2 + $0xe0] sm:$0xff]  ;;  %v5052_v10 = vld [vmem:[#allocation2 + $0xf0] sm:$0xff] }
 0x373   : > { %v6045_v0 = vpack.c.bf16 %v5125_v54, %v5124_v49  ;;  %v5129_v2 = vmax.f32 %v5097_v56, 0.0  ;;  %v5051_v5 = vld [vmem:[#allocation2 + $0xe8] sm:$0xff]  ;;  %v6046_v6 = vpack.c.bf16 %v5127_v59, %v5126_v58  ;;  %v5101_v9 = vadd.f32 %v8163_v46, %v5047_v57  ;;  %v5053_v11 = vld [vmem:[#allocation2 + $0xf8] sm:$0xff] }
 0x374   : > { %v5130_v7 = vmax.f32 %v5098_v60, 0.0  ;;  %v5131_v8 = vmax.f32 %v5099_v61, 0.0  ;;  %v5132_v13 = vmax.f32 %v5100_v3, 0.0  ;;  %v5102_v14 = vadd.f32 %v8165_v47, %v5048_v62 }
 0x375   : > { %5244 = vst [vmem:[%s7517_s9 + $0x40] sm:$0xff] %v6045_v0  ;;  %v6047_v12 = vpack.c.bf16 %v5129_v2, %v5128_v1  ;;  %v5103_v15 = vadd.f32 %v8167_v48, %v5049_v63  ;;  %5245 = vst [vmem:[%s7517_s9 + $0x48] sm:$0xff] %v6046_v6  ;;  %v5133_v17 = vmax.f32 %v5101_v9, 0.0  ;;  %v5104_v18 = vadd.f32 %v8161_v45, %v5050_v4 }
 0x376   : > { %v6048_v16 = vpack.c.bf16 %v5131_v8, %v5130_v7  ;;  %v5105_v19 = vadd.f32 %v8163_v46, %v5051_v5  ;;  %v5134_v20 = vmax.f32 %v5102_v14, 0.0  ;;  %v5106_v22 = vadd.f32 %v8165_v47, %v5052_v10 }
 0x377   : > { %5246 = vst [vmem:[%s7517_s9 + $0x50] sm:$0xff] %v6047_v12  ;;  %v5135_v21 = vmax.f32 %v5103_v15, 0.0  ;;  %v5107_v23 = vadd.f32 %v8167_v48, %v5053_v11  ;;  %v6049_v24 = vpack.c.bf16 %v5133_v17, %v5132_v13  ;;  %v5136_v25 = vmax.f32 %v5104_v18, 0.0 }
 0x378   : > { %5247 = vst [vmem:[%s7517_s9 + $0x58] sm:$0xff] %v6048_v16  ;;  %v5137_v26 = vmax.f32 %v5105_v19, 0.0  ;;  %v5138_v28 = vmax.f32 %v5106_v22, 0.0 }
 0x379   : > { %v6050_v27 = vpack.c.bf16 %v5135_v21, %v5134_v20  ;;  %v5139_v29 = vmax.f32 %v5107_v23, 0.0  ;;  %5248 = vst [vmem:[%s7517_s9 + $0x60] sm:$0xff] %v6049_v24 }
 0x37a   : > { %v6051_v45 = vpack.c.bf16 %v5137_v26, %v5136_v25 }
 0x37b   : > { %5249 = vst [vmem:[%s7517_s9 + $0x68] sm:$0xff] %v6050_v27  ;;  %v6052_v46 = vpack.c.bf16 %v5139_v29, %v5138_v28 }
 0x37c   : > { %5250 = vst [vmem:[%s7517_s9 + $0x70] sm:$0xff] %v6051_v45 }
 0x37d   : > { %5251 = vst [vmem:[%s7517_s9 + $0x78] sm:$0xff] %v6052_v46 }
 0x37e PF: > { %p8301_p3 = scmp.ne.s32.totalorder %s8287_s28, 0 }
 0x37f   : > { %s6053_s17 = sshll.u32 (%p8301_p3), %s7281_s18, 4  ;;  %v5281_v30 = vld [vmem:[%s7517_s9 + $0x10] sm:$0xff] (%p8301_p3)  ;;  %v5283_v31 = vld [vmem:[%s7517_s9 + $0x18] sm:$0xff] (%p8301_p3)  ;;  %v5285_v32 = vld [vmem:[%s7517_s9 + $0x20] sm:$0xff] (%p8301_p3) }
 0x380   : > { %5258 = sbr.rel (!%p8301_p3) target bundleno = 905 (0x389), region = 52  ;;  %s5264_s26 = scalar_lea.vmem (%p8301_p3), %s8272_s3, %s6053_s17  ;;  %v5287_v33 = vld [vmem:[%s7517_s9 + $0x28] sm:$0xff] (%p8301_p3)  ;;  %v5289_v34 = vld [vmem:[%s7517_s9 + $0x30] sm:$0xff] (%p8301_p3)  ;;  %v5291_v35 = vld [vmem:[%s7517_s9 + $0x38] sm:$0xff] (%p8301_p3) }
 0x381   : > { %5282 = vst [vmem:[%s5264_s26 + $0x40] sm:$0xff] (%p8301_p3), %v5281_v30  ;;  %5284 = vst [vmem:[%s5264_s26 + $0x48] sm:$0xff] (%p8301_p3), %v5283_v31  ;;  %v5293_v36 = vld [vmem:[%s7517_s9 + $0x40] sm:$0xff] (%p8301_p3)  ;;  %v5295_v37 = vld [vmem:[%s7517_s9 + $0x48] sm:$0xff] (%p8301_p3) }
 0x382   : > { %5286 = vst [vmem:[%s5264_s26 + $0x80] sm:$0xff] (%p8301_p3), %v5285_v32  ;;  %5288 = vst [vmem:[%s5264_s26 + $0x88] sm:$0xff] (%p8301_p3), %v5287_v33  ;;  %v5297_v38 = vld [vmem:[%s7517_s9 + $0x50] sm:$0xff] (%p8301_p3)  ;;  %v5299_v39 = vld [vmem:[%s7517_s9 + $0x58] sm:$0xff] (%p8301_p3) }
 0x383   : > { %5290 = vst [vmem:[%s5264_s26 + $0xc0] sm:$0xff] (%p8301_p3), %v5289_v34  ;;  %5292 = vst [vmem:[%s5264_s26 + $0xc8] sm:$0xff] (%p8301_p3), %v5291_v35  ;;  %v5301_v40 = vld [vmem:[%s7517_s9 + $0x60] sm:$0xff] (%p8301_p3)  ;;  %v5303_v41 = vld [vmem:[%s7517_s9 + $0x68] sm:$0xff] (%p8301_p3) }
 0x384   : > { %5294 = vst [vmem:[%s5264_s26 + $0x100] sm:$0xff] (%p8301_p3), %v5293_v36  ;;  %5296 = vst [vmem:[%s5264_s26 + $0x108] sm:$0xff] (%p8301_p3), %v5295_v37  ;;  %v5305_v42 = vld [vmem:[%s7517_s9 + $0x70] sm:$0xff] (%p8301_p3)  ;;  %v5307_v43 = vld [vmem:[%s7517_s9 + $0x78] sm:$0xff] (%p8301_p3) }
 0x385   : > { %v5277_v47 = vld [vmem:[%s7517_s9] sm:$0xff] (%p8301_p3)  ;;  %v5279_v48 = vld [vmem:[%s7517_s9 + $0x8] sm:$0xff] (%p8301_p3)  ;;  %5298 = vst [vmem:[%s5264_s26 + $0x140] sm:$0xff] (%p8301_p3), %v5297_v38  ;;  %5300 = vst [vmem:[%s5264_s26 + $0x148] sm:$0xff] (%p8301_p3), %v5299_v39 }
 0x386   : > { %5278 = vst [vmem:[%s5264_s26] sm:$0xff] (%p8301_p3), %v5277_v47  ;;  %5280 = vst [vmem:[%s5264_s26 + $0x8] sm:$0xff] (%p8301_p3), %v5279_v48 }
 0x387   : > { %5302 = vst [vmem:[%s5264_s26 + $0x180] sm:$0xff] %v5301_v40  ;;  %5304 = vst [vmem:[%s5264_s26 + $0x188] sm:$0xff] %v5303_v41 }
 0x388   : > { %5306 = vst [vmem:[%s5264_s26 + $0x1c0] sm:$0xff] %v5305_v42  ;;  %5308 = vst [vmem:[%s5264_s26 + $0x1c8] sm:$0xff] %v5307_v43 }
 0x389 PF: > { %s8302_s18 = sld [smem:[#allocation10_spill]]  ;;  %s8303_s28 = sld [smem:[#allocation11_spill]] }
 0x38a   : > { %s8304_s30 = sld [smem:[#allocation12_spill]]  ;;  %s8305_s12 = smov %s7261_s13 }
 0x38b   : > { %s8306_s13 = smov %s7460_s8  ;;  %s8307_s14 = smov %s7269_s15 }
 0x38c   : > { %s8308_s15 = smov %s7273_s16  ;;  %s8309_s16 = smov %s7465_s5 }
 0x38d   : > { %s8310_s17 = smov %s7285_s19 }
 0x38f   : > { %s17_s21 = sadd.s32 1, %s8302_s18   ;;  %s8311_s18 = smov %s7289_s20 }
 0x390   : > { %p14_p5 = scmp.ge.s32.totalorder %s17_s21, 18   ;;  %s8312_s19 = smov %s8303_s28 }
 0x391   : > { %s8313_s20 = smov %s8304_s30 }
 0x392   :  { %16 = sbr.rel (!%p14_p5) target bundleno = 9 (0x9), region = 113 }
 0x399   :  { %5324 = vsyncpa [#allocation4], 1 }
 0x39a   :  { %5326 = vsyncpa [#allocation4 + $0x1], 1 }
 0x39b   :  { %5327 = vsyncpa [#allocation6], 1 }
 0x39c   :  { %5329 = vsyncpa [#allocation6 + $0x1], 1 }

// kernel: wav2phoneme_forward.20
= control target key start
LH: loop header
LB: loop body
LE: loop exit
PB: predicated region body
PF: predicated region fallthrough
CT: control target
= control target key end

     0   :  { %s8152_s12 = smov 0   ;;  %s8154_s13 = smov 0   ;;  %s10100_s0 = inlined_call_operand.vmem [shape: bf16[1,64,2048], index: 0, kind: input, shape index: {}]   ;;  %s10101_s1 = inlined_call_operand.vmem [shape: bf16[2048,2048], index: 1, kind: input, shape index: {}]   ;;  %s10102_s2 = inlined_call_operand.vmem [shape: f32[1,2048], index: 2, kind: input, shape index: {}]   ;;  %s10103_s3 = inlined_call_operand.vmem [shape: bf16[64,2048], index: 3, kind: output, shape index: {}]  }
   0x1   :  { %s8156_s14 = smov 0   ;;  %s8158_s15 = smov 0  }
   0x2   :  { %s8160_s16 = smov 0  }
   0x3 LB: > { %s28_s17 = sadd.s32 1, %s8126_s15  ;;  %s6433_s18 = sadd.s32 4294967295, %s8130_s16   ;;  %s8130_s16 = sphi %s8160_s16, %s13_s16   ;;  %s8126_s15 = sphi %s8158_s15, %s10108_s15   ;;  %s8122_s14 = sphi %s8156_s14, %s10107_s14   ;;  %s8118_s13 = sphi %s8154_s13, %s10106_s13   ;;  %s8114_s12 = sphi %s8152_s12, %s10105_s12  }
   0x4   : > { %p30_p0 = scmp.ge.s32.totalorder %s28_s17, 4  ;;  %p74_p1 = scmp.ne.s32.totalorder %s8118_s13, %s8114_s12 }
   0x5   : > { %p75_p2 = scmp.eq.s32.totalorder %s8130_s16, 0  ;;  %p132_p4 = scmp.eq.s32.totalorder %s6433_s18, 3 }
   0x6   : > { %s10110_s17 = smov (%p30_p0, %s28_s17), 0  ;;  %s67_s20 = sadd.s32 1, %s8118_s13 }
   0x7   : > { %p76_p3 = por %p75_p2, %p74_p1  ;;  %s63_s19 = ssub.s32 %s8126_s15, %s10110_s17 }
   0x8   : > { %p65_p5 = scmp.eq.s32.totalorder %s63_s19, 0  ;;  %p8187_p6 = por %p132_p4, %p74_p1 }
   0x9   : > { %p6437_p7 = scmp.ge.s32.totalorder %s8130_s16, 4 }
   0xa   : > { %s8192_s22 = scalar_select %p65_p5, %s8118_s13, %s67_s20  }
   0xb   : > { %164 = sbr.rel (%p6437_p7) target bundleno = 278 (0x116), region = 20 }
  0x12   : > { %167 = sbr.rel (!%p76_p3) target bundleno = 278 (0x116), region = 24  ;;  %s169_s23 = sand.u32 (%p76_p3), 1, %s8118_s13  }
  0x13   : > { %s7042_s24 = sshll.u32 (%p76_p3), %s8126_s15, 4  ;;  %s6438_s25 = sshll.u32 (%p76_p3), %s169_s23, 12 }
  0x14   : > { %s8200_s28 = scalar_lea.vmem (%p76_p3), %s10101_s1, %s7042_s24  ;;  %s8205_s29 = scalar_lea.vmem (%p76_p3), [#allocation3], %s6438_s25 }
  0x15   : > { %v190_v0 = vld [vmem:[%s8200_s28] sm:$0xff] (%p76_p3)  ;;  %v192_v1 = vld [vmem:[%s8200_s28 + $0x8] sm:$0xff] (%p76_p3) }
  0x16   : > { %v194_v2 = vld [vmem:[%s8200_s28 + $0x40] sm:$0xff] (%p76_p3)  ;;  %191 = vst [vmem:[%s8205_s29] sm:$0xff] (%p76_p3), %v190_v0  ;;  %193 = vst [vmem:[%s8205_s29 + $0x8] sm:$0xff] (%p76_p3), %v192_v1  ;;  %v196_v3 = vld [vmem:[%s8200_s28 + $0x48] sm:$0xff] (%p76_p3) }
  0x17   : > { %195 = vst [vmem:[%s8205_s29 + $0x10] sm:$0xff] (%p76_p3), %v194_v2  ;;  %v198_v4 = vld [vmem:[%s8200_s28 + $0x80] sm:$0xff] (%p76_p3)  ;;  %v200_v5 = vld [vmem:[%s8200_s28 + $0x88] sm:$0xff] (%p76_p3)  ;;  %197 = vst [vmem:[%s8205_s29 + $0x18] sm:$0xff] (%p76_p3), %v196_v3 }
  0x18   : > { %199 = vst [vmem:[%s8205_s29 + $0x20] sm:$0xff] (%p76_p3), %v198_v4  ;;  %201 = vst [vmem:[%s8205_s29 + $0x28] sm:$0xff] (%p76_p3), %v200_v5  ;;  %v202_v6 = vld [vmem:[%s8200_s28 + $0xc0] sm:$0xff] (%p76_p3)  ;;  %v204_v7 = vld [vmem:[%s8200_s28 + $0xc8] sm:$0xff] (%p76_p3) }
  0x19   : > { %v206_v8 = vld [vmem:[%s8200_s28 + $0x100] sm:$0xff]  ;;  %203 = vst [vmem:[%s8205_s29 + $0x30] sm:$0xff] %v202_v6  ;;  %205 = vst [vmem:[%s8205_s29 + $0x38] sm:$0xff] %v204_v7  ;;  %v208_v9 = vld [vmem:[%s8200_s28 + $0x108] sm:$0xff] }
  0x1a   : > { %207 = vst [vmem:[%s8205_s29 + $0x40] sm:$0xff] %v206_v8  ;;  %v210_v10 = vld [vmem:[%s8200_s28 + $0x140] sm:$0xff]  ;;  %v212_v11 = vld [vmem:[%s8200_s28 + $0x148] sm:$0xff]  ;;  %209 = vst [vmem:[%s8205_s29 + $0x48] sm:$0xff] %v208_v9 }
  0x1b   : > { %211 = vst [vmem:[%s8205_s29 + $0x50] sm:$0xff] %v210_v10  ;;  %213 = vst [vmem:[%s8205_s29 + $0x58] sm:$0xff] %v212_v11  ;;  %v214_v12 = vld [vmem:[%s8200_s28 + $0x180] sm:$0xff]  ;;  %v216_v13 = vld [vmem:[%s8200_s28 + $0x188] sm:$0xff] }
  0x1c   : > { %v218_v14 = vld [vmem:[%s8200_s28 + $0x1c0] sm:$0xff]  ;;  %215 = vst [vmem:[%s8205_s29 + $0x60] sm:$0xff] %v214_v12  ;;  %217 = vst [vmem:[%s8205_s29 + $0x68] sm:$0xff] %v216_v13  ;;  %v220_v15 = vld [vmem:[%s8200_s28 + $0x1c8] sm:$0xff] }
  0x1d   : > { %219 = vst [vmem:[%s8205_s29 + $0x70] sm:$0xff] %v218_v14  ;;  %v222_v16 = vld [vmem:[%s8200_s28 + $0x200] sm:$0xff]  ;;  %v224_v17 = vld [vmem:[%s8200_s28 + $0x208] sm:$0xff]  ;;  %221 = vst [vmem:[%s8205_s29 + $0x78] sm:$0xff] %v220_v15 }
  0x1e   : > { %223 = vst [vmem:[%s8205_s29 + $0x80] sm:$0xff] %v222_v16  ;;  %225 = vst [vmem:[%s8205_s29 + $0x88] sm:$0xff] %v224_v17  ;;  %v226_v18 = vld [vmem:[%s8200_s28 + $0x240] sm:$0xff]  ;;  %v228_v19 = vld [vmem:[%s8200_s28 + $0x248] sm:$0xff] }
  0x1f   : > { %v230_v20 = vld [vmem:[%s8200_s28 + $0x280] sm:$0xff]  ;;  %227 = vst [vmem:[%s8205_s29 + $0x90] sm:$0xff] %v226_v18  ;;  %229 = vst [vmem:[%s8205_s29 + $0x98] sm:$0xff] %v228_v19  ;;  %v232_v21 = vld [vmem:[%s8200_s28 + $0x288] sm:$0xff] }
  0x20   : > { %231 = vst [vmem:[%s8205_s29 + $0xa0] sm:$0xff] %v230_v20  ;;  %v234_v22 = vld [vmem:[%s8200_s28 + $0x2c0] sm:$0xff]  ;;  %v236_v23 = vld [vmem:[%s8200_s28 + $0x2c8] sm:$0xff]  ;;  %233 = vst [vmem:[%s8205_s29 + $0xa8] sm:$0xff] %v232_v21 }
  0x21   : > { %235 = vst [vmem:[%s8205_s29 + $0xb0] sm:$0xff] %v234_v22  ;;  %237 = vst [vmem:[%s8205_s29 + $0xb8] sm:$0xff] %v236_v23  ;;  %v238_v24 = vld [vmem:[%s8200_s28 + $0x300] sm:$0xff]  ;;  %v240_v25 = vld [vmem:[%s8200_s28 + $0x308] sm:$0xff] }
  0x22   : > { %v242_v26 = vld [vmem:[%s8200_s28 + $0x340] sm:$0xff]  ;;  %239 = vst [vmem:[%s8205_s29 + $0xc0] sm:$0xff] %v238_v24  ;;  %241 = vst [vmem:[%s8205_s29 + $0xc8] sm:$0xff] %v240_v25  ;;  %v244_v27 = vld [vmem:[%s8200_s28 + $0x348] sm:$0xff] }
  0x23   : > { %243 = vst [vmem:[%s8205_s29 + $0xd0] sm:$0xff] %v242_v26  ;;  %v246_v28 = vld [vmem:[%s8200_s28 + $0x380] sm:$0xff]  ;;  %v248_v29 = vld [vmem:[%s8200_s28 + $0x388] sm:$0xff]  ;;  %245 = vst [vmem:[%s8205_s29 + $0xd8] sm:$0xff] %v244_v27 }
  0x24   : > { %247 = vst [vmem:[%s8205_s29 + $0xe0] sm:$0xff] %v246_v28  ;;  %249 = vst [vmem:[%s8205_s29 + $0xe8] sm:$0xff] %v248_v29  ;;  %v250_v30 = vld [vmem:[%s8200_s28 + $0x3c0] sm:$0xff]  ;;  %v252_v31 = vld [vmem:[%s8200_s28 + $0x3c8] sm:$0xff] }
  0x25   : > { %v254_v32 = vld [vmem:[%s8200_s28 + $0x400] sm:$0xff]  ;;  %251 = vst [vmem:[%s8205_s29 + $0xf0] sm:$0xff] %v250_v30  ;;  %253 = vst [vmem:[%s8205_s29 + $0xf8] sm:$0xff] %v252_v31  ;;  %v256_v33 = vld [vmem:[%s8200_s28 + $0x408] sm:$0xff] }
  0x26   : > { %255 = vst [vmem:[%s8205_s29 + $0x100] sm:$0xff] %v254_v32  ;;  %v258_v34 = vld [vmem:[%s8200_s28 + $0x440] sm:$0xff]  ;;  %v260_v35 = vld [vmem:[%s8200_s28 + $0x448] sm:$0xff]  ;;  %257 = vst [vmem:[%s8205_s29 + $0x108] sm:$0xff] %v256_v33 }
  0x27   : > { %259 = vst [vmem:[%s8205_s29 + $0x110] sm:$0xff] %v258_v34  ;;  %261 = vst [vmem:[%s8205_s29 + $0x118] sm:$0xff] %v260_v35  ;;  %v262_v36 = vld [vmem:[%s8200_s28 + $0x480] sm:$0xff]  ;;  %v264_v37 = vld [vmem:[%s8200_s28 + $0x488] sm:$0xff] }
  0x28   : > { %v266_v38 = vld [vmem:[%s8200_s28 + $0x4c0] sm:$0xff]  ;;  %263 = vst [vmem:[%s8205_s29 + $0x120] sm:$0xff] %v262_v36  ;;  %265 = vst [vmem:[%s8205_s29 + $0x128] sm:$0xff] %v264_v37  ;;  %v268_v39 = vld [vmem:[%s8200_s28 + $0x4c8] sm:$0xff] }
  0x29   : > { %267 = vst [vmem:[%s8205_s29 + $0x130] sm:$0xff] %v266_v38  ;;  %v270_v40 = vld [vmem:[%s8200_s28 + $0x500] sm:$0xff]  ;;  %v272_v41 = vld [vmem:[%s8200_s28 + $0x508] sm:$0xff]  ;;  %269 = vst [vmem:[%s8205_s29 + $0x138] sm:$0xff] %v268_v39 }
  0x2a   : > { %271 = vst [vmem:[%s8205_s29 + $0x140] sm:$0xff] %v270_v40  ;;  %273 = vst [vmem:[%s8205_s29 + $0x148] sm:$0xff] %v272_v41  ;;  %v274_v42 = vld [vmem:[%s8200_s28 + $0x540] sm:$0xff]  ;;  %v276_v43 = vld [vmem:[%s8200_s28 + $0x548] sm:$0xff] }
  0x2b   : > { %v278_v44 = vld [vmem:[%s8200_s28 + $0x580] sm:$0xff]  ;;  %275 = vst [vmem:[%s8205_s29 + $0x150] sm:$0xff] %v274_v42  ;;  %277 = vst [vmem:[%s8205_s29 + $0x158] sm:$0xff] %v276_v43  ;;  %v280_v45 = vld [vmem:[%s8200_s28 + $0x588] sm:$0xff] }
  0x2c   : > { %279 = vst [vmem:[%s8205_s29 + $0x160] sm:$0xff] %v278_v44  ;;  %v282_v46 = vld [vmem:[%s8200_s28 + $0x5c0] sm:$0xff]  ;;  %v284_v47 = vld [vmem:[%s8200_s28 + $0x5c8] sm:$0xff]  ;;  %281 = vst [vmem:[%s8205_s29 + $0x168] sm:$0xff] %v280_v45 }
  0x2d   : > { %283 = vst [vmem:[%s8205_s29 + $0x170] sm:$0xff] %v282_v46  ;;  %285 = vst [vmem:[%s8205_s29 + $0x178] sm:$0xff] %v284_v47  ;;  %v286_v48 = vld [vmem:[%s8200_s28 + $0x600] sm:$0xff]  ;;  %v288_v49 = vld [vmem:[%s8200_s28 + $0x608] sm:$0xff] }
  0x2e   : > { %v290_v50 = vld [vmem:[%s8200_s28 + $0x640] sm:$0xff]  ;;  %287 = vst [vmem:[%s8205_s29 + $0x180] sm:$0xff] %v286_v48  ;;  %289 = vst [vmem:[%s8205_s29 + $0x188] sm:$0xff] %v288_v49  ;;  %v292_v51 = vld [vmem:[%s8200_s28 + $0x648] sm:$0xff] }
  0x2f   : > { %291 = vst [vmem:[%s8205_s29 + $0x190] sm:$0xff] %v290_v50  ;;  %v294_v52 = vld [vmem:[%s8200_s28 + $0x680] sm:$0xff]  ;;  %v296_v53 = vld [vmem:[%s8200_s28 + $0x688] sm:$0xff]  ;;  %293 = vst [vmem:[%s8205_s29 + $0x198] sm:$0xff] %v292_v51 }
  0x30   : > { %295 = vst [vmem:[%s8205_s29 + $0x1a0] sm:$0xff] %v294_v52  ;;  %297 = vst [vmem:[%s8205_s29 + $0x1a8] sm:$0xff] %v296_v53  ;;  %v298_v54 = vld [vmem:[%s8200_s28 + $0x6c0] sm:$0xff]  ;;  %v300_v55 = vld [vmem:[%s8200_s28 + $0x6c8] sm:$0xff] }
  0x31   : > { %v302_v56 = vld [vmem:[%s8200_s28 + $0x700] sm:$0xff]  ;;  %299 = vst [vmem:[%s8205_s29 + $0x1b0] sm:$0xff] %v298_v54  ;;  %301 = vst [vmem:[%s8205_s29 + $0x1b8] sm:$0xff] %v300_v55  ;;  %v304_v57 = vld [vmem:[%s8200_s28 + $0x708] sm:$0xff] }
  0x32   : > { %303 = vst [vmem:[%s8205_s29 + $0x1c0] sm:$0xff] %v302_v56  ;;  %v306_v58 = vld [vmem:[%s8200_s28 + $0x740] sm:$0xff]  ;;  %v308_v59 = vld [vmem:[%s8200_s28 + $0x748] sm:$0xff]  ;;  %305 = vst [vmem:[%s8205_s29 + $0x1c8] sm:$0xff] %v304_v57 }
  0x33   : > { %307 = vst [vmem:[%s8205_s29 + $0x1d0] sm:$0xff] %v306_v58  ;;  %309 = vst [vmem:[%s8205_s29 + $0x1d8] sm:$0xff] %v308_v59  ;;  %v310_v60 = vld [vmem:[%s8200_s28 + $0x780] sm:$0xff]  ;;  %v312_v61 = vld [vmem:[%s8200_s28 + $0x788] sm:$0xff] }
  0x34   : > { %v314_v62 = vld [vmem:[%s8200_s28 + $0x7c0] sm:$0xff]  ;;  %311 = vst [vmem:[%s8205_s29 + $0x1e0] sm:$0xff] %v310_v60  ;;  %313 = vst [vmem:[%s8205_s29 + $0x1e8] sm:$0xff] %v312_v61  ;;  %v316_v63 = vld [vmem:[%s8200_s28 + $0x7c8] sm:$0xff] }
  0x35   : > { %315 = vst [vmem:[%s8205_s29 + $0x1f0] sm:$0xff] %v314_v62  ;;  %v318_v0 = vld [vmem:[%s8200_s28 + $0x800] sm:$0xff]  ;;  %v320_v1 = vld [vmem:[%s8200_s28 + $0x808] sm:$0xff]  ;;  %317 = vst [vmem:[%s8205_s29 + $0x1f8] sm:$0xff] %v316_v63 }
  0x36   : > { %319 = vst [vmem:[%s8205_s29 + $0x200] sm:$0xff] %v318_v0  ;;  %321 = vst [vmem:[%s8205_s29 + $0x208] sm:$0xff] %v320_v1  ;;  %v322_v2 = vld [vmem:[%s8200_s28 + $0x840] sm:$0xff]  ;;  %v324_v3 = vld [vmem:[%s8200_s28 + $0x848] sm:$0xff] }
  0x37   : > { %v326_v4 = vld [vmem:[%s8200_s28 + $0x880] sm:$0xff]  ;;  %323 = vst [vmem:[%s8205_s29 + $0x210] sm:$0xff] %v322_v2  ;;  %325 = vst [vmem:[%s8205_s29 + $0x218] sm:$0xff] %v324_v3  ;;  %v328_v5 = vld [vmem:[%s8200_s28 + $0x888] sm:$0xff] }
  0x38   : > { %327 = vst [vmem:[%s8205_s29 + $0x220] sm:$0xff] %v326_v4  ;;  %v330_v6 = vld [vmem:[%s8200_s28 + $0x8c0] sm:$0xff]  ;;  %v332_v7 = vld [vmem:[%s8200_s28 + $0x8c8] sm:$0xff]  ;;  %329 = vst [vmem:[%s8205_s29 + $0x228] sm:$0xff] %v328_v5 }
  0x39   : > { %331 = vst [vmem:[%s8205_s29 + $0x230] sm:$0xff] %v330_v6  ;;  %333 = vst [vmem:[%s8205_s29 + $0x238] sm:$0xff] %v332_v7  ;;  %v334_v8 = vld [vmem:[%s8200_s28 + $0x900] sm:$0xff]  ;;  %v336_v9 = vld [vmem:[%s8200_s28 + $0x908] sm:$0xff] }
  0x3a   : > { %v338_v10 = vld [vmem:[%s8200_s28 + $0x940] sm:$0xff]  ;;  %335 = vst [vmem:[%s8205_s29 + $0x240] sm:$0xff] %v334_v8  ;;  %337 = vst [vmem:[%s8205_s29 + $0x248] sm:$0xff] %v336_v9  ;;  %v340_v11 = vld [vmem:[%s8200_s28 + $0x948] sm:$0xff] }
  0x3b   : > { %339 = vst [vmem:[%s8205_s29 + $0x250] sm:$0xff] %v338_v10  ;;  %v342_v12 = vld [vmem:[%s8200_s28 + $0x980] sm:$0xff]  ;;  %v344_v13 = vld [vmem:[%s8200_s28 + $0x988] sm:$0xff]  ;;  %341 = vst [vmem:[%s8205_s29 + $0x258] sm:$0xff] %v340_v11 }
  0x3c   : > { %343 = vst [vmem:[%s8205_s29 + $0x260] sm:$0xff] %v342_v12  ;;  %345 = vst [vmem:[%s8205_s29 + $0x268] sm:$0xff] %v344_v13  ;;  %v346_v14 = vld [vmem:[%s8200_s28 + $0x9c0] sm:$0xff]  ;;  %v348_v15 = vld [vmem:[%s8200_s28 + $0x9c8] sm:$0xff] }
  0x3d   : > { %v350_v16 = vld [vmem:[%s8200_s28 + $0xa00] sm:$0xff]  ;;  %347 = vst [vmem:[%s8205_s29 + $0x270] sm:$0xff] %v346_v14  ;;  %349 = vst [vmem:[%s8205_s29 + $0x278] sm:$0xff] %v348_v15  ;;  %v352_v17 = vld [vmem:[%s8200_s28 + $0xa08] sm:$0xff] }
  0x3e   : > { %351 = vst [vmem:[%s8205_s29 + $0x280] sm:$0xff] %v350_v16  ;;  %v354_v18 = vld [vmem:[%s8200_s28 + $0xa40] sm:$0xff]  ;;  %v356_v19 = vld [vmem:[%s8200_s28 + $0xa48] sm:$0xff]  ;;  %353 = vst [vmem:[%s8205_s29 + $0x288] sm:$0xff] %v352_v17 }
  0x3f   : > { %355 = vst [vmem:[%s8205_s29 + $0x290] sm:$0xff] %v354_v18  ;;  %357 = vst [vmem:[%s8205_s29 + $0x298] sm:$0xff] %v356_v19  ;;  %v358_v20 = vld [vmem:[%s8200_s28 + $0xa80] sm:$0xff]  ;;  %v360_v21 = vld [vmem:[%s8200_s28 + $0xa88] sm:$0xff] }
  0x40   : > { %v362_v22 = vld [vmem:[%s8200_s28 + $0xac0] sm:$0xff]  ;;  %359 = vst [vmem:[%s8205_s29 + $0x2a0] sm:$0xff] %v358_v20  ;;  %361 = vst [vmem:[%s8205_s29 + $0x2a8] sm:$0xff] %v360_v21  ;;  %v364_v23 = vld [vmem:[%s8200_s28 + $0xac8] sm:$0xff] }
  0x41   : > { %363 = vst [vmem:[%s8205_s29 + $0x2b0] sm:$0xff] %v362_v22  ;;  %v366_v24 = vld [vmem:[%s8200_s28 + $0xb00] sm:$0xff]  ;;  %v368_v25 = vld [vmem:[%s8200_s28 + $0xb08] sm:$0xff]  ;;  %365 = vst [vmem:[%s8205_s29 + $0x2b8] sm:$0xff] %v364_v23 }
  0x42   : > { %367 = vst [vmem:[%s8205_s29 + $0x2c0] sm:$0xff] %v366_v24  ;;  %369 = vst [vmem:[%s8205_s29 + $0x2c8] sm:$0xff] %v368_v25  ;;  %v370_v26 = vld [vmem:[%s8200_s28 + $0xb40] sm:$0xff]  ;;  %v372_v27 = vld [vmem:[%s8200_s28 + $0xb48] sm:$0xff] }
  0x43   : > { %v374_v28 = vld [vmem:[%s8200_s28 + $0xb80] sm:$0xff]  ;;  %371 = vst [vmem:[%s8205_s29 + $0x2d0] sm:$0xff] %v370_v26  ;;  %373 = vst [vmem:[%s8205_s29 + $0x2d8] sm:$0xff] %v372_v27  ;;  %v376_v29 = vld [vmem:[%s8200_s28 + $0xb88] sm:$0xff] }
  0x44   : > { %375 = vst [vmem:[%s8205_s29 + $0x2e0] sm:$0xff] %v374_v28  ;;  %v378_v30 = vld [vmem:[%s8200_s28 + $0xbc0] sm:$0xff]  ;;  %v380_v31 = vld [vmem:[%s8200_s28 + $0xbc8] sm:$0xff]  ;;  %377 = vst [vmem:[%s8205_s29 + $0x2e8] sm:$0xff] %v376_v29 }
  0x45   : > { %379 = vst [vmem:[%s8205_s29 + $0x2f0] sm:$0xff] %v378_v30  ;;  %381 = vst [vmem:[%s8205_s29 + $0x2f8] sm:$0xff] %v380_v31  ;;  %v382_v32 = vld [vmem:[%s8200_s28 + $0xc00] sm:$0xff]  ;;  %v384_v33 = vld [vmem:[%s8200_s28 + $0xc08] sm:$0xff] }
  0x46   : > { %v386_v34 = vld [vmem:[%s8200_s28 + $0xc40] sm:$0xff]  ;;  %383 = vst [vmem:[%s8205_s29 + $0x300] sm:$0xff] %v382_v32  ;;  %385 = vst [vmem:[%s8205_s29 + $0x308] sm:$0xff] %v384_v33  ;;  %v388_v35 = vld [vmem:[%s8200_s28 + $0xc48] sm:$0xff] }
  0x47   : > { %387 = vst [vmem:[%s8205_s29 + $0x310] sm:$0xff] %v386_v34  ;;  %v390_v36 = vld [vmem:[%s8200_s28 + $0xc80] sm:$0xff]  ;;  %v392_v37 = vld [vmem:[%s8200_s28 + $0xc88] sm:$0xff]  ;;  %389 = vst [vmem:[%s8205_s29 + $0x318] sm:$0xff] %v388_v35 }
  0x48   : > { %391 = vst [vmem:[%s8205_s29 + $0x320] sm:$0xff] %v390_v36  ;;  %393 = vst [vmem:[%s8205_s29 + $0x328] sm:$0xff] %v392_v37  ;;  %v394_v38 = vld [vmem:[%s8200_s28 + $0xcc0] sm:$0xff]  ;;  %v396_v39 = vld [vmem:[%s8200_s28 + $0xcc8] sm:$0xff] }
  0x49   : > { %v398_v40 = vld [vmem:[%s8200_s28 + $0xd00] sm:$0xff]  ;;  %395 = vst [vmem:[%s8205_s29 + $0x330] sm:$0xff] %v394_v38  ;;  %397 = vst [vmem:[%s8205_s29 + $0x338] sm:$0xff] %v396_v39  ;;  %v400_v41 = vld [vmem:[%s8200_s28 + $0xd08] sm:$0xff] }
  0x4a   : > { %399 = vst [vmem:[%s8205_s29 + $0x340] sm:$0xff] %v398_v40  ;;  %v402_v42 = vld [vmem:[%s8200_s28 + $0xd40] sm:$0xff]  ;;  %v404_v43 = vld [vmem:[%s8200_s28 + $0xd48] sm:$0xff]  ;;  %401 = vst [vmem:[%s8205_s29 + $0x348] sm:$0xff] %v400_v41 }
  0x4b   : > { %403 = vst [vmem:[%s8205_s29 + $0x350] sm:$0xff] %v402_v42  ;;  %405 = vst [vmem:[%s8205_s29 + $0x358] sm:$0xff] %v404_v43  ;;  %v406_v44 = vld [vmem:[%s8200_s28 + $0xd80] sm:$0xff]  ;;  %v408_v45 = vld [vmem:[%s8200_s28 + $0xd88] sm:$0xff] }
  0x4c   : > { %v410_v46 = vld [vmem:[%s8200_s28 + $0xdc0] sm:$0xff]  ;;  %407 = vst [vmem:[%s8205_s29 + $0x360] sm:$0xff] %v406_v44  ;;  %409 = vst [vmem:[%s8205_s29 + $0x368] sm:$0xff] %v408_v45  ;;  %v412_v47 = vld [vmem:[%s8200_s28 + $0xdc8] sm:$0xff] }
  0x4d   : > { %411 = vst [vmem:[%s8205_s29 + $0x370] sm:$0xff] %v410_v46  ;;  %v414_v48 = vld [vmem:[%s8200_s28 + $0xe00] sm:$0xff]  ;;  %v416_v49 = vld [vmem:[%s8200_s28 + $0xe08] sm:$0xff]  ;;  %413 = vst [vmem:[%s8205_s29 + $0x378] sm:$0xff] %v412_v47 }
  0x4e   : > { %415 = vst [vmem:[%s8205_s29 + $0x380] sm:$0xff] %v414_v48  ;;  %417 = vst [vmem:[%s8205_s29 + $0x388] sm:$0xff] %v416_v49  ;;  %v418_v50 = vld [vmem:[%s8200_s28 + $0xe40] sm:$0xff]  ;;  %v420_v51 = vld [vmem:[%s8200_s28 + $0xe48] sm:$0xff] }
  0x4f   : > { %v422_v52 = vld [vmem:[%s8200_s28 + $0xe80] sm:$0xff]  ;;  %419 = vst [vmem:[%s8205_s29 + $0x390] sm:$0xff] %v418_v50  ;;  %421 = vst [vmem:[%s8205_s29 + $0x398] sm:$0xff] %v420_v51  ;;  %v424_v53 = vld [vmem:[%s8200_s28 + $0xe88] sm:$0xff] }
  0x50   : > { %423 = vst [vmem:[%s8205_s29 + $0x3a0] sm:$0xff] %v422_v52  ;;  %v426_v54 = vld [vmem:[%s8200_s28 + $0xec0] sm:$0xff]  ;;  %v428_v55 = vld [vmem:[%s8200_s28 + $0xec8] sm:$0xff]  ;;  %425 = vst [vmem:[%s8205_s29 + $0x3a8] sm:$0xff] %v424_v53 }
  0x51   : > { %427 = vst [vmem:[%s8205_s29 + $0x3b0] sm:$0xff] %v426_v54  ;;  %429 = vst [vmem:[%s8205_s29 + $0x3b8] sm:$0xff] %v428_v55  ;;  %v430_v56 = vld [vmem:[%s8200_s28 + $0xf00] sm:$0xff]  ;;  %v432_v57 = vld [vmem:[%s8200_s28 + $0xf08] sm:$0xff] }
  0x52   : > { %v434_v58 = vld [vmem:[%s8200_s28 + $0xf40] sm:$0xff]  ;;  %431 = vst [vmem:[%s8205_s29 + $0x3c0] sm:$0xff] %v430_v56  ;;  %433 = vst [vmem:[%s8205_s29 + $0x3c8] sm:$0xff] %v432_v57  ;;  %v436_v59 = vld [vmem:[%s8200_s28 + $0xf48] sm:$0xff] }
  0x53   : > { %435 = vst [vmem:[%s8205_s29 + $0x3d0] sm:$0xff] %v434_v58  ;;  %v438_v60 = vld [vmem:[%s8200_s28 + $0xf80] sm:$0xff]  ;;  %v440_v61 = vld [vmem:[%s8200_s28 + $0xf88] sm:$0xff]  ;;  %437 = vst [vmem:[%s8205_s29 + $0x3d8] sm:$0xff] %v436_v59 }
  0x54   : > { %439 = vst [vmem:[%s8205_s29 + $0x3e0] sm:$0xff] %v438_v60  ;;  %441 = vst [vmem:[%s8205_s29 + $0x3e8] sm:$0xff] %v440_v61  ;;  %v442_v62 = vld [vmem:[%s8200_s28 + $0xfc0] sm:$0xff]  ;;  %v444_v63 = vld [vmem:[%s8200_s28 + $0xfc8] sm:$0xff] }
  0x55   : > { %v446_v0 = vld [vmem:[%s8200_s28 + $0x1000] sm:$0xff]  ;;  %443 = vst [vmem:[%s8205_s29 + $0x3f0] sm:$0xff] %v442_v62  ;;  %445 = vst [vmem:[%s8205_s29 + $0x3f8] sm:$0xff] %v444_v63  ;;  %v448_v1 = vld [vmem:[%s8200_s28 + $0x1008] sm:$0xff] }
  0x56   : > { %447 = vst [vmem:[%s8205_s29 + $0x400] sm:$0xff] %v446_v0  ;;  %v450_v2 = vld [vmem:[%s8200_s28 + $0x1040] sm:$0xff]  ;;  %v452_v3 = vld [vmem:[%s8200_s28 + $0x1048] sm:$0xff]  ;;  %449 = vst [vmem:[%s8205_s29 + $0x408] sm:$0xff] %v448_v1 }
  0x57   : > { %451 = vst [vmem:[%s8205_s29 + $0x410] sm:$0xff] %v450_v2  ;;  %453 = vst [vmem:[%s8205_s29 + $0x418] sm:$0xff] %v452_v3  ;;  %v454_v4 = vld [vmem:[%s8200_s28 + $0x1080] sm:$0xff]  ;;  %v456_v5 = vld [vmem:[%s8200_s28 + $0x1088] sm:$0xff] }
  0x58   : > { %v458_v6 = vld [vmem:[%s8200_s28 + $0x10c0] sm:$0xff]  ;;  %455 = vst [vmem:[%s8205_s29 + $0x420] sm:$0xff] %v454_v4  ;;  %457 = vst [vmem:[%s8205_s29 + $0x428] sm:$0xff] %v456_v5  ;;  %v460_v7 = vld [vmem:[%s8200_s28 + $0x10c8] sm:$0xff] }
  0x59   : > { %459 = vst [vmem:[%s8205_s29 + $0x430] sm:$0xff] %v458_v6  ;;  %v462_v8 = vld [vmem:[%s8200_s28 + $0x1100] sm:$0xff]  ;;  %v464_v9 = vld [vmem:[%s8200_s28 + $0x1108] sm:$0xff]  ;;  %461 = vst [vmem:[%s8205_s29 + $0x438] sm:$0xff] %v460_v7 }
  0x5a   : > { %463 = vst [vmem:[%s8205_s29 + $0x440] sm:$0xff] %v462_v8  ;;  %465 = vst [vmem:[%s8205_s29 + $0x448] sm:$0xff] %v464_v9  ;;  %v466_v10 = vld [vmem:[%s8200_s28 + $0x1140] sm:$0xff]  ;;  %v468_v11 = vld [vmem:[%s8200_s28 + $0x1148] sm:$0xff] }
  0x5b   : > { %v470_v12 = vld [vmem:[%s8200_s28 + $0x1180] sm:$0xff]  ;;  %467 = vst [vmem:[%s8205_s29 + $0x450] sm:$0xff] %v466_v10  ;;  %469 = vst [vmem:[%s8205_s29 + $0x458] sm:$0xff] %v468_v11  ;;  %v472_v13 = vld [vmem:[%s8200_s28 + $0x1188] sm:$0xff] }
  0x5c   : > { %471 = vst [vmem:[%s8205_s29 + $0x460] sm:$0xff] %v470_v12  ;;  %v474_v14 = vld [vmem:[%s8200_s28 + $0x11c0] sm:$0xff]  ;;  %v476_v15 = vld [vmem:[%s8200_s28 + $0x11c8] sm:$0xff]  ;;  %473 = vst [vmem:[%s8205_s29 + $0x468] sm:$0xff] %v472_v13 }
  0x5d   : > { %475 = vst [vmem:[%s8205_s29 + $0x470] sm:$0xff] %v474_v14  ;;  %477 = vst [vmem:[%s8205_s29 + $0x478] sm:$0xff] %v476_v15  ;;  %v478_v16 = vld [vmem:[%s8200_s28 + $0x1200] sm:$0xff]  ;;  %v480_v17 = vld [vmem:[%s8200_s28 + $0x1208] sm:$0xff] }
  0x5e   : > { %v482_v18 = vld [vmem:[%s8200_s28 + $0x1240] sm:$0xff]  ;;  %479 = vst [vmem:[%s8205_s29 + $0x480] sm:$0xff] %v478_v16  ;;  %481 = vst [vmem:[%s8205_s29 + $0x488] sm:$0xff] %v480_v17  ;;  %v484_v19 = vld [vmem:[%s8200_s28 + $0x1248] sm:$0xff] }
  0x5f   : > { %483 = vst [vmem:[%s8205_s29 + $0x490] sm:$0xff] %v482_v18  ;;  %v486_v20 = vld [vmem:[%s8200_s28 + $0x1280] sm:$0xff]  ;;  %v488_v21 = vld [vmem:[%s8200_s28 + $0x1288] sm:$0xff]  ;;  %485 = vst [vmem:[%s8205_s29 + $0x498] sm:$0xff] %v484_v19 }
  0x60   : > { %487 = vst [vmem:[%s8205_s29 + $0x4a0] sm:$0xff] %v486_v20  ;;  %489 = vst [vmem:[%s8205_s29 + $0x4a8] sm:$0xff] %v488_v21  ;;  %v490_v22 = vld [vmem:[%s8200_s28 + $0x12c0] sm:$0xff]  ;;  %v492_v23 = vld [vmem:[%s8200_s28 + $0x12c8] sm:$0xff] }
  0x61   : > { %v494_v24 = vld [vmem:[%s8200_s28 + $0x1300] sm:$0xff]  ;;  %491 = vst [vmem:[%s8205_s29 + $0x4b0] sm:$0xff] %v490_v22  ;;  %493 = vst [vmem:[%s8205_s29 + $0x4b8] sm:$0xff] %v492_v23  ;;  %v496_v25 = vld [vmem:[%s8200_s28 + $0x1308] sm:$0xff] }
  0x62   : > { %495 = vst [vmem:[%s8205_s29 + $0x4c0] sm:$0xff] %v494_v24  ;;  %v498_v26 = vld [vmem:[%s8200_s28 + $0x1340] sm:$0xff]  ;;  %v500_v27 = vld [vmem:[%s8200_s28 + $0x1348] sm:$0xff]  ;;  %497 = vst [vmem:[%s8205_s29 + $0x4c8] sm:$0xff] %v496_v25 }
  0x63   : > { %499 = vst [vmem:[%s8205_s29 + $0x4d0] sm:$0xff] %v498_v26  ;;  %501 = vst [vmem:[%s8205_s29 + $0x4d8] sm:$0xff] %v500_v27  ;;  %v502_v28 = vld [vmem:[%s8200_s28 + $0x1380] sm:$0xff]  ;;  %v504_v29 = vld [vmem:[%s8200_s28 + $0x1388] sm:$0xff] }
  0x64   : > { %v506_v30 = vld [vmem:[%s8200_s28 + $0x13c0] sm:$0xff]  ;;  %503 = vst [vmem:[%s8205_s29 + $0x4e0] sm:$0xff] %v502_v28  ;;  %505 = vst [vmem:[%s8205_s29 + $0x4e8] sm:$0xff] %v504_v29  ;;  %v508_v31 = vld [vmem:[%s8200_s28 + $0x13c8] sm:$0xff] }
  0x65   : > { %507 = vst [vmem:[%s8205_s29 + $0x4f0] sm:$0xff] %v506_v30  ;;  %v510_v32 = vld [vmem:[%s8200_s28 + $0x1400] sm:$0xff]  ;;  %v512_v33 = vld [vmem:[%s8200_s28 + $0x1408] sm:$0xff]  ;;  %509 = vst [vmem:[%s8205_s29 + $0x4f8] sm:$0xff] %v508_v31 }
  0x66   : > { %511 = vst [vmem:[%s8205_s29 + $0x500] sm:$0xff] %v510_v32  ;;  %513 = vst [vmem:[%s8205_s29 + $0x508] sm:$0xff] %v512_v33  ;;  %v514_v34 = vld [vmem:[%s8200_s28 + $0x1440] sm:$0xff]  ;;  %v516_v35 = vld [vmem:[%s8200_s28 + $0x1448] sm:$0xff] }
  0x67   : > { %v518_v36 = vld [vmem:[%s8200_s28 + $0x1480] sm:$0xff]  ;;  %515 = vst [vmem:[%s8205_s29 + $0x510] sm:$0xff] %v514_v34  ;;  %517 = vst [vmem:[%s8205_s29 + $0x518] sm:$0xff] %v516_v35  ;;  %v520_v37 = vld [vmem:[%s8200_s28 + $0x1488] sm:$0xff] }
  0x68   : > { %519 = vst [vmem:[%s8205_s29 + $0x520] sm:$0xff] %v518_v36  ;;  %v522_v38 = vld [vmem:[%s8200_s28 + $0x14c0] sm:$0xff]  ;;  %v524_v39 = vld [vmem:[%s8200_s28 + $0x14c8] sm:$0xff]  ;;  %521 = vst [vmem:[%s8205_s29 + $0x528] sm:$0xff] %v520_v37 }
  0x69   : > { %523 = vst [vmem:[%s8205_s29 + $0x530] sm:$0xff] %v522_v38  ;;  %525 = vst [vmem:[%s8205_s29 + $0x538] sm:$0xff] %v524_v39  ;;  %v526_v40 = vld [vmem:[%s8200_s28 + $0x1500] sm:$0xff]  ;;  %v528_v41 = vld [vmem:[%s8200_s28 + $0x1508] sm:$0xff] }
  0x6a   : > { %v530_v42 = vld [vmem:[%s8200_s28 + $0x1540] sm:$0xff]  ;;  %527 = vst [vmem:[%s8205_s29 + $0x540] sm:$0xff] %v526_v40  ;;  %529 = vst [vmem:[%s8205_s29 + $0x548] sm:$0xff] %v528_v41  ;;  %v532_v43 = vld [vmem:[%s8200_s28 + $0x1548] sm:$0xff] }
  0x6b   : > { %531 = vst [vmem:[%s8205_s29 + $0x550] sm:$0xff] %v530_v42  ;;  %v534_v44 = vld [vmem:[%s8200_s28 + $0x1580] sm:$0xff]  ;;  %v536_v45 = vld [vmem:[%s8200_s28 + $0x1588] sm:$0xff]  ;;  %533 = vst [vmem:[%s8205_s29 + $0x558] sm:$0xff] %v532_v43 }
  0x6c   : > { %535 = vst [vmem:[%s8205_s29 + $0x560] sm:$0xff] %v534_v44  ;;  %537 = vst [vmem:[%s8205_s29 + $0x568] sm:$0xff] %v536_v45  ;;  %v538_v46 = vld [vmem:[%s8200_s28 + $0x15c0] sm:$0xff]  ;;  %v540_v47 = vld [vmem:[%s8200_s28 + $0x15c8] sm:$0xff] }
  0x6d   : > { %v542_v48 = vld [vmem:[%s8200_s28 + $0x1600] sm:$0xff]  ;;  %539 = vst [vmem:[%s8205_s29 + $0x570] sm:$0xff] %v538_v46  ;;  %541 = vst [vmem:[%s8205_s29 + $0x578] sm:$0xff] %v540_v47  ;;  %v544_v49 = vld [vmem:[%s8200_s28 + $0x1608] sm:$0xff] }
  0x6e   : > { %543 = vst [vmem:[%s8205_s29 + $0x580] sm:$0xff] %v542_v48  ;;  %v546_v50 = vld [vmem:[%s8200_s28 + $0x1640] sm:$0xff]  ;;  %v548_v51 = vld [vmem:[%s8200_s28 + $0x1648] sm:$0xff]  ;;  %545 = vst [vmem:[%s8205_s29 + $0x588] sm:$0xff] %v544_v49 }
  0x6f   : > { %547 = vst [vmem:[%s8205_s29 + $0x590] sm:$0xff] %v546_v50  ;;  %549 = vst [vmem:[%s8205_s29 + $0x598] sm:$0xff] %v548_v51  ;;  %v550_v52 = vld [vmem:[%s8200_s28 + $0x1680] sm:$0xff]  ;;  %v552_v53 = vld [vmem:[%s8200_s28 + $0x1688] sm:$0xff] }
  0x70   : > { %v554_v54 = vld [vmem:[%s8200_s28 + $0x16c0] sm:$0xff]  ;;  %551 = vst [vmem:[%s8205_s29 + $0x5a0] sm:$0xff] %v550_v52  ;;  %553 = vst [vmem:[%s8205_s29 + $0x5a8] sm:$0xff] %v552_v53  ;;  %v556_v55 = vld [vmem:[%s8200_s28 + $0x16c8] sm:$0xff] }
  0x71   : > { %555 = vst [vmem:[%s8205_s29 + $0x5b0] sm:$0xff] %v554_v54  ;;  %v558_v56 = vld [vmem:[%s8200_s28 + $0x1700] sm:$0xff]  ;;  %v560_v57 = vld [vmem:[%s8200_s28 + $0x1708] sm:$0xff]  ;;  %557 = vst [vmem:[%s8205_s29 + $0x5b8] sm:$0xff] %v556_v55 }
  0x72   : > { %559 = vst [vmem:[%s8205_s29 + $0x5c0] sm:$0xff] %v558_v56  ;;  %561 = vst [vmem:[%s8205_s29 + $0x5c8] sm:$0xff] %v560_v57  ;;  %v562_v58 = vld [vmem:[%s8200_s28 + $0x1740] sm:$0xff]  ;;  %v564_v59 = vld [vmem:[%s8200_s28 + $0x1748] sm:$0xff] }
  0x73   : > { %v566_v60 = vld [vmem:[%s8200_s28 + $0x1780] sm:$0xff]  ;;  %563 = vst [vmem:[%s8205_s29 + $0x5d0] sm:$0xff] %v562_v58  ;;  %565 = vst [vmem:[%s8205_s29 + $0x5d8] sm:$0xff] %v564_v59  ;;  %v568_v61 = vld [vmem:[%s8200_s28 + $0x1788] sm:$0xff] }
  0x74   : > { %567 = vst [vmem:[%s8205_s29 + $0x5e0] sm:$0xff] %v566_v60  ;;  %v570_v62 = vld [vmem:[%s8200_s28 + $0x17c0] sm:$0xff]  ;;  %v572_v63 = vld [vmem:[%s8200_s28 + $0x17c8] sm:$0xff]  ;;  %569 = vst [vmem:[%s8205_s29 + $0x5e8] sm:$0xff] %v568_v61 }
  0x75   : > { %571 = vst [vmem:[%s8205_s29 + $0x5f0] sm:$0xff] %v570_v62  ;;  %573 = vst [vmem:[%s8205_s29 + $0x5f8] sm:$0xff] %v572_v63  ;;  %v574_v0 = vld [vmem:[%s8200_s28 + $0x1800] sm:$0xff]  ;;  %v576_v1 = vld [vmem:[%s8200_s28 + $0x1808] sm:$0xff] }
  0x76   : > { %v578_v2 = vld [vmem:[%s8200_s28 + $0x1840] sm:$0xff]  ;;  %575 = vst [vmem:[%s8205_s29 + $0x600] sm:$0xff] %v574_v0  ;;  %577 = vst [vmem:[%s8205_s29 + $0x608] sm:$0xff] %v576_v1  ;;  %v580_v3 = vld [vmem:[%s8200_s28 + $0x1848] sm:$0xff] }
  0x77   : > { %579 = vst [vmem:[%s8205_s29 + $0x610] sm:$0xff] %v578_v2  ;;  %v582_v4 = vld [vmem:[%s8200_s28 + $0x1880] sm:$0xff]  ;;  %v584_v5 = vld [vmem:[%s8200_s28 + $0x1888] sm:$0xff]  ;;  %581 = vst [vmem:[%s8205_s29 + $0x618] sm:$0xff] %v580_v3 }
  0x78   : > { %583 = vst [vmem:[%s8205_s29 + $0x620] sm:$0xff] %v582_v4  ;;  %585 = vst [vmem:[%s8205_s29 + $0x628] sm:$0xff] %v584_v5  ;;  %v586_v6 = vld [vmem:[%s8200_s28 + $0x18c0] sm:$0xff]  ;;  %v588_v7 = vld [vmem:[%s8200_s28 + $0x18c8] sm:$0xff] }
  0x79   : > { %v590_v8 = vld [vmem:[%s8200_s28 + $0x1900] sm:$0xff]  ;;  %587 = vst [vmem:[%s8205_s29 + $0x630] sm:$0xff] %v586_v6  ;;  %589 = vst [vmem:[%s8205_s29 + $0x638] sm:$0xff] %v588_v7  ;;  %v592_v9 = vld [vmem:[%s8200_s28 + $0x1908] sm:$0xff] }
  0x7a   : > { %591 = vst [vmem:[%s8205_s29 + $0x640] sm:$0xff] %v590_v8  ;;  %v594_v10 = vld [vmem:[%s8200_s28 + $0x1940] sm:$0xff]  ;;  %v596_v11 = vld [vmem:[%s8200_s28 + $0x1948] sm:$0xff]  ;;  %593 = vst [vmem:[%s8205_s29 + $0x648] sm:$0xff] %v592_v9 }
  0x7b   : > { %595 = vst [vmem:[%s8205_s29 + $0x650] sm:$0xff] %v594_v10  ;;  %597 = vst [vmem:[%s8205_s29 + $0x658] sm:$0xff] %v596_v11  ;;  %v598_v12 = vld [vmem:[%s8200_s28 + $0x1980] sm:$0xff]  ;;  %v600_v13 = vld [vmem:[%s8200_s28 + $0x1988] sm:$0xff] }
  0x7c   : > { %v602_v14 = vld [vmem:[%s8200_s28 + $0x19c0] sm:$0xff]  ;;  %599 = vst [vmem:[%s8205_s29 + $0x660] sm:$0xff] %v598_v12  ;;  %601 = vst [vmem:[%s8205_s29 + $0x668] sm:$0xff] %v600_v13  ;;  %v604_v15 = vld [vmem:[%s8200_s28 + $0x19c8] sm:$0xff] }
  0x7d   : > { %603 = vst [vmem:[%s8205_s29 + $0x670] sm:$0xff] %v602_v14  ;;  %v606_v16 = vld [vmem:[%s8200_s28 + $0x1a00] sm:$0xff]  ;;  %v608_v17 = vld [vmem:[%s8200_s28 + $0x1a08] sm:$0xff]  ;;  %605 = vst [vmem:[%s8205_s29 + $0x678] sm:$0xff] %v604_v15 }
  0x7e   : > { %607 = vst [vmem:[%s8205_s29 + $0x680] sm:$0xff] %v606_v16  ;;  %609 = vst [vmem:[%s8205_s29 + $0x688] sm:$0xff] %v608_v17  ;;  %v610_v18 = vld [vmem:[%s8200_s28 + $0x1a40] sm:$0xff]  ;;  %v612_v19 = vld [vmem:[%s8200_s28 + $0x1a48] sm:$0xff] }
  0x7f   : > { %v614_v20 = vld [vmem:[%s8200_s28 + $0x1a80] sm:$0xff]  ;;  %611 = vst [vmem:[%s8205_s29 + $0x690] sm:$0xff] %v610_v18  ;;  %613 = vst [vmem:[%s8205_s29 + $0x698] sm:$0xff] %v612_v19  ;;  %v616_v21 = vld [vmem:[%s8200_s28 + $0x1a88] sm:$0xff] }
  0x80   : > { %615 = vst [vmem:[%s8205_s29 + $0x6a0] sm:$0xff] %v614_v20  ;;  %v618_v22 = vld [vmem:[%s8200_s28 + $0x1ac0] sm:$0xff]  ;;  %v620_v23 = vld [vmem:[%s8200_s28 + $0x1ac8] sm:$0xff]  ;;  %617 = vst [vmem:[%s8205_s29 + $0x6a8] sm:$0xff] %v616_v21 }
  0x81   : > { %619 = vst [vmem:[%s8205_s29 + $0x6b0] sm:$0xff] %v618_v22  ;;  %621 = vst [vmem:[%s8205_s29 + $0x6b8] sm:$0xff] %v620_v23  ;;  %v622_v24 = vld [vmem:[%s8200_s28 + $0x1b00] sm:$0xff]  ;;  %v624_v25 = vld [vmem:[%s8200_s28 + $0x1b08] sm:$0xff] }
  0x82   : > { %v626_v26 = vld [vmem:[%s8200_s28 + $0x1b40] sm:$0xff]  ;;  %623 = vst [vmem:[%s8205_s29 + $0x6c0] sm:$0xff] %v622_v24  ;;  %625 = vst [vmem:[%s8205_s29 + $0x6c8] sm:$0xff] %v624_v25  ;;  %v628_v27 = vld [vmem:[%s8200_s28 + $0x1b48] sm:$0xff] }
  0x83   : > { %627 = vst [vmem:[%s8205_s29 + $0x6d0] sm:$0xff] %v626_v26  ;;  %v630_v28 = vld [vmem:[%s8200_s28 + $0x1b80] sm:$0xff]  ;;  %v632_v29 = vld [vmem:[%s8200_s28 + $0x1b88] sm:$0xff]  ;;  %629 = vst [vmem:[%s8205_s29 + $0x6d8] sm:$0xff] %v628_v27 }
  0x84   : > { %631 = vst [vmem:[%s8205_s29 + $0x6e0] sm:$0xff] %v630_v28  ;;  %633 = vst [vmem:[%s8205_s29 + $0x6e8] sm:$0xff] %v632_v29  ;;  %v634_v30 = vld [vmem:[%s8200_s28 + $0x1bc0] sm:$0xff]  ;;  %v636_v31 = vld [vmem:[%s8200_s28 + $0x1bc8] sm:$0xff] }
  0x85   : > { %v638_v32 = vld [vmem:[%s8200_s28 + $0x1c00] sm:$0xff]  ;;  %635 = vst [vmem:[%s8205_s29 + $0x6f0] sm:$0xff] %v634_v30  ;;  %637 = vst [vmem:[%s8205_s29 + $0x6f8] sm:$0xff] %v636_v31  ;;  %v640_v33 = vld [vmem:[%s8200_s28 + $0x1c08] sm:$0xff] }
  0x86   : > { %639 = vst [vmem:[%s8205_s29 + $0x700] sm:$0xff] %v638_v32  ;;  %v642_v34 = vld [vmem:[%s8200_s28 + $0x1c40] sm:$0xff]  ;;  %v644_v35 = vld [vmem:[%s8200_s28 + $0x1c48] sm:$0xff]  ;;  %641 = vst [vmem:[%s8205_s29 + $0x708] sm:$0xff] %v640_v33 }
  0x87   : > { %643 = vst [vmem:[%s8205_s29 + $0x710] sm:$0xff] %v642_v34  ;;  %645 = vst [vmem:[%s8205_s29 + $0x718] sm:$0xff] %v644_v35  ;;  %v646_v36 = vld [vmem:[%s8200_s28 + $0x1c80] sm:$0xff]  ;;  %v648_v37 = vld [vmem:[%s8200_s28 + $0x1c88] sm:$0xff] }
  0x88   : > { %v650_v38 = vld [vmem:[%s8200_s28 + $0x1cc0] sm:$0xff]  ;;  %647 = vst [vmem:[%s8205_s29 + $0x720] sm:$0xff] %v646_v36  ;;  %649 = vst [vmem:[%s8205_s29 + $0x728] sm:$0xff] %v648_v37  ;;  %v652_v39 = vld [vmem:[%s8200_s28 + $0x1cc8] sm:$0xff] }
  0x89   : > { %651 = vst [vmem:[%s8205_s29 + $0x730] sm:$0xff] %v650_v38  ;;  %v654_v40 = vld [vmem:[%s8200_s28 + $0x1d00] sm:$0xff]  ;;  %v656_v41 = vld [vmem:[%s8200_s28 + $0x1d08] sm:$0xff]  ;;  %653 = vst [vmem:[%s8205_s29 + $0x738] sm:$0xff] %v652_v39 }
  0x8a   : > { %655 = vst [vmem:[%s8205_s29 + $0x740] sm:$0xff] %v654_v40  ;;  %657 = vst [vmem:[%s8205_s29 + $0x748] sm:$0xff] %v656_v41  ;;  %v658_v42 = vld [vmem:[%s8200_s28 + $0x1d40] sm:$0xff]  ;;  %v660_v43 = vld [vmem:[%s8200_s28 + $0x1d48] sm:$0xff] }
  0x8b   : > { %v662_v44 = vld [vmem:[%s8200_s28 + $0x1d80] sm:$0xff]  ;;  %659 = vst [vmem:[%s8205_s29 + $0x750] sm:$0xff] %v658_v42  ;;  %661 = vst [vmem:[%s8205_s29 + $0x758] sm:$0xff] %v660_v43  ;;  %v664_v45 = vld [vmem:[%s8200_s28 + $0x1d88] sm:$0xff] }
  0x8c   : > { %663 = vst [vmem:[%s8205_s29 + $0x760] sm:$0xff] %v662_v44  ;;  %v666_v46 = vld [vmem:[%s8200_s28 + $0x1dc0] sm:$0xff]  ;;  %v668_v47 = vld [vmem:[%s8200_s28 + $0x1dc8] sm:$0xff]  ;;  %665 = vst [vmem:[%s8205_s29 + $0x768] sm:$0xff] %v664_v45 }
  0x8d   : > { %667 = vst [vmem:[%s8205_s29 + $0x770] sm:$0xff] %v666_v46  ;;  %669 = vst [vmem:[%s8205_s29 + $0x778] sm:$0xff] %v668_v47  ;;  %v670_v48 = vld [vmem:[%s8200_s28 + $0x1e00] sm:$0xff]  ;;  %v672_v49 = vld [vmem:[%s8200_s28 + $0x1e08] sm:$0xff] }
  0x8e   : > { %v674_v50 = vld [vmem:[%s8200_s28 + $0x1e40] sm:$0xff]  ;;  %671 = vst [vmem:[%s8205_s29 + $0x780] sm:$0xff] %v670_v48  ;;  %673 = vst [vmem:[%s8205_s29 + $0x788] sm:$0xff] %v672_v49  ;;  %v676_v51 = vld [vmem:[%s8200_s28 + $0x1e48] sm:$0xff] }
  0x8f   : > { %675 = vst [vmem:[%s8205_s29 + $0x790] sm:$0xff] %v674_v50  ;;  %v678_v52 = vld [vmem:[%s8200_s28 + $0x1e80] sm:$0xff]  ;;  %v680_v53 = vld [vmem:[%s8200_s28 + $0x1e88] sm:$0xff]  ;;  %677 = vst [vmem:[%s8205_s29 + $0x798] sm:$0xff] %v676_v51 }
  0x90   : > { %679 = vst [vmem:[%s8205_s29 + $0x7a0] sm:$0xff] %v678_v52  ;;  %681 = vst [vmem:[%s8205_s29 + $0x7a8] sm:$0xff] %v680_v53  ;;  %v682_v54 = vld [vmem:[%s8200_s28 + $0x1ec0] sm:$0xff]  ;;  %v684_v55 = vld [vmem:[%s8200_s28 + $0x1ec8] sm:$0xff] }
  0x91   : > { %v686_v56 = vld [vmem:[%s8200_s28 + $0x1f00] sm:$0xff]  ;;  %683 = vst [vmem:[%s8205_s29 + $0x7b0] sm:$0xff] %v682_v54  ;;  %685 = vst [vmem:[%s8205_s29 + $0x7b8] sm:$0xff] %v684_v55  ;;  %v688_v57 = vld [vmem:[%s8200_s28 + $0x1f08] sm:$0xff] }
  0x92   : > { %687 = vst [vmem:[%s8205_s29 + $0x7c0] sm:$0xff] %v686_v56  ;;  %v690_v58 = vld [vmem:[%s8200_s28 + $0x1f40] sm:$0xff]  ;;  %v692_v59 = vld [vmem:[%s8200_s28 + $0x1f48] sm:$0xff]  ;;  %689 = vst [vmem:[%s8205_s29 + $0x7c8] sm:$0xff] %v688_v57 }
  0x93   : > { %691 = vst [vmem:[%s8205_s29 + $0x7d0] sm:$0xff] %v690_v58  ;;  %693 = vst [vmem:[%s8205_s29 + $0x7d8] sm:$0xff] %v692_v59  ;;  %v694_v60 = vld [vmem:[%s8200_s28 + $0x1f80] sm:$0xff]  ;;  %v696_v61 = vld [vmem:[%s8200_s28 + $0x1f88] sm:$0xff] }
  0x94   : > { %v698_v62 = vld [vmem:[%s8200_s28 + $0x1fc0] sm:$0xff]  ;;  %695 = vst [vmem:[%s8205_s29 + $0x7e0] sm:$0xff] %v694_v60  ;;  %697 = vst [vmem:[%s8205_s29 + $0x7e8] sm:$0xff] %v696_v61  ;;  %v700_v63 = vld [vmem:[%s8200_s28 + $0x1fc8] sm:$0xff] }
  0x95   : > { %699 = vst [vmem:[%s8205_s29 + $0x7f0] sm:$0xff] %v698_v62  ;;  %v702_v0 = vld [vmem:[%s8200_s28 + $0x2000] sm:$0xff]  ;;  %v704_v1 = vld [vmem:[%s8200_s28 + $0x2008] sm:$0xff]  ;;  %701 = vst [vmem:[%s8205_s29 + $0x7f8] sm:$0xff] %v700_v63 }
  0x96   : > { %703 = vst [vmem:[%s8205_s29 + $0x800] sm:$0xff] %v702_v0  ;;  %705 = vst [vmem:[%s8205_s29 + $0x808] sm:$0xff] %v704_v1  ;;  %v706_v2 = vld [vmem:[%s8200_s28 + $0x2040] sm:$0xff]  ;;  %v708_v3 = vld [vmem:[%s8200_s28 + $0x2048] sm:$0xff] }
  0x97   : > { %v710_v4 = vld [vmem:[%s8200_s28 + $0x2080] sm:$0xff]  ;;  %707 = vst [vmem:[%s8205_s29 + $0x810] sm:$0xff] %v706_v2  ;;  %709 = vst [vmem:[%s8205_s29 + $0x818] sm:$0xff] %v708_v3  ;;  %v712_v5 = vld [vmem:[%s8200_s28 + $0x2088] sm:$0xff] }
  0x98   : > { %711 = vst [vmem:[%s8205_s29 + $0x820] sm:$0xff] %v710_v4  ;;  %v714_v6 = vld [vmem:[%s8200_s28 + $0x20c0] sm:$0xff]  ;;  %v716_v7 = vld [vmem:[%s8200_s28 + $0x20c8] sm:$0xff]  ;;  %713 = vst [vmem:[%s8205_s29 + $0x828] sm:$0xff] %v712_v5 }
  0x99   : > { %715 = vst [vmem:[%s8205_s29 + $0x830] sm:$0xff] %v714_v6  ;;  %717 = vst [vmem:[%s8205_s29 + $0x838] sm:$0xff] %v716_v7  ;;  %v718_v8 = vld [vmem:[%s8200_s28 + $0x2100] sm:$0xff]  ;;  %v720_v9 = vld [vmem:[%s8200_s28 + $0x2108] sm:$0xff] }
  0x9a   : > { %v722_v10 = vld [vmem:[%s8200_s28 + $0x2140] sm:$0xff]  ;;  %719 = vst [vmem:[%s8205_s29 + $0x840] sm:$0xff] %v718_v8  ;;  %721 = vst [vmem:[%s8205_s29 + $0x848] sm:$0xff] %v720_v9  ;;  %v724_v11 = vld [vmem:[%s8200_s28 + $0x2148] sm:$0xff] }
  0x9b   : > { %723 = vst [vmem:[%s8205_s29 + $0x850] sm:$0xff] %v722_v10  ;;  %v726_v12 = vld [vmem:[%s8200_s28 + $0x2180] sm:$0xff]  ;;  %v728_v13 = vld [vmem:[%s8200_s28 + $0x2188] sm:$0xff]  ;;  %725 = vst [vmem:[%s8205_s29 + $0x858] sm:$0xff] %v724_v11 }
  0x9c   : > { %727 = vst [vmem:[%s8205_s29 + $0x860] sm:$0xff] %v726_v12  ;;  %729 = vst [vmem:[%s8205_s29 + $0x868] sm:$0xff] %v728_v13  ;;  %v730_v14 = vld [vmem:[%s8200_s28 + $0x21c0] sm:$0xff]  ;;  %v732_v15 = vld [vmem:[%s8200_s28 + $0x21c8] sm:$0xff] }
  0x9d   : > { %v734_v16 = vld [vmem:[%s8200_s28 + $0x2200] sm:$0xff]  ;;  %731 = vst [vmem:[%s8205_s29 + $0x870] sm:$0xff] %v730_v14  ;;  %733 = vst [vmem:[%s8205_s29 + $0x878] sm:$0xff] %v732_v15  ;;  %v736_v17 = vld [vmem:[%s8200_s28 + $0x2208] sm:$0xff] }
  0x9e   : > { %735 = vst [vmem:[%s8205_s29 + $0x880] sm:$0xff] %v734_v16  ;;  %v738_v18 = vld [vmem:[%s8200_s28 + $0x2240] sm:$0xff]  ;;  %v740_v19 = vld [vmem:[%s8200_s28 + $0x2248] sm:$0xff]  ;;  %737 = vst [vmem:[%s8205_s29 + $0x888] sm:$0xff] %v736_v17 }
  0x9f   : > { %739 = vst [vmem:[%s8205_s29 + $0x890] sm:$0xff] %v738_v18  ;;  %741 = vst [vmem:[%s8205_s29 + $0x898] sm:$0xff] %v740_v19  ;;  %v742_v20 = vld [vmem:[%s8200_s28 + $0x2280] sm:$0xff]  ;;  %v744_v21 = vld [vmem:[%s8200_s28 + $0x2288] sm:$0xff] }
  0xa0   : > { %v746_v22 = vld [vmem:[%s8200_s28 + $0x22c0] sm:$0xff]  ;;  %743 = vst [vmem:[%s8205_s29 + $0x8a0] sm:$0xff] %v742_v20  ;;  %745 = vst [vmem:[%s8205_s29 + $0x8a8] sm:$0xff] %v744_v21  ;;  %v748_v23 = vld [vmem:[%s8200_s28 + $0x22c8] sm:$0xff] }
  0xa1   : > { %747 = vst [vmem:[%s8205_s29 + $0x8b0] sm:$0xff] %v746_v22  ;;  %v750_v24 = vld [vmem:[%s8200_s28 + $0x2300] sm:$0xff]  ;;  %v752_v25 = vld [vmem:[%s8200_s28 + $0x2308] sm:$0xff]  ;;  %749 = vst [vmem:[%s8205_s29 + $0x8b8] sm:$0xff] %v748_v23 }
  0xa2   : > { %751 = vst [vmem:[%s8205_s29 + $0x8c0] sm:$0xff] %v750_v24  ;;  %753 = vst [vmem:[%s8205_s29 + $0x8c8] sm:$0xff] %v752_v25  ;;  %v754_v26 = vld [vmem:[%s8200_s28 + $0x2340] sm:$0xff]  ;;  %v756_v27 = vld [vmem:[%s8200_s28 + $0x2348] sm:$0xff] }
  0xa3   : > { %v758_v28 = vld [vmem:[%s8200_s28 + $0x2380] sm:$0xff]  ;;  %755 = vst [vmem:[%s8205_s29 + $0x8d0] sm:$0xff] %v754_v26  ;;  %757 = vst [vmem:[%s8205_s29 + $0x8d8] sm:$0xff] %v756_v27  ;;  %v760_v29 = vld [vmem:[%s8200_s28 + $0x2388] sm:$0xff] }
  0xa4   : > { %759 = vst [vmem:[%s8205_s29 + $0x8e0] sm:$0xff] %v758_v28  ;;  %v762_v30 = vld [vmem:[%s8200_s28 + $0x23c0] sm:$0xff]  ;;  %v764_v31 = vld [vmem:[%s8200_s28 + $0x23c8] sm:$0xff]  ;;  %761 = vst [vmem:[%s8205_s29 + $0x8e8] sm:$0xff] %v760_v29 }
  0xa5   : > { %763 = vst [vmem:[%s8205_s29 + $0x8f0] sm:$0xff] %v762_v30  ;;  %765 = vst [vmem:[%s8205_s29 + $0x8f8] sm:$0xff] %v764_v31  ;;  %v766_v32 = vld [vmem:[%s8200_s28 + $0x2400] sm:$0xff]  ;;  %v768_v33 = vld [vmem:[%s8200_s28 + $0x2408] sm:$0xff] }
  0xa6   : > { %v770_v34 = vld [vmem:[%s8200_s28 + $0x2440] sm:$0xff]  ;;  %767 = vst [vmem:[%s8205_s29 + $0x900] sm:$0xff] %v766_v32  ;;  %769 = vst [vmem:[%s8205_s29 + $0x908] sm:$0xff] %v768_v33  ;;  %v772_v35 = vld [vmem:[%s8200_s28 + $0x2448] sm:$0xff] }
  0xa7   : > { %771 = vst [vmem:[%s8205_s29 + $0x910] sm:$0xff] %v770_v34  ;;  %v774_v36 = vld [vmem:[%s8200_s28 + $0x2480] sm:$0xff]  ;;  %v776_v37 = vld [vmem:[%s8200_s28 + $0x2488] sm:$0xff]  ;;  %773 = vst [vmem:[%s8205_s29 + $0x918] sm:$0xff] %v772_v35 }
  0xa8   : > { %775 = vst [vmem:[%s8205_s29 + $0x920] sm:$0xff] %v774_v36  ;;  %777 = vst [vmem:[%s8205_s29 + $0x928] sm:$0xff] %v776_v37  ;;  %v778_v38 = vld [vmem:[%s8200_s28 + $0x24c0] sm:$0xff]  ;;  %v780_v39 = vld [vmem:[%s8200_s28 + $0x24c8] sm:$0xff] }
  0xa9   : > { %v782_v40 = vld [vmem:[%s8200_s28 + $0x2500] sm:$0xff]  ;;  %779 = vst [vmem:[%s8205_s29 + $0x930] sm:$0xff] %v778_v38  ;;  %781 = vst [vmem:[%s8205_s29 + $0x938] sm:$0xff] %v780_v39  ;;  %v784_v41 = vld [vmem:[%s8200_s28 + $0x2508] sm:$0xff] }
  0xaa   : > { %783 = vst [vmem:[%s8205_s29 + $0x940] sm:$0xff] %v782_v40  ;;  %v786_v42 = vld [vmem:[%s8200_s28 + $0x2540] sm:$0xff]  ;;  %v788_v43 = vld [vmem:[%s8200_s28 + $0x2548] sm:$0xff]  ;;  %785 = vst [vmem:[%s8205_s29 + $0x948] sm:$0xff] %v784_v41 }
  0xab   : > { %787 = vst [vmem:[%s8205_s29 + $0x950] sm:$0xff] %v786_v42  ;;  %789 = vst [vmem:[%s8205_s29 + $0x958] sm:$0xff] %v788_v43  ;;  %v790_v44 = vld [vmem:[%s8200_s28 + $0x2580] sm:$0xff]  ;;  %v792_v45 = vld [vmem:[%s8200_s28 + $0x2588] sm:$0xff] }
  0xac   : > { %v794_v46 = vld [vmem:[%s8200_s28 + $0x25c0] sm:$0xff]  ;;  %791 = vst [vmem:[%s8205_s29 + $0x960] sm:$0xff] %v790_v44  ;;  %793 = vst [vmem:[%s8205_s29 + $0x968] sm:$0xff] %v792_v45  ;;  %v796_v47 = vld [vmem:[%s8200_s28 + $0x25c8] sm:$0xff] }
  0xad   : > { %795 = vst [vmem:[%s8205_s29 + $0x970] sm:$0xff] %v794_v46  ;;  %v798_v48 = vld [vmem:[%s8200_s28 + $0x2600] sm:$0xff]  ;;  %v800_v49 = vld [vmem:[%s8200_s28 + $0x2608] sm:$0xff]  ;;  %797 = vst [vmem:[%s8205_s29 + $0x978] sm:$0xff] %v796_v47 }
  0xae   : > { %799 = vst [vmem:[%s8205_s29 + $0x980] sm:$0xff] %v798_v48  ;;  %801 = vst [vmem:[%s8205_s29 + $0x988] sm:$0xff] %v800_v49  ;;  %v802_v50 = vld [vmem:[%s8200_s28 + $0x2640] sm:$0xff]  ;;  %v804_v51 = vld [vmem:[%s8200_s28 + $0x2648] sm:$0xff] }
  0xaf   : > { %v806_v52 = vld [vmem:[%s8200_s28 + $0x2680] sm:$0xff]  ;;  %803 = vst [vmem:[%s8205_s29 + $0x990] sm:$0xff] %v802_v50  ;;  %805 = vst [vmem:[%s8205_s29 + $0x998] sm:$0xff] %v804_v51  ;;  %v808_v53 = vld [vmem:[%s8200_s28 + $0x2688] sm:$0xff] }
  0xb0   : > { %807 = vst [vmem:[%s8205_s29 + $0x9a0] sm:$0xff] %v806_v52  ;;  %v810_v54 = vld [vmem:[%s8200_s28 + $0x26c0] sm:$0xff]  ;;  %v812_v55 = vld [vmem:[%s8200_s28 + $0x26c8] sm:$0xff]  ;;  %809 = vst [vmem:[%s8205_s29 + $0x9a8] sm:$0xff] %v808_v53 }
  0xb1   : > { %811 = vst [vmem:[%s8205_s29 + $0x9b0] sm:$0xff] %v810_v54  ;;  %813 = vst [vmem:[%s8205_s29 + $0x9b8] sm:$0xff] %v812_v55  ;;  %v814_v56 = vld [vmem:[%s8200_s28 + $0x2700] sm:$0xff]  ;;  %v816_v57 = vld [vmem:[%s8200_s28 + $0x2708] sm:$0xff] }
  0xb2   : > { %v818_v58 = vld [vmem:[%s8200_s28 + $0x2740] sm:$0xff]  ;;  %815 = vst [vmem:[%s8205_s29 + $0x9c0] sm:$0xff] %v814_v56  ;;  %817 = vst [vmem:[%s8205_s29 + $0x9c8] sm:$0xff] %v816_v57  ;;  %v820_v59 = vld [vmem:[%s8200_s28 + $0x2748] sm:$0xff] }
  0xb3   : > { %819 = vst [vmem:[%s8205_s29 + $0x9d0] sm:$0xff] %v818_v58  ;;  %v822_v60 = vld [vmem:[%s8200_s28 + $0x2780] sm:$0xff]  ;;  %v824_v61 = vld [vmem:[%s8200_s28 + $0x2788] sm:$0xff]  ;;  %821 = vst [vmem:[%s8205_s29 + $0x9d8] sm:$0xff] %v820_v59 }
  0xb4   : > { %823 = vst [vmem:[%s8205_s29 + $0x9e0] sm:$0xff] %v822_v60  ;;  %825 = vst [vmem:[%s8205_s29 + $0x9e8] sm:$0xff] %v824_v61  ;;  %v826_v62 = vld [vmem:[%s8200_s28 + $0x27c0] sm:$0xff]  ;;  %v828_v63 = vld [vmem:[%s8200_s28 + $0x27c8] sm:$0xff] }
  0xb5   : > { %v830_v0 = vld [vmem:[%s8200_s28 + $0x2800] sm:$0xff]  ;;  %827 = vst [vmem:[%s8205_s29 + $0x9f0] sm:$0xff] %v826_v62  ;;  %829 = vst [vmem:[%s8205_s29 + $0x9f8] sm:$0xff] %v828_v63  ;;  %v832_v1 = vld [vmem:[%s8200_s28 + $0x2808] sm:$0xff] }
  0xb6   : > { %831 = vst [vmem:[%s8205_s29 + $0xa00] sm:$0xff] %v830_v0  ;;  %v834_v2 = vld [vmem:[%s8200_s28 + $0x2840] sm:$0xff]  ;;  %v836_v3 = vld [vmem:[%s8200_s28 + $0x2848] sm:$0xff]  ;;  %833 = vst [vmem:[%s8205_s29 + $0xa08] sm:$0xff] %v832_v1 }
  0xb7   : > { %835 = vst [vmem:[%s8205_s29 + $0xa10] sm:$0xff] %v834_v2  ;;  %837 = vst [vmem:[%s8205_s29 + $0xa18] sm:$0xff] %v836_v3  ;;  %v838_v4 = vld [vmem:[%s8200_s28 + $0x2880] sm:$0xff]  ;;  %v840_v5 = vld [vmem:[%s8200_s28 + $0x2888] sm:$0xff] }
  0xb8   : > { %v842_v6 = vld [vmem:[%s8200_s28 + $0x28c0] sm:$0xff]  ;;  %839 = vst [vmem:[%s8205_s29 + $0xa20] sm:$0xff] %v838_v4  ;;  %841 = vst [vmem:[%s8205_s29 + $0xa28] sm:$0xff] %v840_v5  ;;  %v844_v7 = vld [vmem:[%s8200_s28 + $0x28c8] sm:$0xff] }
  0xb9   : > { %843 = vst [vmem:[%s8205_s29 + $0xa30] sm:$0xff] %v842_v6  ;;  %v846_v8 = vld [vmem:[%s8200_s28 + $0x2900] sm:$0xff]  ;;  %v848_v9 = vld [vmem:[%s8200_s28 + $0x2908] sm:$0xff]  ;;  %845 = vst [vmem:[%s8205_s29 + $0xa38] sm:$0xff] %v844_v7 }
  0xba   : > { %847 = vst [vmem:[%s8205_s29 + $0xa40] sm:$0xff] %v846_v8  ;;  %849 = vst [vmem:[%s8205_s29 + $0xa48] sm:$0xff] %v848_v9  ;;  %v850_v10 = vld [vmem:[%s8200_s28 + $0x2940] sm:$0xff]  ;;  %v852_v11 = vld [vmem:[%s8200_s28 + $0x2948] sm:$0xff] }
  0xbb   : > { %v854_v12 = vld [vmem:[%s8200_s28 + $0x2980] sm:$0xff]  ;;  %851 = vst [vmem:[%s8205_s29 + $0xa50] sm:$0xff] %v850_v10  ;;  %853 = vst [vmem:[%s8205_s29 + $0xa58] sm:$0xff] %v852_v11  ;;  %v856_v13 = vld [vmem:[%s8200_s28 + $0x2988] sm:$0xff] }
  0xbc   : > { %855 = vst [vmem:[%s8205_s29 + $0xa60] sm:$0xff] %v854_v12  ;;  %v858_v14 = vld [vmem:[%s8200_s28 + $0x29c0] sm:$0xff]  ;;  %v860_v15 = vld [vmem:[%s8200_s28 + $0x29c8] sm:$0xff]  ;;  %857 = vst [vmem:[%s8205_s29 + $0xa68] sm:$0xff] %v856_v13 }
  0xbd   : > { %859 = vst [vmem:[%s8205_s29 + $0xa70] sm:$0xff] %v858_v14  ;;  %861 = vst [vmem:[%s8205_s29 + $0xa78] sm:$0xff] %v860_v15  ;;  %v862_v16 = vld [vmem:[%s8200_s28 + $0x2a00] sm:$0xff]  ;;  %v864_v17 = vld [vmem:[%s8200_s28 + $0x2a08] sm:$0xff] }
  0xbe   : > { %v866_v18 = vld [vmem:[%s8200_s28 + $0x2a40] sm:$0xff]  ;;  %863 = vst [vmem:[%s8205_s29 + $0xa80] sm:$0xff] %v862_v16  ;;  %865 = vst [vmem:[%s8205_s29 + $0xa88] sm:$0xff] %v864_v17  ;;  %v868_v19 = vld [vmem:[%s8200_s28 + $0x2a48] sm:$0xff] }
  0xbf   : > { %867 = vst [vmem:[%s8205_s29 + $0xa90] sm:$0xff] %v866_v18  ;;  %v870_v20 = vld [vmem:[%s8200_s28 + $0x2a80] sm:$0xff]  ;;  %v872_v21 = vld [vmem:[%s8200_s28 + $0x2a88] sm:$0xff]  ;;  %869 = vst [vmem:[%s8205_s29 + $0xa98] sm:$0xff] %v868_v19 }
  0xc0   : > { %871 = vst [vmem:[%s8205_s29 + $0xaa0] sm:$0xff] %v870_v20  ;;  %873 = vst [vmem:[%s8205_s29 + $0xaa8] sm:$0xff] %v872_v21  ;;  %v874_v22 = vld [vmem:[%s8200_s28 + $0x2ac0] sm:$0xff]  ;;  %v876_v23 = vld [vmem:[%s8200_s28 + $0x2ac8] sm:$0xff] }
  0xc1   : > { %v878_v24 = vld [vmem:[%s8200_s28 + $0x2b00] sm:$0xff]  ;;  %875 = vst [vmem:[%s8205_s29 + $0xab0] sm:$0xff] %v874_v22  ;;  %877 = vst [vmem:[%s8205_s29 + $0xab8] sm:$0xff] %v876_v23  ;;  %v880_v25 = vld [vmem:[%s8200_s28 + $0x2b08] sm:$0xff] }
  0xc2   : > { %879 = vst [vmem:[%s8205_s29 + $0xac0] sm:$0xff] %v878_v24  ;;  %v882_v26 = vld [vmem:[%s8200_s28 + $0x2b40] sm:$0xff]  ;;  %v884_v27 = vld [vmem:[%s8200_s28 + $0x2b48] sm:$0xff]  ;;  %881 = vst [vmem:[%s8205_s29 + $0xac8] sm:$0xff] %v880_v25 }
  0xc3   : > { %883 = vst [vmem:[%s8205_s29 + $0xad0] sm:$0xff] %v882_v26  ;;  %885 = vst [vmem:[%s8205_s29 + $0xad8] sm:$0xff] %v884_v27  ;;  %v886_v28 = vld [vmem:[%s8200_s28 + $0x2b80] sm:$0xff]  ;;  %v888_v29 = vld [vmem:[%s8200_s28 + $0x2b88] sm:$0xff] }
  0xc4   : > { %v890_v30 = vld [vmem:[%s8200_s28 + $0x2bc0] sm:$0xff]  ;;  %887 = vst [vmem:[%s8205_s29 + $0xae0] sm:$0xff] %v886_v28  ;;  %889 = vst [vmem:[%s8205_s29 + $0xae8] sm:$0xff] %v888_v29  ;;  %v892_v31 = vld [vmem:[%s8200_s28 + $0x2bc8] sm:$0xff] }
  0xc5   : > { %891 = vst [vmem:[%s8205_s29 + $0xaf0] sm:$0xff] %v890_v30  ;;  %v894_v32 = vld [vmem:[%s8200_s28 + $0x2c00] sm:$0xff]  ;;  %v896_v33 = vld [vmem:[%s8200_s28 + $0x2c08] sm:$0xff]  ;;  %893 = vst [vmem:[%s8205_s29 + $0xaf8] sm:$0xff] %v892_v31 }
  0xc6   : > { %895 = vst [vmem:[%s8205_s29 + $0xb00] sm:$0xff] %v894_v32  ;;  %897 = vst [vmem:[%s8205_s29 + $0xb08] sm:$0xff] %v896_v33  ;;  %v898_v34 = vld [vmem:[%s8200_s28 + $0x2c40] sm:$0xff]  ;;  %v900_v35 = vld [vmem:[%s8200_s28 + $0x2c48] sm:$0xff] }
  0xc7   : > { %v902_v36 = vld [vmem:[%s8200_s28 + $0x2c80] sm:$0xff]  ;;  %899 = vst [vmem:[%s8205_s29 + $0xb10] sm:$0xff] %v898_v34  ;;  %901 = vst [vmem:[%s8205_s29 + $0xb18] sm:$0xff] %v900_v35  ;;  %v904_v37 = vld [vmem:[%s8200_s28 + $0x2c88] sm:$0xff] }
  0xc8   : > { %903 = vst [vmem:[%s8205_s29 + $0xb20] sm:$0xff] %v902_v36  ;;  %v906_v38 = vld [vmem:[%s8200_s28 + $0x2cc0] sm:$0xff]  ;;  %v908_v39 = vld [vmem:[%s8200_s28 + $0x2cc8] sm:$0xff]  ;;  %905 = vst [vmem:[%s8205_s29 + $0xb28] sm:$0xff] %v904_v37 }
  0xc9   : > { %907 = vst [vmem:[%s8205_s29 + $0xb30] sm:$0xff] %v906_v38  ;;  %909 = vst [vmem:[%s8205_s29 + $0xb38] sm:$0xff] %v908_v39  ;;  %v910_v40 = vld [vmem:[%s8200_s28 + $0x2d00] sm:$0xff]  ;;  %v912_v41 = vld [vmem:[%s8200_s28 + $0x2d08] sm:$0xff] }
  0xca   : > { %v914_v42 = vld [vmem:[%s8200_s28 + $0x2d40] sm:$0xff]  ;;  %911 = vst [vmem:[%s8205_s29 + $0xb40] sm:$0xff] %v910_v40  ;;  %913 = vst [vmem:[%s8205_s29 + $0xb48] sm:$0xff] %v912_v41  ;;  %v916_v43 = vld [vmem:[%s8200_s28 + $0x2d48] sm:$0xff] }
  0xcb   : > { %915 = vst [vmem:[%s8205_s29 + $0xb50] sm:$0xff] %v914_v42  ;;  %v918_v44 = vld [vmem:[%s8200_s28 + $0x2d80] sm:$0xff]  ;;  %v920_v45 = vld [vmem:[%s8200_s28 + $0x2d88] sm:$0xff]  ;;  %917 = vst [vmem:[%s8205_s29 + $0xb58] sm:$0xff] %v916_v43 }
  0xcc   : > { %919 = vst [vmem:[%s8205_s29 + $0xb60] sm:$0xff] %v918_v44  ;;  %921 = vst [vmem:[%s8205_s29 + $0xb68] sm:$0xff] %v920_v45  ;;  %v922_v46 = vld [vmem:[%s8200_s28 + $0x2dc0] sm:$0xff]  ;;  %v924_v47 = vld [vmem:[%s8200_s28 + $0x2dc8] sm:$0xff] }
  0xcd   : > { %v926_v48 = vld [vmem:[%s8200_s28 + $0x2e00] sm:$0xff]  ;;  %923 = vst [vmem:[%s8205_s29 + $0xb70] sm:$0xff] %v922_v46  ;;  %925 = vst [vmem:[%s8205_s29 + $0xb78] sm:$0xff] %v924_v47  ;;  %v928_v49 = vld [vmem:[%s8200_s28 + $0x2e08] sm:$0xff] }
  0xce   : > { %927 = vst [vmem:[%s8205_s29 + $0xb80] sm:$0xff] %v926_v48  ;;  %v930_v50 = vld [vmem:[%s8200_s28 + $0x2e40] sm:$0xff]  ;;  %v932_v51 = vld [vmem:[%s8200_s28 + $0x2e48] sm:$0xff]  ;;  %929 = vst [vmem:[%s8205_s29 + $0xb88] sm:$0xff] %v928_v49 }
  0xcf   : > { %931 = vst [vmem:[%s8205_s29 + $0xb90] sm:$0xff] %v930_v50  ;;  %933 = vst [vmem:[%s8205_s29 + $0xb98] sm:$0xff] %v932_v51  ;;  %v934_v52 = vld [vmem:[%s8200_s28 + $0x2e80] sm:$0xff]  ;;  %v936_v53 = vld [vmem:[%s8200_s28 + $0x2e88] sm:$0xff] }
  0xd0   : > { %v938_v54 = vld [vmem:[%s8200_s28 + $0x2ec0] sm:$0xff]  ;;  %935 = vst [vmem:[%s8205_s29 + $0xba0] sm:$0xff] %v934_v52  ;;  %937 = vst [vmem:[%s8205_s29 + $0xba8] sm:$0xff] %v936_v53  ;;  %v940_v55 = vld [vmem:[%s8200_s28 + $0x2ec8] sm:$0xff] }
  0xd1   : > { %939 = vst [vmem:[%s8205_s29 + $0xbb0] sm:$0xff] %v938_v54  ;;  %v942_v56 = vld [vmem:[%s8200_s28 + $0x2f00] sm:$0xff]  ;;  %v944_v57 = vld [vmem:[%s8200_s28 + $0x2f08] sm:$0xff]  ;;  %941 = vst [vmem:[%s8205_s29 + $0xbb8] sm:$0xff] %v940_v55 }
  0xd2   : > { %943 = vst [vmem:[%s8205_s29 + $0xbc0] sm:$0xff] %v942_v56  ;;  %945 = vst [vmem:[%s8205_s29 + $0xbc8] sm:$0xff] %v944_v57  ;;  %v946_v58 = vld [vmem:[%s8200_s28 + $0x2f40] sm:$0xff]  ;;  %v948_v59 = vld [vmem:[%s8200_s28 + $0x2f48] sm:$0xff] }
  0xd3   : > { %v950_v60 = vld [vmem:[%s8200_s28 + $0x2f80] sm:$0xff]  ;;  %947 = vst [vmem:[%s8205_s29 + $0xbd0] sm:$0xff] %v946_v58  ;;  %949 = vst [vmem:[%s8205_s29 + $0xbd8] sm:$0xff] %v948_v59  ;;  %v952_v61 = vld [vmem:[%s8200_s28 + $0x2f88] sm:$0xff] }
  0xd4   : > { %951 = vst [vmem:[%s8205_s29 + $0xbe0] sm:$0xff] %v950_v60  ;;  %v954_v62 = vld [vmem:[%s8200_s28 + $0x2fc0] sm:$0xff]  ;;  %v956_v63 = vld [vmem:[%s8200_s28 + $0x2fc8] sm:$0xff]  ;;  %953 = vst [vmem:[%s8205_s29 + $0xbe8] sm:$0xff] %v952_v61 }
  0xd5   : > { %955 = vst [vmem:[%s8205_s29 + $0xbf0] sm:$0xff] %v954_v62  ;;  %957 = vst [vmem:[%s8205_s29 + $0xbf8] sm:$0xff] %v956_v63  ;;  %v958_v0 = vld [vmem:[%s8200_s28 + $0x3000] sm:$0xff]  ;;  %v960_v1 = vld [vmem:[%s8200_s28 + $0x3008] sm:$0xff] }
  0xd6   : > { %v962_v2 = vld [vmem:[%s8200_s28 + $0x3040] sm:$0xff]  ;;  %959 = vst [vmem:[%s8205_s29 + $0xc00] sm:$0xff] %v958_v0  ;;  %961 = vst [vmem:[%s8205_s29 + $0xc08] sm:$0xff] %v960_v1  ;;  %v964_v3 = vld [vmem:[%s8200_s28 + $0x3048] sm:$0xff] }
  0xd7   : > { %963 = vst [vmem:[%s8205_s29 + $0xc10] sm:$0xff] %v962_v2  ;;  %v966_v4 = vld [vmem:[%s8200_s28 + $0x3080] sm:$0xff]  ;;  %v968_v5 = vld [vmem:[%s8200_s28 + $0x3088] sm:$0xff]  ;;  %965 = vst [vmem:[%s8205_s29 + $0xc18] sm:$0xff] %v964_v3 }
  0xd8   : > { %967 = vst [vmem:[%s8205_s29 + $0xc20] sm:$0xff] %v966_v4  ;;  %969 = vst [vmem:[%s8205_s29 + $0xc28] sm:$0xff] %v968_v5  ;;  %v970_v6 = vld [vmem:[%s8200_s28 + $0x30c0] sm:$0xff]  ;;  %v972_v7 = vld [vmem:[%s8200_s28 + $0x30c8] sm:$0xff] }
  0xd9   : > { %v974_v8 = vld [vmem:[%s8200_s28 + $0x3100] sm:$0xff]  ;;  %971 = vst [vmem:[%s8205_s29 + $0xc30] sm:$0xff] %v970_v6  ;;  %973 = vst [vmem:[%s8205_s29 + $0xc38] sm:$0xff] %v972_v7  ;;  %v976_v9 = vld [vmem:[%s8200_s28 + $0x3108] sm:$0xff] }
  0xda   : > { %975 = vst [vmem:[%s8205_s29 + $0xc40] sm:$0xff] %v974_v8  ;;  %v978_v10 = vld [vmem:[%s8200_s28 + $0x3140] sm:$0xff]  ;;  %v980_v11 = vld [vmem:[%s8200_s28 + $0x3148] sm:$0xff]  ;;  %977 = vst [vmem:[%s8205_s29 + $0xc48] sm:$0xff] %v976_v9 }
  0xdb   : > { %979 = vst [vmem:[%s8205_s29 + $0xc50] sm:$0xff] %v978_v10  ;;  %981 = vst [vmem:[%s8205_s29 + $0xc58] sm:$0xff] %v980_v11  ;;  %v982_v12 = vld [vmem:[%s8200_s28 + $0x3180] sm:$0xff]  ;;  %v984_v13 = vld [vmem:[%s8200_s28 + $0x3188] sm:$0xff] }
  0xdc   : > { %v986_v14 = vld [vmem:[%s8200_s28 + $0x31c0] sm:$0xff]  ;;  %983 = vst [vmem:[%s8205_s29 + $0xc60] sm:$0xff] %v982_v12  ;;  %985 = vst [vmem:[%s8205_s29 + $0xc68] sm:$0xff] %v984_v13  ;;  %v988_v15 = vld [vmem:[%s8200_s28 + $0x31c8] sm:$0xff] }
  0xdd   : > { %987 = vst [vmem:[%s8205_s29 + $0xc70] sm:$0xff] %v986_v14  ;;  %v990_v16 = vld [vmem:[%s8200_s28 + $0x3200] sm:$0xff]  ;;  %v992_v17 = vld [vmem:[%s8200_s28 + $0x3208] sm:$0xff]  ;;  %989 = vst [vmem:[%s8205_s29 + $0xc78] sm:$0xff] %v988_v15 }
  0xde   : > { %991 = vst [vmem:[%s8205_s29 + $0xc80] sm:$0xff] %v990_v16  ;;  %993 = vst [vmem:[%s8205_s29 + $0xc88] sm:$0xff] %v992_v17  ;;  %v994_v18 = vld [vmem:[%s8200_s28 + $0x3240] sm:$0xff]  ;;  %v996_v19 = vld [vmem:[%s8200_s28 + $0x3248] sm:$0xff] }
  0xdf   : > { %v998_v20 = vld [vmem:[%s8200_s28 + $0x3280] sm:$0xff]  ;;  %995 = vst [vmem:[%s8205_s29 + $0xc90] sm:$0xff] %v994_v18  ;;  %997 = vst [vmem:[%s8205_s29 + $0xc98] sm:$0xff] %v996_v19  ;;  %v1000_v21 = vld [vmem:[%s8200_s28 + $0x3288] sm:$0xff] }
  0xe0   : > { %999 = vst [vmem:[%s8205_s29 + $0xca0] sm:$0xff] %v998_v20  ;;  %v1002_v22 = vld [vmem:[%s8200_s28 + $0x32c0] sm:$0xff]  ;;  %v1004_v23 = vld [vmem:[%s8200_s28 + $0x32c8] sm:$0xff]  ;;  %1001 = vst [vmem:[%s8205_s29 + $0xca8] sm:$0xff] %v1000_v21 }
  0xe1   : > { %1003 = vst [vmem:[%s8205_s29 + $0xcb0] sm:$0xff] %v1002_v22  ;;  %1005 = vst [vmem:[%s8205_s29 + $0xcb8] sm:$0xff] %v1004_v23  ;;  %v1006_v24 = vld [vmem:[%s8200_s28 + $0x3300] sm:$0xff]  ;;  %v1008_v25 = vld [vmem:[%s8200_s28 + $0x3308] sm:$0xff] }
  0xe2   : > { %v1010_v26 = vld [vmem:[%s8200_s28 + $0x3340] sm:$0xff]  ;;  %1007 = vst [vmem:[%s8205_s29 + $0xcc0] sm:$0xff] %v1006_v24  ;;  %1009 = vst [vmem:[%s8205_s29 + $0xcc8] sm:$0xff] %v1008_v25  ;;  %v1012_v27 = vld [vmem:[%s8200_s28 + $0x3348] sm:$0xff] }
  0xe3   : > { %1011 = vst [vmem:[%s8205_s29 + $0xcd0] sm:$0xff] %v1010_v26  ;;  %v1014_v28 = vld [vmem:[%s8200_s28 + $0x3380] sm:$0xff]  ;;  %v1016_v29 = vld [vmem:[%s8200_s28 + $0x3388] sm:$0xff]  ;;  %1013 = vst [vmem:[%s8205_s29 + $0xcd8] sm:$0xff] %v1012_v27 }
  0xe4   : > { %1015 = vst [vmem:[%s8205_s29 + $0xce0] sm:$0xff] %v1014_v28  ;;  %1017 = vst [vmem:[%s8205_s29 + $0xce8] sm:$0xff] %v1016_v29  ;;  %v1018_v30 = vld [vmem:[%s8200_s28 + $0x33c0] sm:$0xff]  ;;  %v1020_v31 = vld [vmem:[%s8200_s28 + $0x33c8] sm:$0xff] }
  0xe5   : > { %v1022_v32 = vld [vmem:[%s8200_s28 + $0x3400] sm:$0xff]  ;;  %1019 = vst [vmem:[%s8205_s29 + $0xcf0] sm:$0xff] %v1018_v30  ;;  %1021 = vst [vmem:[%s8205_s29 + $0xcf8] sm:$0xff] %v1020_v31  ;;  %v1024_v33 = vld [vmem:[%s8200_s28 + $0x3408] sm:$0xff] }
  0xe6   : > { %1023 = vst [vmem:[%s8205_s29 + $0xd00] sm:$0xff] %v1022_v32  ;;  %v1026_v34 = vld [vmem:[%s8200_s28 + $0x3440] sm:$0xff]  ;;  %v1028_v35 = vld [vmem:[%s8200_s28 + $0x3448] sm:$0xff]  ;;  %1025 = vst [vmem:[%s8205_s29 + $0xd08] sm:$0xff] %v1024_v33 }
  0xe7   : > { %1027 = vst [vmem:[%s8205_s29 + $0xd10] sm:$0xff] %v1026_v34  ;;  %1029 = vst [vmem:[%s8205_s29 + $0xd18] sm:$0xff] %v1028_v35  ;;  %v1030_v36 = vld [vmem:[%s8200_s28 + $0x3480] sm:$0xff]  ;;  %v1032_v37 = vld [vmem:[%s8200_s28 + $0x3488] sm:$0xff] }
  0xe8   : > { %v1034_v38 = vld [vmem:[%s8200_s28 + $0x34c0] sm:$0xff]  ;;  %1031 = vst [vmem:[%s8205_s29 + $0xd20] sm:$0xff] %v1030_v36  ;;  %1033 = vst [vmem:[%s8205_s29 + $0xd28] sm:$0xff] %v1032_v37  ;;  %v1036_v39 = vld [vmem:[%s8200_s28 + $0x34c8] sm:$0xff] }
  0xe9   : > { %1035 = vst [vmem:[%s8205_s29 + $0xd30] sm:$0xff] %v1034_v38  ;;  %v1038_v40 = vld [vmem:[%s8200_s28 + $0x3500] sm:$0xff]  ;;  %v1040_v41 = vld [vmem:[%s8200_s28 + $0x3508] sm:$0xff]  ;;  %1037 = vst [vmem:[%s8205_s29 + $0xd38] sm:$0xff] %v1036_v39 }
  0xea   : > { %1039 = vst [vmem:[%s8205_s29 + $0xd40] sm:$0xff] %v1038_v40  ;;  %1041 = vst [vmem:[%s8205_s29 + $0xd48] sm:$0xff] %v1040_v41  ;;  %v1042_v42 = vld [vmem:[%s8200_s28 + $0x3540] sm:$0xff]  ;;  %v1044_v43 = vld [vmem:[%s8200_s28 + $0x3548] sm:$0xff] }
  0xeb   : > { %v1046_v44 = vld [vmem:[%s8200_s28 + $0x3580] sm:$0xff]  ;;  %1043 = vst [vmem:[%s8205_s29 + $0xd50] sm:$0xff] %v1042_v42  ;;  %1045 = vst [vmem:[%s8205_s29 + $0xd58] sm:$0xff] %v1044_v43  ;;  %v1048_v45 = vld [vmem:[%s8200_s28 + $0x3588] sm:$0xff] }
  0xec   : > { %1047 = vst [vmem:[%s8205_s29 + $0xd60] sm:$0xff] %v1046_v44  ;;  %v1050_v46 = vld [vmem:[%s8200_s28 + $0x35c0] sm:$0xff]  ;;  %v1052_v47 = vld [vmem:[%s8200_s28 + $0x35c8] sm:$0xff]  ;;  %1049 = vst [vmem:[%s8205_s29 + $0xd68] sm:$0xff] %v1048_v45 }
  0xed   : > { %1051 = vst [vmem:[%s8205_s29 + $0xd70] sm:$0xff] %v1050_v46  ;;  %1053 = vst [vmem:[%s8205_s29 + $0xd78] sm:$0xff] %v1052_v47  ;;  %v1054_v48 = vld [vmem:[%s8200_s28 + $0x3600] sm:$0xff]  ;;  %v1056_v49 = vld [vmem:[%s8200_s28 + $0x3608] sm:$0xff] }
  0xee   : > { %v1058_v50 = vld [vmem:[%s8200_s28 + $0x3640] sm:$0xff]  ;;  %1055 = vst [vmem:[%s8205_s29 + $0xd80] sm:$0xff] %v1054_v48  ;;  %1057 = vst [vmem:[%s8205_s29 + $0xd88] sm:$0xff] %v1056_v49  ;;  %v1060_v51 = vld [vmem:[%s8200_s28 + $0x3648] sm:$0xff] }
  0xef   : > { %1059 = vst [vmem:[%s8205_s29 + $0xd90] sm:$0xff] %v1058_v50  ;;  %v1062_v52 = vld [vmem:[%s8200_s28 + $0x3680] sm:$0xff]  ;;  %v1064_v53 = vld [vmem:[%s8200_s28 + $0x3688] sm:$0xff]  ;;  %1061 = vst [vmem:[%s8205_s29 + $0xd98] sm:$0xff] %v1060_v51 }
  0xf0   : > { %1063 = vst [vmem:[%s8205_s29 + $0xda0] sm:$0xff] %v1062_v52  ;;  %1065 = vst [vmem:[%s8205_s29 + $0xda8] sm:$0xff] %v1064_v53  ;;  %v1066_v54 = vld [vmem:[%s8200_s28 + $0x36c0] sm:$0xff]  ;;  %v1068_v55 = vld [vmem:[%s8200_s28 + $0x36c8] sm:$0xff] }
  0xf1   : > { %v1070_v56 = vld [vmem:[%s8200_s28 + $0x3700] sm:$0xff]  ;;  %1067 = vst [vmem:[%s8205_s29 + $0xdb0] sm:$0xff] %v1066_v54  ;;  %1069 = vst [vmem:[%s8205_s29 + $0xdb8] sm:$0xff] %v1068_v55  ;;  %v1072_v57 = vld [vmem:[%s8200_s28 + $0x3708] sm:$0xff] }
  0xf2   : > { %1071 = vst [vmem:[%s8205_s29 + $0xdc0] sm:$0xff] %v1070_v56  ;;  %v1074_v58 = vld [vmem:[%s8200_s28 + $0x3740] sm:$0xff]  ;;  %v1076_v59 = vld [vmem:[%s8200_s28 + $0x3748] sm:$0xff]  ;;  %1073 = vst [vmem:[%s8205_s29 + $0xdc8] sm:$0xff] %v1072_v57 }
  0xf3   : > { %1075 = vst [vmem:[%s8205_s29 + $0xdd0] sm:$0xff] %v1074_v58  ;;  %1077 = vst [vmem:[%s8205_s29 + $0xdd8] sm:$0xff] %v1076_v59  ;;  %v1078_v60 = vld [vmem:[%s8200_s28 + $0x3780] sm:$0xff]  ;;  %v1080_v61 = vld [vmem:[%s8200_s28 + $0x3788] sm:$0xff] }
  0xf4   : > { %v1082_v62 = vld [vmem:[%s8200_s28 + $0x37c0] sm:$0xff]  ;;  %1079 = vst [vmem:[%s8205_s29 + $0xde0] sm:$0xff] %v1078_v60  ;;  %1081 = vst [vmem:[%s8205_s29 + $0xde8] sm:$0xff] %v1080_v61  ;;  %v1084_v63 = vld [vmem:[%s8200_s28 + $0x37c8] sm:$0xff] }
  0xf5   : > { %1083 = vst [vmem:[%s8205_s29 + $0xdf0] sm:$0xff] %v1082_v62  ;;  %v1086_v0 = vld [vmem:[%s8200_s28 + $0x3800] sm:$0xff]  ;;  %v1088_v1 = vld [vmem:[%s8200_s28 + $0x3808] sm:$0xff]  ;;  %1085 = vst [vmem:[%s8205_s29 + $0xdf8] sm:$0xff] %v1084_v63 }
  0xf6   : > { %1087 = vst [vmem:[%s8205_s29 + $0xe00] sm:$0xff] %v1086_v0  ;;  %1089 = vst [vmem:[%s8205_s29 + $0xe08] sm:$0xff] %v1088_v1  ;;  %v1090_v2 = vld [vmem:[%s8200_s28 + $0x3840] sm:$0xff]  ;;  %v1092_v3 = vld [vmem:[%s8200_s28 + $0x3848] sm:$0xff] }
  0xf7   : > { %v1094_v4 = vld [vmem:[%s8200_s28 + $0x3880] sm:$0xff]  ;;  %1091 = vst [vmem:[%s8205_s29 + $0xe10] sm:$0xff] %v1090_v2  ;;  %1093 = vst [vmem:[%s8205_s29 + $0xe18] sm:$0xff] %v1092_v3  ;;  %v1096_v5 = vld [vmem:[%s8200_s28 + $0x3888] sm:$0xff] }
  0xf8   : > { %1095 = vst [vmem:[%s8205_s29 + $0xe20] sm:$0xff] %v1094_v4  ;;  %v1098_v6 = vld [vmem:[%s8200_s28 + $0x38c0] sm:$0xff]  ;;  %v1100_v7 = vld [vmem:[%s8200_s28 + $0x38c8] sm:$0xff]  ;;  %1097 = vst [vmem:[%s8205_s29 + $0xe28] sm:$0xff] %v1096_v5 }
  0xf9   : > { %1099 = vst [vmem:[%s8205_s29 + $0xe30] sm:$0xff] %v1098_v6  ;;  %1101 = vst [vmem:[%s8205_s29 + $0xe38] sm:$0xff] %v1100_v7  ;;  %v1102_v8 = vld [vmem:[%s8200_s28 + $0x3900] sm:$0xff]  ;;  %v1104_v9 = vld [vmem:[%s8200_s28 + $0x3908] sm:$0xff] }
  0xfa   : > { %v1106_v10 = vld [vmem:[%s8200_s28 + $0x3940] sm:$0xff]  ;;  %1103 = vst [vmem:[%s8205_s29 + $0xe40] sm:$0xff] %v1102_v8  ;;  %1105 = vst [vmem:[%s8205_s29 + $0xe48] sm:$0xff] %v1104_v9  ;;  %v1108_v11 = vld [vmem:[%s8200_s28 + $0x3948] sm:$0xff] }
  0xfb   : > { %1107 = vst [vmem:[%s8205_s29 + $0xe50] sm:$0xff] %v1106_v10  ;;  %v1110_v12 = vld [vmem:[%s8200_s28 + $0x3980] sm:$0xff]  ;;  %v1112_v13 = vld [vmem:[%s8200_s28 + $0x3988] sm:$0xff]  ;;  %1109 = vst [vmem:[%s8205_s29 + $0xe58] sm:$0xff] %v1108_v11 }
  0xfc   : > { %1111 = vst [vmem:[%s8205_s29 + $0xe60] sm:$0xff] %v1110_v12  ;;  %1113 = vst [vmem:[%s8205_s29 + $0xe68] sm:$0xff] %v1112_v13  ;;  %v1114_v14 = vld [vmem:[%s8200_s28 + $0x39c0] sm:$0xff]  ;;  %v1116_v15 = vld [vmem:[%s8200_s28 + $0x39c8] sm:$0xff] }
  0xfd   : > { %v1118_v16 = vld [vmem:[%s8200_s28 + $0x3a00] sm:$0xff]  ;;  %1115 = vst [vmem:[%s8205_s29 + $0xe70] sm:$0xff] %v1114_v14  ;;  %1117 = vst [vmem:[%s8205_s29 + $0xe78] sm:$0xff] %v1116_v15  ;;  %v1120_v17 = vld [vmem:[%s8200_s28 + $0x3a08] sm:$0xff] }
  0xfe   : > { %1119 = vst [vmem:[%s8205_s29 + $0xe80] sm:$0xff] %v1118_v16  ;;  %v1122_v18 = vld [vmem:[%s8200_s28 + $0x3a40] sm:$0xff]  ;;  %v1124_v19 = vld [vmem:[%s8200_s28 + $0x3a48] sm:$0xff]  ;;  %1121 = vst [vmem:[%s8205_s29 + $0xe88] sm:$0xff] %v1120_v17 }
  0xff   : > { %1123 = vst [vmem:[%s8205_s29 + $0xe90] sm:$0xff] %v1122_v18  ;;  %1125 = vst [vmem:[%s8205_s29 + $0xe98] sm:$0xff] %v1124_v19  ;;  %v1126_v20 = vld [vmem:[%s8200_s28 + $0x3a80] sm:$0xff]  ;;  %v1128_v21 = vld [vmem:[%s8200_s28 + $0x3a88] sm:$0xff] }
 0x100   : > { %v1130_v22 = vld [vmem:[%s8200_s28 + $0x3ac0] sm:$0xff]  ;;  %1127 = vst [vmem:[%s8205_s29 + $0xea0] sm:$0xff] %v1126_v20  ;;  %1129 = vst [vmem:[%s8205_s29 + $0xea8] sm:$0xff] %v1128_v21  ;;  %v1132_v23 = vld [vmem:[%s8200_s28 + $0x3ac8] sm:$0xff] }
 0x101   : > { %1131 = vst [vmem:[%s8205_s29 + $0xeb0] sm:$0xff] %v1130_v22  ;;  %v1134_v24 = vld [vmem:[%s8200_s28 + $0x3b00] sm:$0xff]  ;;  %v1136_v25 = vld [vmem:[%s8200_s28 + $0x3b08] sm:$0xff]  ;;  %1133 = vst [vmem:[%s8205_s29 + $0xeb8] sm:$0xff] %v1132_v23 }
 0x102   : > { %1135 = vst [vmem:[%s8205_s29 + $0xec0] sm:$0xff] %v1134_v24  ;;  %1137 = vst [vmem:[%s8205_s29 + $0xec8] sm:$0xff] %v1136_v25  ;;  %v1138_v26 = vld [vmem:[%s8200_s28 + $0x3b40] sm:$0xff]  ;;  %v1140_v27 = vld [vmem:[%s8200_s28 + $0x3b48] sm:$0xff] }
 0x103   : > { %v1142_v28 = vld [vmem:[%s8200_s28 + $0x3b80] sm:$0xff]  ;;  %1139 = vst [vmem:[%s8205_s29 + $0xed0] sm:$0xff] %v1138_v26  ;;  %1141 = vst [vmem:[%s8205_s29 + $0xed8] sm:$0xff] %v1140_v27  ;;  %v1144_v29 = vld [vmem:[%s8200_s28 + $0x3b88] sm:$0xff] }
 0x104   : > { %1143 = vst [vmem:[%s8205_s29 + $0xee0] sm:$0xff] %v1142_v28  ;;  %v1146_v30 = vld [vmem:[%s8200_s28 + $0x3bc0] sm:$0xff]  ;;  %v1148_v31 = vld [vmem:[%s8200_s28 + $0x3bc8] sm:$0xff]  ;;  %1145 = vst [vmem:[%s8205_s29 + $0xee8] sm:$0xff] %v1144_v29 }
 0x105   : > { %1147 = vst [vmem:[%s8205_s29 + $0xef0] sm:$0xff] %v1146_v30  ;;  %1149 = vst [vmem:[%s8205_s29 + $0xef8] sm:$0xff] %v1148_v31  ;;  %v1150_v32 = vld [vmem:[%s8200_s28 + $0x3c00] sm:$0xff]  ;;  %v1152_v33 = vld [vmem:[%s8200_s28 + $0x3c08] sm:$0xff] }
 0x106   : > { %v1154_v34 = vld [vmem:[%s8200_s28 + $0x3c40] sm:$0xff]  ;;  %1151 = vst [vmem:[%s8205_s29 + $0xf00] sm:$0xff] %v1150_v32  ;;  %1153 = vst [vmem:[%s8205_s29 + $0xf08] sm:$0xff] %v1152_v33  ;;  %v1156_v35 = vld [vmem:[%s8200_s28 + $0x3c48] sm:$0xff] }
 0x107   : > { %1155 = vst [vmem:[%s8205_s29 + $0xf10] sm:$0xff] %v1154_v34  ;;  %v1158_v36 = vld [vmem:[%s8200_s28 + $0x3c80] sm:$0xff]  ;;  %v1160_v37 = vld [vmem:[%s8200_s28 + $0x3c88] sm:$0xff]  ;;  %1157 = vst [vmem:[%s8205_s29 + $0xf18] sm:$0xff] %v1156_v35 }
 0x108   : > { %1159 = vst [vmem:[%s8205_s29 + $0xf20] sm:$0xff] %v1158_v36  ;;  %1161 = vst [vmem:[%s8205_s29 + $0xf28] sm:$0xff] %v1160_v37  ;;  %v1162_v38 = vld [vmem:[%s8200_s28 + $0x3cc0] sm:$0xff]  ;;  %v1164_v39 = vld [vmem:[%s8200_s28 + $0x3cc8] sm:$0xff] }
 0x109   : > { %v1166_v40 = vld [vmem:[%s8200_s28 + $0x3d00] sm:$0xff]  ;;  %1163 = vst [vmem:[%s8205_s29 + $0xf30] sm:$0xff] %v1162_v38  ;;  %1165 = vst [vmem:[%s8205_s29 + $0xf38] sm:$0xff] %v1164_v39  ;;  %v1168_v41 = vld [vmem:[%s8200_s28 + $0x3d08] sm:$0xff] }
 0x10a   : > { %1167 = vst [vmem:[%s8205_s29 + $0xf40] sm:$0xff] %v1166_v40  ;;  %v1170_v42 = vld [vmem:[%s8200_s28 + $0x3d40] sm:$0xff]  ;;  %v1172_v43 = vld [vmem:[%s8200_s28 + $0x3d48] sm:$0xff]  ;;  %1169 = vst [vmem:[%s8205_s29 + $0xf48] sm:$0xff] %v1168_v41 }
 0x10b   : > { %1171 = vst [vmem:[%s8205_s29 + $0xf50] sm:$0xff] %v1170_v42  ;;  %1173 = vst [vmem:[%s8205_s29 + $0xf58] sm:$0xff] %v1172_v43  ;;  %v1174_v44 = vld [vmem:[%s8200_s28 + $0x3d80] sm:$0xff]  ;;  %v1176_v45 = vld [vmem:[%s8200_s28 + $0x3d88] sm:$0xff] }
 0x10c   : > { %v1178_v46 = vld [vmem:[%s8200_s28 + $0x3dc0] sm:$0xff]  ;;  %1175 = vst [vmem:[%s8205_s29 + $0xf60] sm:$0xff] %v1174_v44  ;;  %1177 = vst [vmem:[%s8205_s29 + $0xf68] sm:$0xff] %v1176_v45  ;;  %v1180_v47 = vld [vmem:[%s8200_s28 + $0x3dc8] sm:$0xff] }
 0x10d   : > { %1179 = vst [vmem:[%s8205_s29 + $0xf70] sm:$0xff] %v1178_v46  ;;  %v1182_v48 = vld [vmem:[%s8200_s28 + $0x3e00] sm:$0xff]  ;;  %v1184_v49 = vld [vmem:[%s8200_s28 + $0x3e08] sm:$0xff]  ;;  %1181 = vst [vmem:[%s8205_s29 + $0xf78] sm:$0xff] %v1180_v47 }
 0x10e   : > { %1183 = vst [vmem:[%s8205_s29 + $0xf80] sm:$0xff] %v1182_v48  ;;  %1185 = vst [vmem:[%s8205_s29 + $0xf88] sm:$0xff] %v1184_v49  ;;  %v1186_v50 = vld [vmem:[%s8200_s28 + $0x3e40] sm:$0xff]  ;;  %v1188_v51 = vld [vmem:[%s8200_s28 + $0x3e48] sm:$0xff] }
 0x10f   : > { %v1190_v52 = vld [vmem:[%s8200_s28 + $0x3e80] sm:$0xff]  ;;  %1187 = vst [vmem:[%s8205_s29 + $0xf90] sm:$0xff] %v1186_v50  ;;  %1189 = vst [vmem:[%s8205_s29 + $0xf98] sm:$0xff] %v1188_v51  ;;  %v1192_v53 = vld [vmem:[%s8200_s28 + $0x3e88] sm:$0xff] }
 0x110   : > { %1191 = vst [vmem:[%s8205_s29 + $0xfa0] sm:$0xff] %v1190_v52  ;;  %v1194_v54 = vld [vmem:[%s8200_s28 + $0x3ec0] sm:$0xff]  ;;  %v1196_v55 = vld [vmem:[%s8200_s28 + $0x3ec8] sm:$0xff]  ;;  %1193 = vst [vmem:[%s8205_s29 + $0xfa8] sm:$0xff] %v1192_v53 }
 0x111   : > { %1195 = vst [vmem:[%s8205_s29 + $0xfb0] sm:$0xff] %v1194_v54  ;;  %1197 = vst [vmem:[%s8205_s29 + $0xfb8] sm:$0xff] %v1196_v55  ;;  %v1198_v56 = vld [vmem:[%s8200_s28 + $0x3f00] sm:$0xff]  ;;  %v1200_v57 = vld [vmem:[%s8200_s28 + $0x3f08] sm:$0xff] }
 0x112   : > { %v1202_v58 = vld [vmem:[%s8200_s28 + $0x3f40] sm:$0xff]  ;;  %1199 = vst [vmem:[%s8205_s29 + $0xfc0] sm:$0xff] %v1198_v56  ;;  %1201 = vst [vmem:[%s8205_s29 + $0xfc8] sm:$0xff] %v1200_v57  ;;  %v1204_v59 = vld [vmem:[%s8200_s28 + $0x3f48] sm:$0xff] }
 0x113   : > { %1203 = vst [vmem:[%s8205_s29 + $0xfd0] sm:$0xff] %v1202_v58  ;;  %v1206_v60 = vld [vmem:[%s8200_s28 + $0x3f80] sm:$0xff]  ;;  %v1208_v61 = vld [vmem:[%s8200_s28 + $0x3f88] sm:$0xff]  ;;  %1205 = vst [vmem:[%s8205_s29 + $0xfd8] sm:$0xff] %v1204_v59 }
 0x114   : > { %1207 = vst [vmem:[%s8205_s29 + $0xfe0] sm:$0xff] %v1206_v60  ;;  %1209 = vst [vmem:[%s8205_s29 + $0xfe8] sm:$0xff] %v1208_v61  ;;  %v1210_v62 = vld [vmem:[%s8200_s28 + $0x3fc0] sm:$0xff]  ;;  %v1212_v63 = vld [vmem:[%s8200_s28 + $0x3fc8] sm:$0xff] }
 0x115   : > { %1211 = vst [vmem:[%s8205_s29 + $0xff0] sm:$0xff] %v1210_v62  ;;  %1213 = vst [vmem:[%s8205_s29 + $0xff8] sm:$0xff] %v1212_v63 }
 0x116 PF: > { %p6441_p8 = scmp.ge.s32.totalorder %s8130_s16, 1  ;;  %p1226_p9 = scmp.lt.s32.totalorder %s8130_s16, 5 }
 0x118   : > { %p1227_p10 = pnand %p6441_p8, %p1226_p9 }
 0x119   : > { %s1233_s30 = sand.u32 (!%p1227_p10), 1, %s8114_s12   ;;  %v1352_v0 = vld [vmem:[%s10100_s0] sm:$0xff] (!%p1227_p10)  ;;  %s6444_s20 = sshll.u32 (!%p1227_p10), %s8122_s14, 2 }
 0x11a   : > { %1230 = sbr.rel (%p1227_p10) target bundleno = 1052 (0x41c), region = 51  ;;  %v1360_v1 = vld [vmem:[%s10100_s0 + $0x40] sm:$0xff] (!%p1227_p10)  ;;  %s6442_s8 = sshll.u32 (!%p1227_p10), %s1233_s30, 12 }
 0x11b   : > { %v9239_v2 = vcombine.low (!%p1227_p10), %v1352_v0, %v1360_v1  ;;  %v6446_v3 = vcombine.high (!%p1227_p10), %v1352_v0, %v1360_v1  ;;  %s9241_s9 = scalar_lea.vmem (!%p1227_p10), [#allocation3], %s6442_s8  ;;  %p1275_p11 = scmp.lt.s32.totalorder (!%p1227_p10), %s6444_s20, 15 }
 0x11c   : > { %v7324_v4 = vld [vmem:[%s9241_s9 + $0x4] ss:$16 sps:$4 sm:$0xff] (!%p1227_p10)   ;;  %v7326_v5 = vld [vmem:[%s9241_s9 + $0xc] ss:$16 sps:$4 sm:$0xff] (!%p1227_p10)   ;;  %v7328_v6 = vld [vmem:[%s9241_s9] ss:$16 sps:$4 sm:$0xff] (!%p1227_p10)  }
 0x11d   : > { %4840 = vmatprep.mubr.bf16.mxu0 (!%p1227_p10), %v6446_v3  ;;  %5424 = vmatprep.mubr.bf16.mxu1 (!%p1227_p10), %v6446_v3  ;;  %v7329_v7 = vld [vmem:[%s9241_s9 + $0x8] ss:$16 sps:$4 sm:$0xff] (!%p1227_p10)   ;;  %v7330_v8 = vld [vmem:[%s9241_s9 + $0x24] ss:$16 sps:$4 sm:$0xff] (!%p1227_p10)   ;;  %v7332_v9 = vld [vmem:[%s9241_s9 + $0x2c] ss:$16 sps:$4 sm:$0xff] (!%p1227_p10)  }
 0x11e   : > { %4808 = vmatprep.subr.bf16.mxu0 (!%p1227_p10), %v7324_v4  ;;  %5392 = vmatprep.subr.bf16.mxu1 (!%p1227_p10), %v7326_v5  ;;  %v7334_v10 = vld [vmem:[%s9241_s9 + $0x20] ss:$16 sps:$4 sm:$0xff] (!%p1227_p10)   ;;  %v7335_v11 = vld [vmem:[%s9241_s9 + $0x28] ss:$16 sps:$4 sm:$0xff] (!%p1227_p10)   ;;  %v7336_v12 = vld [vmem:[%s9241_s9 + $0x44] ss:$16 sps:$4 sm:$0xff] (!%p1227_p10)  }
 0x11f   : > { %4809 = vmatpush1.bf16.msra.mxu0 (!%p1227_p10), %v7328_v6  ;;  %5393 = vmatpush1.bf16.msra.mxu1 (!%p1227_p10), %v7329_v7  ;;  %v7338_v13 = vld [vmem:[%s9241_s9 + $0x4c] ss:$16 sps:$4 sm:$0xff] (!%p1227_p10)   ;;  %v7340_v14 = vld [vmem:[%s9241_s9 + $0x40] ss:$16 sps:$4 sm:$0xff] (!%p1227_p10)   ;;  %v7341_v15 = vld [vmem:[%s9241_s9 + $0x48] ss:$16 sps:$4 sm:$0xff] (!%p1227_p10)  }
 0x120   : > { %4810 = vmatprep.subr.bf16.mxu0 (!%p1227_p10), %v7330_v8  ;;  %5394 = vmatprep.subr.bf16.mxu1 (!%p1227_p10), %v7332_v9  ;;  %v7342_v16 = vld [vmem:[%s9241_s9 + $0x64] ss:$16 sps:$4 sm:$0xff] (!%p1227_p10)   ;;  %v7344_v17 = vld [vmem:[%s9241_s9 + $0x6c] ss:$16 sps:$4 sm:$0xff] (!%p1227_p10)   ;;  %v7346_v18 = vld [vmem:[%s9241_s9 + $0x60] ss:$16 sps:$4 sm:$0xff] (!%p1227_p10)  }
 0x121   : > { %v7347_v19 = vld [vmem:[%s9241_s9 + $0x68] ss:$16 sps:$4 sm:$0xff]   ;;  %v7348_v20 = vld [vmem:[%s9241_s9 + $0x84] ss:$16 sps:$4 sm:$0xff]   ;;  %v7350_v21 = vld [vmem:[%s9241_s9 + $0x8c] ss:$16 sps:$4 sm:$0xff]  }
 0x122   : > { %v7352_v22 = vld [vmem:[%s9241_s9 + $0x80] ss:$16 sps:$4 sm:$0xff]   ;;  %v7353_v23 = vld [vmem:[%s9241_s9 + $0x88] ss:$16 sps:$4 sm:$0xff]   ;;  %v7354_v24 = vld [vmem:[%s9241_s9 + $0xa4] ss:$16 sps:$4 sm:$0xff]  }
 0x123   : > { %4811 = vmatpush1.bf16.msra.mxu0 %v7334_v10  ;;  %5395 = vmatpush1.bf16.msra.mxu1 %v7335_v11  ;;  %v7356_v25 = vld [vmem:[%s9241_s9 + $0xac] ss:$16 sps:$4 sm:$0xff]   ;;  %v7358_v26 = vld [vmem:[%s9241_s9 + $0xa0] ss:$16 sps:$4 sm:$0xff]   ;;  %v7359_v27 = vld [vmem:[%s9241_s9 + $0xa8] ss:$16 sps:$4 sm:$0xff]  }
 0x124   : > { %4812 = vmatprep.subr.bf16.mxu0 %v7336_v12  ;;  %5396 = vmatprep.subr.bf16.mxu1 %v7338_v13  ;;  %v7360_v28 = vld [vmem:[%s9241_s9 + $0xc4] ss:$16 sps:$4 sm:$0xff]   ;;  %v7362_v29 = vld [vmem:[%s9241_s9 + $0xcc] ss:$16 sps:$4 sm:$0xff]   ;;  %v7364_v30 = vld [vmem:[%s9241_s9 + $0xc0] ss:$16 sps:$4 sm:$0xff]  }
 0x125   : > { %v7365_v31 = vld [vmem:[%s9241_s9 + $0xc8] ss:$16 sps:$4 sm:$0xff]   ;;  %v7366_v32 = vld [vmem:[%s9241_s9 + $0xe4] ss:$16 sps:$4 sm:$0xff]   ;;  %v7368_v33 = vld [vmem:[%s9241_s9 + $0xec] ss:$16 sps:$4 sm:$0xff]  }
 0x126   : > { %v7370_v34 = vld [vmem:[%s9241_s9 + $0xe0] ss:$16 sps:$4 sm:$0xff]   ;;  %v7371_v35 = vld [vmem:[%s9241_s9 + $0xe8] ss:$16 sps:$4 sm:$0xff]   ;;  %v7372_v36 = vld [vmem:[%s9241_s9 + $0x104] ss:$16 sps:$4 sm:$0xff]  }
 0x127   : > { %4813 = vmatpush1.bf16.msra.mxu0 %v7340_v14  ;;  %5397 = vmatpush1.bf16.msra.mxu1 %v7341_v15  ;;  %v7374_v37 = vld [vmem:[%s9241_s9 + $0x10c] ss:$16 sps:$4 sm:$0xff]   ;;  %v7376_v38 = vld [vmem:[%s9241_s9 + $0x100] ss:$16 sps:$4 sm:$0xff]   ;;  %v7377_v39 = vld [vmem:[%s9241_s9 + $0x108] ss:$16 sps:$4 sm:$0xff]  }
 0x128   : > { %4814 = vmatprep.subr.bf16.mxu0 %v7342_v16  ;;  %5398 = vmatprep.subr.bf16.mxu1 %v7344_v17  ;;  %v7378_v40 = vld [vmem:[%s9241_s9 + $0x124] ss:$16 sps:$4 sm:$0xff]   ;;  %v7380_v41 = vld [vmem:[%s9241_s9 + $0x12c] ss:$16 sps:$4 sm:$0xff]   ;;  %v7382_v42 = vld [vmem:[%s9241_s9 + $0x120] ss:$16 sps:$4 sm:$0xff]  }
 0x129   : > { %v7383_v43 = vld [vmem:[%s9241_s9 + $0x128] ss:$16 sps:$4 sm:$0xff]   ;;  %v7384_v44 = vld [vmem:[%s9241_s9 + $0x144] ss:$16 sps:$4 sm:$0xff]   ;;  %v7386_v45 = vld [vmem:[%s9241_s9 + $0x14c] ss:$16 sps:$4 sm:$0xff]  }
 0x12a   : > { %v7388_v46 = vld [vmem:[%s9241_s9 + $0x140] ss:$16 sps:$4 sm:$0xff]   ;;  %v7389_v47 = vld [vmem:[%s9241_s9 + $0x148] ss:$16 sps:$4 sm:$0xff]   ;;  %v7390_v48 = vld [vmem:[%s9241_s9 + $0x164] ss:$16 sps:$4 sm:$0xff]  }
 0x12b   : > { %4815 = vmatpush1.bf16.msra.mxu0 %v7346_v18  ;;  %5399 = vmatpush1.bf16.msra.mxu1 %v7347_v19  ;;  %v7392_v49 = vld [vmem:[%s9241_s9 + $0x16c] ss:$16 sps:$4 sm:$0xff]   ;;  %v7394_v50 = vld [vmem:[%s9241_s9 + $0x160] ss:$16 sps:$4 sm:$0xff]   ;;  %v7395_v51 = vld [vmem:[%s9241_s9 + $0x168] ss:$16 sps:$4 sm:$0xff]  }
 0x12c   : > { %4816 = vmatprep.subr.bf16.mxu0 %v7348_v20  ;;  %5400 = vmatprep.subr.bf16.mxu1 %v7350_v21  ;;  %v7396_v52 = vld [vmem:[%s9241_s9 + $0x184] ss:$16 sps:$4 sm:$0xff]   ;;  %v7398_v53 = vld [vmem:[%s9241_s9 + $0x18c] ss:$16 sps:$4 sm:$0xff]   ;;  %v7400_v54 = vld [vmem:[%s9241_s9 + $0x180] ss:$16 sps:$4 sm:$0xff]  }
 0x12d   : > { %v7401_v55 = vld [vmem:[%s9241_s9 + $0x188] ss:$16 sps:$4 sm:$0xff]   ;;  %v7402_v56 = vld [vmem:[%s9241_s9 + $0x1a4] ss:$16 sps:$4 sm:$0xff]   ;;  %v7404_v57 = vld [vmem:[%s9241_s9 + $0x1ac] ss:$16 sps:$4 sm:$0xff]  }
 0x12e   : > { %v7406_v58 = vld [vmem:[%s9241_s9 + $0x1a0] ss:$16 sps:$4 sm:$0xff]   ;;  %v7407_v59 = vld [vmem:[%s9241_s9 + $0x1a8] ss:$16 sps:$4 sm:$0xff]   ;;  %v7408_v60 = vld [vmem:[%s9241_s9 + $0x1c4] ss:$16 sps:$4 sm:$0xff]  }
 0x12f   : > { %4817 = vmatpush1.bf16.msra.mxu0 %v7352_v22  ;;  %5401 = vmatpush1.bf16.msra.mxu1 %v7353_v23  ;;  %v7410_v61 = vld [vmem:[%s9241_s9 + $0x1cc] ss:$16 sps:$4 sm:$0xff]   ;;  %v7412_v62 = vld [vmem:[%s9241_s9 + $0x1c0] ss:$16 sps:$4 sm:$0xff]   ;;  %v7413_v63 = vld [vmem:[%s9241_s9 + $0x1c8] ss:$16 sps:$4 sm:$0xff]  }
 0x130   : > { %4818 = vmatprep.subr.bf16.mxu0 %v7354_v24  ;;  %5402 = vmatprep.subr.bf16.mxu1 %v7356_v25  ;;  %v7414_v0 = vld [vmem:[%s9241_s9 + $0x1e4] ss:$16 sps:$4 sm:$0xff]   ;;  %v7416_v1 = vld [vmem:[%s9241_s9 + $0x1ec] ss:$16 sps:$4 sm:$0xff]   ;;  %v7418_v3 = vld [vmem:[%s9241_s9 + $0x1e0] ss:$16 sps:$4 sm:$0xff]  }
 0x131   : > { %v7419_v4 = vld [vmem:[%s9241_s9 + $0x1e8] ss:$16 sps:$4 sm:$0xff]   ;;  %v7422_v5 = vld [vmem:[%s9241_s9 + $0x204] ss:$16 sps:$4 sm:$0xff]   ;;  %v7425_v6 = vld [vmem:[%s9241_s9 + $0x20c] ss:$16 sps:$4 sm:$0xff]  }
 0x132   : > { %v1368_v7 = vld [vmem:[%s10100_s0 + $0x80] sm:$0xff]  ;;  %v7423_v10 = vld [vmem:[%s9241_s9 + $0x208] ss:$16 sps:$4 sm:$0xff]   ;;  %v7431_v12 = vld [vmem:[%s9241_s9 + $0x22c] ss:$16 sps:$4 sm:$0xff]   ;;  %s10112_s20 = smov (!%p1275_p11, %s6444_s20), 15 }
 0x133   : > { %4819 = vmatpush1.bf16.msra.mxu0 %v7358_v26  ;;  %5403 = vmatpush1.bf16.msra.mxu1 %v7359_v27  ;;  %v1376_v8 = vld [vmem:[%s10100_s0 + $0xc0] sm:$0xff]  ;;  %v7429_v15 = vld [vmem:[%s9241_s9 + $0x228] ss:$16 sps:$4 sm:$0xff]   ;;  %v7437_v17 = vld [vmem:[%s9241_s9 + $0x24c] ss:$16 sps:$4 sm:$0xff]   ;;  %s1277_s25 = scalar_lea.vmem %s10102_s2, %s10112_s20  ;;  %s6443_s26 = sshll.u32 %s1233_s30, 7 }
 0x134   : > { %4820 = vmatprep.subr.bf16.mxu0 %v7360_v28  ;;  %5404 = vmatprep.subr.bf16.mxu1 %v7362_v29  ;;  %v7420_v9 = vld [vmem:[%s9241_s9 + $0x200] ss:$16 sps:$4 sm:$0xff]   ;;  %v7428_v11 = vld [vmem:[%s9241_s9 + $0x224] ss:$16 sps:$4 sm:$0xff]   ;;  %v6462_v13 = vcombine.high %v1368_v7, %v1376_v8  ;;  %v7435_v20 = vld [vmem:[%s9241_s9 + $0x248] ss:$16 sps:$4 sm:$0xff]   ;;  %v6461_v21 = vcombine.low %v1368_v7, %v1376_v8 }
 0x135   : > { %v7426_v14 = vld [vmem:[%s9241_s9 + $0x220] ss:$16 sps:$4 sm:$0xff]   ;;  %v7434_v16 = vld [vmem:[%s9241_s9 + $0x244] ss:$16 sps:$4 sm:$0xff]   ;;  %v7443_v23 = vld [vmem:[%s9241_s9 + $0x26c] ss:$16 sps:$4 sm:$0xff]  }
 0x136   : > { %v1384_v18 = vld [vmem:[%s10100_s0 + $0x100] sm:$0xff]  ;;  %v7441_v26 = vld [vmem:[%s9241_s9 + $0x268] ss:$16 sps:$4 sm:$0xff]   ;;  %v7449_v28 = vld [vmem:[%s9241_s9 + $0x28c] ss:$16 sps:$4 sm:$0xff]   ;;  %s10021_s12 = scalar_lea.vmem [#allocation4], %s6443_s26 }
 0x137   : > { %4821 = vmatpush1.bf16.msra.mxu0 %v7364_v30  ;;  %5405 = vmatpush1.bf16.msra.mxu1 %v7365_v31  ;;  %v7432_v19 = vld [vmem:[%s9241_s9 + $0x240] ss:$16 sps:$4 sm:$0xff]   ;;  %v7440_v22 = vld [vmem:[%s9241_s9 + $0x264] ss:$16 sps:$4 sm:$0xff]   ;;  %v7495_v7 = vld [vmem:[%s9241_s9 + $0x388] ss:$16 sps:$4 sm:$0xff]  }
 0x138   : > { %4822 = vmatprep.subr.bf16.mxu0 %v7366_v32  ;;  %5406 = vmatprep.subr.bf16.mxu1 %v7368_v33  ;;  %v7438_v25 = vld [vmem:[%s9241_s9 + $0x260] ss:$16 sps:$4 sm:$0xff]   ;;  %v7446_v27 = vld [vmem:[%s9241_s9 + $0x284] ss:$16 sps:$4 sm:$0xff]   ;;  %v7447_v32 = vld [vmem:[%s9241_s9 + $0x288] ss:$16 sps:$4 sm:$0xff]  }
 0x139   : > { %v1400_v29 = vld [vmem:[%s10100_s0 + $0x180] sm:$0xff]  ;;  %s7059_s30 = sshll.u32 (%p8187_p6), %s8122_s14, 4 }
 0x13a   : > { %v1408_v30 = vld [vmem:[%s10100_s0 + $0x1c0] sm:$0xff]  ;;  %s6285_s29 = scalar_lea.vmem (%p8187_p6), %s10103_s3, %s7059_s30 }
 0x13b   : > { %4823 = vmatpush1.bf16.msra.mxu0 %v7370_v34  ;;  %5407 = vmatpush1.bf16.msra.mxu1 %v7371_v35  ;;  %v7444_v31 = vld [vmem:[%s9241_s9 + $0x280] ss:$16 sps:$4 sm:$0xff]   ;;  %v7452_v34 = vld [vmem:[%s9241_s9 + $0x2a4] ss:$16 sps:$4 sm:$0xff]   ;;  %v7455_v35 = vld [vmem:[%s9241_s9 + $0x2ac] ss:$16 sps:$4 sm:$0xff]  }
 0x13c   : > { %4824 = vmatprep.subr.bf16.mxu0 %v7372_v36  ;;  %5408 = vmatprep.subr.bf16.mxu1 %v7374_v37  ;;  %v6494_v36 = vcombine.high %v1400_v29, %v1408_v30  ;;  %v7450_v37 = vld [vmem:[%s9241_s9 + $0x2a0] ss:$16 sps:$4 sm:$0xff]   ;;  %v7500_v8 = vld [vmem:[%s9241_s9 + $0x3a4] ss:$16 sps:$4 sm:$0xff]  }
 0x13f   : > { %4825 = vmatpush1.bf16.msra.mxu0 %v7376_v38  ;;  %5409 = vmatpush1.bf16.msra.mxu1 %v7377_v39  ;;  %v7453_v38 = vld [vmem:[%s9241_s9 + $0x2a8] ss:$16 sps:$4 sm:$0xff]   ;;  %v7458_v39 = vld [vmem:[%s9241_s9 + $0x2c4] ss:$16 sps:$4 sm:$0xff]  }
 0x140   : > { %4826 = vmatprep.subr.bf16.mxu0 %v7378_v40  ;;  %5410 = vmatprep.subr.bf16.mxu1 %v7380_v41  ;;  %v7461_v40 = vld [vmem:[%s9241_s9 + $0x2cc] ss:$16 sps:$4 sm:$0xff]  }
 0x141   : > { %v9356_v41 = vld [vmem:[%s10100_s0 + $0x8] sm:$0xff] }
 0x143   : > { %4827 = vmatpush1.bf16.msra.mxu0 %v7382_v42  ;;  %5411 = vmatpush1.bf16.msra.mxu1 %v7383_v43  ;;  %v6493_v42 = vcombine.low %v1400_v29, %v1408_v30  ;;  %v9361_v43 = vld [vmem:[%s10100_s0 + $0x48] sm:$0xff]  ;;  %v7522_v29 = vld [vmem:[%s9241_s9 + $0x420] ss:$16 sps:$4 sm:$0xff]  }
 0x144   : > { %4828 = vmatprep.subr.bf16.mxu0 %v7384_v44  ;;  %5412 = vmatprep.subr.bf16.mxu1 %v7386_v45  ;;  %v7456_v44 = vld [vmem:[%s9241_s9 + $0x2c0] ss:$16 sps:$4 sm:$0xff]   ;;  %v7459_v45 = vld [vmem:[%s9241_s9 + $0x2c8] ss:$16 sps:$4 sm:$0xff]  }
 0x145   : > { %v7525_v30 = vld [vmem:[%s9241_s9 + $0x428] ss:$16 sps:$4 sm:$0xff]  }
 0x147   : > { %4829 = vmatpush1.bf16.msra.mxu0 %v7388_v46  ;;  %5413 = vmatpush1.bf16.msra.mxu1 %v7389_v47  ;;  %v7464_v46 = vld [vmem:[%s9241_s9 + $0x2e4] ss:$16 sps:$4 sm:$0xff]   ;;  %v7467_v47 = vld [vmem:[%s9241_s9 + $0x2ec] ss:$16 sps:$4 sm:$0xff]  }
 0x148   : > { %4830 = vmatprep.subr.bf16.mxu0 %v7390_v48  ;;  %5414 = vmatprep.subr.bf16.mxu1 %v7392_v49  ;;  %v6448_v48 = vcombine.high %v9356_v41, %v9361_v43  ;;  %v7462_v49 = vld [vmem:[%s9241_s9 + $0x2e0] ss:$16 sps:$4 sm:$0xff]  }
 0x14b   : > { %4831 = vmatpush1.bf16.msra.mxu0 %v7394_v50  ;;  %5415 = vmatpush1.bf16.msra.mxu1 %v7395_v51  ;;  %v7465_v50 = vld [vmem:[%s9241_s9 + $0x2e8] ss:$16 sps:$4 sm:$0xff]   ;;  %v7470_v51 = vld [vmem:[%s9241_s9 + $0x304] ss:$16 sps:$4 sm:$0xff]  }
 0x14c   : > { %4832 = vmatprep.subr.bf16.mxu0 %v7396_v52  ;;  %5416 = vmatprep.subr.bf16.mxu1 %v7398_v53  ;;  %v7473_v52 = vld [vmem:[%s9241_s9 + $0x30c] ss:$16 sps:$4 sm:$0xff]   ;;  %v7468_v53 = vld [vmem:[%s9241_s9 + $0x300] ss:$16 sps:$4 sm:$0xff]  }
 0x14f   : > { %4833 = vmatpush1.bf16.msra.mxu0 %v7400_v54  ;;  %5417 = vmatpush1.bf16.msra.mxu1 %v7401_v55  ;;  %v7471_v54 = vld [vmem:[%s9241_s9 + $0x308] ss:$16 sps:$4 sm:$0xff]   ;;  %v7476_v55 = vld [vmem:[%s9241_s9 + $0x324] ss:$16 sps:$4 sm:$0xff]  }
 0x150   : > { %4834 = vmatprep.subr.bf16.mxu0 %v7402_v56  ;;  %5418 = vmatprep.subr.bf16.mxu1 %v7404_v57  ;;  %v7479_v56 = vld [vmem:[%s9241_s9 + $0x32c] ss:$16 sps:$4 sm:$0xff]   ;;  %v7474_v57 = vld [vmem:[%s9241_s9 + $0x320] ss:$16 sps:$4 sm:$0xff]  }
 0x153   : > { %4835 = vmatpush1.bf16.msra.mxu0 %v7406_v58  ;;  %5419 = vmatpush1.bf16.msra.mxu1 %v7407_v59  ;;  %v7477_v58 = vld [vmem:[%s9241_s9 + $0x328] ss:$16 sps:$4 sm:$0xff]   ;;  %v7482_v59 = vld [vmem:[%s9241_s9 + $0x344] ss:$16 sps:$4 sm:$0xff]  }
 0x154   : > { %4836 = vmatprep.subr.bf16.mxu0 %v7408_v60  ;;  %5420 = vmatprep.subr.bf16.mxu1 %v7410_v61  ;;  %v7485_v60 = vld [vmem:[%s9241_s9 + $0x34c] ss:$16 sps:$4 sm:$0xff]   ;;  %v7480_v61 = vld [vmem:[%s9241_s9 + $0x340] ss:$16 sps:$4 sm:$0xff]  }
 0x157   : > { %4837 = vmatpush1.bf16.msra.mxu0 %v7412_v62  ;;  %5421 = vmatpush1.bf16.msra.mxu1 %v7413_v63  ;;  %v7483_v62 = vld [vmem:[%s9241_s9 + $0x348] ss:$16 sps:$4 sm:$0xff]   ;;  %v7488_v63 = vld [vmem:[%s9241_s9 + $0x364] ss:$16 sps:$4 sm:$0xff]  }
 0x158   : > { %4838 = vmatprep.subr.bf16.mxu0 %v7414_v0  ;;  %5422 = vmatprep.subr.bf16.mxu1 %v7416_v1  ;;  %v7491_v0 = vld [vmem:[%s9241_s9 + $0x36c] ss:$16 sps:$4 sm:$0xff]   ;;  %v7486_v1 = vld [vmem:[%s9241_s9 + $0x360] ss:$16 sps:$4 sm:$0xff]  }
 0x15b   : > { %4839 = vmatpush1.bf16.msra.mxu0 %v7418_v3  ;;  %5423 = vmatpush1.bf16.msra.mxu1 %v7419_v4  ;;  %v7489_v3 = vld [vmem:[%s9241_s9 + $0x368] ss:$16 sps:$4 sm:$0xff]   ;;  %v7494_v4 = vld [vmem:[%s9241_s9 + $0x384] ss:$16 sps:$4 sm:$0xff]  }
 0x15c   : > { %4881 = vmatprep.subr.bf16.mxu0 %v7422_v5  ;;  %5465 = vmatprep.subr.bf16.mxu1 %v7425_v6  ;;  %v7497_v5 = vld [vmem:[%s9241_s9 + $0x38c] ss:$16 sps:$4 sm:$0xff]   ;;  %v7492_v6 = vld [vmem:[%s9241_s9 + $0x380] ss:$16 sps:$4 sm:$0xff]  }
 0x15e   : > { %4841 = vmatmul.mubr.bf16.vlgmr.msra.gmra.mrb[0].mxu0 %v9239_v2  ;;  %5425 = vmatmul.mubr.bf16.vlgmr.msra.gmra.mrb[0].mxu1 %v9239_v2  ;;  %v1392_v2 = vld [vmem:[%s10100_s0 + $0x140] sm:$0xff] }
 0x15f   : > { %4882 = vmatpush1.bf16.msra.mxu0 %v7420_v9  ;;  %5466 = vmatpush1.bf16.msra.mxu1 %v7423_v10  ;;  %v6478_v24 = vcombine.high %v1384_v18, %v1392_v2  ;;  %v6477_v33 = vcombine.low %v1384_v18, %v1392_v2  ;;  %v7503_v9 = vld [vmem:[%s9241_s9 + $0x3ac] ss:$16 sps:$4 sm:$0xff]   ;;  %v7498_v10 = vld [vmem:[%s9241_s9 + $0x3a0] ss:$16 sps:$4 sm:$0xff]   ;;  %v7513_v2 = vld [vmem:[%s9241_s9 + $0x3e8] ss:$16 sps:$4 sm:$0xff]  }
 0x160   : > { %4883 = vmatprep.subr.bf16.mxu0 %v7428_v11  ;;  %5467 = vmatprep.subr.bf16.mxu1 %v7431_v12  ;;  %v7501_v11 = vld [vmem:[%s9241_s9 + $0x3a8] ss:$16 sps:$4 sm:$0xff]   ;;  %v7506_v12 = vld [vmem:[%s9241_s9 + $0x3c4] ss:$16 sps:$4 sm:$0xff]   ;;  %v7510_v18 = vld [vmem:[%s9241_s9 + $0x3e0] ss:$16 sps:$4 sm:$0xff]  }
 0x161   : > { %4850 = vmatprep.mubr.bf16.mxu0 %v6462_v13  ;;  %5434 = vmatprep.mubr.bf16.mxu1 %v6462_v13  ;;  %v7509_v13 = vld [vmem:[%s9241_s9 + $0x3cc] ss:$16 sps:$4 sm:$0xff]  }
 0x163   : > { %4884 = vmatpush1.bf16.msra.mxu0 %v7426_v14  ;;  %5468 = vmatpush1.bf16.msra.mxu1 %v7429_v15  ;;  %v7504_v14 = vld [vmem:[%s9241_s9 + $0x3c0] ss:$16 sps:$4 sm:$0xff]   ;;  %v7507_v15 = vld [vmem:[%s9241_s9 + $0x3c8] ss:$16 sps:$4 sm:$0xff]  }
 0x164   : > { %4885 = vmatprep.subr.bf16.mxu0 %v7434_v16  ;;  %5469 = vmatprep.subr.bf16.mxu1 %v7437_v17  ;;  %v7512_v16 = vld [vmem:[%s9241_s9 + $0x3e4] ss:$16 sps:$4 sm:$0xff]   ;;  %v7515_v17 = vld [vmem:[%s9241_s9 + $0x3ec] ss:$16 sps:$4 sm:$0xff]  }
 0x166   : > { %4851 = vmatmul.mubr.bf16.gmra.mrb[4].mxu0 %v6461_v21  ;;  %5435 = vmatmul.mubr.bf16.gmra.mrb[4].mxu1 %v6461_v21  ;;  %v7516_v21 = vld [vmem:[%s9241_s9 + $0x400] ss:$16 sps:$4 sm:$0xff]  }
 0x167   : > { %4886 = vmatpush1.bf16.msra.mxu0 %v7432_v19  ;;  %5470 = vmatpush1.bf16.msra.mxu1 %v7435_v20  ;;  %v7518_v19 = vld [vmem:[%s9241_s9 + $0x404] ss:$16 sps:$4 sm:$0xff]   ;;  %v7521_v20 = vld [vmem:[%s9241_s9 + $0x40c] ss:$16 sps:$4 sm:$0xff]  }
 0x168   : > { %4887 = vmatprep.subr.bf16.mxu0 %v7440_v22  ;;  %5471 = vmatprep.subr.bf16.mxu1 %v7443_v23  ;;  %v7519_v22 = vld [vmem:[%s9241_s9 + $0x408] ss:$16 sps:$4 sm:$0xff]   ;;  %v6447_v23 = vcombine.low %v9356_v41, %v9361_v43  ;;  %v7534_v41 = vld [vmem:[%s9241_s9 + $0x460] ss:$16 sps:$4 sm:$0xff]   ;;  %v7542_v43 = vld [vmem:[%s9241_s9 + $0x484] ss:$16 sps:$4 sm:$0xff]  }
 0x169   : > { %4860 = vmatprep.mubr.bf16.mxu0 %v6478_v24  ;;  %5444 = vmatprep.mubr.bf16.mxu1 %v6478_v24  ;;  %v1369_v24 = vld [vmem:[%s10100_s0 + $0x88] sm:$0xff] }
 0x16b   : > { %4888 = vmatpush1.bf16.msra.mxu0 %v7438_v25  ;;  %5472 = vmatpush1.bf16.msra.mxu1 %v7441_v26  ;;  %v1377_v25 = vld [vmem:[%s10100_s0 + $0xc8] sm:$0xff]  ;;  %v7524_v26 = vld [vmem:[%s9241_s9 + $0x424] ss:$16 sps:$4 sm:$0xff]  }
 0x16c   : > { %4889 = vmatprep.subr.bf16.mxu0 %v7446_v27  ;;  %5473 = vmatprep.subr.bf16.mxu1 %v7449_v28  ;;  %v7527_v27 = vld [vmem:[%s9241_s9 + $0x42c] ss:$16 sps:$4 sm:$0xff]   ;;  %v6464_v28 = vcombine.high %v1369_v24, %v1377_v25 }
 0x16e   : > { %4861 = vmatmul.mubr.bf16.gmra.mrb[8].mxu0 %v6477_v33  ;;  %5445 = vmatmul.mubr.bf16.gmra.mrb[8].mxu1 %v6477_v33  ;;  %v1385_v33 = vld [vmem:[%s10100_s0 + $0x108] sm:$0xff] }
 0x16f   : > { %4890 = vmatpush1.bf16.msra.mxu0 %v7444_v31  ;;  %5474 = vmatpush1.bf16.msra.mxu1 %v7447_v32  ;;  %v7530_v31 = vld [vmem:[%s9241_s9 + $0x444] ss:$16 sps:$4 sm:$0xff]   ;;  %v7533_v32 = vld [vmem:[%s9241_s9 + $0x44c] ss:$16 sps:$4 sm:$0xff]  }
 0x170   : > { %4891 = vmatprep.subr.bf16.mxu0 %v7452_v34  ;;  %5475 = vmatprep.subr.bf16.mxu1 %v7455_v35  ;;  %v6463_v34 = vcombine.low %v1369_v24, %v1377_v25  ;;  %v1393_v35 = vld [vmem:[%s10100_s0 + $0x148] sm:$0xff]  ;;  %v7594_v25 = vld [vmem:[%s9241_s9 + $0x5a0] ss:$16 sps:$4 sm:$0xff]  }
 0x171   : > { %4870 = vmatprep.mubr.bf16.mxu0 %v6494_v36  ;;  %5454 = vmatprep.mubr.bf16.mxu1 %v6494_v36  ;;  %v7528_v36 = vld [vmem:[%s9241_s9 + $0x440] ss:$16 sps:$4 sm:$0xff]   ;;  %v7599_v24 = vld [vmem:[%s9241_s9 + $0x5ac] ss:$16 sps:$4 sm:$0xff]  }
 0x173   : > { %4892 = vmatpush1.bf16.msra.mxu0 %v7450_v37  ;;  %5476 = vmatpush1.bf16.msra.mxu1 %v7453_v38  ;;  %v7531_v37 = vld [vmem:[%s9241_s9 + $0x448] ss:$16 sps:$4 sm:$0xff]   ;;  %v7536_v38 = vld [vmem:[%s9241_s9 + $0x464] ss:$16 sps:$4 sm:$0xff]  }
 0x174   : > { %4893 = vmatprep.subr.bf16.mxu0 %v7458_v39  ;;  %5477 = vmatprep.subr.bf16.mxu1 %v7461_v40  ;;  %v7539_v39 = vld [vmem:[%s9241_s9 + $0x46c] ss:$16 sps:$4 sm:$0xff]   ;;  %v6480_v40 = vcombine.high %v1385_v33, %v1393_v35 }
 0x176   : > { %4871 = vmatmul.mubr.bf16.gmra.mrb[12].mxu0 %v6493_v42  ;;  %5455 = vmatmul.mubr.bf16.gmra.mrb[12].mxu1 %v6493_v42  ;;  %v7537_v42 = vld [vmem:[%s9241_s9 + $0x468] ss:$16 sps:$4 sm:$0xff]  }
 0x177   : > { %4894 = vmatpush1.bf16.msra.mxu0 %v7456_v44  ;;  %5478 = vmatpush1.bf16.msra.mxu1 %v7459_v45  ;;  %v7545_v44 = vld [vmem:[%s9241_s9 + $0x48c] ss:$16 sps:$4 sm:$0xff]  }
 0x178   : > { %4895 = vmatprep.subr.bf16.mxu0 %v7464_v46  ;;  %5479 = vmatprep.subr.bf16.mxu1 %v7467_v47  ;;  %v1401_v45 = vld [vmem:[%s10100_s0 + $0x188] sm:$0xff]  ;;  %v6479_v46 = vcombine.low %v1385_v33, %v1393_v35  ;;  %v7606_v33 = vld [vmem:[%s9241_s9 + $0x5e0] ss:$16 sps:$4 sm:$0xff]   ;;  %v7614_v35 = vld [vmem:[%s9241_s9 + $0x604] ss:$16 sps:$4 sm:$0xff]  }
 0x179   : > { %4913 = vmatprep.mubr.bf16.mxu0 %v6448_v48  ;;  %5497 = vmatprep.mubr.bf16.mxu1 %v6448_v48  ;;  %v1409_v47 = vld [vmem:[%s10100_s0 + $0x1c8] sm:$0xff]  ;;  %v7540_v48 = vld [vmem:[%s9241_s9 + $0x480] ss:$16 sps:$4 sm:$0xff]  }
 0x17b   : > { %4896 = vmatpush1.bf16.msra.mxu0 %v7462_v49  ;;  %5480 = vmatpush1.bf16.msra.mxu1 %v7465_v50  ;;  %v7543_v49 = vld [vmem:[%s9241_s9 + $0x488] ss:$16 sps:$4 sm:$0xff]   ;;  %v7548_v50 = vld [vmem:[%s9241_s9 + $0x4a4] ss:$16 sps:$4 sm:$0xff]  }
 0x17c   : > { %4897 = vmatprep.subr.bf16.mxu0 %v7470_v51  ;;  %5481 = vmatprep.subr.bf16.mxu1 %v7473_v52  ;;  %v7551_v51 = vld [vmem:[%s9241_s9 + $0x4ac] ss:$16 sps:$4 sm:$0xff]   ;;  %v6496_v52 = vcombine.high %v1401_v45, %v1409_v47 }
 0x17f   : > { %4898 = vmatpush1.bf16.msra.mxu0 %v7468_v53  ;;  %5482 = vmatpush1.bf16.msra.mxu1 %v7471_v54  ;;  %v7546_v53 = vld [vmem:[%s9241_s9 + $0x4a0] ss:$16 sps:$4 sm:$0xff]   ;;  %v7549_v54 = vld [vmem:[%s9241_s9 + $0x4a8] ss:$16 sps:$4 sm:$0xff]  }
 0x180   : > { %4899 = vmatprep.subr.bf16.mxu0 %v7476_v55  ;;  %5483 = vmatprep.subr.bf16.mxu1 %v7479_v56  ;;  %v7554_v55 = vld [vmem:[%s9241_s9 + $0x4c4] ss:$16 sps:$4 sm:$0xff]   ;;  %v7557_v56 = vld [vmem:[%s9241_s9 + $0x4cc] ss:$16 sps:$4 sm:$0xff]  }
 0x183   : > { %4900 = vmatpush1.bf16.msra.mxu0 %v7474_v57  ;;  %5484 = vmatpush1.bf16.msra.mxu1 %v7477_v58  ;;  %v9452_v57 = vld [vmem:[%s10100_s0 + $0x10] sm:$0xff]  ;;  %v6495_v58 = vcombine.low %v1401_v45, %v1409_v47 }
 0x184   : > { %4901 = vmatprep.subr.bf16.mxu0 %v7482_v59  ;;  %5485 = vmatprep.subr.bf16.mxu1 %v7485_v60  ;;  %v9457_v59 = vld [vmem:[%s10100_s0 + $0x50] sm:$0xff] }
 0x185   : > { %v7552_v60 = vld [vmem:[%s9241_s9 + $0x4c0] ss:$16 sps:$4 sm:$0xff]   ;;  %v7626_v47 = vld [vmem:[%s9241_s9 + $0x644] ss:$16 sps:$4 sm:$0xff]  }
 0x186   : > { %v7618_v45 = vld [vmem:[%s9241_s9 + $0x620] ss:$16 sps:$4 sm:$0xff]  }
 0x187   : > { %4902 = vmatpush1.bf16.msra.mxu0 %v7480_v61  ;;  %5486 = vmatpush1.bf16.msra.mxu1 %v7483_v62  ;;  %v7555_v61 = vld [vmem:[%s9241_s9 + $0x4c8] ss:$16 sps:$4 sm:$0xff]   ;;  %v7560_v62 = vld [vmem:[%s9241_s9 + $0x4e4] ss:$16 sps:$4 sm:$0xff]  }
 0x188   : > { %4903 = vmatprep.subr.bf16.mxu0 %v7488_v63  ;;  %5487 = vmatprep.subr.bf16.mxu1 %v7491_v0  ;;  %v7563_v63 = vld [vmem:[%s9241_s9 + $0x4ec] ss:$16 sps:$4 sm:$0xff]   ;;  %v6450_v0 = vcombine.high %v9452_v57, %v9457_v59 }
 0x18b   : > { %4904 = vmatpush1.bf16.msra.mxu0 %v7486_v1  ;;  %5488 = vmatpush1.bf16.msra.mxu1 %v7489_v3  ;;  %v7558_v1 = vld [vmem:[%s9241_s9 + $0x4e0] ss:$16 sps:$4 sm:$0xff]   ;;  %v7561_v3 = vld [vmem:[%s9241_s9 + $0x4e8] ss:$16 sps:$4 sm:$0xff]  }
 0x18c   : > { %4905 = vmatprep.subr.bf16.mxu0 %v7494_v4  ;;  %5489 = vmatprep.subr.bf16.mxu1 %v7497_v5  ;;  %v7566_v4 = vld [vmem:[%s9241_s9 + $0x504] ss:$16 sps:$4 sm:$0xff]   ;;  %v7569_v5 = vld [vmem:[%s9241_s9 + $0x50c] ss:$16 sps:$4 sm:$0xff]  }
 0x18f   : > { %4906 = vmatpush1.bf16.msra.mxu0 %v7492_v6  ;;  %5490 = vmatpush1.bf16.msra.mxu1 %v7495_v7  ;;  %v7564_v6 = vld [vmem:[%s9241_s9 + $0x500] ss:$16 sps:$4 sm:$0xff]   ;;  %v7567_v7 = vld [vmem:[%s9241_s9 + $0x508] ss:$16 sps:$4 sm:$0xff]  }
 0x190   : > { %4907 = vmatprep.subr.bf16.mxu0 %v7500_v8  ;;  %5491 = vmatprep.subr.bf16.mxu1 %v7503_v9  ;;  %v7572_v8 = vld [vmem:[%s9241_s9 + $0x524] ss:$16 sps:$4 sm:$0xff]   ;;  %v7575_v9 = vld [vmem:[%s9241_s9 + $0x52c] ss:$16 sps:$4 sm:$0xff]  }
 0x193   : > { %4908 = vmatpush1.bf16.msra.mxu0 %v7498_v10  ;;  %5492 = vmatpush1.bf16.msra.mxu1 %v7501_v11  ;;  %v7570_v10 = vld [vmem:[%s9241_s9 + $0x520] ss:$16 sps:$4 sm:$0xff]   ;;  %v7573_v11 = vld [vmem:[%s9241_s9 + $0x528] ss:$16 sps:$4 sm:$0xff]  }
 0x194   : > { %4909 = vmatprep.subr.bf16.mxu0 %v7506_v12  ;;  %5493 = vmatprep.subr.bf16.mxu1 %v7509_v13  ;;  %v7578_v12 = vld [vmem:[%s9241_s9 + $0x544] ss:$16 sps:$4 sm:$0xff]   ;;  %v7581_v13 = vld [vmem:[%s9241_s9 + $0x54c] ss:$16 sps:$4 sm:$0xff]  }
 0x197   : > { %4910 = vmatpush1.bf16.msra.mxu0 %v7504_v14  ;;  %5494 = vmatpush1.bf16.msra.mxu1 %v7507_v15  ;;  %v7576_v14 = vld [vmem:[%s9241_s9 + $0x540] ss:$16 sps:$4 sm:$0xff]   ;;  %v7579_v15 = vld [vmem:[%s9241_s9 + $0x548] ss:$16 sps:$4 sm:$0xff]  }
 0x198   : > { %4911 = vmatprep.subr.bf16.mxu0 %v7512_v16  ;;  %5495 = vmatprep.subr.bf16.mxu1 %v7515_v17  ;;  %v7584_v16 = vld [vmem:[%s9241_s9 + $0x564] ss:$16 sps:$4 sm:$0xff]   ;;  %v7587_v17 = vld [vmem:[%s9241_s9 + $0x56c] ss:$16 sps:$4 sm:$0xff]  }
 0x19b   : > { %4912 = vmatpush1.bf16.msra.mxu0 %v7510_v18  ;;  %5496 = vmatpush1.bf16.msra.mxu1 %v7513_v2  ;;  %v7582_v18 = vld [vmem:[%s9241_s9 + $0x560] ss:$16 sps:$4 sm:$0xff]   ;;  %v7585_v2 = vld [vmem:[%s9241_s9 + $0x568] ss:$16 sps:$4 sm:$0xff]  }
 0x19c   : > { %4954 = vmatprep.subr.bf16.mxu0 %v7518_v19  ;;  %5538 = vmatprep.subr.bf16.mxu1 %v7521_v20  ;;  %v7590_v19 = vld [vmem:[%s9241_s9 + $0x584] ss:$16 sps:$4 sm:$0xff]   ;;  %v7593_v20 = vld [vmem:[%s9241_s9 + $0x58c] ss:$16 sps:$4 sm:$0xff]  }
 0x19e   : > { %4914 = vmatmul.mubr.bf16.vlgmr.msra.gmra.mrb[0].mxu0 %v6447_v23  ;;  %5498 = vmatmul.mubr.bf16.vlgmr.msra.gmra.mrb[0].mxu1 %v6447_v23  ;;  %v7596_v23 = vld [vmem:[%s9241_s9 + $0x5a4] ss:$16 sps:$4 sm:$0xff]  }
 0x19f   : > { %4955 = vmatpush1.bf16.msra.mxu0 %v7516_v21  ;;  %5539 = vmatpush1.bf16.msra.mxu1 %v7519_v22  ;;  %v7588_v21 = vld [vmem:[%s9241_s9 + $0x580] ss:$16 sps:$4 sm:$0xff]   ;;  %v7591_v22 = vld [vmem:[%s9241_s9 + $0x588] ss:$16 sps:$4 sm:$0xff]  }
 0x1a0   : > { %4956 = vmatprep.subr.bf16.mxu0 %v7524_v26  ;;  %5540 = vmatprep.subr.bf16.mxu1 %v7527_v27  ;;  %v7597_v26 = vld [vmem:[%s9241_s9 + $0x5a8] ss:$16 sps:$4 sm:$0xff]   ;;  %v7602_v27 = vld [vmem:[%s9241_s9 + $0x5c4] ss:$16 sps:$4 sm:$0xff]  }
 0x1a1   : > { %4923 = vmatprep.mubr.bf16.mxu0 %v6464_v28  ;;  %5507 = vmatprep.mubr.bf16.mxu1 %v6464_v28  ;;  %v7605_v28 = vld [vmem:[%s9241_s9 + $0x5cc] ss:$16 sps:$4 sm:$0xff]  }
 0x1a3   : > { %4957 = vmatpush1.bf16.msra.mxu0 %v7522_v29  ;;  %5541 = vmatpush1.bf16.msra.mxu1 %v7525_v30  ;;  %v7600_v29 = vld [vmem:[%s9241_s9 + $0x5c0] ss:$16 sps:$4 sm:$0xff]   ;;  %v7603_v30 = vld [vmem:[%s9241_s9 + $0x5c8] ss:$16 sps:$4 sm:$0xff]  }
 0x1a4   : > { %4958 = vmatprep.subr.bf16.mxu0 %v7530_v31  ;;  %5542 = vmatprep.subr.bf16.mxu1 %v7533_v32  ;;  %v7608_v31 = vld [vmem:[%s9241_s9 + $0x5e4] ss:$16 sps:$4 sm:$0xff]   ;;  %v7611_v32 = vld [vmem:[%s9241_s9 + $0x5ec] ss:$16 sps:$4 sm:$0xff]  }
 0x1a6   : > { %4924 = vmatmul.mubr.bf16.gmra.mrb[4].mxu0 %v6463_v34  ;;  %5508 = vmatmul.mubr.bf16.gmra.mrb[4].mxu1 %v6463_v34  ;;  %v7609_v34 = vld [vmem:[%s9241_s9 + $0x5e8] ss:$16 sps:$4 sm:$0xff]  }
 0x1a7   : > { %4959 = vmatpush1.bf16.msra.mxu0 %v7528_v36  ;;  %5543 = vmatpush1.bf16.msra.mxu1 %v7531_v37  ;;  %v7617_v36 = vld [vmem:[%s9241_s9 + $0x60c] ss:$16 sps:$4 sm:$0xff]   ;;  %v1370_v37 = vld [vmem:[%s10100_s0 + $0x90] sm:$0xff] }
 0x1a8   : > { %4960 = vmatprep.subr.bf16.mxu0 %v7536_v38  ;;  %5544 = vmatprep.subr.bf16.mxu1 %v7539_v39  ;;  %v6449_v38 = vcombine.low %v9452_v57, %v9457_v59  ;;  %v1378_v39 = vld [vmem:[%s10100_s0 + $0xd0] sm:$0xff] }
 0x1a9   : > { %4933 = vmatprep.mubr.bf16.mxu0 %v6480_v40  ;;  %5517 = vmatprep.mubr.bf16.mxu1 %v6480_v40  ;;  %v7612_v40 = vld [vmem:[%s9241_s9 + $0x600] ss:$16 sps:$4 sm:$0xff]   ;;  %v7638_v59 = vld [vmem:[%s9241_s9 + $0x684] ss:$16 sps:$4 sm:$0xff]  }
 0x1aa   : > { %v7630_v57 = vld [vmem:[%s9241_s9 + $0x660] ss:$16 sps:$4 sm:$0xff]  }
 0x1ab   : > { %4961 = vmatpush1.bf16.msra.mxu0 %v7534_v41  ;;  %5545 = vmatpush1.bf16.msra.mxu1 %v7537_v42  ;;  %v7615_v41 = vld [vmem:[%s9241_s9 + $0x608] ss:$16 sps:$4 sm:$0xff]   ;;  %v7620_v42 = vld [vmem:[%s9241_s9 + $0x624] ss:$16 sps:$4 sm:$0xff]  }
 0x1ac   : > { %4962 = vmatprep.subr.bf16.mxu0 %v7542_v43  ;;  %5546 = vmatprep.subr.bf16.mxu1 %v7545_v44  ;;  %v7623_v43 = vld [vmem:[%s9241_s9 + $0x62c] ss:$16 sps:$4 sm:$0xff]   ;;  %v6466_v44 = vcombine.high %v1370_v37, %v1378_v39 }
 0x1ae   : > { %4934 = vmatmul.mubr.bf16.gmra.mrb[8].mxu0 %v6479_v46  ;;  %5518 = vmatmul.mubr.bf16.gmra.mrb[8].mxu1 %v6479_v46  ;;  %v7621_v46 = vld [vmem:[%s9241_s9 + $0x628] ss:$16 sps:$4 sm:$0xff]  }
 0x1af   : > { %4963 = vmatpush1.bf16.msra.mxu0 %v7540_v48  ;;  %5547 = vmatpush1.bf16.msra.mxu1 %v7543_v49  ;;  %v7629_v48 = vld [vmem:[%s9241_s9 + $0x64c] ss:$16 sps:$4 sm:$0xff]   ;;  %v1386_v49 = vld [vmem:[%s10100_s0 + $0x110] sm:$0xff] }
 0x1b0   : > { %4964 = vmatprep.subr.bf16.mxu0 %v7548_v50  ;;  %5548 = vmatprep.subr.bf16.mxu1 %v7551_v51  ;;  %v6465_v50 = vcombine.low %v1370_v37, %v1378_v39  ;;  %v1394_v51 = vld [vmem:[%s10100_s0 + $0x150] sm:$0xff] }
 0x1b1   : > { %4943 = vmatprep.mubr.bf16.mxu0 %v6496_v52  ;;  %5527 = vmatprep.mubr.bf16.mxu1 %v6496_v52  ;;  %v7624_v52 = vld [vmem:[%s9241_s9 + $0x640] ss:$16 sps:$4 sm:$0xff]   ;;  %v7692_v39 = vld [vmem:[%s9241_s9 + $0x7a4] ss:$16 sps:$4 sm:$0xff]  }
 0x1b2   : > { %v7684_v37 = vld [vmem:[%s9241_s9 + $0x780] ss:$16 sps:$4 sm:$0xff]  }
 0x1b3   : > { %4965 = vmatpush1.bf16.msra.mxu0 %v7546_v53  ;;  %5549 = vmatpush1.bf16.msra.mxu1 %v7549_v54  ;;  %v7627_v53 = vld [vmem:[%s9241_s9 + $0x648] ss:$16 sps:$4 sm:$0xff]   ;;  %v7632_v54 = vld [vmem:[%s9241_s9 + $0x664] ss:$16 sps:$4 sm:$0xff]  }
 0x1b4   : > { %4966 = vmatprep.subr.bf16.mxu0 %v7554_v55  ;;  %5550 = vmatprep.subr.bf16.mxu1 %v7557_v56  ;;  %v7635_v55 = vld [vmem:[%s9241_s9 + $0x66c] ss:$16 sps:$4 sm:$0xff]   ;;  %v6482_v56 = vcombine.high %v1386_v49, %v1394_v51 }
 0x1b6   : > { %4944 = vmatmul.mubr.bf16.gmra.mrb[12].mxu0 %v6495_v58  ;;  %5528 = vmatmul.mubr.bf16.gmra.mrb[12].mxu1 %v6495_v58  ;;  %v7633_v58 = vld [vmem:[%s9241_s9 + $0x668] ss:$16 sps:$4 sm:$0xff]  }
 0x1b7   : > { %4967 = vmatpush1.bf16.msra.mxu0 %v7552_v60  ;;  %5551 = vmatpush1.bf16.msra.mxu1 %v7555_v61  ;;  %v7641_v60 = vld [vmem:[%s9241_s9 + $0x68c] ss:$16 sps:$4 sm:$0xff]   ;;  %v7636_v61 = vld [vmem:[%s9241_s9 + $0x680] ss:$16 sps:$4 sm:$0xff]  }
 0x1b8   : > { %4968 = vmatprep.subr.bf16.mxu0 %v7560_v62  ;;  %5552 = vmatprep.subr.bf16.mxu1 %v7563_v63  ;;  %v6481_v62 = vcombine.low %v1386_v49, %v1394_v51  ;;  %v1402_v63 = vld [vmem:[%s10100_s0 + $0x190] sm:$0xff] }
 0x1b9   : > { %4986 = vmatprep.mubr.bf16.mxu0 %v6450_v0  ;;  %5570 = vmatprep.mubr.bf16.mxu1 %v6450_v0  ;;  %v1410_v0 = vld [vmem:[%s10100_s0 + $0x1d0] sm:$0xff] }
 0x1ba   : > { %v7702_v49 = vld [vmem:[%s9241_s9 + $0x7e0] ss:$16 sps:$4 sm:$0xff]   ;;  %v7710_v51 = vld [vmem:[%s9241_s9 + $0x804] ss:$16 sps:$4 sm:$0xff]  }
 0x1bb   : > { %4969 = vmatpush1.bf16.msra.mxu0 %v7558_v1  ;;  %5553 = vmatpush1.bf16.msra.mxu1 %v7561_v3  ;;  %v7639_v1 = vld [vmem:[%s9241_s9 + $0x688] ss:$16 sps:$4 sm:$0xff]   ;;  %v7644_v3 = vld [vmem:[%s9241_s9 + $0x6a4] ss:$16 sps:$4 sm:$0xff]  }
 0x1bc   : > { %4970 = vmatprep.subr.bf16.mxu0 %v7566_v4  ;;  %5554 = vmatprep.subr.bf16.mxu1 %v7569_v5  ;;  %v7647_v4 = vld [vmem:[%s9241_s9 + $0x6ac] ss:$16 sps:$4 sm:$0xff]   ;;  %v6498_v5 = vcombine.high %v1402_v63, %v1410_v0 }
 0x1bf   : > { %4971 = vmatpush1.bf16.msra.mxu0 %v7564_v6  ;;  %5555 = vmatpush1.bf16.msra.mxu1 %v7567_v7  ;;  %v7642_v6 = vld [vmem:[%s9241_s9 + $0x6a0] ss:$16 sps:$4 sm:$0xff]   ;;  %v7645_v7 = vld [vmem:[%s9241_s9 + $0x6a8] ss:$16 sps:$4 sm:$0xff]  }
 0x1c0   : > { %4972 = vmatprep.subr.bf16.mxu0 %v7572_v8  ;;  %5556 = vmatprep.subr.bf16.mxu1 %v7575_v9  ;;  %v7650_v8 = vld [vmem:[%s9241_s9 + $0x6c4] ss:$16 sps:$4 sm:$0xff]   ;;  %v7653_v9 = vld [vmem:[%s9241_s9 + $0x6cc] ss:$16 sps:$4 sm:$0xff]  }
 0x1c3   : > { %4973 = vmatpush1.bf16.msra.mxu0 %v7570_v10  ;;  %5557 = vmatpush1.bf16.msra.mxu1 %v7573_v11  ;;  %v7648_v10 = vld [vmem:[%s9241_s9 + $0x6c0] ss:$16 sps:$4 sm:$0xff]   ;;  %v7651_v11 = vld [vmem:[%s9241_s9 + $0x6c8] ss:$16 sps:$4 sm:$0xff]  }
 0x1c4   : > { %4974 = vmatprep.subr.bf16.mxu0 %v7578_v12  ;;  %5558 = vmatprep.subr.bf16.mxu1 %v7581_v13  ;;  %v6497_v12 = vcombine.low %v1402_v63, %v1410_v0  ;;  %v9550_v13 = vld [vmem:[%s10100_s0 + $0x18] sm:$0xff]  ;;  %v7722_v63 = vld [vmem:[%s9241_s9 + $0x844] ss:$16 sps:$4 sm:$0xff]  }
 0x1c5   : > { %v7725_v0 = vld [vmem:[%s9241_s9 + $0x84c] ss:$16 sps:$4 sm:$0xff]  }
 0x1c7   : > { %4975 = vmatpush1.bf16.msra.mxu0 %v7576_v14  ;;  %5559 = vmatpush1.bf16.msra.mxu1 %v7579_v15  ;;  %v9555_v14 = vld [vmem:[%s10100_s0 + $0x58] sm:$0xff]  ;;  %v7656_v15 = vld [vmem:[%s9241_s9 + $0x6e4] ss:$16 sps:$4 sm:$0xff]  }
 0x1c8   : > { %4976 = vmatprep.subr.bf16.mxu0 %v7584_v16  ;;  %5560 = vmatprep.subr.bf16.mxu1 %v7587_v17  ;;  %v7659_v16 = vld [vmem:[%s9241_s9 + $0x6ec] ss:$16 sps:$4 sm:$0xff]   ;;  %v6452_v17 = vcombine.high %v9550_v13, %v9555_v14 }
 0x1cb   : > { %4977 = vmatpush1.bf16.msra.mxu0 %v7582_v18  ;;  %5561 = vmatpush1.bf16.msra.mxu1 %v7585_v2  ;;  %v7654_v18 = vld [vmem:[%s9241_s9 + $0x6e0] ss:$16 sps:$4 sm:$0xff]   ;;  %v7657_v2 = vld [vmem:[%s9241_s9 + $0x6e8] ss:$16 sps:$4 sm:$0xff]  }
 0x1cc   : > { %4978 = vmatprep.subr.bf16.mxu0 %v7590_v19  ;;  %5562 = vmatprep.subr.bf16.mxu1 %v7593_v20  ;;  %v7662_v19 = vld [vmem:[%s9241_s9 + $0x704] ss:$16 sps:$4 sm:$0xff]   ;;  %v7665_v20 = vld [vmem:[%s9241_s9 + $0x70c] ss:$16 sps:$4 sm:$0xff]  }
 0x1cf   : > { %4979 = vmatpush1.bf16.msra.mxu0 %v7588_v21  ;;  %5563 = vmatpush1.bf16.msra.mxu1 %v7591_v22  ;;  %v7660_v21 = vld [vmem:[%s9241_s9 + $0x700] ss:$16 sps:$4 sm:$0xff]   ;;  %v7663_v22 = vld [vmem:[%s9241_s9 + $0x708] ss:$16 sps:$4 sm:$0xff]  }
 0x1d0   : > { %4980 = vmatprep.subr.bf16.mxu0 %v7596_v23  ;;  %5564 = vmatprep.subr.bf16.mxu1 %v7599_v24  ;;  %v7668_v23 = vld [vmem:[%s9241_s9 + $0x724] ss:$16 sps:$4 sm:$0xff]   ;;  %v7671_v24 = vld [vmem:[%s9241_s9 + $0x72c] ss:$16 sps:$4 sm:$0xff]  }
 0x1d3   : > { %4981 = vmatpush1.bf16.msra.mxu0 %v7594_v25  ;;  %5565 = vmatpush1.bf16.msra.mxu1 %v7597_v26  ;;  %v7666_v25 = vld [vmem:[%s9241_s9 + $0x720] ss:$16 sps:$4 sm:$0xff]   ;;  %v7669_v26 = vld [vmem:[%s9241_s9 + $0x728] ss:$16 sps:$4 sm:$0xff]  }
 0x1d4   : > { %4982 = vmatprep.subr.bf16.mxu0 %v7602_v27  ;;  %5566 = vmatprep.subr.bf16.mxu1 %v7605_v28  ;;  %v7674_v27 = vld [vmem:[%s9241_s9 + $0x744] ss:$16 sps:$4 sm:$0xff]   ;;  %v7677_v28 = vld [vmem:[%s9241_s9 + $0x74c] ss:$16 sps:$4 sm:$0xff]  }
 0x1d7   : > { %4983 = vmatpush1.bf16.msra.mxu0 %v7600_v29  ;;  %5567 = vmatpush1.bf16.msra.mxu1 %v7603_v30  ;;  %v7672_v29 = vld [vmem:[%s9241_s9 + $0x740] ss:$16 sps:$4 sm:$0xff]   ;;  %v7675_v30 = vld [vmem:[%s9241_s9 + $0x748] ss:$16 sps:$4 sm:$0xff]  }
 0x1d8   : > { %4984 = vmatprep.subr.bf16.mxu0 %v7608_v31  ;;  %5568 = vmatprep.subr.bf16.mxu1 %v7611_v32  ;;  %v7680_v31 = vld [vmem:[%s9241_s9 + $0x764] ss:$16 sps:$4 sm:$0xff]   ;;  %v7683_v32 = vld [vmem:[%s9241_s9 + $0x76c] ss:$16 sps:$4 sm:$0xff]  }
 0x1db   : > { %4985 = vmatpush1.bf16.msra.mxu0 %v7606_v33  ;;  %5569 = vmatpush1.bf16.msra.mxu1 %v7609_v34  ;;  %v7678_v33 = vld [vmem:[%s9241_s9 + $0x760] ss:$16 sps:$4 sm:$0xff]   ;;  %v7681_v34 = vld [vmem:[%s9241_s9 + $0x768] ss:$16 sps:$4 sm:$0xff]  }
 0x1dc   : > { %5027 = vmatprep.subr.bf16.mxu0 %v7614_v35  ;;  %5611 = vmatprep.subr.bf16.mxu1 %v7617_v36  ;;  %v7686_v35 = vld [vmem:[%s9241_s9 + $0x784] ss:$16 sps:$4 sm:$0xff]   ;;  %v7689_v36 = vld [vmem:[%s9241_s9 + $0x78c] ss:$16 sps:$4 sm:$0xff]  }
 0x1de   : > { %4987 = vmatmul.mubr.bf16.vlgmr.msra.gmra.mrb[0].mxu0 %v6449_v38  ;;  %5571 = vmatmul.mubr.bf16.vlgmr.msra.gmra.mrb[0].mxu1 %v6449_v38  ;;  %v7687_v38 = vld [vmem:[%s9241_s9 + $0x788] ss:$16 sps:$4 sm:$0xff]  }
 0x1df   : > { %5028 = vmatpush1.bf16.msra.mxu0 %v7612_v40  ;;  %5612 = vmatpush1.bf16.msra.mxu1 %v7615_v41  ;;  %v7695_v40 = vld [vmem:[%s9241_s9 + $0x7ac] ss:$16 sps:$4 sm:$0xff]   ;;  %v7690_v41 = vld [vmem:[%s9241_s9 + $0x7a0] ss:$16 sps:$4 sm:$0xff]  }
 0x1e0   : > { %5029 = vmatprep.subr.bf16.mxu0 %v7620_v42  ;;  %5613 = vmatprep.subr.bf16.mxu1 %v7623_v43  ;;  %v7693_v42 = vld [vmem:[%s9241_s9 + $0x7a8] ss:$16 sps:$4 sm:$0xff]   ;;  %v7698_v43 = vld [vmem:[%s9241_s9 + $0x7c4] ss:$16 sps:$4 sm:$0xff]  }
 0x1e1   : > { %4996 = vmatprep.mubr.bf16.mxu0 %v6466_v44  ;;  %5580 = vmatprep.mubr.bf16.mxu1 %v6466_v44  ;;  %v7701_v44 = vld [vmem:[%s9241_s9 + $0x7cc] ss:$16 sps:$4 sm:$0xff]  }
 0x1e3   : > { %5030 = vmatpush1.bf16.msra.mxu0 %v7618_v45  ;;  %5614 = vmatpush1.bf16.msra.mxu1 %v7621_v46  ;;  %v7696_v45 = vld [vmem:[%s9241_s9 + $0x7c0] ss:$16 sps:$4 sm:$0xff]   ;;  %v7699_v46 = vld [vmem:[%s9241_s9 + $0x7c8] ss:$16 sps:$4 sm:$0xff]  }
 0x1e4   : > { %5031 = vmatprep.subr.bf16.mxu0 %v7626_v47  ;;  %5615 = vmatprep.subr.bf16.mxu1 %v7629_v48  ;;  %v7704_v47 = vld [vmem:[%s9241_s9 + $0x7e4] ss:$16 sps:$4 sm:$0xff]   ;;  %v7707_v48 = vld [vmem:[%s9241_s9 + $0x7ec] ss:$16 sps:$4 sm:$0xff]  }
 0x1e6   : > { %4997 = vmatmul.mubr.bf16.gmra.mrb[4].mxu0 %v6465_v50  ;;  %5581 = vmatmul.mubr.bf16.gmra.mrb[4].mxu1 %v6465_v50  ;;  %v7705_v50 = vld [vmem:[%s9241_s9 + $0x7e8] ss:$16 sps:$4 sm:$0xff]  }
 0x1e7   : > { %5032 = vmatpush1.bf16.msra.mxu0 %v7624_v52  ;;  %5616 = vmatpush1.bf16.msra.mxu1 %v7627_v53  ;;  %v7713_v52 = vld [vmem:[%s9241_s9 + $0x80c] ss:$16 sps:$4 sm:$0xff]  }
 0x1e8   : > { %5033 = vmatprep.subr.bf16.mxu0 %v7632_v54  ;;  %5617 = vmatprep.subr.bf16.mxu1 %v7635_v55  ;;  %v1371_v53 = vld [vmem:[%s10100_s0 + $0x98] sm:$0xff]  ;;  %v6451_v54 = vcombine.low %v9550_v13, %v9555_v14 }
 0x1e9   : > { %5006 = vmatprep.mubr.bf16.mxu0 %v6482_v56  ;;  %5590 = vmatprep.mubr.bf16.mxu1 %v6482_v56  ;;  %v1379_v55 = vld [vmem:[%s10100_s0 + $0xd8] sm:$0xff]  ;;  %v7708_v56 = vld [vmem:[%s9241_s9 + $0x800] ss:$16 sps:$4 sm:$0xff]  }
 0x1ea   : > { %v7737_v13 = vld [vmem:[%s9241_s9 + $0x88c] ss:$16 sps:$4 sm:$0xff]  }
 0x1eb   : > { %5034 = vmatpush1.bf16.msra.mxu0 %v7630_v57  ;;  %5618 = vmatpush1.bf16.msra.mxu1 %v7633_v58  ;;  %v7711_v57 = vld [vmem:[%s9241_s9 + $0x808] ss:$16 sps:$4 sm:$0xff]   ;;  %v7716_v58 = vld [vmem:[%s9241_s9 + $0x824] ss:$16 sps:$4 sm:$0xff]  }
 0x1ec   : > { %5035 = vmatprep.subr.bf16.mxu0 %v7638_v59  ;;  %5619 = vmatprep.subr.bf16.mxu1 %v7641_v60  ;;  %v7719_v59 = vld [vmem:[%s9241_s9 + $0x82c] ss:$16 sps:$4 sm:$0xff]   ;;  %v6468_v60 = vcombine.high %v1371_v53, %v1379_v55 }
 0x1ed   : > { %v1403_v14 = vld [vmem:[%s10100_s0 + $0x198] sm:$0xff] }
 0x1ee   : > { %5007 = vmatmul.mubr.bf16.gmra.mrb[8].mxu0 %v6481_v62  ;;  %5591 = vmatmul.mubr.bf16.gmra.mrb[8].mxu1 %v6481_v62  ;;  %v7717_v62 = vld [vmem:[%s9241_s9 + $0x828] ss:$16 sps:$4 sm:$0xff]  }
 0x1ef   : > { %5036 = vmatpush1.bf16.msra.mxu0 %v7636_v61  ;;  %5620 = vmatpush1.bf16.msra.mxu1 %v7639_v1  ;;  %v7714_v61 = vld [vmem:[%s9241_s9 + $0x820] ss:$16 sps:$4 sm:$0xff]  }
 0x1f0   : > { %5037 = vmatprep.subr.bf16.mxu0 %v7644_v3  ;;  %5621 = vmatprep.subr.bf16.mxu1 %v7647_v4  ;;  %v7720_v1 = vld [vmem:[%s9241_s9 + $0x840] ss:$16 sps:$4 sm:$0xff]   ;;  %v7723_v3 = vld [vmem:[%s9241_s9 + $0x848] ss:$16 sps:$4 sm:$0xff]   ;;  %v6467_v4 = vcombine.low %v1371_v53, %v1379_v55  ;;  %v7788_v55 = vld [vmem:[%s9241_s9 + $0x9a4] ss:$16 sps:$4 sm:$0xff]  }
 0x1f1   : > { %5016 = vmatprep.mubr.bf16.mxu0 %v6498_v5  ;;  %5600 = vmatprep.mubr.bf16.mxu1 %v6498_v5  ;;  %v1387_v5 = vld [vmem:[%s10100_s0 + $0x118] sm:$0xff]  ;;  %v7780_v53 = vld [vmem:[%s9241_s9 + $0x980] ss:$16 sps:$4 sm:$0xff]  }
 0x1f3   : > { %5038 = vmatpush1.bf16.msra.mxu0 %v7642_v6  ;;  %5622 = vmatpush1.bf16.msra.mxu1 %v7645_v7  ;;  %v1395_v6 = vld [vmem:[%s10100_s0 + $0x158] sm:$0xff]  ;;  %v7728_v7 = vld [vmem:[%s9241_s9 + $0x864] ss:$16 sps:$4 sm:$0xff]  }
 0x1f4   : > { %5039 = vmatprep.subr.bf16.mxu0 %v7650_v8  ;;  %5623 = vmatprep.subr.bf16.mxu1 %v7653_v9  ;;  %v7731_v8 = vld [vmem:[%s9241_s9 + $0x86c] ss:$16 sps:$4 sm:$0xff]   ;;  %v6484_v9 = vcombine.high %v1387_v5, %v1395_v6 }
 0x1f6   : > { %5017 = vmatmul.mubr.bf16.gmra.mrb[12].mxu0 %v6497_v12  ;;  %5601 = vmatmul.mubr.bf16.gmra.mrb[12].mxu1 %v6497_v12  ;;  %v7734_v12 = vld [vmem:[%s9241_s9 + $0x884] ss:$16 sps:$4 sm:$0xff]  }
 0x1f7   : > { %5040 = vmatpush1.bf16.msra.mxu0 %v7648_v10  ;;  %5624 = vmatpush1.bf16.msra.mxu1 %v7651_v11  ;;  %v7726_v10 = vld [vmem:[%s9241_s9 + $0x860] ss:$16 sps:$4 sm:$0xff]   ;;  %v7729_v11 = vld [vmem:[%s9241_s9 + $0x868] ss:$16 sps:$4 sm:$0xff]  }
 0x1f8   : > { %5041 = vmatprep.subr.bf16.mxu0 %v7656_v15  ;;  %5625 = vmatprep.subr.bf16.mxu1 %v7659_v16  ;;  %v6483_v15 = vcombine.low %v1387_v5, %v1395_v6  ;;  %v1411_v16 = vld [vmem:[%s10100_s0 + $0x1d8] sm:$0xff]  ;;  %v1372_v6 = vld [vmem:[%s10100_s0 + $0xa0] sm:$0xff] }
 0x1f9   : > { %5059 = vmatprep.mubr.bf16.mxu0 %v6452_v17  ;;  %5643 = vmatprep.mubr.bf16.mxu1 %v6452_v17  ;;  %v7732_v17 = vld [vmem:[%s9241_s9 + $0x880] ss:$16 sps:$4 sm:$0xff]   ;;  %v7809_v5 = vld [vmem:[%s9241_s9 + $0xa0c] ss:$16 sps:$4 sm:$0xff]  }
 0x1fb   : > { %5042 = vmatpush1.bf16.msra.mxu0 %v7654_v18  ;;  %5626 = vmatpush1.bf16.msra.mxu1 %v7657_v2  ;;  %v7735_v18 = vld [vmem:[%s9241_s9 + $0x888] ss:$16 sps:$4 sm:$0xff]   ;;  %v7740_v2 = vld [vmem:[%s9241_s9 + $0x8a4] ss:$16 sps:$4 sm:$0xff]  }
 0x1fc   : > { %5043 = vmatprep.subr.bf16.mxu0 %v7662_v19  ;;  %5627 = vmatprep.subr.bf16.mxu1 %v7665_v20  ;;  %v7743_v19 = vld [vmem:[%s9241_s9 + $0x8ac] ss:$16 sps:$4 sm:$0xff]   ;;  %v6500_v20 = vcombine.high %v1403_v14, %v1411_v16 }
 0x1ff   : > { %5044 = vmatpush1.bf16.msra.mxu0 %v7660_v21  ;;  %5628 = vmatpush1.bf16.msra.mxu1 %v7663_v22  ;;  %v7738_v21 = vld [vmem:[%s9241_s9 + $0x8a0] ss:$16 sps:$4 sm:$0xff]   ;;  %v7741_v22 = vld [vmem:[%s9241_s9 + $0x8a8] ss:$16 sps:$4 sm:$0xff]  }
 0x200   : > { %5045 = vmatprep.subr.bf16.mxu0 %v7668_v23  ;;  %5629 = vmatprep.subr.bf16.mxu1 %v7671_v24  ;;  %v7746_v23 = vld [vmem:[%s9241_s9 + $0x8c4] ss:$16 sps:$4 sm:$0xff]   ;;  %v7749_v24 = vld [vmem:[%s9241_s9 + $0x8cc] ss:$16 sps:$4 sm:$0xff]  }
 0x203   : > { %5046 = vmatpush1.bf16.msra.mxu0 %v7666_v25  ;;  %5630 = vmatpush1.bf16.msra.mxu1 %v7669_v26  ;;  %v9644_v25 = vld [vmem:[%s10100_s0 + $0x20] sm:$0xff]  ;;  %v6499_v26 = vcombine.low %v1403_v14, %v1411_v16  ;;  %v7813_v14 = vld [vmem:[%s9241_s9 + $0xa28] ss:$16 sps:$4 sm:$0xff]  }
 0x204   : > { %5047 = vmatprep.subr.bf16.mxu0 %v7674_v27  ;;  %5631 = vmatprep.subr.bf16.mxu1 %v7677_v28  ;;  %v9649_v27 = vld [vmem:[%s10100_s0 + $0x60] sm:$0xff] }
 0x205   : > { %v7744_v28 = vld [vmem:[%s9241_s9 + $0x8c0] ss:$16 sps:$4 sm:$0xff]   ;;  %v7818_v16 = vld [vmem:[%s9241_s9 + $0xa44] ss:$16 sps:$4 sm:$0xff]  }
 0x207   : > { %5048 = vmatpush1.bf16.msra.mxu0 %v7672_v29  ;;  %5632 = vmatpush1.bf16.msra.mxu1 %v7675_v30  ;;  %v7747_v29 = vld [vmem:[%s9241_s9 + $0x8c8] ss:$16 sps:$4 sm:$0xff]   ;;  %v7752_v30 = vld [vmem:[%s9241_s9 + $0x8e4] ss:$16 sps:$4 sm:$0xff]  }
 0x208   : > { %5049 = vmatprep.subr.bf16.mxu0 %v7680_v31  ;;  %5633 = vmatprep.subr.bf16.mxu1 %v7683_v32  ;;  %v7755_v31 = vld [vmem:[%s9241_s9 + $0x8ec] ss:$16 sps:$4 sm:$0xff]   ;;  %v6454_v32 = vcombine.high %v9644_v25, %v9649_v27 }
 0x20b   : > { %5050 = vmatpush1.bf16.msra.mxu0 %v7678_v33  ;;  %5634 = vmatpush1.bf16.msra.mxu1 %v7681_v34  ;;  %v7750_v33 = vld [vmem:[%s9241_s9 + $0x8e0] ss:$16 sps:$4 sm:$0xff]   ;;  %v7753_v34 = vld [vmem:[%s9241_s9 + $0x8e8] ss:$16 sps:$4 sm:$0xff]  }
 0x20c   : > { %5051 = vmatprep.subr.bf16.mxu0 %v7686_v35  ;;  %5635 = vmatprep.subr.bf16.mxu1 %v7689_v36  ;;  %v7758_v35 = vld [vmem:[%s9241_s9 + $0x904] ss:$16 sps:$4 sm:$0xff]   ;;  %v7761_v36 = vld [vmem:[%s9241_s9 + $0x90c] ss:$16 sps:$4 sm:$0xff]  }
 0x20f   : > { %5052 = vmatpush1.bf16.msra.mxu0 %v7684_v37  ;;  %5636 = vmatpush1.bf16.msra.mxu1 %v7687_v38  ;;  %v7756_v37 = vld [vmem:[%s9241_s9 + $0x900] ss:$16 sps:$4 sm:$0xff]   ;;  %v7759_v38 = vld [vmem:[%s9241_s9 + $0x908] ss:$16 sps:$4 sm:$0xff]  }
 0x210   : > { %5053 = vmatprep.subr.bf16.mxu0 %v7692_v39  ;;  %5637 = vmatprep.subr.bf16.mxu1 %v7695_v40  ;;  %v7764_v39 = vld [vmem:[%s9241_s9 + $0x924] ss:$16 sps:$4 sm:$0xff]   ;;  %v7767_v40 = vld [vmem:[%s9241_s9 + $0x92c] ss:$16 sps:$4 sm:$0xff]  }
 0x213   : > { %5054 = vmatpush1.bf16.msra.mxu0 %v7690_v41  ;;  %5638 = vmatpush1.bf16.msra.mxu1 %v7693_v42  ;;  %v7762_v41 = vld [vmem:[%s9241_s9 + $0x920] ss:$16 sps:$4 sm:$0xff]   ;;  %v7765_v42 = vld [vmem:[%s9241_s9 + $0x928] ss:$16 sps:$4 sm:$0xff]  }
 0x214   : > { %5055 = vmatprep.subr.bf16.mxu0 %v7698_v43  ;;  %5639 = vmatprep.subr.bf16.mxu1 %v7701_v44  ;;  %v7770_v43 = vld [vmem:[%s9241_s9 + $0x944] ss:$16 sps:$4 sm:$0xff]   ;;  %v7773_v44 = vld [vmem:[%s9241_s9 + $0x94c] ss:$16 sps:$4 sm:$0xff]  }
 0x217   : > { %5056 = vmatpush1.bf16.msra.mxu0 %v7696_v45  ;;  %5640 = vmatpush1.bf16.msra.mxu1 %v7699_v46  ;;  %v7768_v45 = vld [vmem:[%s9241_s9 + $0x940] ss:$16 sps:$4 sm:$0xff]   ;;  %v7771_v46 = vld [vmem:[%s9241_s9 + $0x948] ss:$16 sps:$4 sm:$0xff]  }
 0x218   : > { %5057 = vmatprep.subr.bf16.mxu0 %v7704_v47  ;;  %5641 = vmatprep.subr.bf16.mxu1 %v7707_v48  ;;  %v7776_v47 = vld [vmem:[%s9241_s9 + $0x964] ss:$16 sps:$4 sm:$0xff]   ;;  %v7779_v48 = vld [vmem:[%s9241_s9 + $0x96c] ss:$16 sps:$4 sm:$0xff]  }
 0x21b   : > { %5058 = vmatpush1.bf16.msra.mxu0 %v7702_v49  ;;  %5642 = vmatpush1.bf16.msra.mxu1 %v7705_v50  ;;  %v7774_v49 = vld [vmem:[%s9241_s9 + $0x960] ss:$16 sps:$4 sm:$0xff]   ;;  %v7777_v50 = vld [vmem:[%s9241_s9 + $0x968] ss:$16 sps:$4 sm:$0xff]  }
 0x21c   : > { %5100 = vmatprep.subr.bf16.mxu0 %v7710_v51  ;;  %5684 = vmatprep.subr.bf16.mxu1 %v7713_v52  ;;  %v7782_v51 = vld [vmem:[%s9241_s9 + $0x984] ss:$16 sps:$4 sm:$0xff]   ;;  %v7785_v52 = vld [vmem:[%s9241_s9 + $0x98c] ss:$16 sps:$4 sm:$0xff]  }
 0x21e   : > { %5060 = vmatmul.mubr.bf16.vlgmr.msra.gmra.mrb[0].mxu0 %v6451_v54  ;;  %5644 = vmatmul.mubr.bf16.vlgmr.msra.gmra.mrb[0].mxu1 %v6451_v54  ;;  %v7783_v54 = vld [vmem:[%s9241_s9 + $0x988] ss:$16 sps:$4 sm:$0xff]  }
 0x21f   : > { %5101 = vmatpush1.bf16.msra.mxu0 %v7708_v56  ;;  %5685 = vmatpush1.bf16.msra.mxu1 %v7711_v57  ;;  %v7791_v56 = vld [vmem:[%s9241_s9 + $0x9ac] ss:$16 sps:$4 sm:$0xff]   ;;  %v7786_v57 = vld [vmem:[%s9241_s9 + $0x9a0] ss:$16 sps:$4 sm:$0xff]  }
 0x220   : > { %5102 = vmatprep.subr.bf16.mxu0 %v7716_v58  ;;  %5686 = vmatprep.subr.bf16.mxu1 %v7719_v59  ;;  %v7789_v58 = vld [vmem:[%s9241_s9 + $0x9a8] ss:$16 sps:$4 sm:$0xff]   ;;  %v7794_v59 = vld [vmem:[%s9241_s9 + $0x9c4] ss:$16 sps:$4 sm:$0xff]  }
 0x221   : > { %5069 = vmatprep.mubr.bf16.mxu0 %v6468_v60  ;;  %5653 = vmatprep.mubr.bf16.mxu1 %v6468_v60  ;;  %v7797_v60 = vld [vmem:[%s9241_s9 + $0x9cc] ss:$16 sps:$4 sm:$0xff]  }
 0x223   : > { %5103 = vmatpush1.bf16.msra.mxu0 %v7714_v61  ;;  %5687 = vmatpush1.bf16.msra.mxu1 %v7717_v62  ;;  %v7792_v61 = vld [vmem:[%s9241_s9 + $0x9c0] ss:$16 sps:$4 sm:$0xff]   ;;  %v7795_v62 = vld [vmem:[%s9241_s9 + $0x9c8] ss:$16 sps:$4 sm:$0xff]  }
 0x224   : > { %5104 = vmatprep.subr.bf16.mxu0 %v7722_v63  ;;  %5688 = vmatprep.subr.bf16.mxu1 %v7725_v0  ;;  %v7800_v63 = vld [vmem:[%s9241_s9 + $0x9e4] ss:$16 sps:$4 sm:$0xff]   ;;  %v7803_v0 = vld [vmem:[%s9241_s9 + $0x9ec] ss:$16 sps:$4 sm:$0xff]  }
 0x226   : > { %5070 = vmatmul.mubr.bf16.gmra.mrb[4].mxu0 %v6467_v4  ;;  %5654 = vmatmul.mubr.bf16.gmra.mrb[4].mxu1 %v6467_v4  ;;  %v7806_v4 = vld [vmem:[%s9241_s9 + $0xa04] ss:$16 sps:$4 sm:$0xff]  }
 0x227   : > { %5105 = vmatpush1.bf16.msra.mxu0 %v7720_v1  ;;  %5689 = vmatpush1.bf16.msra.mxu1 %v7723_v3  ;;  %v7798_v1 = vld [vmem:[%s9241_s9 + $0x9e0] ss:$16 sps:$4 sm:$0xff]   ;;  %v7801_v3 = vld [vmem:[%s9241_s9 + $0x9e8] ss:$16 sps:$4 sm:$0xff]  }
 0x228   : > { %5106 = vmatprep.subr.bf16.mxu0 %v7728_v7  ;;  %5690 = vmatprep.subr.bf16.mxu1 %v7731_v8  ;;  %v1380_v7 = vld [vmem:[%s10100_s0 + $0xe0] sm:$0xff]  ;;  %v6453_v8 = vcombine.low %v9644_v25, %v9649_v27  ;;  %v7825_v25 = vld [vmem:[%s9241_s9 + $0xa68] ss:$16 sps:$4 sm:$0xff]  }
 0x229   : > { %5079 = vmatprep.mubr.bf16.mxu0 %v6484_v9  ;;  %5663 = vmatprep.mubr.bf16.mxu1 %v6484_v9  ;;  %v7804_v9 = vld [vmem:[%s9241_s9 + $0xa00] ss:$16 sps:$4 sm:$0xff]   ;;  %v7830_v27 = vld [vmem:[%s9241_s9 + $0xa84] ss:$16 sps:$4 sm:$0xff]  }
 0x22b   : > { %5107 = vmatpush1.bf16.msra.mxu0 %v7726_v10  ;;  %5691 = vmatpush1.bf16.msra.mxu1 %v7729_v11  ;;  %v7807_v10 = vld [vmem:[%s9241_s9 + $0xa08] ss:$16 sps:$4 sm:$0xff]   ;;  %v7812_v11 = vld [vmem:[%s9241_s9 + $0xa24] ss:$16 sps:$4 sm:$0xff]  }
 0x22c   : > { %5108 = vmatprep.subr.bf16.mxu0 %v7734_v12  ;;  %5692 = vmatprep.subr.bf16.mxu1 %v7737_v13  ;;  %v7815_v12 = vld [vmem:[%s9241_s9 + $0xa2c] ss:$16 sps:$4 sm:$0xff]   ;;  %v7810_v13 = vld [vmem:[%s9241_s9 + $0xa20] ss:$16 sps:$4 sm:$0xff]  }
 0x22e   : > { %5080 = vmatmul.mubr.bf16.gmra.mrb[8].mxu0 %v6483_v15  ;;  %5664 = vmatmul.mubr.bf16.gmra.mrb[8].mxu1 %v6483_v15  ;;  %v6470_v15 = vcombine.high %v1372_v6, %v1380_v7 }
 0x22f   : > { %5109 = vmatpush1.bf16.msra.mxu0 %v7732_v17  ;;  %5693 = vmatpush1.bf16.msra.mxu1 %v7735_v18  ;;  %v7821_v17 = vld [vmem:[%s9241_s9 + $0xa4c] ss:$16 sps:$4 sm:$0xff]   ;;  %v1388_v18 = vld [vmem:[%s10100_s0 + $0x120] sm:$0xff] }
 0x230   : > { %5110 = vmatprep.subr.bf16.mxu0 %v7740_v2  ;;  %5694 = vmatprep.subr.bf16.mxu1 %v7743_v19  ;;  %v1396_v2 = vld [vmem:[%s10100_s0 + $0x160] sm:$0xff]  ;;  %v6469_v19 = vcombine.low %v1372_v6, %v1380_v7  ;;  %v7879_v7 = vld [vmem:[%s9241_s9 + $0xb88] ss:$16 sps:$4 sm:$0xff]  }
 0x231   : > { %5089 = vmatprep.mubr.bf16.mxu0 %v6500_v20  ;;  %5673 = vmatprep.mubr.bf16.mxu1 %v6500_v20  ;;  %v7816_v20 = vld [vmem:[%s9241_s9 + $0xa40] ss:$16 sps:$4 sm:$0xff]  }
 0x232   : > { %v7876_v6 = vld [vmem:[%s9241_s9 + $0xb80] ss:$16 sps:$4 sm:$0xff]  }
 0x233   : > { %5111 = vmatpush1.bf16.msra.mxu0 %v7738_v21  ;;  %5695 = vmatpush1.bf16.msra.mxu1 %v7741_v22  ;;  %v7819_v21 = vld [vmem:[%s9241_s9 + $0xa48] ss:$16 sps:$4 sm:$0xff]   ;;  %v7824_v22 = vld [vmem:[%s9241_s9 + $0xa64] ss:$16 sps:$4 sm:$0xff]  }
 0x234   : > { %5112 = vmatprep.subr.bf16.mxu0 %v7746_v23  ;;  %5696 = vmatprep.subr.bf16.mxu1 %v7749_v24  ;;  %v7827_v23 = vld [vmem:[%s9241_s9 + $0xa6c] ss:$16 sps:$4 sm:$0xff]   ;;  %v7822_v24 = vld [vmem:[%s9241_s9 + $0xa60] ss:$16 sps:$4 sm:$0xff]  }
 0x236   : > { %5090 = vmatmul.mubr.bf16.gmra.mrb[12].mxu0 %v6499_v26  ;;  %5674 = vmatmul.mubr.bf16.gmra.mrb[12].mxu1 %v6499_v26  ;;  %v6486_v26 = vcombine.high %v1388_v18, %v1396_v2 }
 0x237   : > { %5113 = vmatpush1.bf16.msra.mxu0 %v7744_v28  ;;  %5697 = vmatpush1.bf16.msra.mxu1 %v7747_v29  ;;  %v7833_v28 = vld [vmem:[%s9241_s9 + $0xa8c] ss:$16 sps:$4 sm:$0xff]   ;;  %v1404_v29 = vld [vmem:[%s10100_s0 + $0x1a0] sm:$0xff] }
 0x238   : > { %5114 = vmatprep.subr.bf16.mxu0 %v7752_v30  ;;  %5698 = vmatprep.subr.bf16.mxu1 %v7755_v31  ;;  %v1412_v30 = vld [vmem:[%s10100_s0 + $0x1e0] sm:$0xff]  ;;  %v6485_v31 = vcombine.low %v1388_v18, %v1396_v2  ;;  %v7897_v2 = vld [vmem:[%s9241_s9 + $0xbe8] ss:$16 sps:$4 sm:$0xff]  }
 0x239   : > { %5132 = vmatprep.mubr.bf16.mxu0 %v6454_v32  ;;  %5716 = vmatprep.mubr.bf16.mxu1 %v6454_v32  ;;  %v7828_v32 = vld [vmem:[%s9241_s9 + $0xa80] ss:$16 sps:$4 sm:$0xff]  }
 0x23a   : > { %v7894_v18 = vld [vmem:[%s9241_s9 + $0xbe0] ss:$16 sps:$4 sm:$0xff]  }
 0x23b   : > { %5115 = vmatpush1.bf16.msra.mxu0 %v7750_v33  ;;  %5699 = vmatpush1.bf16.msra.mxu1 %v7753_v34  ;;  %v7831_v33 = vld [vmem:[%s9241_s9 + $0xa88] ss:$16 sps:$4 sm:$0xff]   ;;  %v7836_v34 = vld [vmem:[%s9241_s9 + $0xaa4] ss:$16 sps:$4 sm:$0xff]  }
 0x23c   : > { %5116 = vmatprep.subr.bf16.mxu0 %v7758_v35  ;;  %5700 = vmatprep.subr.bf16.mxu1 %v7761_v36  ;;  %v7839_v35 = vld [vmem:[%s9241_s9 + $0xaac] ss:$16 sps:$4 sm:$0xff]   ;;  %v6502_v36 = vcombine.high %v1404_v29, %v1412_v30 }
 0x23f   : > { %5117 = vmatpush1.bf16.msra.mxu0 %v7756_v37  ;;  %5701 = vmatpush1.bf16.msra.mxu1 %v7759_v38  ;;  %v7834_v37 = vld [vmem:[%s9241_s9 + $0xaa0] ss:$16 sps:$4 sm:$0xff]   ;;  %v7837_v38 = vld [vmem:[%s9241_s9 + $0xaa8] ss:$16 sps:$4 sm:$0xff]  }
 0x240   : > { %5118 = vmatprep.subr.bf16.mxu0 %v7764_v39  ;;  %5702 = vmatprep.subr.bf16.mxu1 %v7767_v40  ;;  %v7842_v39 = vld [vmem:[%s9241_s9 + $0xac4] ss:$16 sps:$4 sm:$0xff]   ;;  %v7845_v40 = vld [vmem:[%s9241_s9 + $0xacc] ss:$16 sps:$4 sm:$0xff]  }
 0x243   : > { %5119 = vmatpush1.bf16.msra.mxu0 %v7762_v41  ;;  %5703 = vmatpush1.bf16.msra.mxu1 %v7765_v42  ;;  %v6501_v41 = vcombine.low %v1404_v29, %v1412_v30  ;;  %v9740_v42 = vld [vmem:[%s10100_s0 + $0x28] sm:$0xff]  ;;  %v7906_v29 = vld [vmem:[%s9241_s9 + $0xc20] ss:$16 sps:$4 sm:$0xff]  }
 0x244   : > { %5120 = vmatprep.subr.bf16.mxu0 %v7770_v43  ;;  %5704 = vmatprep.subr.bf16.mxu1 %v7773_v44  ;;  %v9745_v43 = vld [vmem:[%s10100_s0 + $0x68] sm:$0xff]  ;;  %v7840_v44 = vld [vmem:[%s9241_s9 + $0xac0] ss:$16 sps:$4 sm:$0xff]  }
 0x245   : > { %v7909_v30 = vld [vmem:[%s9241_s9 + $0xc28] ss:$16 sps:$4 sm:$0xff]  }
 0x247   : > { %5121 = vmatpush1.bf16.msra.mxu0 %v7768_v45  ;;  %5705 = vmatpush1.bf16.msra.mxu1 %v7771_v46  ;;  %v7843_v45 = vld [vmem:[%s9241_s9 + $0xac8] ss:$16 sps:$4 sm:$0xff]   ;;  %v7848_v46 = vld [vmem:[%s9241_s9 + $0xae4] ss:$16 sps:$4 sm:$0xff]  }
 0x248   : > { %5122 = vmatprep.subr.bf16.mxu0 %v7776_v47  ;;  %5706 = vmatprep.subr.bf16.mxu1 %v7779_v48  ;;  %v7851_v47 = vld [vmem:[%s9241_s9 + $0xaec] ss:$16 sps:$4 sm:$0xff]   ;;  %v6456_v48 = vcombine.high %v9740_v42, %v9745_v43 }
 0x24b   : > { %5123 = vmatpush1.bf16.msra.mxu0 %v7774_v49  ;;  %5707 = vmatpush1.bf16.msra.mxu1 %v7777_v50  ;;  %v7846_v49 = vld [vmem:[%s9241_s9 + $0xae0] ss:$16 sps:$4 sm:$0xff]   ;;  %v7849_v50 = vld [vmem:[%s9241_s9 + $0xae8] ss:$16 sps:$4 sm:$0xff]  }
 0x24c   : > { %5124 = vmatprep.subr.bf16.mxu0 %v7782_v51  ;;  %5708 = vmatprep.subr.bf16.mxu1 %v7785_v52  ;;  %v7854_v51 = vld [vmem:[%s9241_s9 + $0xb04] ss:$16 sps:$4 sm:$0xff]   ;;  %v7857_v52 = vld [vmem:[%s9241_s9 + $0xb0c] ss:$16 sps:$4 sm:$0xff]  }
 0x24f   : > { %5125 = vmatpush1.bf16.msra.mxu0 %v7780_v53  ;;  %5709 = vmatpush1.bf16.msra.mxu1 %v7783_v54  ;;  %v7852_v53 = vld [vmem:[%s9241_s9 + $0xb00] ss:$16 sps:$4 sm:$0xff]   ;;  %v7855_v54 = vld [vmem:[%s9241_s9 + $0xb08] ss:$16 sps:$4 sm:$0xff]  }
 0x250   : > { %5126 = vmatprep.subr.bf16.mxu0 %v7788_v55  ;;  %5710 = vmatprep.subr.bf16.mxu1 %v7791_v56  ;;  %v7860_v55 = vld [vmem:[%s9241_s9 + $0xb24] ss:$16 sps:$4 sm:$0xff]   ;;  %v7863_v56 = vld [vmem:[%s9241_s9 + $0xb2c] ss:$16 sps:$4 sm:$0xff]  }
 0x253   : > { %5127 = vmatpush1.bf16.msra.mxu0 %v7786_v57  ;;  %5711 = vmatpush1.bf16.msra.mxu1 %v7789_v58  ;;  %v7858_v57 = vld [vmem:[%s9241_s9 + $0xb20] ss:$16 sps:$4 sm:$0xff]   ;;  %v7861_v58 = vld [vmem:[%s9241_s9 + $0xb28] ss:$16 sps:$4 sm:$0xff]  }
 0x254   : > { %5128 = vmatprep.subr.bf16.mxu0 %v7794_v59  ;;  %5712 = vmatprep.subr.bf16.mxu1 %v7797_v60  ;;  %v7866_v59 = vld [vmem:[%s9241_s9 + $0xb44] ss:$16 sps:$4 sm:$0xff]   ;;  %v7869_v60 = vld [vmem:[%s9241_s9 + $0xb4c] ss:$16 sps:$4 sm:$0xff]  }
 0x257   : > { %5129 = vmatpush1.bf16.msra.mxu0 %v7792_v61  ;;  %5713 = vmatpush1.bf16.msra.mxu1 %v7795_v62  ;;  %v7864_v61 = vld [vmem:[%s9241_s9 + $0xb40] ss:$16 sps:$4 sm:$0xff]   ;;  %v7867_v62 = vld [vmem:[%s9241_s9 + $0xb48] ss:$16 sps:$4 sm:$0xff]  }
 0x258   : > { %5130 = vmatprep.subr.bf16.mxu0 %v7800_v63  ;;  %5714 = vmatprep.subr.bf16.mxu1 %v7803_v0  ;;  %v7872_v63 = vld [vmem:[%s9241_s9 + $0xb64] ss:$16 sps:$4 sm:$0xff]   ;;  %v7875_v0 = vld [vmem:[%s9241_s9 + $0xb6c] ss:$16 sps:$4 sm:$0xff]  }
 0x25b   : > { %5131 = vmatpush1.bf16.msra.mxu0 %v7798_v1  ;;  %5715 = vmatpush1.bf16.msra.mxu1 %v7801_v3  ;;  %v7870_v1 = vld [vmem:[%s9241_s9 + $0xb60] ss:$16 sps:$4 sm:$0xff]   ;;  %v7873_v3 = vld [vmem:[%s9241_s9 + $0xb68] ss:$16 sps:$4 sm:$0xff]  }
 0x25c   : > { %5173 = vmatprep.subr.bf16.mxu0 %v7806_v4  ;;  %5757 = vmatprep.subr.bf16.mxu1 %v7809_v5  ;;  %v7878_v4 = vld [vmem:[%s9241_s9 + $0xb84] ss:$16 sps:$4 sm:$0xff]   ;;  %v7881_v5 = vld [vmem:[%s9241_s9 + $0xb8c] ss:$16 sps:$4 sm:$0xff]  }
 0x25e   : > { %5133 = vmatmul.mubr.bf16.vlgmr.msra.gmra.mrb[0].mxu0 %v6453_v8  ;;  %5717 = vmatmul.mubr.bf16.vlgmr.msra.gmra.mrb[0].mxu1 %v6453_v8  ;;  %v7884_v8 = vld [vmem:[%s9241_s9 + $0xba4] ss:$16 sps:$4 sm:$0xff]  }
 0x25f   : > { %5174 = vmatpush1.bf16.msra.mxu0 %v7804_v9  ;;  %5758 = vmatpush1.bf16.msra.mxu1 %v7807_v10  ;;  %v7887_v9 = vld [vmem:[%s9241_s9 + $0xbac] ss:$16 sps:$4 sm:$0xff]   ;;  %v7882_v10 = vld [vmem:[%s9241_s9 + $0xba0] ss:$16 sps:$4 sm:$0xff]  }
 0x260   : > { %5175 = vmatprep.subr.bf16.mxu0 %v7812_v11  ;;  %5759 = vmatprep.subr.bf16.mxu1 %v7815_v12  ;;  %v7885_v11 = vld [vmem:[%s9241_s9 + $0xba8] ss:$16 sps:$4 sm:$0xff]   ;;  %v7890_v12 = vld [vmem:[%s9241_s9 + $0xbc4] ss:$16 sps:$4 sm:$0xff]  }
 0x261   : > { %5142 = vmatprep.mubr.bf16.mxu0 %v6470_v15  ;;  %5726 = vmatprep.mubr.bf16.mxu1 %v6470_v15  ;;  %v7891_v15 = vld [vmem:[%s9241_s9 + $0xbc8] ss:$16 sps:$4 sm:$0xff]  }
 0x263   : > { %5176 = vmatpush1.bf16.msra.mxu0 %v7810_v13  ;;  %5760 = vmatpush1.bf16.msra.mxu1 %v7813_v14  ;;  %v7893_v13 = vld [vmem:[%s9241_s9 + $0xbcc] ss:$16 sps:$4 sm:$0xff]   ;;  %v7888_v14 = vld [vmem:[%s9241_s9 + $0xbc0] ss:$16 sps:$4 sm:$0xff]  }
 0x264   : > { %5177 = vmatprep.subr.bf16.mxu0 %v7818_v16  ;;  %5761 = vmatprep.subr.bf16.mxu1 %v7821_v17  ;;  %v7896_v16 = vld [vmem:[%s9241_s9 + $0xbe4] ss:$16 sps:$4 sm:$0xff]   ;;  %v7899_v17 = vld [vmem:[%s9241_s9 + $0xbec] ss:$16 sps:$4 sm:$0xff]  }
 0x266   : > { %5143 = vmatmul.mubr.bf16.gmra.mrb[4].mxu0 %v6469_v19  ;;  %5727 = vmatmul.mubr.bf16.gmra.mrb[4].mxu1 %v6469_v19  ;;  %v7902_v19 = vld [vmem:[%s9241_s9 + $0xc04] ss:$16 sps:$4 sm:$0xff]  }
 0x267   : > { %5178 = vmatpush1.bf16.msra.mxu0 %v7816_v20  ;;  %5762 = vmatpush1.bf16.msra.mxu1 %v7819_v21  ;;  %v7905_v20 = vld [vmem:[%s9241_s9 + $0xc0c] ss:$16 sps:$4 sm:$0xff]   ;;  %v6455_v21 = vcombine.low %v9740_v42, %v9745_v43  ;;  %v7921_v42 = vld [vmem:[%s9241_s9 + $0xc68] ss:$16 sps:$4 sm:$0xff]   ;;  %v7926_v43 = vld [vmem:[%s9241_s9 + $0xc84] ss:$16 sps:$4 sm:$0xff]  }
 0x268   : > { %5179 = vmatprep.subr.bf16.mxu0 %v7824_v22  ;;  %5763 = vmatprep.subr.bf16.mxu1 %v7827_v23  ;;  %v1373_v22 = vld [vmem:[%s10100_s0 + $0xa8] sm:$0xff] }
 0x269   : > { %5152 = vmatprep.mubr.bf16.mxu0 %v6486_v26  ;;  %5736 = vmatprep.mubr.bf16.mxu1 %v6486_v26  ;;  %v1381_v23 = vld [vmem:[%s10100_s0 + $0xe8] sm:$0xff]  ;;  %v7908_v26 = vld [vmem:[%s9241_s9 + $0xc24] ss:$16 sps:$4 sm:$0xff]  }
 0x26b   : > { %5180 = vmatpush1.bf16.msra.mxu0 %v7822_v24  ;;  %5764 = vmatpush1.bf16.msra.mxu1 %v7825_v25  ;;  %v7900_v24 = vld [vmem:[%s9241_s9 + $0xc00] ss:$16 sps:$4 sm:$0xff]   ;;  %v7903_v25 = vld [vmem:[%s9241_s9 + $0xc08] ss:$16 sps:$4 sm:$0xff]  }
 0x26c   : > { %5181 = vmatprep.subr.bf16.mxu0 %v7830_v27  ;;  %5765 = vmatprep.subr.bf16.mxu1 %v7833_v28  ;;  %v7911_v27 = vld [vmem:[%s9241_s9 + $0xc2c] ss:$16 sps:$4 sm:$0xff]   ;;  %v6472_v28 = vcombine.high %v1373_v22, %v1381_v23 }
 0x26e   : > { %5153 = vmatmul.mubr.bf16.gmra.mrb[8].mxu0 %v6485_v31  ;;  %5737 = vmatmul.mubr.bf16.gmra.mrb[8].mxu1 %v6485_v31  ;;  %v7914_v31 = vld [vmem:[%s9241_s9 + $0xc44] ss:$16 sps:$4 sm:$0xff]  }
 0x26f   : > { %5182 = vmatpush1.bf16.msra.mxu0 %v7828_v32  ;;  %5766 = vmatpush1.bf16.msra.mxu1 %v7831_v33  ;;  %v7917_v32 = vld [vmem:[%s9241_s9 + $0xc4c] ss:$16 sps:$4 sm:$0xff]   ;;  %v6471_v33 = vcombine.low %v1373_v22, %v1381_v23  ;;  %v7975_v22 = vld [vmem:[%s9241_s9 + $0xd88] ss:$16 sps:$4 sm:$0xff]   ;;  %v7980_v23 = vld [vmem:[%s9241_s9 + $0xda4] ss:$16 sps:$4 sm:$0xff]  }
 0x270   : > { %5183 = vmatprep.subr.bf16.mxu0 %v7836_v34  ;;  %5767 = vmatprep.subr.bf16.mxu1 %v7839_v35  ;;  %v1389_v34 = vld [vmem:[%s10100_s0 + $0x128] sm:$0xff] }
 0x271   : > { %5162 = vmatprep.mubr.bf16.mxu0 %v6502_v36  ;;  %5746 = vmatprep.mubr.bf16.mxu1 %v6502_v36  ;;  %v1397_v35 = vld [vmem:[%s10100_s0 + $0x168] sm:$0xff]  ;;  %v7912_v36 = vld [vmem:[%s9241_s9 + $0xc40] ss:$16 sps:$4 sm:$0xff]  }
 0x273   : > { %5184 = vmatpush1.bf16.msra.mxu0 %v7834_v37  ;;  %5768 = vmatpush1.bf16.msra.mxu1 %v7837_v38  ;;  %v7915_v37 = vld [vmem:[%s9241_s9 + $0xc48] ss:$16 sps:$4 sm:$0xff]   ;;  %v7920_v38 = vld [vmem:[%s9241_s9 + $0xc64] ss:$16 sps:$4 sm:$0xff]  }
 0x274   : > { %5185 = vmatprep.subr.bf16.mxu0 %v7842_v39  ;;  %5769 = vmatprep.subr.bf16.mxu1 %v7845_v40  ;;  %v7923_v39 = vld [vmem:[%s9241_s9 + $0xc6c] ss:$16 sps:$4 sm:$0xff]   ;;  %v6488_v40 = vcombine.high %v1389_v34, %v1397_v35 }
 0x276   : > { %5163 = vmatmul.mubr.bf16.gmra.mrb[12].mxu0 %v6501_v41  ;;  %5747 = vmatmul.mubr.bf16.gmra.mrb[12].mxu1 %v6501_v41  ;;  %v7918_v41 = vld [vmem:[%s9241_s9 + $0xc60] ss:$16 sps:$4 sm:$0xff]  }
 0x277   : > { %5186 = vmatpush1.bf16.msra.mxu0 %v7840_v44  ;;  %5770 = vmatpush1.bf16.msra.mxu1 %v7843_v45  ;;  %v7929_v44 = vld [vmem:[%s9241_s9 + $0xc8c] ss:$16 sps:$4 sm:$0xff]   ;;  %v6487_v45 = vcombine.low %v1389_v34, %v1397_v35  ;;  %v7993_v34 = vld [vmem:[%s9241_s9 + $0xde8] ss:$16 sps:$4 sm:$0xff]   ;;  %v7998_v35 = vld [vmem:[%s9241_s9 + $0xe04] ss:$16 sps:$4 sm:$0xff]  }
 0x278   : > { %5187 = vmatprep.subr.bf16.mxu0 %v7848_v46  ;;  %5771 = vmatprep.subr.bf16.mxu1 %v7851_v47  ;;  %v1405_v46 = vld [vmem:[%s10100_s0 + $0x1a8] sm:$0xff] }
 0x279   : > { %5205 = vmatprep.mubr.bf16.mxu0 %v6456_v48  ;;  %5789 = vmatprep.mubr.bf16.mxu1 %v6456_v48  ;;  %v1413_v47 = vld [vmem:[%s10100_s0 + $0x1e8] sm:$0xff]  ;;  %v7924_v48 = vld [vmem:[%s9241_s9 + $0xc80] ss:$16 sps:$4 sm:$0xff]  }
 0x27b   : > { %5188 = vmatpush1.bf16.msra.mxu0 %v7846_v49  ;;  %5772 = vmatpush1.bf16.msra.mxu1 %v7849_v50  ;;  %v7927_v49 = vld [vmem:[%s9241_s9 + $0xc88] ss:$16 sps:$4 sm:$0xff]   ;;  %v7932_v50 = vld [vmem:[%s9241_s9 + $0xca4] ss:$16 sps:$4 sm:$0xff]  }
 0x27c   : > { %5189 = vmatprep.subr.bf16.mxu0 %v7854_v51  ;;  %5773 = vmatprep.subr.bf16.mxu1 %v7857_v52  ;;  %v7935_v51 = vld [vmem:[%s9241_s9 + $0xcac] ss:$16 sps:$4 sm:$0xff]   ;;  %v6504_v52 = vcombine.high %v1405_v46, %v1413_v47 }
 0x27f   : > { %5190 = vmatpush1.bf16.msra.mxu0 %v7852_v53  ;;  %5774 = vmatpush1.bf16.msra.mxu1 %v7855_v54  ;;  %v7930_v53 = vld [vmem:[%s9241_s9 + $0xca0] ss:$16 sps:$4 sm:$0xff]   ;;  %v7933_v54 = vld [vmem:[%s9241_s9 + $0xca8] ss:$16 sps:$4 sm:$0xff]  }
 0x280   : > { %5191 = vmatprep.subr.bf16.mxu0 %v7860_v55  ;;  %5775 = vmatprep.subr.bf16.mxu1 %v7863_v56  ;;  %v7938_v55 = vld [vmem:[%s9241_s9 + $0xcc4] ss:$16 sps:$4 sm:$0xff]   ;;  %v7941_v56 = vld [vmem:[%s9241_s9 + $0xccc] ss:$16 sps:$4 sm:$0xff]  }
 0x283   : > { %5192 = vmatpush1.bf16.msra.mxu0 %v7858_v57  ;;  %5776 = vmatpush1.bf16.msra.mxu1 %v7861_v58  ;;  %v6503_v57 = vcombine.low %v1405_v46, %v1413_v47  ;;  %v9836_v58 = vld [vmem:[%s10100_s0 + $0x30] sm:$0xff]  ;;  %v8005_v46 = vld [vmem:[%s9241_s9 + $0xe28] ss:$16 sps:$4 sm:$0xff]  }
 0x284   : > { %5193 = vmatprep.subr.bf16.mxu0 %v7866_v59  ;;  %5777 = vmatprep.subr.bf16.mxu1 %v7869_v60  ;;  %v9841_v59 = vld [vmem:[%s10100_s0 + $0x70] sm:$0xff] }
 0x285   : > { %v7936_v60 = vld [vmem:[%s9241_s9 + $0xcc0] ss:$16 sps:$4 sm:$0xff]   ;;  %v8010_v47 = vld [vmem:[%s9241_s9 + $0xe44] ss:$16 sps:$4 sm:$0xff]  }
 0x287   : > { %5194 = vmatpush1.bf16.msra.mxu0 %v7864_v61  ;;  %5778 = vmatpush1.bf16.msra.mxu1 %v7867_v62  ;;  %v7939_v61 = vld [vmem:[%s9241_s9 + $0xcc8] ss:$16 sps:$4 sm:$0xff]   ;;  %v7944_v62 = vld [vmem:[%s9241_s9 + $0xce4] ss:$16 sps:$4 sm:$0xff]  }
 0x288   : > { %5195 = vmatprep.subr.bf16.mxu0 %v7872_v63  ;;  %5779 = vmatprep.subr.bf16.mxu1 %v7875_v0  ;;  %v7947_v63 = vld [vmem:[%s9241_s9 + $0xcec] ss:$16 sps:$4 sm:$0xff]   ;;  %v6458_v0 = vcombine.high %v9836_v58, %v9841_v59 }
 0x28b   : > { %5196 = vmatpush1.bf16.msra.mxu0 %v7870_v1  ;;  %5780 = vmatpush1.bf16.msra.mxu1 %v7873_v3  ;;  %v7942_v1 = vld [vmem:[%s9241_s9 + $0xce0] ss:$16 sps:$4 sm:$0xff]   ;;  %v7945_v3 = vld [vmem:[%s9241_s9 + $0xce8] ss:$16 sps:$4 sm:$0xff]  }
 0x28c   : > { %5197 = vmatprep.subr.bf16.mxu0 %v7878_v4  ;;  %5781 = vmatprep.subr.bf16.mxu1 %v7881_v5  ;;  %v7950_v4 = vld [vmem:[%s9241_s9 + $0xd04] ss:$16 sps:$4 sm:$0xff]   ;;  %v7953_v5 = vld [vmem:[%s9241_s9 + $0xd0c] ss:$16 sps:$4 sm:$0xff]  }
 0x28f   : > { %5198 = vmatpush1.bf16.msra.mxu0 %v7876_v6  ;;  %5782 = vmatpush1.bf16.msra.mxu1 %v7879_v7  ;;  %v7948_v6 = vld [vmem:[%s9241_s9 + $0xd00] ss:$16 sps:$4 sm:$0xff]   ;;  %v7951_v7 = vld [vmem:[%s9241_s9 + $0xd08] ss:$16 sps:$4 sm:$0xff]  }
 0x290   : > { %5199 = vmatprep.subr.bf16.mxu0 %v7884_v8  ;;  %5783 = vmatprep.subr.bf16.mxu1 %v7887_v9  ;;  %v7956_v8 = vld [vmem:[%s9241_s9 + $0xd24] ss:$16 sps:$4 sm:$0xff]   ;;  %v7959_v9 = vld [vmem:[%s9241_s9 + $0xd2c] ss:$16 sps:$4 sm:$0xff]  }
 0x293   : > { %5200 = vmatpush1.bf16.msra.mxu0 %v7882_v10  ;;  %5784 = vmatpush1.bf16.msra.mxu1 %v7885_v11  ;;  %v7954_v10 = vld [vmem:[%s9241_s9 + $0xd20] ss:$16 sps:$4 sm:$0xff]   ;;  %v7957_v11 = vld [vmem:[%s9241_s9 + $0xd28] ss:$16 sps:$4 sm:$0xff]  }
 0x294   : > { %5201 = vmatprep.subr.bf16.mxu0 %v7890_v12  ;;  %5785 = vmatprep.subr.bf16.mxu1 %v7893_v13  ;;  %v7962_v12 = vld [vmem:[%s9241_s9 + $0xd44] ss:$16 sps:$4 sm:$0xff]   ;;  %v7965_v13 = vld [vmem:[%s9241_s9 + $0xd4c] ss:$16 sps:$4 sm:$0xff]  }
 0x297   : > { %5202 = vmatpush1.bf16.msra.mxu0 %v7888_v14  ;;  %5786 = vmatpush1.bf16.msra.mxu1 %v7891_v15  ;;  %v7960_v14 = vld [vmem:[%s9241_s9 + $0xd40] ss:$16 sps:$4 sm:$0xff]   ;;  %v7963_v15 = vld [vmem:[%s9241_s9 + $0xd48] ss:$16 sps:$4 sm:$0xff]  }
 0x298   : > { %5203 = vmatprep.subr.bf16.mxu0 %v7896_v16  ;;  %5787 = vmatprep.subr.bf16.mxu1 %v7899_v17  ;;  %v7968_v16 = vld [vmem:[%s9241_s9 + $0xd64] ss:$16 sps:$4 sm:$0xff]   ;;  %v7971_v17 = vld [vmem:[%s9241_s9 + $0xd6c] ss:$16 sps:$4 sm:$0xff]  }
 0x29b   : > { %5204 = vmatpush1.bf16.msra.mxu0 %v7894_v18  ;;  %5788 = vmatpush1.bf16.msra.mxu1 %v7897_v2  ;;  %v7966_v18 = vld [vmem:[%s9241_s9 + $0xd60] ss:$16 sps:$4 sm:$0xff]   ;;  %v7969_v2 = vld [vmem:[%s9241_s9 + $0xd68] ss:$16 sps:$4 sm:$0xff]  }
 0x29c   : > { %5246 = vmatprep.subr.bf16.mxu0 %v7902_v19  ;;  %5830 = vmatprep.subr.bf16.mxu1 %v7905_v20  ;;  %v7974_v19 = vld [vmem:[%s9241_s9 + $0xd84] ss:$16 sps:$4 sm:$0xff]   ;;  %v7977_v20 = vld [vmem:[%s9241_s9 + $0xd8c] ss:$16 sps:$4 sm:$0xff]  }
 0x29e   : > { %5206 = vmatmul.mubr.bf16.vlgmr.msra.gmra.mrb[0].mxu0 %v6455_v21  ;;  %5790 = vmatmul.mubr.bf16.vlgmr.msra.gmra.mrb[0].mxu1 %v6455_v21  ;;  %v7972_v21 = vld [vmem:[%s9241_s9 + $0xd80] ss:$16 sps:$4 sm:$0xff]  }
 0x29f   : > { %5247 = vmatpush1.bf16.msra.mxu0 %v7900_v24  ;;  %5831 = vmatpush1.bf16.msra.mxu1 %v7903_v25  ;;  %v7983_v24 = vld [vmem:[%s9241_s9 + $0xdac] ss:$16 sps:$4 sm:$0xff]   ;;  %v7978_v25 = vld [vmem:[%s9241_s9 + $0xda0] ss:$16 sps:$4 sm:$0xff]  }
 0x2a0   : > { %5248 = vmatprep.subr.bf16.mxu0 %v7908_v26  ;;  %5832 = vmatprep.subr.bf16.mxu1 %v7911_v27  ;;  %v7981_v26 = vld [vmem:[%s9241_s9 + $0xda8] ss:$16 sps:$4 sm:$0xff]   ;;  %v7986_v27 = vld [vmem:[%s9241_s9 + $0xdc4] ss:$16 sps:$4 sm:$0xff]  }
 0x2a1   : > { %5215 = vmatprep.mubr.bf16.mxu0 %v6472_v28  ;;  %5799 = vmatprep.mubr.bf16.mxu1 %v6472_v28  ;;  %v7989_v28 = vld [vmem:[%s9241_s9 + $0xdcc] ss:$16 sps:$4 sm:$0xff]  }
 0x2a3   : > { %5249 = vmatpush1.bf16.msra.mxu0 %v7906_v29  ;;  %5833 = vmatpush1.bf16.msra.mxu1 %v7909_v30  ;;  %v7984_v29 = vld [vmem:[%s9241_s9 + $0xdc0] ss:$16 sps:$4 sm:$0xff]   ;;  %v7987_v30 = vld [vmem:[%s9241_s9 + $0xdc8] ss:$16 sps:$4 sm:$0xff]  }
 0x2a4   : > { %5250 = vmatprep.subr.bf16.mxu0 %v7914_v31  ;;  %5834 = vmatprep.subr.bf16.mxu1 %v7917_v32  ;;  %v7992_v31 = vld [vmem:[%s9241_s9 + $0xde4] ss:$16 sps:$4 sm:$0xff]   ;;  %v7995_v32 = vld [vmem:[%s9241_s9 + $0xdec] ss:$16 sps:$4 sm:$0xff]  }
 0x2a6   : > { %5216 = vmatmul.mubr.bf16.gmra.mrb[4].mxu0 %v6471_v33  ;;  %5800 = vmatmul.mubr.bf16.gmra.mrb[4].mxu1 %v6471_v33  ;;  %v7990_v33 = vld [vmem:[%s9241_s9 + $0xde0] ss:$16 sps:$4 sm:$0xff]  }
 0x2a7   : > { %5251 = vmatpush1.bf16.msra.mxu0 %v7912_v36  ;;  %5835 = vmatpush1.bf16.msra.mxu1 %v7915_v37  ;;  %v8001_v36 = vld [vmem:[%s9241_s9 + $0xe0c] ss:$16 sps:$4 sm:$0xff]   ;;  %v6457_v37 = vcombine.low %v9836_v58, %v9841_v59  ;;  %v8017_v58 = vld [vmem:[%s9241_s9 + $0xe68] ss:$16 sps:$4 sm:$0xff]   ;;  %v8022_v59 = vld [vmem:[%s9241_s9 + $0xe84] ss:$16 sps:$4 sm:$0xff]  }
 0x2a8   : > { %5252 = vmatprep.subr.bf16.mxu0 %v7920_v38  ;;  %5836 = vmatprep.subr.bf16.mxu1 %v7923_v39  ;;  %v1374_v38 = vld [vmem:[%s10100_s0 + $0xb0] sm:$0xff] }
 0x2a9   : > { %5225 = vmatprep.mubr.bf16.mxu0 %v6488_v40  ;;  %5809 = vmatprep.mubr.bf16.mxu1 %v6488_v40  ;;  %v1382_v39 = vld [vmem:[%s10100_s0 + $0xf0] sm:$0xff] }
 0x2aa   : > { %v7996_v40 = vld [vmem:[%s9241_s9 + $0xe00] ss:$16 sps:$4 sm:$0xff]  }
 0x2ab   : > { %5253 = vmatpush1.bf16.msra.mxu0 %v7918_v41  ;;  %5837 = vmatpush1.bf16.msra.mxu1 %v7921_v42  ;;  %v7999_v41 = vld [vmem:[%s9241_s9 + $0xe08] ss:$16 sps:$4 sm:$0xff]   ;;  %v8004_v42 = vld [vmem:[%s9241_s9 + $0xe24] ss:$16 sps:$4 sm:$0xff]  }
 0x2ac   : > { %5254 = vmatprep.subr.bf16.mxu0 %v7926_v43  ;;  %5838 = vmatprep.subr.bf16.mxu1 %v7929_v44  ;;  %v8007_v43 = vld [vmem:[%s9241_s9 + $0xe2c] ss:$16 sps:$4 sm:$0xff]   ;;  %v6474_v44 = vcombine.high %v1374_v38, %v1382_v39 }
 0x2ae   : > { %5226 = vmatmul.mubr.bf16.gmra.mrb[8].mxu0 %v6487_v45  ;;  %5810 = vmatmul.mubr.bf16.gmra.mrb[8].mxu1 %v6487_v45  ;;  %v8002_v45 = vld [vmem:[%s9241_s9 + $0xe20] ss:$16 sps:$4 sm:$0xff]  }
 0x2af   : > { %5255 = vmatpush1.bf16.msra.mxu0 %v7924_v48  ;;  %5839 = vmatpush1.bf16.msra.mxu1 %v7927_v49  ;;  %v8013_v48 = vld [vmem:[%s9241_s9 + $0xe4c] ss:$16 sps:$4 sm:$0xff]   ;;  %v6473_v49 = vcombine.low %v1374_v38, %v1382_v39  ;;  %v8071_v38 = vld [vmem:[%s9241_s9 + $0xf88] ss:$16 sps:$4 sm:$0xff]   ;;  %v8076_v39 = vld [vmem:[%s9241_s9 + $0xfa4] ss:$16 sps:$4 sm:$0xff]  }
 0x2b0   : > { %5256 = vmatprep.subr.bf16.mxu0 %v7932_v50  ;;  %5840 = vmatprep.subr.bf16.mxu1 %v7935_v51  ;;  %v1390_v50 = vld [vmem:[%s10100_s0 + $0x130] sm:$0xff] }
 0x2b1   : > { %5235 = vmatprep.mubr.bf16.mxu0 %v6504_v52  ;;  %5819 = vmatprep.mubr.bf16.mxu1 %v6504_v52  ;;  %v1398_v51 = vld [vmem:[%s10100_s0 + $0x170] sm:$0xff] }
 0x2b2   : > { %v8008_v52 = vld [vmem:[%s9241_s9 + $0xe40] ss:$16 sps:$4 sm:$0xff]  }
 0x2b3   : > { %5257 = vmatpush1.bf16.msra.mxu0 %v7930_v53  ;;  %5841 = vmatpush1.bf16.msra.mxu1 %v7933_v54  ;;  %v8011_v53 = vld [vmem:[%s9241_s9 + $0xe48] ss:$16 sps:$4 sm:$0xff]   ;;  %v8016_v54 = vld [vmem:[%s9241_s9 + $0xe64] ss:$16 sps:$4 sm:$0xff]  }
 0x2b4   : > { %5258 = vmatprep.subr.bf16.mxu0 %v7938_v55  ;;  %5842 = vmatprep.subr.bf16.mxu1 %v7941_v56  ;;  %v8019_v55 = vld [vmem:[%s9241_s9 + $0xe6c] ss:$16 sps:$4 sm:$0xff]   ;;  %v6490_v56 = vcombine.high %v1390_v50, %v1398_v51 }
 0x2b6   : > { %5236 = vmatmul.mubr.bf16.gmra.mrb[12].mxu0 %v6503_v57  ;;  %5820 = vmatmul.mubr.bf16.gmra.mrb[12].mxu1 %v6503_v57  ;;  %v8014_v57 = vld [vmem:[%s9241_s9 + $0xe60] ss:$16 sps:$4 sm:$0xff]  }
 0x2b7   : > { %5259 = vmatpush1.bf16.msra.mxu0 %v7936_v60  ;;  %5843 = vmatpush1.bf16.msra.mxu1 %v7939_v61  ;;  %v8025_v60 = vld [vmem:[%s9241_s9 + $0xe8c] ss:$16 sps:$4 sm:$0xff]   ;;  %v6489_v61 = vcombine.low %v1390_v50, %v1398_v51  ;;  %v8089_v50 = vld [vmem:[%s9241_s9 + $0xfe8] ss:$16 sps:$4 sm:$0xff]  }
 0x2b8   : > { %5260 = vmatprep.subr.bf16.mxu0 %v7944_v62  ;;  %5844 = vmatprep.subr.bf16.mxu1 %v7947_v63  ;;  %v1406_v62 = vld [vmem:[%s10100_s0 + $0x1b0] sm:$0xff]  ;;  %v1375_v51 = vld [vmem:[%s10100_s0 + $0xb8] sm:$0xff] }
 0x2b9   : > { %5278 = vmatprep.mubr.bf16.mxu0 %v6458_v0  ;;  %5862 = vmatprep.mubr.bf16.mxu1 %v6458_v0  ;;  %v1414_v63 = vld [vmem:[%s10100_s0 + $0x1f0] sm:$0xff] }
 0x2ba   : > { %v8020_v0 = vld [vmem:[%s9241_s9 + $0xe80] ss:$16 sps:$4 sm:$0xff]  }
 0x2bb   : > { %5261 = vmatpush1.bf16.msra.mxu0 %v7942_v1  ;;  %5845 = vmatpush1.bf16.msra.mxu1 %v7945_v3  ;;  %v8023_v1 = vld [vmem:[%s9241_s9 + $0xe88] ss:$16 sps:$4 sm:$0xff]   ;;  %v8028_v3 = vld [vmem:[%s9241_s9 + $0xea4] ss:$16 sps:$4 sm:$0xff]  }
 0x2bc   : > { %5262 = vmatprep.subr.bf16.mxu0 %v7950_v4  ;;  %5846 = vmatprep.subr.bf16.mxu1 %v7953_v5  ;;  %v8031_v4 = vld [vmem:[%s9241_s9 + $0xeac] ss:$16 sps:$4 sm:$0xff]   ;;  %v6506_v5 = vcombine.high %v1406_v62, %v1414_v63 }
 0x2bf   : > { %5263 = vmatpush1.bf16.msra.mxu0 %v7948_v6  ;;  %5847 = vmatpush1.bf16.msra.mxu1 %v7951_v7  ;;  %v8026_v6 = vld [vmem:[%s9241_s9 + $0xea0] ss:$16 sps:$4 sm:$0xff]   ;;  %v8029_v7 = vld [vmem:[%s9241_s9 + $0xea8] ss:$16 sps:$4 sm:$0xff]  }
 0x2c0   : > { %5264 = vmatprep.subr.bf16.mxu0 %v7956_v8  ;;  %5848 = vmatprep.subr.bf16.mxu1 %v7959_v9  ;;  %v8034_v8 = vld [vmem:[%s9241_s9 + $0xec4] ss:$16 sps:$4 sm:$0xff]   ;;  %v8037_v9 = vld [vmem:[%s9241_s9 + $0xecc] ss:$16 sps:$4 sm:$0xff]  }
 0x2c3   : > { %5265 = vmatpush1.bf16.msra.mxu0 %v7954_v10  ;;  %5849 = vmatpush1.bf16.msra.mxu1 %v7957_v11  ;;  %v6505_v10 = vcombine.low %v1406_v62, %v1414_v63  ;;  %v9932_v11 = vld [vmem:[%s10100_s0 + $0x38] sm:$0xff] }
 0x2c4   : > { %5266 = vmatprep.subr.bf16.mxu0 %v7962_v12  ;;  %5850 = vmatprep.subr.bf16.mxu1 %v7965_v13  ;;  %v9937_v12 = vld [vmem:[%s10100_s0 + $0x78] sm:$0xff]  ;;  %v8032_v13 = vld [vmem:[%s9241_s9 + $0xec0] ss:$16 sps:$4 sm:$0xff]  }
 0x2c7   : > { %5267 = vmatpush1.bf16.msra.mxu0 %v7960_v14  ;;  %5851 = vmatpush1.bf16.msra.mxu1 %v7963_v15  ;;  %v8035_v14 = vld [vmem:[%s9241_s9 + $0xec8] ss:$16 sps:$4 sm:$0xff]   ;;  %v8040_v15 = vld [vmem:[%s9241_s9 + $0xee4] ss:$16 sps:$4 sm:$0xff]  }
 0x2c8   : > { %5268 = vmatprep.subr.bf16.mxu0 %v7968_v16  ;;  %5852 = vmatprep.subr.bf16.mxu1 %v7971_v17  ;;  %v8043_v16 = vld [vmem:[%s9241_s9 + $0xeec] ss:$16 sps:$4 sm:$0xff]   ;;  %v6460_v17 = vcombine.high %v9932_v11, %v9937_v12 }
 0x2cb   : > { %5269 = vmatpush1.bf16.msra.mxu0 %v7966_v18  ;;  %5853 = vmatpush1.bf16.msra.mxu1 %v7969_v2  ;;  %v8038_v18 = vld [vmem:[%s9241_s9 + $0xee0] ss:$16 sps:$4 sm:$0xff]   ;;  %v8041_v2 = vld [vmem:[%s9241_s9 + $0xee8] ss:$16 sps:$4 sm:$0xff]  }
 0x2cc   : > { %5270 = vmatprep.subr.bf16.mxu0 %v7974_v19  ;;  %5854 = vmatprep.subr.bf16.mxu1 %v7977_v20  ;;  %v8046_v19 = vld [vmem:[%s9241_s9 + $0xf04] ss:$16 sps:$4 sm:$0xff]   ;;  %v8049_v20 = vld [vmem:[%s9241_s9 + $0xf0c] ss:$16 sps:$4 sm:$0xff]  }
 0x2cf   : > { %5271 = vmatpush1.bf16.msra.mxu0 %v7972_v21  ;;  %5855 = vmatpush1.bf16.msra.mxu1 %v7975_v22  ;;  %v8044_v21 = vld [vmem:[%s9241_s9 + $0xf00] ss:$16 sps:$4 sm:$0xff]   ;;  %v8047_v22 = vld [vmem:[%s9241_s9 + $0xf08] ss:$16 sps:$4 sm:$0xff]  }
 0x2d0   : > { %5272 = vmatprep.subr.bf16.mxu0 %v7980_v23  ;;  %5856 = vmatprep.subr.bf16.mxu1 %v7983_v24  ;;  %v8052_v23 = vld [vmem:[%s9241_s9 + $0xf24] ss:$16 sps:$4 sm:$0xff]   ;;  %v8055_v24 = vld [vmem:[%s9241_s9 + $0xf2c] ss:$16 sps:$4 sm:$0xff]  }
 0x2d3   : > { %5273 = vmatpush1.bf16.msra.mxu0 %v7978_v25  ;;  %5857 = vmatpush1.bf16.msra.mxu1 %v7981_v26  ;;  %v8050_v25 = vld [vmem:[%s9241_s9 + $0xf20] ss:$16 sps:$4 sm:$0xff]   ;;  %v8053_v26 = vld [vmem:[%s9241_s9 + $0xf28] ss:$16 sps:$4 sm:$0xff]  }
 0x2d4   : > { %5274 = vmatprep.subr.bf16.mxu0 %v7986_v27  ;;  %5858 = vmatprep.subr.bf16.mxu1 %v7989_v28  ;;  %v8058_v27 = vld [vmem:[%s9241_s9 + $0xf44] ss:$16 sps:$4 sm:$0xff]   ;;  %v8061_v28 = vld [vmem:[%s9241_s9 + $0xf4c] ss:$16 sps:$4 sm:$0xff]  }
 0x2d7   : > { %5275 = vmatpush1.bf16.msra.mxu0 %v7984_v29  ;;  %5859 = vmatpush1.bf16.msra.mxu1 %v7987_v30  ;;  %v8056_v29 = vld [vmem:[%s9241_s9 + $0xf40] ss:$16 sps:$4 sm:$0xff]   ;;  %v8059_v30 = vld [vmem:[%s9241_s9 + $0xf48] ss:$16 sps:$4 sm:$0xff]  }
 0x2d8   : > { %5276 = vmatprep.subr.bf16.mxu0 %v7992_v31  ;;  %5860 = vmatprep.subr.bf16.mxu1 %v7995_v32  ;;  %v8064_v31 = vld [vmem:[%s9241_s9 + $0xf64] ss:$16 sps:$4 sm:$0xff]   ;;  %v8067_v32 = vld [vmem:[%s9241_s9 + $0xf6c] ss:$16 sps:$4 sm:$0xff]  }
 0x2db   : > { %5277 = vmatpush1.bf16.msra.mxu0 %v7990_v33  ;;  %5861 = vmatpush1.bf16.msra.mxu1 %v7993_v34  ;;  %v8062_v33 = vld [vmem:[%s9241_s9 + $0xf60] ss:$16 sps:$4 sm:$0xff]   ;;  %v8065_v34 = vld [vmem:[%s9241_s9 + $0xf68] ss:$16 sps:$4 sm:$0xff]  }
 0x2dc   : > { %5319 = vmatprep.subr.bf16.mxu0 %v7998_v35  ;;  %5903 = vmatprep.subr.bf16.mxu1 %v8001_v36  ;;  %v8070_v35 = vld [vmem:[%s9241_s9 + $0xf84] ss:$16 sps:$4 sm:$0xff]   ;;  %v8073_v36 = vld [vmem:[%s9241_s9 + $0xf8c] ss:$16 sps:$4 sm:$0xff]  }
 0x2de   : > { %5279 = vmatmul.mubr.bf16.vlgmr.msra.gmra.mrb[0].mxu0 %v6457_v37  ;;  %5863 = vmatmul.mubr.bf16.vlgmr.msra.gmra.mrb[0].mxu1 %v6457_v37  ;;  %v8068_v37 = vld [vmem:[%s9241_s9 + $0xf80] ss:$16 sps:$4 sm:$0xff]  }
 0x2df   : > { %5320 = vmatpush1.bf16.msra.mxu0 %v7996_v40  ;;  %5904 = vmatpush1.bf16.msra.mxu1 %v7999_v41  ;;  %v8079_v40 = vld [vmem:[%s9241_s9 + $0xfac] ss:$16 sps:$4 sm:$0xff]   ;;  %v8074_v41 = vld [vmem:[%s9241_s9 + $0xfa0] ss:$16 sps:$4 sm:$0xff]  }
 0x2e0   : > { %5321 = vmatprep.subr.bf16.mxu0 %v8004_v42  ;;  %5905 = vmatprep.subr.bf16.mxu1 %v8007_v43  ;;  %v8077_v42 = vld [vmem:[%s9241_s9 + $0xfa8] ss:$16 sps:$4 sm:$0xff]   ;;  %v8082_v43 = vld [vmem:[%s9241_s9 + $0xfc4] ss:$16 sps:$4 sm:$0xff]  }
 0x2e1   : > { %5288 = vmatprep.mubr.bf16.mxu0 %v6474_v44  ;;  %5872 = vmatprep.mubr.bf16.mxu1 %v6474_v44  ;;  %v8085_v44 = vld [vmem:[%s9241_s9 + $0xfcc] ss:$16 sps:$4 sm:$0xff]  }
 0x2e3   : > { %5322 = vmatpush1.bf16.msra.mxu0 %v8002_v45  ;;  %5906 = vmatpush1.bf16.msra.mxu1 %v8005_v46  ;;  %v8080_v45 = vld [vmem:[%s9241_s9 + $0xfc0] ss:$16 sps:$4 sm:$0xff]   ;;  %v8083_v46 = vld [vmem:[%s9241_s9 + $0xfc8] ss:$16 sps:$4 sm:$0xff]  }
 0x2e4   : > { %5323 = vmatprep.subr.bf16.mxu0 %v8010_v47  ;;  %5907 = vmatprep.subr.bf16.mxu1 %v8013_v48  ;;  %v8088_v47 = vld [vmem:[%s9241_s9 + $0xfe4] ss:$16 sps:$4 sm:$0xff]   ;;  %v8091_v48 = vld [vmem:[%s9241_s9 + $0xfec] ss:$16 sps:$4 sm:$0xff]  }
 0x2e6   : > { %5289 = vmatmul.mubr.bf16.gmra.mrb[4].mxu0 %v6473_v49  ;;  %5873 = vmatmul.mubr.bf16.gmra.mrb[4].mxu1 %v6473_v49  ;;  %v8086_v49 = vld [vmem:[%s9241_s9 + $0xfe0] ss:$16 sps:$4 sm:$0xff]  }
 0x2e7   : > { %5324 = vmatpush1.bf16.msra.mxu0 %v8008_v52  ;;  %5908 = vmatpush1.bf16.msra.mxu1 %v8011_v53  ;;  %v1383_v52 = vld [vmem:[%s10100_s0 + $0xf8] sm:$0xff]  ;;  %v6459_v53 = vcombine.low %v9932_v11, %v9937_v12 }
 0x2e8   : > { %5325 = vmatprep.subr.bf16.mxu0 %v8016_v54  ;;  %5909 = vmatprep.subr.bf16.mxu1 %v8019_v55  ;;  %v6476_v54 = vcombine.high %v1375_v51, %v1383_v52  ;;  %v1391_v55 = vld [vmem:[%s10100_s0 + $0x138] sm:$0xff] }
 0x2e9   : > { %5298 = vmatprep.mubr.bf16.mxu0 %v6490_v56  ;;  %5882 = vmatprep.mubr.bf16.mxu1 %v6490_v56  ;;  %v1399_v56 = vld [vmem:[%s10100_s0 + $0x178] sm:$0xff] }
 0x2eb   : > { %5326 = vmatpush1.bf16.msra.mxu0 %v8014_v57  ;;  %5910 = vmatpush1.bf16.msra.mxu1 %v8017_v58  ;;  %v6475_v57 = vcombine.low %v1375_v51, %v1383_v52  ;;  %v6492_v58 = vcombine.high %v1391_v55, %v1399_v56 }
 0x2ec   : > { %5327 = vmatprep.subr.bf16.mxu0 %v8022_v59  ;;  %5911 = vmatprep.subr.bf16.mxu1 %v8025_v60  ;;  %v1407_v59 = vld [vmem:[%s10100_s0 + $0x1b8] sm:$0xff] }
 0x2ed   : > { %v1415_v60 = vld [vmem:[%s10100_s0 + $0x1f8] sm:$0xff] }
 0x2ee   : > { %5299 = vmatmul.mubr.bf16.gmra.mrb[8].mxu0 %v6489_v61  ;;  %5883 = vmatmul.mubr.bf16.gmra.mrb[8].mxu1 %v6489_v61  ;;  %v6491_v61 = vcombine.low %v1391_v55, %v1399_v56  ;;  %v6508_v62 = vcombine.high %v1407_v59, %v1415_v60  ;;  %v6507_v63 = vcombine.low %v1407_v59, %v1415_v60 }
 0x2ef   : > { %5328 = vmatpush1.bf16.msra.mxu0 %v8020_v0  ;;  %5912 = vmatpush1.bf16.msra.mxu1 %v8023_v1  ;;  %v6077_v0 = vlaneseq }
 0x2f0   : > { %5329 = vmatprep.subr.bf16.mxu0 %v8028_v3  ;;  %5913 = vmatprep.subr.bf16.mxu1 %v8031_v4 }
 0x2f1   : > { %5308 = vmatprep.mubr.bf16.mxu0 %v6506_v5  ;;  %5892 = vmatprep.mubr.bf16.mxu1 %v6506_v5  ;;  %v6078_v1 = vshrl.u32 %v6077_v0, 7  ;;  %v6075_v5 = vld [vmem:[%s1277_s25] sm:$0xf] }
 0x2f3   : > { %5330 = vmatpush1.bf16.msra.mxu0 %v8026_v6  ;;  %5914 = vmatpush1.bf16.msra.mxu1 %v8029_v7  ;;  %v6079_v3 = vsub.s32 0, %v6078_v1  ;;  %v6087_v4 = vsub.s32 2, %v6078_v1  ;;  %v6083_v6 = vsub.s32 1, %v6078_v1  ;;  %v6091_v7 = vsub.s32 3, %v6078_v1 }
 0x2f4   : > { %5331 = vmatprep.subr.bf16.mxu0 %v8034_v8  ;;  %5915 = vmatprep.subr.bf16.mxu1 %v8037_v9 }
 0x2f5   : > { %v10003_v8 = vrot.slane %v6075_v5, %v6079_v3  ;;  %v10005_v9 = vrot.slane %v6075_v5, %v6087_v4  ;;  %v10009_v11 = vrot.slane %v6075_v5, %v6091_v7 }
 0x2f6   : > { %5309 = vmatmul.mubr.bf16.gmra.mrb[12].mxu0 %v6505_v10  ;;  %5893 = vmatmul.mubr.bf16.gmra.mrb[12].mxu1 %v6505_v10  ;;  %v10007_v10 = vrot.slane %v6075_v5, %v6083_v6 }
 0x2f7   : > { %5332 = vmatpush1.bf16.msra.mxu0 %v8032_v13  ;;  %5916 = vmatpush1.bf16.msra.mxu1 %v8035_v14 }
 0x2f8   : > { %5333 = vmatprep.subr.bf16.mxu0 %v8040_v15  ;;  %5917 = vmatprep.subr.bf16.mxu1 %v8043_v16 }
 0x2f9   : > { %5351 = vmatprep.mubr.bf16.mxu0 %v6460_v17  ;;  %5935 = vmatprep.mubr.bf16.mxu1 %v6460_v17 }
 0x2fb   : > { %5334 = vmatpush1.bf16.msra.mxu0 %v8038_v18  ;;  %5918 = vmatpush1.bf16.msra.mxu1 %v8041_v2 }
 0x2fc   : > { %5335 = vmatprep.subr.bf16.mxu0 %v8046_v19  ;;  %5919 = vmatprep.subr.bf16.mxu1 %v8049_v20 }
 0x2ff   : > { %5336 = vmatpush1.bf16.msra.mxu0 %v8044_v21  ;;  %5920 = vmatpush1.bf16.msra.mxu1 %v8047_v22 }
 0x300   : > { %5337 = vmatprep.subr.bf16.mxu0 %v8052_v23  ;;  %5921 = vmatprep.subr.bf16.mxu1 %v8055_v24 }
 0x303   : > { %5338 = vmatpush1.bf16.msra.mxu0 %v8050_v25  ;;  %5922 = vmatpush1.bf16.msra.mxu1 %v8053_v26 }
 0x304   : > { %5339 = vmatprep.subr.bf16.mxu0 %v8058_v27  ;;  %5923 = vmatprep.subr.bf16.mxu1 %v8061_v28 }
 0x307   : > { %5340 = vmatpush1.bf16.msra.mxu0 %v8056_v29  ;;  %5924 = vmatpush1.bf16.msra.mxu1 %v8059_v30 }
 0x308   : > { %5341 = vmatprep.subr.bf16.mxu0 %v8064_v31  ;;  %5925 = vmatprep.subr.bf16.mxu1 %v8067_v32 }
 0x30b   : > { %5342 = vmatpush1.bf16.msra.mxu0 %v8062_v33  ;;  %5926 = vmatpush1.bf16.msra.mxu1 %v8065_v34 }
 0x30c   : > { %5343 = vmatprep.subr.bf16.mxu0 %v8070_v35  ;;  %5927 = vmatprep.subr.bf16.mxu1 %v8073_v36 }
 0x30f   : > { %5344 = vmatpush1.bf16.msra.mxu0 %v8068_v37  ;;  %5928 = vmatpush1.bf16.msra.mxu1 %v8071_v38 }
 0x310   : > { %5345 = vmatprep.subr.bf16.mxu0 %v8076_v39  ;;  %5929 = vmatprep.subr.bf16.mxu1 %v8079_v40 }
 0x313   : > { %5346 = vmatpush1.bf16.msra.mxu0 %v8074_v41  ;;  %5930 = vmatpush1.bf16.msra.mxu1 %v8077_v42 }
 0x314   : > { %5347 = vmatprep.subr.bf16.mxu0 %v8082_v43  ;;  %5931 = vmatprep.subr.bf16.mxu1 %v8085_v44 }
 0x317   : > { %5348 = vmatpush1.bf16.msra.mxu0 %v8080_v45  ;;  %5932 = vmatpush1.bf16.msra.mxu1 %v8083_v46 }
 0x318   : > { %5349 = vmatprep.subr.bf16.mxu0 %v8088_v47  ;;  %5933 = vmatprep.subr.bf16.mxu1 %v8091_v48 }
 0x31b   : > { %5350 = vmatpush1.bf16.msra.mxu0 %v8086_v49  ;;  %5934 = vmatpush1.bf16.msra.mxu1 %v8089_v50 }
 0x31e   : > { %5352 = vmatmul.mubr.bf16.vlgmr.msra.gmra.mrb[0].mxu0 %v6459_v53  ;;  %5936 = vmatmul.mubr.bf16.vlgmr.msra.gmra.mrb[0].mxu1 %v6459_v53 }
 0x31f   : > { %5361 = vmatprep.mubr.bf16.mxu0 %v6476_v54  ;;  %5945 = vmatprep.mubr.bf16.mxu1 %v6476_v54 }
 0x326   : > { %5362 = vmatmul.mubr.bf16.gmra.mrb[4].mxu0 %v6475_v57  ;;  %5946 = vmatmul.mubr.bf16.gmra.mrb[4].mxu1 %v6475_v57 }
 0x327   : > { %5371 = vmatprep.mubr.bf16.mxu0 %v6492_v58  ;;  %5955 = vmatprep.mubr.bf16.mxu1 %v6492_v58 }
 0x32e   : > { %5372 = vmatmul.mubr.bf16.gmra.mrb[8].mxu0 %v6491_v61  ;;  %5956 = vmatmul.mubr.bf16.gmra.mrb[8].mxu1 %v6491_v61 }
 0x32f   : > { %5381 = vmatprep.mubr.bf16.mxu0 %v6508_v62  ;;  %5965 = vmatprep.mubr.bf16.mxu1 %v6508_v62 }
 0x336   : > { %5382 = vmatmul.mubr.bf16.gmra.mrb[12].mxu0 %v6507_v63  ;;  %5966 = vmatmul.mubr.bf16.gmra.mrb[12].mxu1 %v6507_v63 }
 0x3f1   : > { %v5353_v12 = vpop.f32.mrb[0].mxu0  ;;  %v5937_v13 = vpop.f32.mrb[0].mxu1 }
 0x3f2   : > { %v6097_v14 = vadd.f32 %v10003_v8, %v5353_v12  ;;  %v6099_v15 = vadd.f32 %v10005_v9, %v5937_v13  ;;  %v5355_v16 = vpop.f32.mrb[1].mxu0  ;;  %v5939_v17 = vpop.f32.mrb[1].mxu1 }
 0x3f3   : > { %v6098_v18 = vadd.f32 %v10007_v10, %v5355_v16  ;;  %v6100_v2 = vadd.f32 %v10009_v11, %v5939_v17  ;;  %v5357_v19 = vpop.f32.mrb[2].mxu0  ;;  %v5941_v20 = vpop.f32.mrb[2].mxu1 }
 0x3f4   : > { %v6129_v21 = vmax.f32 %v6097_v14, 0.0  ;;  %v6131_v22 = vmax.f32 %v6099_v15, 0.0  ;;  %v6101_v23 = vadd.f32 %v10003_v8, %v5357_v19  ;;  %v6103_v24 = vadd.f32 %v10005_v9, %v5941_v20  ;;  %v5359_v25 = vpop.f32.mrb[3].mxu0  ;;  %v5943_v26 = vpop.f32.mrb[3].mxu1 }
 0x3f5   : > { %v6130_v27 = vmax.f32 %v6098_v18, 0.0  ;;  %v6132_v28 = vmax.f32 %v6100_v2, 0.0  ;;  %v6102_v29 = vadd.f32 %v10007_v10, %v5359_v25  ;;  %v6104_v30 = vadd.f32 %v10009_v11, %v5943_v26 }
 0x3f6   : > { %v6133_v31 = vmax.f32 %v6101_v23, 0.0  ;;  %v6135_v32 = vmax.f32 %v6103_v24, 0.0 }
 0x3f7   : > { %v7043_v33 = vpack.c.bf16 %v6130_v27, %v6129_v21  ;;  %v7044_v34 = vpack.c.bf16 %v6132_v28, %v6131_v22  ;;  %v6134_v35 = vmax.f32 %v6102_v29, 0.0  ;;  %v6136_v36 = vmax.f32 %v6104_v30, 0.0 }
 0x3f9   : > { %6257 = vst [vmem:[%s10021_s12] sm:$0xff] %v7043_v33  ;;  %6258 = vst [vmem:[%s10021_s12 + $0x8] sm:$0xff] %v7044_v34  ;;  %v7045_v37 = vpack.c.bf16 %v6134_v35, %v6133_v31  ;;  %v7046_v38 = vpack.c.bf16 %v6136_v36, %v6135_v32  ;;  %v5363_v39 = vpop.f32.mrb[4].mxu0  ;;  %v5947_v40 = vpop.f32.mrb[4].mxu1 }
 0x3fa   : > { %v6105_v41 = vadd.f32 %v10003_v8, %v5363_v39  ;;  %v6107_v42 = vadd.f32 %v10005_v9, %v5947_v40  ;;  %v5365_v43 = vpop.f32.mrb[5].mxu0  ;;  %v5949_v44 = vpop.f32.mrb[5].mxu1 }
 0x3fb   : > { %6259 = vst [vmem:[%s10021_s12 + $0x10] sm:$0xff] %v7045_v37  ;;  %6260 = vst [vmem:[%s10021_s12 + $0x18] sm:$0xff] %v7046_v38  ;;  %v6106_v45 = vadd.f32 %v10007_v10, %v5365_v43  ;;  %v6108_v46 = vadd.f32 %v10009_v11, %v5949_v44  ;;  %v5367_v47 = vpop.f32.mrb[6].mxu0  ;;  %v5951_v48 = vpop.f32.mrb[6].mxu1 }
 0x3fc   : > { %v6137_v49 = vmax.f32 %v6105_v41, 0.0  ;;  %v6139_v50 = vmax.f32 %v6107_v42, 0.0  ;;  %v6109_v51 = vadd.f32 %v10003_v8, %v5367_v47  ;;  %v6111_v52 = vadd.f32 %v10005_v9, %v5951_v48  ;;  %v5369_v53 = vpop.f32.mrb[7].mxu0  ;;  %v5953_v54 = vpop.f32.mrb[7].mxu1 }
 0x3fd   : > { %v6138_v55 = vmax.f32 %v6106_v45, 0.0  ;;  %v6140_v56 = vmax.f32 %v6108_v46, 0.0  ;;  %v6110_v57 = vadd.f32 %v10007_v10, %v5369_v53  ;;  %v6112_v58 = vadd.f32 %v10009_v11, %v5953_v54 }
 0x3fe   : > { %v6141_v59 = vmax.f32 %v6109_v51, 0.0  ;;  %v6143_v60 = vmax.f32 %v6111_v52, 0.0 }
 0x3ff   : > { %v7047_v61 = vpack.c.bf16 %v6138_v55, %v6137_v49  ;;  %v7048_v62 = vpack.c.bf16 %v6140_v56, %v6139_v50  ;;  %v6142_v63 = vmax.f32 %v6110_v57, 0.0  ;;  %v6144_v0 = vmax.f32 %v6112_v58, 0.0 }
 0x401   : > { %6261 = vst [vmem:[%s10021_s12 + $0x20] sm:$0xff] %v7047_v61  ;;  %6262 = vst [vmem:[%s10021_s12 + $0x28] sm:$0xff] %v7048_v62  ;;  %v7049_v1 = vpack.c.bf16 %v6142_v63, %v6141_v59  ;;  %v7050_v3 = vpack.c.bf16 %v6144_v0, %v6143_v60  ;;  %v5373_v4 = vpop.f32.mrb[8].mxu0  ;;  %v5957_v5 = vpop.f32.mrb[8].mxu1 }
 0x402   : > { %v6113_v6 = vadd.f32 %v10003_v8, %v5373_v4  ;;  %v6115_v7 = vadd.f32 %v10005_v9, %v5957_v5  ;;  %v5375_v12 = vpop.f32.mrb[9].mxu0  ;;  %v5959_v13 = vpop.f32.mrb[9].mxu1  ;;  %v6302_v61 = vld [vmem:[%s10021_s12 + $0x10] sm:$0xff] (%p8187_p6)  ;;  %v6304_v62 = vld [vmem:[%s10021_s12 + $0x18] sm:$0xff] (%p8187_p6) }
 0x403   : > { %6263 = vst [vmem:[%s10021_s12 + $0x30] sm:$0xff] %v7049_v1  ;;  %6264 = vst [vmem:[%s10021_s12 + $0x38] sm:$0xff] %v7050_v3  ;;  %v6114_v14 = vadd.f32 %v10007_v10, %v5375_v12  ;;  %v6116_v15 = vadd.f32 %v10009_v11, %v5959_v13  ;;  %v5377_v16 = vpop.f32.mrb[10].mxu0  ;;  %v5961_v17 = vpop.f32.mrb[10].mxu1 }
 0x404   : > { %v6145_v18 = vmax.f32 %v6113_v6, 0.0  ;;  %v6147_v2 = vmax.f32 %v6115_v7, 0.0  ;;  %v6117_v19 = vadd.f32 %v10003_v8, %v5377_v16  ;;  %v6119_v20 = vadd.f32 %v10005_v9, %v5961_v17  ;;  %v5379_v21 = vpop.f32.mrb[11].mxu0  ;;  %v5963_v22 = vpop.f32.mrb[11].mxu1  ;;  %6303 = vst [vmem:[%s6285_s29 + $0x40] sm:$0xff] (%p8187_p6), %v6302_v61  ;;  %6305 = vst [vmem:[%s6285_s29 + $0x48] sm:$0xff] (%p8187_p6), %v6304_v62 }
 0x405   : > { %v6146_v23 = vmax.f32 %v6114_v14, 0.0  ;;  %v6148_v24 = vmax.f32 %v6116_v15, 0.0  ;;  %v6118_v25 = vadd.f32 %v10007_v10, %v5379_v21  ;;  %v6120_v26 = vadd.f32 %v10009_v11, %v5963_v22 }
 0x406   : > { %v6149_v27 = vmax.f32 %v6117_v19, 0.0  ;;  %v6151_v28 = vmax.f32 %v6119_v20, 0.0 }
 0x407   : > { %v7051_v29 = vpack.c.bf16 %v6146_v23, %v6145_v18  ;;  %v7052_v30 = vpack.c.bf16 %v6148_v24, %v6147_v2  ;;  %v6150_v31 = vmax.f32 %v6118_v25, 0.0  ;;  %v6152_v32 = vmax.f32 %v6120_v26, 0.0 }
 0x408   : > { %v6306_v63 = vld [vmem:[%s10021_s12 + $0x20] sm:$0xff] (%p8187_p6)  ;;  %v6308_v0 = vld [vmem:[%s10021_s12 + $0x28] sm:$0xff] (%p8187_p6) }
 0x409   : > { %6265 = vst [vmem:[%s10021_s12 + $0x40] sm:$0xff] %v7051_v29  ;;  %6266 = vst [vmem:[%s10021_s12 + $0x48] sm:$0xff] %v7052_v30  ;;  %v7053_v33 = vpack.c.bf16 %v6150_v31, %v6149_v27  ;;  %v7054_v34 = vpack.c.bf16 %v6152_v32, %v6151_v28  ;;  %v5383_v35 = vpop.f32.mrb[12].mxu0  ;;  %v5967_v36 = vpop.f32.mrb[12].mxu1 }
 0x40a   : > { %v6121_v37 = vadd.f32 %v10003_v8, %v5383_v35  ;;  %v6123_v38 = vadd.f32 %v10005_v9, %v5967_v36  ;;  %v5385_v39 = vpop.f32.mrb[13].mxu0  ;;  %v5969_v40 = vpop.f32.mrb[13].mxu1  ;;  %6307 = vst [vmem:[%s6285_s29 + $0x80] sm:$0xff] (%p8187_p6), %v6306_v63  ;;  %6309 = vst [vmem:[%s6285_s29 + $0x88] sm:$0xff] (%p8187_p6), %v6308_v0  ;;  %v6310_v1 = vld [vmem:[%s10021_s12 + $0x30] sm:$0xff] (%p8187_p6)  ;;  %v6312_v3 = vld [vmem:[%s10021_s12 + $0x38] sm:$0xff] (%p8187_p6) }
 0x40b   : > { %6267 = vst [vmem:[%s10021_s12 + $0x50] sm:$0xff] %v7053_v33  ;;  %6268 = vst [vmem:[%s10021_s12 + $0x58] sm:$0xff] %v7054_v34  ;;  %v6122_v41 = vadd.f32 %v10007_v10, %v5385_v39  ;;  %v6124_v42 = vadd.f32 %v10009_v11, %v5969_v40  ;;  %v5387_v43 = vpop.f32.mrb[14].mxu0  ;;  %v5971_v44 = vpop.f32.mrb[14].mxu1 }
 0x40c   : > { %v6153_v45 = vmax.f32 %v6121_v37, 0.0  ;;  %v6155_v46 = vmax.f32 %v6123_v38, 0.0  ;;  %v6125_v47 = vadd.f32 %v10003_v8, %v5387_v43  ;;  %v6127_v48 = vadd.f32 %v10005_v9, %v5971_v44  ;;  %v5389_v49 = vpop.f32.mrb[15].mxu0  ;;  %v5973_v50 = vpop.f32.mrb[15].mxu1  ;;  %6311 = vst [vmem:[%s6285_s29 + $0xc0] sm:$0xff] (%p8187_p6), %v6310_v1  ;;  %6313 = vst [vmem:[%s6285_s29 + $0xc8] sm:$0xff] (%p8187_p6), %v6312_v3 }
 0x40d   : > { %v6154_v51 = vmax.f32 %v6122_v41, 0.0  ;;  %v6156_v52 = vmax.f32 %v6124_v42, 0.0  ;;  %v6126_v53 = vadd.f32 %v10007_v10, %v5389_v49  ;;  %v6128_v54 = vadd.f32 %v10009_v11, %v5973_v50  ;;  %6279 = sbr.rel (!%p8187_p6) target bundleno = 1052 (0x41c), region = 67  ;;  %v6298_v10 = vld [vmem:[%s10021_s12] sm:$0xff] (%p8187_p6)  ;;  %v6300_v11 = vld [vmem:[%s10021_s12 + $0x8] sm:$0xff] (%p8187_p6) }
 0x40e   : > { %v6157_v55 = vmax.f32 %v6125_v47, 0.0  ;;  %v6159_v56 = vmax.f32 %v6127_v48, 0.0  ;;  %6299 = vst [vmem:[%s6285_s29] sm:$0xff] (%p8187_p6), %v6298_v10  ;;  %6301 = vst [vmem:[%s6285_s29 + $0x8] sm:$0xff] (%p8187_p6), %v6300_v11 }
 0x40f   : > { %v7055_v57 = vpack.c.bf16 %v6154_v51, %v6153_v45  ;;  %v7056_v58 = vpack.c.bf16 %v6156_v52, %v6155_v46  ;;  %v6158_v59 = vmax.f32 %v6126_v53, 0.0  ;;  %v6160_v60 = vmax.f32 %v6128_v54, 0.0 }
 0x410   : > { %v6314_v4 = vld [vmem:[%s10021_s12 + $0x40] sm:$0xff] (%p8187_p6)  ;;  %v6316_v5 = vld [vmem:[%s10021_s12 + $0x48] sm:$0xff] (%p8187_p6) }
 0x411   : > { %6269 = vst [vmem:[%s10021_s12 + $0x60] sm:$0xff] %v7055_v57  ;;  %6270 = vst [vmem:[%s10021_s12 + $0x68] sm:$0xff] %v7056_v58  ;;  %v7057_v8 = vpack.c.bf16 %v6158_v59, %v6157_v55  ;;  %v7058_v9 = vpack.c.bf16 %v6160_v60, %v6159_v56 }
 0x412   : > { %6315 = vst [vmem:[%s6285_s29 + $0x100] sm:$0xff] (%p8187_p6), %v6314_v4  ;;  %v6318_v6 = vld [vmem:[%s10021_s12 + $0x50] sm:$0xff] (%p8187_p6)  ;;  %v6320_v7 = vld [vmem:[%s10021_s12 + $0x58] sm:$0xff] (%p8187_p6)  ;;  %6317 = vst [vmem:[%s6285_s29 + $0x108] sm:$0xff] (%p8187_p6), %v6316_v5 }
 0x413   : > { %6271 = vst [vmem:[%s10021_s12 + $0x70] sm:$0xff] %v7057_v8  ;;  %6272 = vst [vmem:[%s10021_s12 + $0x78] sm:$0xff] %v7058_v9 }
 0x414   : > { %6319 = vst [vmem:[%s6285_s29 + $0x140] sm:$0xff] %v6318_v6  ;;  %6321 = vst [vmem:[%s6285_s29 + $0x148] sm:$0xff] %v6320_v7 }
 0x418   : > { %v6322_v12 = vld [vmem:[%s10021_s12 + $0x60] sm:$0xff]  ;;  %v6324_v13 = vld [vmem:[%s10021_s12 + $0x68] sm:$0xff] }
 0x419   : > { %6323 = vst [vmem:[%s6285_s29 + $0x180] sm:$0xff] %v6322_v12  ;;  %6325 = vst [vmem:[%s6285_s29 + $0x188] sm:$0xff] %v6324_v13 }
 0x41a   : > { %v6326_v14 = vld [vmem:[%s10021_s12 + $0x70] sm:$0xff]  ;;  %v6328_v15 = vld [vmem:[%s10021_s12 + $0x78] sm:$0xff] }
 0x41b   : > { %6327 = vst [vmem:[%s6285_s29 + $0x1c0] sm:$0xff] %v6326_v14  ;;  %6329 = vst [vmem:[%s6285_s29 + $0x1c8] sm:$0xff] %v6328_v15 }
 0x41c PF: > { %s13_s16 = sadd.s32 1, %s8130_s16   ;;  %s10105_s12 = smov %s8118_s13 }
 0x41d   : > { %p10_p12 = scmp.ge.s32.totalorder %s13_s16, 6   ;;  %s10106_s13 = smov %s8192_s22 }
 0x41e   : > { %s10107_s14 = smov %s8126_s15  ;;  %s10108_s15 = smov %s10110_s17 }
 0x41f   :  { %12 = sbr.rel (!%p10_p12) target bundleno = 3 (0x3), region = 128 }

// kernel: wav2phoneme_forward.21
= control target key start
LH: loop header
LB: loop body
LE: loop exit
PB: predicated region body
PF: predicated region fallthrough
CT: control target
= control target key end

     0   :  { %s2727_s18 = smov 0   ;;  %s3235_s0 = inlined_call_operand.vmem [shape: bf16[64,2048], index: 0, kind: input, shape index: {}]   ;;  %s3236_s1 = inlined_call_operand.vmem [shape: bf16[2048,128], index: 1, kind: input, shape index: {}]   ;;  %s3237_s2 = inlined_call_operand.vmem [shape: f32[1,128], index: 2, kind: input, shape index: {}]   ;;  %s3238_s3 = inlined_call_operand.vmem [shape: bf16[128,128], index: 3, kind: input, shape index: {}]   ;;  %s3239_s4 = inlined_call_operand.vmem [shape: f32[1,128], index: 4, kind: input, shape index: {}]   ;;  %s3240_s5 = inlined_call_operand.vmem [shape: f32[64,128], index: 5, kind: output, shape index: {}]  }
   0x1 LB: > { %s2092_s19 = sadd.s32 4294967295, %s2695_s18   ;;  %p2096_p0 = scmp.ge.s32.totalorder %s2695_s18, 1  ;;  %s2695_s18 = sphi %s2727_s18, %s15_s18  }
   0x2   : > { %p189_p1 = scmp.lt.s32.totalorder %s2695_s18, 3 }
   0x4   : > { %p190_p2 = pnand %p2096_p0, %p189_p1 }
   0x5   : > { %v2537_v0 = vld [vmem:[%s3236_s1 + $0x40] sm:$0xff] (!%p190_p2)   ;;  %v2541_v4 = vld [vmem:[%s3236_s1 + $0x48] sm:$0xff] (!%p190_p2)   ;;  %v2545_v8 = vld [vmem:[%s3236_s1 + $0x50] sm:$0xff] (!%p190_p2)   ;;  %s2097_s29 = sshll.u32 (!%p190_p2), %s2092_s19, 2 }
   0x6   : > { %193 = sbr.rel (%p190_p2) target bundleno = 911 (0x38f), region = 40  ;;  %v2538_v1 = vld [vmem:[%s3236_s1 + $0xc0] sm:$0xff] (!%p190_p2)   ;;  %2275 = vmatprep.subr.bf16.mxu0 (!%p190_p2), %v2537_v0  ;;  %v2542_v5 = vld [vmem:[%s3236_s1 + $0xc8] sm:$0xff] (!%p190_p2)   ;;  %v2546_v9 = vld [vmem:[%s3236_s1 + $0xd0] sm:$0xff] (!%p190_p2)   ;;  %p219_p3 = scmp.lt.s32.totalorder (!%p190_p2), %s2097_s29, 7 }
   0x7   : > { %v2539_v2 = vld [vmem:[%s3236_s1] sm:$0xff] (!%p190_p2)   ;;  %2303 = vmatprep.subr.bf16.mxu1 (!%p190_p2), %v2538_v1  ;;  %v2543_v6 = vld [vmem:[%s3236_s1 + $0x8] sm:$0xff] (!%p190_p2)   ;;  %v2547_v10 = vld [vmem:[%s3236_s1 + $0x10] sm:$0xff] (!%p190_p2)  }
   0x8   : > { %v2540_v3 = vld [vmem:[%s3236_s1 + $0x80] sm:$0xff] (!%p190_p2)   ;;  %2276 = vmatpush3.bf16.msra.mxu0 (!%p190_p2), %v2539_v2  ;;  %v2544_v7 = vld [vmem:[%s3236_s1 + $0x88] sm:$0xff] (!%p190_p2)   ;;  %v2548_v11 = vld [vmem:[%s3236_s1 + $0x90] sm:$0xff] (!%p190_p2)  }
   0x9   : > { %2304 = vmatpush3.bf16.msra.mxu1 (!%p190_p2), %v2540_v3  ;;  %2277 = vmatprep.subr.bf16.mxu0 (!%p190_p2), %v2541_v4  ;;  %v2549_v12 = vld [vmem:[%s3236_s1 + $0x58] sm:$0xff] (!%p190_p2)   ;;  %v2553_v16 = vld [vmem:[%s3236_s1 + $0x60] sm:$0xff] (!%p190_p2)   ;;  %v2557_v20 = vld [vmem:[%s3236_s1 + $0x68] sm:$0xff] (!%p190_p2)  }
   0xa   : > { %2305 = vmatprep.subr.bf16.mxu1 (!%p190_p2), %v2542_v5  ;;  %v2550_v13 = vld [vmem:[%s3236_s1 + $0xd8] sm:$0xff] (!%p190_p2)   ;;  %v2554_v17 = vld [vmem:[%s3236_s1 + $0xe0] sm:$0xff] (!%p190_p2)   ;;  %v2558_v21 = vld [vmem:[%s3236_s1 + $0xe8] sm:$0xff] (!%p190_p2)  }
   0xb   : > { %v2551_v14 = vld [vmem:[%s3236_s1 + $0x18] sm:$0xff] (!%p190_p2)   ;;  %v2555_v18 = vld [vmem:[%s3236_s1 + $0x20] sm:$0xff] (!%p190_p2)   ;;  %v2559_v22 = vld [vmem:[%s3236_s1 + $0x28] sm:$0xff] (!%p190_p2)  }
   0xc   : > { %2278 = vmatpush3.bf16.msra.mxu0 (!%p190_p2), %v2543_v6  ;;  %v2552_v15 = vld [vmem:[%s3236_s1 + $0x98] sm:$0xff] (!%p190_p2)   ;;  %v2556_v19 = vld [vmem:[%s3236_s1 + $0xa0] sm:$0xff] (!%p190_p2)   ;;  %v2560_v23 = vld [vmem:[%s3236_s1 + $0xa8] sm:$0xff] (!%p190_p2)  }
   0xd   : > { %2306 = vmatpush3.bf16.msra.mxu1 %v2544_v7  ;;  %2279 = vmatprep.subr.bf16.mxu0 %v2545_v8  ;;  %s3242_s29 = smov (!%p219_p3, %s2097_s29), 7  ;;  %v2561_v24 = vld [vmem:[%s3236_s1 + $0x70] sm:$0xff]   ;;  %v2565_v28 = vld [vmem:[%s3236_s1 + $0x78] sm:$0xff]   ;;  %v2569_v40 = vld [vmem:[%s3236_s1 + $0x140] sm:$0xff]  }
   0xe   : > { %2307 = vmatprep.subr.bf16.mxu1 %v2546_v9  ;;  %v2562_v25 = vld [vmem:[%s3236_s1 + $0xf0] sm:$0xff]   ;;  %s2274_s28 = sshll.u32 %s3242_s29, 6  ;;  %v2566_v29 = vld [vmem:[%s3236_s1 + $0xf8] sm:$0xff]   ;;  %v2570_v41 = vld [vmem:[%s3236_s1 + $0x1c0] sm:$0xff]   ;;  %s2101_s8 = sshll.u32 %s3242_s29, 3 }
   0xf   : > { %v2563_v26 = vld [vmem:[%s3236_s1 + $0x30] sm:$0xff]   ;;  %s2833_s19 = scalar_lea.vmem %s3235_s0, %s2274_s28  ;;  %v2567_v30 = vld [vmem:[%s3236_s1 + $0x38] sm:$0xff]   ;;  %v2571_v42 = vld [vmem:[%s3236_s1 + $0x100] sm:$0xff]   ;;  %s229_s11 = scalar_lea.vmem %s3240_s5, %s2101_s8 }
  0x10   : > { %2280 = vmatpush3.bf16.msra.mxu0 %v2547_v10  ;;  %v2564_v27 = vld [vmem:[%s3236_s1 + $0xb0] sm:$0xff]   ;;  %v2568_v31 = vld [vmem:[%s3236_s1 + $0xb8] sm:$0xff]   ;;  %v232_v32 = vld [vmem:[%s2833_s19] sm:$0xff] }
  0x11   : > { %2308 = vmatpush3.bf16.msra.mxu1 %v2548_v11  ;;  %2281 = vmatprep.subr.bf16.mxu0 %v2549_v12  ;;  %v240_v33 = vld [vmem:[%s2833_s19 + $0x40] sm:$0xff]  ;;  %v233_v34 = vld [vmem:[%s2833_s19 + $0x8] sm:$0xff]  ;;  %v2577_v48 = vld [vmem:[%s3236_s1 + $0x150] sm:$0xff]  }
  0x12   : > { %2309 = vmatprep.subr.bf16.mxu1 %v2550_v13  ;;  %v2103_v35 = vcombine.low %v232_v32, %v240_v33  ;;  %v2104_v36 = vcombine.high %v232_v32, %v240_v33  ;;  %v241_v37 = vld [vmem:[%s2833_s19 + $0x48] sm:$0xff]  ;;  %v2572_v43 = vld [vmem:[%s3236_s1 + $0x180] sm:$0xff]   ;;  %v2578_v49 = vld [vmem:[%s3236_s1 + $0x1d0] sm:$0xff]  }
  0x13   : > { %v2105_v38 = vcombine.low %v233_v34, %v241_v37  ;;  %v2106_v39 = vcombine.high %v233_v34, %v241_v37  ;;  %v2573_v44 = vld [vmem:[%s3236_s1 + $0x148] sm:$0xff]   ;;  %v2579_v50 = vld [vmem:[%s3236_s1 + $0x110] sm:$0xff]   ;;  %v2581_v52 = vld [vmem:[%s3236_s1 + $0x158] sm:$0xff]  }
  0x14   : > { %2282 = vmatpush3.bf16.msra.mxu0 %v2551_v14  ;;  %1487 = vmatprep.mubr.bf16.mxu0 %v2104_v36  ;;  %v2574_v45 = vld [vmem:[%s3236_s1 + $0x1c8] sm:$0xff]   ;;  %v2580_v51 = vld [vmem:[%s3236_s1 + $0x190] sm:$0xff]   ;;  %v2582_v53 = vld [vmem:[%s3236_s1 + $0x1d8] sm:$0xff]  }
  0x15   : > { %2310 = vmatpush3.bf16.msra.mxu1 %v2552_v15  ;;  %2283 = vmatprep.subr.bf16.mxu0 %v2553_v16  ;;  %v2575_v46 = vld [vmem:[%s3236_s1 + $0x108] sm:$0xff]   ;;  %v2583_v54 = vld [vmem:[%s3236_s1 + $0x118] sm:$0xff]   ;;  %v2585_v56 = vld [vmem:[%s3236_s1 + $0x160] sm:$0xff]  }
  0x16   : > { %2311 = vmatprep.subr.bf16.mxu1 %v2554_v17  ;;  %1536 = vmatprep.mubr.bf16.mxu1 %v2106_v39  ;;  %v2576_v47 = vld [vmem:[%s3236_s1 + $0x188] sm:$0xff]   ;;  %v2584_v55 = vld [vmem:[%s3236_s1 + $0x198] sm:$0xff]   ;;  %v2586_v57 = vld [vmem:[%s3236_s1 + $0x1e0] sm:$0xff]  }
  0x17   : > { %v2587_v58 = vld [vmem:[%s3236_s1 + $0x120] sm:$0xff]   ;;  %v2589_v60 = vld [vmem:[%s3236_s1 + $0x168] sm:$0xff]   ;;  %v2593_v8 = vld [vmem:[%s3236_s1 + $0x170] sm:$0xff]  }
  0x18   : > { %2284 = vmatpush3.bf16.msra.mxu0 %v2555_v18  ;;  %v2588_v59 = vld [vmem:[%s3236_s1 + $0x1a0] sm:$0xff]   ;;  %v2590_v61 = vld [vmem:[%s3236_s1 + $0x1e8] sm:$0xff]   ;;  %v2594_v9 = vld [vmem:[%s3236_s1 + $0x1f0] sm:$0xff]  }
  0x19   : > { %2312 = vmatpush3.bf16.msra.mxu1 %v2556_v19  ;;  %2285 = vmatprep.subr.bf16.mxu0 %v2557_v20  ;;  %v248_v62 = vld [vmem:[%s2833_s19 + $0x80] sm:$0xff]  ;;  %v2591_v1 = vld [vmem:[%s3236_s1 + $0x128] sm:$0xff]   ;;  %v2595_v10 = vld [vmem:[%s3236_s1 + $0x130] sm:$0xff]  }
  0x1a   : > { %2313 = vmatprep.subr.bf16.mxu1 %v2558_v21  ;;  %v256_v63 = vld [vmem:[%s2833_s19 + $0xc0] sm:$0xff]  ;;  %v2592_v3 = vld [vmem:[%s3236_s1 + $0x1a8] sm:$0xff]   ;;  %v2596_v11 = vld [vmem:[%s3236_s1 + $0x1b0] sm:$0xff]  }
  0x1b   : > { %v2120_v0 = vcombine.high %v248_v62, %v256_v63  ;;  %v2119_v2 = vcombine.low %v248_v62, %v256_v63  ;;  %v249_v4 = vld [vmem:[%s2833_s19 + $0x88] sm:$0xff]  ;;  %v2597_v12 = vld [vmem:[%s3236_s1 + $0x178] sm:$0xff]   ;;  %v234_v16 = vld [vmem:[%s2833_s19 + $0x10] sm:$0xff] }
  0x1c   : > { %2286 = vmatpush3.bf16.msra.mxu0 %v2559_v22  ;;  %v257_v5 = vld [vmem:[%s2833_s19 + $0xc8] sm:$0xff]  ;;  %v2598_v13 = vld [vmem:[%s3236_s1 + $0x1f8] sm:$0xff]   ;;  %v242_v17 = vld [vmem:[%s2833_s19 + $0x50] sm:$0xff] }
  0x1d   : > { %2314 = vmatpush3.bf16.msra.mxu1 %v2560_v23  ;;  %2287 = vmatprep.subr.bf16.mxu0 %v2561_v24  ;;  %v2122_v6 = vcombine.high %v249_v4, %v257_v5  ;;  %v2121_v7 = vcombine.low %v249_v4, %v257_v5  ;;  %v2599_v14 = vld [vmem:[%s3236_s1 + $0x138] sm:$0xff]   ;;  %v2107_v20 = vcombine.low %v234_v16, %v242_v17  ;;  %v2601_v24 = vld [vmem:[%s3236_s1 + $0x240] sm:$0xff]   ;;  %v250_v32 = vld [vmem:[%s2833_s19 + $0x90] sm:$0xff] }
  0x1e   : > { %2315 = vmatprep.subr.bf16.mxu1 %v2562_v25  ;;  %v2600_v15 = vld [vmem:[%s3236_s1 + $0x1b8] sm:$0xff]   ;;  %v2108_v21 = vcombine.high %v234_v16, %v242_v17  ;;  %v2602_v25 = vld [vmem:[%s3236_s1 + $0x2c0] sm:$0xff]   ;;  %v258_v33 = vld [vmem:[%s2833_s19 + $0xd0] sm:$0xff] }
  0x1f   : > { %v235_v18 = vld [vmem:[%s2833_s19 + $0x18] sm:$0xff]  ;;  %v2124_v34 = vcombine.high %v250_v32, %v258_v33  ;;  %v2609_v36 = vld [vmem:[%s3236_s1 + $0x250] sm:$0xff]   ;;  %v237_v4 = vld [vmem:[%s2833_s19 + $0x28] sm:$0xff] }
  0x20   : > { %2288 = vmatpush3.bf16.msra.mxu0 %v2563_v26  ;;  %v243_v19 = vld [vmem:[%s2833_s19 + $0x58] sm:$0xff]  ;;  %v2603_v26 = vld [vmem:[%s3236_s1 + $0x200] sm:$0xff]   ;;  %v2610_v37 = vld [vmem:[%s3236_s1 + $0x2d0] sm:$0xff]  }
  0x21   : > { %2316 = vmatpush3.bf16.msra.mxu1 %v2564_v27  ;;  %2289 = vmatprep.subr.bf16.mxu0 %v2565_v28  ;;  %v2109_v22 = vcombine.low %v235_v18, %v243_v19  ;;  %v2110_v23 = vcombine.high %v235_v18, %v243_v19  ;;  %v2604_v27 = vld [vmem:[%s3236_s1 + $0x280] sm:$0xff]   ;;  %v2605_v28 = vld [vmem:[%s3236_s1 + $0x248] sm:$0xff]   ;;  %v259_v39 = vld [vmem:[%s2833_s19 + $0xd8] sm:$0xff] }
  0x22   : > { %2317 = vmatprep.subr.bf16.mxu1 %v2566_v29  ;;  %v2606_v29 = vld [vmem:[%s3236_s1 + $0x2c8] sm:$0xff]   ;;  %v2631_v62 = vld [vmem:[%s3236_s1 + $0x238] sm:$0xff]   ;;  %v252_v16 = vld [vmem:[%s2833_s19 + $0xa0] sm:$0xff] }
  0x23   : > { %v2632_v63 = vld [vmem:[%s3236_s1 + $0x2b8] sm:$0xff]   ;;  %v245_v5 = vld [vmem:[%s2833_s19 + $0x68] sm:$0xff]  ;;  %v260_v17 = vld [vmem:[%s2833_s19 + $0xe0] sm:$0xff] }
  0x24   : > { %2290 = vmatpush3.bf16.msra.mxu0 %v2567_v30  ;;  %v2607_v30 = vld [vmem:[%s3236_s1 + $0x208] sm:$0xff]   ;;  %v2128_v18 = vcombine.high %v252_v16, %v260_v17  ;;  %v2127_v19 = vcombine.low %v252_v16, %v260_v17 }
  0x25   : > { %2318 = vmatpush3.bf16.msra.mxu1 %v2568_v31  ;;  %2331 = vmatprep.subr.bf16.mxu0 %v2569_v40  ;;  %v2608_v31 = vld [vmem:[%s3236_s1 + $0x288] sm:$0xff]  }
  0x26   : > { %2359 = vmatprep.subr.bf16.mxu1 %v2570_v41  ;;  %v2611_v41 = vld [vmem:[%s3236_s1 + $0x210] sm:$0xff]  }
  0x27   : > { %1488 = vmatmul.mubr.bf16.vlgmr.msra.gmra.mrb[0].mxu0 %v2103_v35  ;;  %v2123_v35 = vcombine.low %v250_v32, %v258_v33  ;;  %v2649_v32 = vld [vmem:[%s3236_s1 + $0x360] sm:$0xff]  }
  0x28   : > { %1537 = vmatmul.mubr.bf16.vlgmr.msra.gmra.mrb[0].mxu1 %v2105_v38  ;;  %2332 = vmatpush3.bf16.msra.mxu0 %v2571_v42  ;;  %v251_v38 = vld [vmem:[%s2833_s19 + $0x98] sm:$0xff]  ;;  %v2650_v33 = vld [vmem:[%s3236_s1 + $0x3e0] sm:$0xff]  }
  0x29   : > { %2360 = vmatpush3.bf16.msra.mxu1 %v2572_v43  ;;  %2333 = vmatprep.subr.bf16.mxu0 %v2573_v44  ;;  %v2126_v40 = vcombine.high %v251_v38, %v259_v39  ;;  %v2125_v42 = vcombine.low %v251_v38, %v259_v39  ;;  %v2612_v43 = vld [vmem:[%s3236_s1 + $0x290] sm:$0xff]   ;;  %v2613_v44 = vld [vmem:[%s3236_s1 + $0x258] sm:$0xff]   ;;  %v2655_v38 = vld [vmem:[%s3236_s1 + $0x328] sm:$0xff]  }
  0x2a   : > { %2361 = vmatprep.subr.bf16.mxu1 %v2574_v45  ;;  %1495 = vmatprep.mubr.bf16.mxu0 %v2120_v0  ;;  %v2614_v45 = vld [vmem:[%s3236_s1 + $0x2d8] sm:$0xff]   ;;  %v236_v0 = vld [vmem:[%s2833_s19 + $0x20] sm:$0xff]  ;;  %v2656_v39 = vld [vmem:[%s3236_s1 + $0x3a8] sm:$0xff]  }
  0x2b   : > { %1544 = vmatprep.mubr.bf16.mxu1 %v2122_v6  ;;  %v2113_v6 = vcombine.low %v237_v4, %v245_v5 }
  0x2c   : > { %2334 = vmatpush3.bf16.msra.mxu0 %v2575_v46  ;;  %v2615_v46 = vld [vmem:[%s3236_s1 + $0x218] sm:$0xff]  }
  0x2d   : > { %2362 = vmatpush3.bf16.msra.mxu1 %v2576_v47  ;;  %2335 = vmatprep.subr.bf16.mxu0 %v2577_v48  ;;  %v2616_v47 = vld [vmem:[%s3236_s1 + $0x298] sm:$0xff]   ;;  %v2617_v48 = vld [vmem:[%s3236_s1 + $0x260] sm:$0xff]  }
  0x2e   : > { %2363 = vmatprep.subr.bf16.mxu1 %v2578_v49  ;;  %v2618_v49 = vld [vmem:[%s3236_s1 + $0x2e0] sm:$0xff]  }
  0x2f   : > { %1496 = vmatmul.mubr.bf16.gmra.mrb[4].mxu0 %v2119_v2 }
  0x30   : > { %2336 = vmatpush3.bf16.msra.mxu0 %v2579_v50  ;;  %1545 = vmatmul.mubr.bf16.gmra.mrb[4].mxu1 %v2121_v7  ;;  %v2619_v50 = vld [vmem:[%s3236_s1 + $0x220] sm:$0xff]   ;;  %v2114_v7 = vcombine.high %v237_v4, %v245_v5  ;;  %v2670_v5 = vld [vmem:[%s3238_s3 + $0x28] sm:$0xff]  }
  0x31   : > { %2364 = vmatpush3.bf16.msra.mxu1 %v2580_v51  ;;  %2337 = vmatprep.subr.bf16.mxu0 %v2581_v52  ;;  %v2620_v51 = vld [vmem:[%s3236_s1 + $0x2a0] sm:$0xff]   ;;  %v2621_v52 = vld [vmem:[%s3236_s1 + $0x268] sm:$0xff]  }
  0x32   : > { %2365 = vmatprep.subr.bf16.mxu1 %v2582_v53  ;;  %1585 = vmatprep.mubr.bf16.mxu0 %v2108_v21  ;;  %v2622_v53 = vld [vmem:[%s3236_s1 + $0x2e8] sm:$0xff]   ;;  %v2642_v21 = vld [vmem:[%s3236_s1 + $0x3d0] sm:$0xff]   ;;  %v2669_v4 = vld [vmem:[%s3238_s3 + $0x20] sm:$0xff]  }
  0x33   : > { %1634 = vmatprep.mubr.bf16.mxu1 %v2110_v23  ;;  %v261_v23 = vld [vmem:[%s2833_s19 + $0xe8] sm:$0xff] }
  0x34   : > { %2338 = vmatpush3.bf16.msra.mxu0 %v2583_v54  ;;  %v2623_v54 = vld [vmem:[%s3236_s1 + $0x228] sm:$0xff]  }
  0x35   : > { %2366 = vmatpush3.bf16.msra.mxu1 %v2584_v55  ;;  %2339 = vmatprep.subr.bf16.mxu0 %v2585_v56  ;;  %v2624_v55 = vld [vmem:[%s3236_s1 + $0x2a8] sm:$0xff]   ;;  %v2625_v56 = vld [vmem:[%s3236_s1 + $0x270] sm:$0xff]  }
  0x36   : > { %2367 = vmatprep.subr.bf16.mxu1 %v2586_v57  ;;  %v2626_v57 = vld [vmem:[%s3236_s1 + $0x2f0] sm:$0xff]  }
  0x38   : > { %2340 = vmatpush3.bf16.msra.mxu0 %v2587_v58  ;;  %v2627_v58 = vld [vmem:[%s3236_s1 + $0x230] sm:$0xff]  }
  0x39   : > { %2368 = vmatpush3.bf16.msra.mxu1 %v2588_v59  ;;  %2341 = vmatprep.subr.bf16.mxu0 %v2589_v60  ;;  %v2628_v59 = vld [vmem:[%s3236_s1 + $0x2b0] sm:$0xff]   ;;  %v2629_v60 = vld [vmem:[%s3236_s1 + $0x278] sm:$0xff]  }
  0x3a   : > { %2369 = vmatprep.subr.bf16.mxu1 %v2590_v61  ;;  %v2630_v61 = vld [vmem:[%s3236_s1 + $0x2f8] sm:$0xff]  }
  0x3c   : > { %2342 = vmatpush3.bf16.msra.mxu0 %v2591_v1  ;;  %v244_v1 = vld [vmem:[%s2833_s19 + $0x60] sm:$0xff] }
  0x3d   : > { %2370 = vmatpush3.bf16.msra.mxu1 %v2592_v3  ;;  %2343 = vmatprep.subr.bf16.mxu0 %v2593_v8  ;;  %v2111_v2 = vcombine.low %v236_v0, %v244_v1  ;;  %v2112_v3 = vcombine.high %v236_v0, %v244_v1  ;;  %v2633_v8 = vld [vmem:[%s3236_s1 + $0x340] sm:$0xff]   ;;  %v2666_v1 = vld [vmem:[%s3238_s3 + $0x8] sm:$0xff]  }
  0x3e   : > { %2371 = vmatprep.subr.bf16.mxu1 %v2594_v9  ;;  %v2634_v9 = vld [vmem:[%s3236_s1 + $0x3c0] sm:$0xff]  }
  0x3f   : > { %v2665_v0 = vld [vmem:[%s3238_s3] sm:$0xff]  }
  0x40   : > { %2344 = vmatpush3.bf16.msra.mxu0 %v2595_v10  ;;  %v2635_v10 = vld [vmem:[%s3236_s1 + $0x300] sm:$0xff]  }
  0x41   : > { %2372 = vmatpush3.bf16.msra.mxu1 %v2596_v11  ;;  %2345 = vmatprep.subr.bf16.mxu0 %v2597_v12  ;;  %v2636_v11 = vld [vmem:[%s3236_s1 + $0x380] sm:$0xff]   ;;  %v2637_v12 = vld [vmem:[%s3236_s1 + $0x348] sm:$0xff]  }
  0x42   : > { %2373 = vmatprep.subr.bf16.mxu1 %v2598_v13  ;;  %v2638_v13 = vld [vmem:[%s3236_s1 + $0x3c8] sm:$0xff]  }
  0x44   : > { %2346 = vmatpush3.bf16.msra.mxu0 %v2599_v14  ;;  %v2639_v14 = vld [vmem:[%s3236_s1 + $0x308] sm:$0xff]  }
  0x45   : > { %2374 = vmatpush3.bf16.msra.mxu1 %v2600_v15  ;;  %2387 = vmatprep.subr.bf16.mxu0 %v2601_v24  ;;  %v2640_v15 = vld [vmem:[%s3236_s1 + $0x388] sm:$0xff]  }
  0x46   : > { %2415 = vmatprep.subr.bf16.mxu1 %v2602_v25  ;;  %v2643_v25 = vld [vmem:[%s3236_s1 + $0x310] sm:$0xff]  }
  0x47   : > { %1586 = vmatmul.mubr.bf16.vlgmr.msra.gmra.mrb[8].mxu0 %v2107_v20  ;;  %v2641_v20 = vld [vmem:[%s3236_s1 + $0x350] sm:$0xff]  }
  0x48   : > { %1635 = vmatmul.mubr.bf16.vlgmr.msra.gmra.mrb[8].mxu1 %v2109_v22  ;;  %2388 = vmatpush3.bf16.msra.mxu0 %v2603_v26  ;;  %v253_v22 = vld [vmem:[%s2833_s19 + $0xa8] sm:$0xff] }
  0x49   : > { %2416 = vmatpush3.bf16.msra.mxu1 %v2604_v27  ;;  %2389 = vmatprep.subr.bf16.mxu0 %v2605_v28  ;;  %v2130_v24 = vcombine.high %v253_v22, %v261_v23  ;;  %v2129_v26 = vcombine.low %v253_v22, %v261_v23  ;;  %v2644_v27 = vld [vmem:[%s3236_s1 + $0x390] sm:$0xff]   ;;  %v2645_v28 = vld [vmem:[%s3236_s1 + $0x358] sm:$0xff]  }
  0x4a   : > { %2417 = vmatprep.subr.bf16.mxu1 %v2606_v29  ;;  %1593 = vmatprep.mubr.bf16.mxu0 %v2124_v34  ;;  %v2646_v29 = vld [vmem:[%s3236_s1 + $0x3d8] sm:$0xff]   ;;  %v2651_v34 = vld [vmem:[%s3236_s1 + $0x320] sm:$0xff]  }
  0x4b   : > { %1642 = vmatprep.mubr.bf16.mxu1 %v2126_v40  ;;  %v2657_v40 = vld [vmem:[%s3236_s1 + $0x370] sm:$0xff]  }
  0x4c   : > { %2390 = vmatpush3.bf16.msra.mxu0 %v2607_v30  ;;  %v2647_v30 = vld [vmem:[%s3236_s1 + $0x318] sm:$0xff]  }
  0x4d   : > { %2418 = vmatpush3.bf16.msra.mxu1 %v2608_v31  ;;  %2391 = vmatprep.subr.bf16.mxu0 %v2609_v36  ;;  %v2648_v31 = vld [vmem:[%s3236_s1 + $0x398] sm:$0xff]   ;;  %v2653_v36 = vld [vmem:[%s3236_s1 + $0x368] sm:$0xff]  }
  0x4e   : > { %2419 = vmatprep.subr.bf16.mxu1 %v2610_v37  ;;  %v2654_v37 = vld [vmem:[%s3236_s1 + $0x3e8] sm:$0xff]  }
  0x4f   : > { %1594 = vmatmul.mubr.bf16.gmra.mrb[12].mxu0 %v2123_v35  ;;  %v2652_v35 = vld [vmem:[%s3236_s1 + $0x3a0] sm:$0xff]  }
  0x50   : > { %2392 = vmatpush3.bf16.msra.mxu0 %v2611_v41  ;;  %1643 = vmatmul.mubr.bf16.gmra.mrb[12].mxu1 %v2125_v42  ;;  %v2658_v41 = vld [vmem:[%s3236_s1 + $0x3f0] sm:$0xff]  }
  0x51   : > { %2420 = vmatpush3.bf16.msra.mxu1 %v2612_v43  ;;  %2393 = vmatprep.subr.bf16.mxu0 %v2613_v44  ;;  %v2659_v42 = vld [vmem:[%s3236_s1 + $0x330] sm:$0xff]   ;;  %v2661_v44 = vld [vmem:[%s3236_s1 + $0x378] sm:$0xff]  }
  0x52   : > { %2421 = vmatprep.subr.bf16.mxu1 %v2614_v45  ;;  %1683 = vmatprep.mubr.bf16.mxu0 %v2112_v3  ;;  %v2660_v43 = vld [vmem:[%s3236_s1 + $0x3b0] sm:$0xff]   ;;  %v2662_v45 = vld [vmem:[%s3236_s1 + $0x3f8] sm:$0xff]  }
  0x53   : > { %1732 = vmatprep.mubr.bf16.mxu1 %v2114_v7  ;;  %v2668_v3 = vld [vmem:[%s3238_s3 + $0x18] sm:$0xff]  }
  0x54   : > { %2394 = vmatpush3.bf16.msra.mxu0 %v2615_v46  ;;  %v2663_v46 = vld [vmem:[%s3236_s1 + $0x338] sm:$0xff]  }
  0x55   : > { %2422 = vmatpush3.bf16.msra.mxu1 %v2616_v47  ;;  %2395 = vmatprep.subr.bf16.mxu0 %v2617_v48  ;;  %v2664_v47 = vld [vmem:[%s3236_s1 + $0x3b8] sm:$0xff]   ;;  %v238_v48 = vld [vmem:[%s2833_s19 + $0x30] sm:$0xff] }
  0x56   : > { %2423 = vmatprep.subr.bf16.mxu1 %v2618_v49  ;;  %v246_v49 = vld [vmem:[%s2833_s19 + $0x70] sm:$0xff]  ;;  %v2672_v7 = vld [vmem:[%s3238_s3 + $0x38] sm:$0xff]  }
  0x58   : > { %2396 = vmatpush3.bf16.msra.mxu0 %v2619_v50  ;;  %v239_v50 = vld [vmem:[%s2833_s19 + $0x38] sm:$0xff] }
  0x59   : > { %2424 = vmatpush3.bf16.msra.mxu1 %v2620_v51  ;;  %2397 = vmatprep.subr.bf16.mxu0 %v2621_v52  ;;  %v2115_v51 = vcombine.low %v238_v48, %v246_v49  ;;  %v2116_v52 = vcombine.high %v238_v48, %v246_v49 }
  0x5a   : > { %2425 = vmatprep.subr.bf16.mxu1 %v2622_v53  ;;  %v247_v53 = vld [vmem:[%s2833_s19 + $0x78] sm:$0xff] }
  0x5c   : > { %2398 = vmatpush3.bf16.msra.mxu0 %v2623_v54  ;;  %v254_v54 = vld [vmem:[%s2833_s19 + $0xb0] sm:$0xff] }
  0x5d   : > { %2426 = vmatpush3.bf16.msra.mxu1 %v2624_v55  ;;  %2399 = vmatprep.subr.bf16.mxu0 %v2625_v56  ;;  %v262_v55 = vld [vmem:[%s2833_s19 + $0xf0] sm:$0xff]  ;;  %v2117_v56 = vcombine.low %v239_v50, %v247_v53 }
  0x5e   : > { %2427 = vmatprep.subr.bf16.mxu1 %v2626_v57  ;;  %v2118_v57 = vcombine.high %v239_v50, %v247_v53 }
  0x60   : > { %2400 = vmatpush3.bf16.msra.mxu0 %v2627_v58  ;;  %v2132_v58 = vcombine.high %v254_v54, %v262_v55 }
  0x61   : > { %2428 = vmatpush3.bf16.msra.mxu1 %v2628_v59  ;;  %2401 = vmatprep.subr.bf16.mxu0 %v2629_v60  ;;  %v255_v59 = vld [vmem:[%s2833_s19 + $0xb8] sm:$0xff] }
  0x62   : > { %2429 = vmatprep.subr.bf16.mxu1 %v2630_v61  ;;  %v263_v60 = vld [vmem:[%s2833_s19 + $0xf8] sm:$0xff] }
  0x63   : > { %v2134_v61 = vcombine.high %v255_v59, %v263_v60 }
  0x64   : > { %2402 = vmatpush3.bf16.msra.mxu0 %v2631_v62  ;;  %v2131_v62 = vcombine.low %v254_v54, %v262_v55 }
  0x65   : > { %2430 = vmatpush3.bf16.msra.mxu1 %v2632_v63  ;;  %2443 = vmatprep.subr.bf16.mxu0 %v2633_v8  ;;  %v2133_v63 = vcombine.low %v255_v59, %v263_v60 }
  0x66   : > { %2471 = vmatprep.subr.bf16.mxu1 %v2634_v9 }
  0x67   : > { %1684 = vmatmul.mubr.bf16.vlgmr.msra.gmra.mrb[16].mxu0 %v2111_v2  ;;  %v2667_v2 = vld [vmem:[%s3238_s3 + $0x10] sm:$0xff]  }
  0x68   : > { %1733 = vmatmul.mubr.bf16.vlgmr.msra.gmra.mrb[16].mxu1 %v2113_v6  ;;  %2444 = vmatpush3.bf16.msra.mxu0 %v2635_v10  ;;  %v2671_v6 = vld [vmem:[%s3238_s3 + $0x30] sm:$0xff]   ;;  %v2102_v10 = vld [vmem:[%s3237_s2] ss:$0 sm:$0xff] }
  0x69   : > { %2472 = vmatpush3.bf16.msra.mxu1 %v2636_v11  ;;  %2445 = vmatprep.subr.bf16.mxu0 %v2637_v12 }
  0x6a   : > { %2473 = vmatprep.subr.bf16.mxu1 %v2638_v13  ;;  %1691 = vmatprep.mubr.bf16.mxu0 %v2128_v18 }
  0x6b   : > { %1740 = vmatprep.mubr.bf16.mxu1 %v2130_v24 }
  0x6c   : > { %2446 = vmatpush3.bf16.msra.mxu0 %v2639_v14 }
  0x6d   : > { %2474 = vmatpush3.bf16.msra.mxu1 %v2640_v15  ;;  %2447 = vmatprep.subr.bf16.mxu0 %v2641_v20 }
  0x6e   : > { %2475 = vmatprep.subr.bf16.mxu1 %v2642_v21 }
  0x6f   : > { %1692 = vmatmul.mubr.bf16.gmra.mrb[20].mxu0 %v2127_v19 }
  0x70   : > { %2448 = vmatpush3.bf16.msra.mxu0 %v2643_v25  ;;  %1741 = vmatmul.mubr.bf16.gmra.mrb[20].mxu1 %v2129_v26 }
  0x71   : > { %2476 = vmatpush3.bf16.msra.mxu1 %v2644_v27  ;;  %2449 = vmatprep.subr.bf16.mxu0 %v2645_v28 }
  0x72   : > { %2477 = vmatprep.subr.bf16.mxu1 %v2646_v29  ;;  %1781 = vmatprep.mubr.bf16.mxu0 %v2116_v52 }
  0x73   : > { %1830 = vmatprep.mubr.bf16.mxu1 %v2118_v57 }
  0x74   : > { %2450 = vmatpush3.bf16.msra.mxu0 %v2647_v30 }
  0x75   : > { %2478 = vmatpush3.bf16.msra.mxu1 %v2648_v31  ;;  %2451 = vmatprep.subr.bf16.mxu0 %v2649_v32 }
  0x76   : > { %2479 = vmatprep.subr.bf16.mxu1 %v2650_v33 }
  0x78   : > { %2452 = vmatpush3.bf16.msra.mxu0 %v2651_v34 }
  0x79   : > { %2480 = vmatpush3.bf16.msra.mxu1 %v2652_v35  ;;  %2453 = vmatprep.subr.bf16.mxu0 %v2653_v36 }
  0x7a   : > { %2481 = vmatprep.subr.bf16.mxu1 %v2654_v37 }
  0x7c   : > { %2454 = vmatpush3.bf16.msra.mxu0 %v2655_v38 }
  0x7d   : > { %2482 = vmatpush3.bf16.msra.mxu1 %v2656_v39  ;;  %2455 = vmatprep.subr.bf16.mxu0 %v2657_v40 }
  0x7e   : > { %2483 = vmatprep.subr.bf16.mxu1 %v2658_v41 }
  0x80   : > { %2456 = vmatpush3.bf16.msra.mxu0 %v2659_v42 }
  0x81   : > { %2484 = vmatpush3.bf16.msra.mxu1 %v2660_v43  ;;  %2457 = vmatprep.subr.bf16.mxu0 %v2661_v44 }
  0x82   : > { %2485 = vmatprep.subr.bf16.mxu1 %v2662_v45 }
  0x84   : > { %2458 = vmatpush3.bf16.msra.mxu0 %v2663_v46 }
  0x85   : > { %2486 = vmatpush3.bf16.msra.mxu1 %v2664_v47  ;;  %2509 = vmatprep.subr.bf16.mxu0 %v2665_v0 }
  0x87   : > { %1782 = vmatmul.mubr.bf16.vlgmr.msra.gmra.mrb[24].mxu0 %v2115_v51 }
  0x88   : > { %1831 = vmatmul.mubr.bf16.vlgmr.msra.gmra.mrb[24].mxu1 %v2117_v56  ;;  %1789 = vmatprep.mubr.bf16.mxu0 %v2132_v58 }
  0x89   : > { %1838 = vmatprep.mubr.bf16.mxu1 %v2134_v61  ;;  %2510 = vmatpush3.bf16.msra.mxu0 %v2665_v0 }
  0x8a   : > { %2511 = vmatprep.subr.bf16.mxu0 %v2666_v1 }
  0x8d   : > { %2512 = vmatpush3.bf16.msra.mxu0 %v2666_v1 }
  0x8e   : > { %2513 = vmatprep.subr.bf16.mxu0 %v2667_v2 }
  0x8f   : > { %1790 = vmatmul.mubr.bf16.gmra.mrb[28].mxu0 %v2131_v62 }
  0x90   : > { %1839 = vmatmul.mubr.bf16.gmra.mrb[28].mxu1 %v2133_v63 }
  0x91   : > { %2514 = vmatpush3.bf16.msra.mxu0 %v2667_v2 }
  0x92   : > { %2515 = vmatprep.subr.bf16.mxu0 %v2668_v3 }
  0x95   : > { %2516 = vmatpush3.bf16.msra.mxu0 %v2668_v3 }
  0x96   : > { %2517 = vmatprep.subr.bf16.mxu0 %v2669_v4 }
  0x99   : > { %2518 = vmatpush3.bf16.msra.mxu0 %v2669_v4 }
  0x9a   : > { %2519 = vmatprep.subr.bf16.mxu0 %v2670_v5 }
  0x9d   : > { %2520 = vmatpush3.bf16.msra.mxu0 %v2670_v5 }
  0x9e   : > { %2521 = vmatprep.subr.bf16.mxu0 %v2671_v6 }
  0xa1   : > { %2522 = vmatpush3.bf16.msra.mxu0 %v2671_v6 }
  0xa2   : > { %2523 = vmatprep.subr.bf16.mxu0 %v2672_v7 }
  0xa5   : > { %2524 = vmatpush3.bf16.msra.mxu0 %v2672_v7 }
  0xfa   : > { %v2291_v8 = vpop.f32.mrb[0].mxu0 }
  0xfb   : > { %v2319_v9 = vpop.f32.mrb[0].mxu1  ;;  %v2292_v11 = vpop.f32.mrb[1].mxu0 }
  0xfc   : > { %v2293_v12 = vadd.f32 %v2292_v11, %v2291_v8  ;;  %v2320_v13 = vpop.f32.mrb[1].mxu1  ;;  %v2294_v14 = vpop.f32.mrb[2].mxu0 }
  0xfd   : > { %v2321_v15 = vadd.f32 %v2320_v13, %v2319_v9  ;;  %v2322_v16 = vpop.f32.mrb[2].mxu1  ;;  %v2295_v17 = vpop.f32.mrb[3].mxu0 }
  0xfe   : > { %v1490_v18 = vadd.f32 %v2293_v12, %v2102_v10  ;;  %v2296_v19 = vadd.f32 %v2295_v17, %v2294_v14  ;;  %v2323_v20 = vpop.f32.mrb[3].mxu1 }
  0xff   : > { %v2324_v21 = vadd.f32 %v2323_v20, %v2322_v16 }
 0x100   : > { %v1539_v22 = vadd.f32 %v2321_v15, %v1490_v18  ;;  %v1493_v23 = vadd.f32 %v2296_v19, %v2102_v10 }
 0x102   : > { %v1542_v24 = vadd.f32 %v2324_v21, %v1493_v23  ;;  %v2297_v25 = vpop.f32.mrb[4].mxu0 }
 0x103   : > { %v2298_v26 = vpop.f32.mrb[5].mxu0  ;;  %v2325_v29 = vpop.f32.mrb[4].mxu1 }
 0x104   : > { %v2299_v27 = vadd.f32 %v2298_v26, %v2297_v25  ;;  %v2300_v28 = vpop.f32.mrb[6].mxu0  ;;  %v2326_v33 = vpop.f32.mrb[5].mxu1 }
 0x105   : > { %v2301_v30 = vpop.f32.mrb[7].mxu0  ;;  %v2327_v34 = vadd.f32 %v2326_v33, %v2325_v29  ;;  %v2328_v35 = vpop.f32.mrb[6].mxu1 }
 0x106   : > { %v1498_v31 = vadd.f32 %v2299_v27, %v2102_v10  ;;  %v2302_v32 = vadd.f32 %v2301_v30, %v2300_v28  ;;  %v2329_v37 = vpop.f32.mrb[7].mxu1 }
 0x107   : > { %v2330_v39 = vadd.f32 %v2329_v37, %v2328_v35 }
 0x108   : > { %v1501_v36 = vadd.f32 %v2302_v32, %v2102_v10  ;;  %v1547_v38 = vadd.f32 %v2327_v34, %v1498_v31 }
 0x10a   : > { %v1550_v40 = vadd.f32 %v2330_v39, %v1501_v36 }
 0x11a   : > { %v2347_v41 = vpop.f32.mrb[8].mxu0 }
 0x11b   : > { %v2375_v42 = vpop.f32.mrb[8].mxu1  ;;  %v2348_v43 = vpop.f32.mrb[9].mxu0 }
 0x11c   : > { %v2376_v44 = vpop.f32.mrb[9].mxu1  ;;  %v2349_v45 = vadd.f32 %v2348_v43, %v2347_v41  ;;  %v2350_v47 = vpop.f32.mrb[10].mxu0 }
 0x11d   : > { %v2377_v46 = vadd.f32 %v2376_v44, %v2375_v42  ;;  %v2378_v48 = vpop.f32.mrb[10].mxu1  ;;  %v2351_v49 = vpop.f32.mrb[11].mxu0 }
 0x11e   : > { %v2379_v50 = vpop.f32.mrb[11].mxu1  ;;  %v1588_v51 = vadd.f32 %v2349_v45, %v1539_v22  ;;  %v2352_v52 = vadd.f32 %v2351_v49, %v2350_v47 }
 0x11f   : > { %v2380_v53 = vadd.f32 %v2379_v50, %v2378_v48 }
 0x120   : > { %v1637_v54 = vadd.f32 %v2377_v46, %v1588_v51  ;;  %v1591_v55 = vadd.f32 %v2352_v52, %v1542_v24 }
 0x122   : > { %v1640_v56 = vadd.f32 %v2380_v53, %v1591_v55  ;;  %v2353_v57 = vpop.f32.mrb[12].mxu0 }
 0x123   : > { %v2354_v58 = vpop.f32.mrb[13].mxu0  ;;  %v2381_v63 = vpop.f32.mrb[12].mxu1 }
 0x124   : > { %v2355_v59 = vadd.f32 %v2354_v58, %v2353_v57  ;;  %v2356_v60 = vpop.f32.mrb[14].mxu0  ;;  %v2382_v1 = vpop.f32.mrb[13].mxu1 }
 0x125   : > { %v2357_v61 = vpop.f32.mrb[15].mxu0  ;;  %v2383_v3 = vadd.f32 %v2382_v1, %v2381_v63  ;;  %v2384_v4 = vpop.f32.mrb[14].mxu1 }
 0x126   : > { %v1596_v62 = vadd.f32 %v2355_v59, %v1547_v38  ;;  %v2358_v0 = vadd.f32 %v2357_v61, %v2356_v60  ;;  %v2385_v5 = vpop.f32.mrb[15].mxu1 }
 0x127   : > { %v2386_v7 = vadd.f32 %v2385_v5, %v2384_v4 }
 0x128   : > { %v1599_v2 = vadd.f32 %v2358_v0, %v1550_v40  ;;  %v1645_v6 = vadd.f32 %v2383_v3, %v1596_v62 }
 0x12a   : > { %v1648_v8 = vadd.f32 %v2386_v7, %v1599_v2 }
 0x13a   : > { %v2403_v9 = vpop.f32.mrb[16].mxu0 }
 0x13b   : > { %v2431_v10 = vpop.f32.mrb[16].mxu1  ;;  %v2404_v11 = vpop.f32.mrb[17].mxu0 }
 0x13c   : > { %v2405_v12 = vadd.f32 %v2404_v11, %v2403_v9  ;;  %v2432_v13 = vpop.f32.mrb[17].mxu1  ;;  %v2406_v14 = vpop.f32.mrb[18].mxu0 }
 0x13d   : > { %v2433_v15 = vadd.f32 %v2432_v13, %v2431_v10  ;;  %v2434_v16 = vpop.f32.mrb[18].mxu1  ;;  %v2407_v17 = vpop.f32.mrb[19].mxu0 }
 0x13e   : > { %v1686_v18 = vadd.f32 %v2405_v12, %v1637_v54  ;;  %v2408_v19 = vadd.f32 %v2407_v17, %v2406_v14  ;;  %v2435_v20 = vpop.f32.mrb[19].mxu1  ;;  %v2263_v17 = vld [vmem:[%s3239_s4] ss:$0 sm:$0xff] }
 0x13f   : > { %v2436_v21 = vadd.f32 %v2435_v20, %v2434_v16 }
 0x140   : > { %v1735_v22 = vadd.f32 %v2433_v15, %v1686_v18  ;;  %v1689_v23 = vadd.f32 %v2408_v19, %v1640_v56  ;;  %v1973_v15 = vlaneseq }
 0x142   : > { %v1738_v24 = vadd.f32 %v2436_v21, %v1689_v23  ;;  %v2409_v25 = vpop.f32.mrb[20].mxu0  ;;  %v3188_v16 = vand.u32 127, %v1973_v15 }
 0x143   : > { %v2410_v26 = vpop.f32.mrb[21].mxu0  ;;  %v2437_v29 = vpop.f32.mrb[20].mxu1 }
 0x144   : > { %v2411_v27 = vadd.f32 %v2410_v26, %v2409_v25  ;;  %v2412_v28 = vpop.f32.mrb[22].mxu0  ;;  %v2438_v33 = vpop.f32.mrb[21].mxu1  ;;  %vm1975_vm0 = vcmp.lt.s32.totalorder %v3188_v16, 41 }
 0x145   : > { %v2413_v30 = vpop.f32.mrb[23].mxu0  ;;  %v2439_v34 = vadd.f32 %v2438_v33, %v2437_v29  ;;  %v2440_v35 = vpop.f32.mrb[22].mxu1 }
 0x146   : > { %v1694_v31 = vadd.f32 %v2411_v27, %v1645_v6  ;;  %v2414_v32 = vadd.f32 %v2413_v30, %v2412_v28  ;;  %v2441_v37 = vpop.f32.mrb[23].mxu1 }
 0x147   : > { %v2442_v39 = vadd.f32 %v2441_v37, %v2440_v35 }
 0x148   : > { %v1697_v36 = vadd.f32 %v2414_v32, %v1648_v8  ;;  %v1743_v38 = vadd.f32 %v2439_v34, %v1694_v31 }
 0x14a   : > { %v1746_v40 = vadd.f32 %v2442_v39, %v1697_v36 }
 0x15a   : > { %v2459_v41 = vpop.f32.mrb[24].mxu0 }
 0x15b   : > { %v2487_v42 = vpop.f32.mrb[24].mxu1  ;;  %v2460_v43 = vpop.f32.mrb[25].mxu0 }
 0x15c   : > { %v2461_v44 = vadd.f32 %v2460_v43, %v2459_v41  ;;  %v2488_v45 = vpop.f32.mrb[25].mxu1  ;;  %v2462_v46 = vpop.f32.mrb[26].mxu0 }
 0x15d   : > { %v2489_v47 = vadd.f32 %v2488_v45, %v2487_v42  ;;  %v2490_v48 = vpop.f32.mrb[26].mxu1  ;;  %v2463_v49 = vpop.f32.mrb[27].mxu0 }
 0x15e   : > { %v1784_v50 = vadd.f32 %v2461_v44, %v1735_v22  ;;  %v2464_v51 = vadd.f32 %v2463_v49, %v2462_v46  ;;  %v2491_v52 = vpop.f32.mrb[27].mxu1 }
 0x15f   : > { %v2492_v53 = vadd.f32 %v2491_v52, %v2490_v48 }
 0x160   : > { %v1833_v54 = vadd.f32 %v2489_v47, %v1784_v50  ;;  %v1787_v55 = vadd.f32 %v2464_v51, %v1738_v24 }
 0x162   : > { %v1836_v56 = vadd.f32 %v2492_v53, %v1787_v55  ;;  %v2465_v57 = vpop.f32.mrb[28].mxu0  ;;  %v1847_v60 = vmax.f32 %v1833_v54, 0.0 }
 0x163   : > { %v2493_v58 = vpop.f32.mrb[28].mxu1  ;;  %v2466_v59 = vpop.f32.mrb[29].mxu0 }
 0x164   : > { %v1848_v61 = vmax.f32 %v1836_v56, 0.0  ;;  %v2467_v62 = vadd.f32 %v2466_v59, %v2465_v57  ;;  %v2494_v63 = vpop.f32.mrb[29].mxu1  ;;  %v2468_v0 = vpop.f32.mrb[30].mxu0 }
 0x165   : > { %v2495_v1 = vadd.f32 %v2494_v63, %v2493_v58  ;;  %v2496_v2 = vpop.f32.mrb[30].mxu1  ;;  %v2469_v3 = vpop.f32.mrb[31].mxu0 }
 0x166   : > { %v1792_v4 = vadd.f32 %v2467_v62, %v1743_v38  ;;  %v2470_v5 = vadd.f32 %v2469_v3, %v2468_v0  ;;  %v2497_v6 = vpop.f32.mrb[31].mxu1  ;;  %v1851_v7 = vpack.c.bf16 %v1848_v61, %v1847_v60 }
 0x167   : > { %v2498_v8 = vadd.f32 %v2497_v6, %v2496_v2 }
 0x168   : > { %v1841_v9 = vadd.f32 %v2495_v1, %v1792_v4  ;;  %v1795_v10 = vadd.f32 %v2470_v5, %v1746_v40  ;;  %2525 = vmatprep.mubr.bf16.mxu0 %v1851_v7 }
 0x16a   : > { %v1844_v11 = vadd.f32 %v2498_v8, %v1795_v10  ;;  %v1849_v12 = vmax.f32 %v1841_v9, 0.0 }
 0x16c   : > { %v1850_v13 = vmax.f32 %v1844_v11, 0.0 }
 0x16e   : > { %v1852_v14 = vpack.c.bf16 %v1850_v13, %v1849_v12 }
 0x170   : > { %2526 = vmatmul.mubr.bf16.vlgmr.msra.gmra.mrb[32].mxu0 %v1852_v14 }
 0x243   : > { %v2527_v18 = vpop.f32.mrb[32].mxu0 }
 0x244   : > { %v1967_v19 = vadd.f32 %v2527_v18, %v2263_v17  ;;  %v1958_v20 = vpop.f32.mrb[33].mxu0 }
 0x245   : > { %v1959_v21 = vadd.f32 %v2263_v17, %v1958_v20  ;;  %v2528_v22 = vpop.f32.mrb[34].mxu0 }
 0x246   : > { %v1970_v23 = vadd.f32 %v2528_v22, %v2263_v17  ;;  %v1961_v24 = vpop.f32.mrb[35].mxu0  ;;  %v3196_v25 = vsel %vm1975_vm0, %v1967_v19, -inf }
 0x247   : > { %v1962_v26 = vadd.f32 %v2263_v17, %v1961_v24  ;;  %1984 = vmax.xlane.f32.xlu1 %v3196_v25  ;;  %v1976_v27 = vsel %vm1975_vm0, %v1959_v21, -inf }
 0x248   : > { %1980 = vmax.xlane.f32.xlu0 %v1976_v27  ;;  %v3203_v28 = vsel %vm1975_vm0, %v1970_v23, -inf }
 0x249   : > { %v1977_v29 = vsel %vm1975_vm0, %v1962_v26, -inf }
 0x24b   : > { %1986 = vmax.xlane.f32.xlu1 %v3203_v28 }
 0x24c   : > { %1982 = vmax.xlane.f32.xlu0 %v1977_v29 }
 0x2d4   : > { %v1985_v30 = vpop.xlane.xlu1 %1984 }
 0x2d5   : > { %v1990_v31 = vsub.f32 %v3196_v25, %v1985_v30  ;;  %v1981_v32 = vpop.xlane.xlu0 %1980 }
 0x2d6   : > { %v1988_v33 = vsub.f32 %v1976_v27, %v1981_v32 }
 0x2d7   : > { %v1996_v34 = vmul.f32 1.442695, %v1990_v31 }
 0x2d8   : > { %v1992_v35 = vmul.f32 1.442695, %v1988_v33  ;;  %v1987_v36 = vpop.xlane.xlu1 %1986 }
 0x2d9   : > { %v1991_v37 = vsub.f32 %v3203_v28, %v1987_v36  ;;  %v1983_v38 = vpop.xlane.xlu0 %1982 }
 0x2da   : > { %2673 = vpow2.f32 %v1992_v35  ;;  %v1989_v39 = vsub.f32 %v1977_v29, %v1983_v38 }
 0x2db   : > { %2675 = vpow2.f32 %v1996_v34  ;;  %v1998_v40 = vmul.f32 1.442695, %v1991_v37 }
 0x2dc   : > { %v1994_v41 = vmul.f32 1.442695, %v1989_v39 }
 0x2de   : > { %2677 = vpow2.f32 %v1994_v41 }
 0x2df   : > { %2679 = vpow2.f32 %v1998_v40 }
 0x2e4   : > { %v2674_v42 = vpop.eup %2673 }
 0x2e5   : > { %v2000_v43 = vsel %vm1975_vm0, %v2674_v42, 0.0  ;;  %v2676_v44 = vpop.eup %2675 }
 0x2e6   : > { %2004 = vadd.xlane.f32.xlu0 %v2000_v43  ;;  %v2002_v46 = vsel %vm1975_vm0, %v2676_v44, 0.0 }
 0x2e8   : > { %v2678_v45 = vpop.eup %2677 }
 0x2e9   : > { %v2001_v47 = vsel %vm1975_vm0, %v2678_v45, 0.0  ;;  %v2680_v48 = vpop.eup %2679 }
 0x2ea   : > { %2008 = vadd.xlane.f32.xlu0 %v2002_v46  ;;  %2006 = vadd.xlane.f32.xlu1 %v2001_v47  ;;  %v2003_v49 = vsel %vm1975_vm0, %v2680_v48, 0.0 }
 0x2ee   : > { %2010 = vadd.xlane.f32.xlu1 %v2003_v49 }
 0x373   : > { %v2005_v50 = vpop.xlane.xlu0 %2004 }
 0x374   : > { %2681 = vlog2.f32 %v2005_v50 }
 0x377   : > { %v2007_v51 = vpop.xlane.xlu1 %2006  ;;  %v2009_v52 = vpop.xlane.xlu0 %2008 }
 0x378   : > { %2683 = vlog2.f32 %v2007_v51 }
 0x379   : > { %2685 = vlog2.f32 %v2009_v52 }
 0x37b   : > { %v2011_v53 = vpop.xlane.xlu1 %2010 }
 0x37c   : > { %2687 = vlog2.f32 %v2011_v53 }
 0x37e   : > { %v2682_v54 = vpop.eup %2681 }
 0x37f   : > { %v2013_v55 = vmul.f32 0.6931472, %v2682_v54 }
 0x381   : > { %v2020_v56 = vadd.f32 %v2013_v55, %v1981_v32 }
 0x382   : > { %v2684_v57 = vpop.eup %2683 }
 0x383   : > { %v2686_v58 = vpop.eup %2685  ;;  %v2024_v59 = vsub.f32 %v1976_v27, %v2020_v56  ;;  %v2015_v60 = vmul.f32 0.6931472, %v2684_v57 }
 0x384   : > { %v2017_v61 = vmul.f32 0.6931472, %v2686_v58 }
 0x385   : > { %v2028_v62 = vsel %vm1975_vm0, %v2024_v59, 0.0  ;;  %v2021_v63 = vadd.f32 %v2015_v60, %v1983_v38 }
 0x386   : > { %v2688_v0 = vpop.eup %2687  ;;  %2032 = vst [vmem:[%s229_s11] sm:$0xff] %v2028_v62  ;;  %v2022_v1 = vadd.f32 %v2017_v61, %v1985_v30 }
 0x387   : > { %v2025_v2 = vsub.f32 %v1977_v29, %v2021_v63  ;;  %v2019_v3 = vmul.f32 0.6931472, %v2688_v0 }
 0x388   : > { %v2026_v4 = vsub.f32 %v3196_v25, %v2022_v1 }
 0x389   : > { %v2029_v5 = vsel %vm1975_vm0, %v2025_v2, 0.0  ;;  %v2023_v6 = vadd.f32 %v2019_v3, %v1987_v36 }
 0x38a   : > { %2033 = vst [vmem:[%s229_s11 + $0x8] sm:$0xff] %v2029_v5  ;;  %v2030_v7 = vsel %vm1975_vm0, %v2026_v4, 0.0 }
 0x38b   : > { %2034 = vst [vmem:[%s229_s11 + $0x10] sm:$0xff] %v2030_v7  ;;  %v2027_v8 = vsub.f32 %v3203_v28, %v2023_v6 }
 0x38d   : > { %v2031_v9 = vsel %vm1975_vm0, %v2027_v8, 0.0 }
 0x38e   : > { %2035 = vst [vmem:[%s229_s11 + $0x18] sm:$0xff] %v2031_v9 }
 0x38f PF: > { %s15_s18 = sadd.s32 1, %s2695_s18  }
 0x390   : > { %p12_p4 = scmp.ge.s32.totalorder %s15_s18, 4  }
 0x392   :  { %14 = sbr.rel (!%p12_p4) target bundleno = 1 (0x1), region = 70 }

</bundles_post_ra>
